<compile_context>
chip_gen: v7x
topology: tpu7x:2x2x1
jax: 0.10.0
libtpu: 0.0.40
codegen_flags: <defaults>
</compile_context>

<pallas_src>
import numpy as np
import jax
import jax.numpy as jnp
from jax import lax
from jax.experimental import pallas as pl
from jax.experimental.pallas import tpu as pltpu

# ---- module constants (from SOLOV2Mask.__init__) ----------------------------
NUM_LEVELS = 5
MASK_STRIDE = 4
CLS_OUT_CHANNELS = 80
KERNEL_OUT_CHANNELS = 128
NUM_GRIDS = [40, 36, 24, 16, 12]
STRIDES = [8, 8, 16, 32, 32]
IMG_SHAPE = (320, 320)

NMS_PRE = 500
MAX_NUM = 100
SIGMA = 2.0
FILTER_THR = 0.05

LANE = 128


def _round_up(x, m):
    return ((x + m - 1) // m) * m


# =============================================================================
# Kernel 1: point NMS  (sigmoid + 2x2/stride-1 local-max suppression)
#   bf16 I/O, one grid step per level (B images per block), f32 math inside.
# =============================================================================
def _point_nms_kernel(x_ref, o_ref):
    # x_ref block: (B, Gmax+1, Gmax+1, 128) bf16 raw logits, -1e9 padded on top/left
    # (and bottom/right/channels for the smaller levels).
    nb = x_ref.shape[0]
    for b in range(nb):                               # static unroll over images
        s = jax.nn.sigmoid(x_ref[b].astype(jnp.float32))   # (Gmax+1, Gmax+1, 128) f32
        c = s[1:, 1:, :]                                    # center (Gmax, Gmax, 128)
        m = jnp.maximum(jnp.maximum(s[:-1, :-1, :], s[:-1, 1:, :]),
                        jnp.maximum(s[1:, :-1, :], c))      # causal 2x2 max
        o_ref[b] = jnp.where(m == c, c, 0.0).astype(o_ref.dtype)


def point_nms_all(mlvl_cls_scores):
    """All levels & images in one pallas_call (grid = NUM_LEVELS, B images per step).

    Input: list of (B, 80, g, g) raw logits.
    Output: (NUM_LEVELS*B, Gmax, Gmax, 128) bf16 suppressed sigmoid scores; the valid
    region for level l / image b is out[l*B + b, :g_l, :g_l, :CLS_OUT_CHANNELS].
    """
    B = int(mlvl_cls_scores[0].shape[0])
    Gmax = max(NUM_GRIDS)
    slabs = []
    for cs, g in zip(mlvl_cls_scores, NUM_GRIDS):
        x = jnp.transpose(cs, (0, 2, 3, 1)).astype(jnp.bfloat16)         # (B, g, g, 80)
        x = jnp.pad(x,
                    ((0, 0), (1, Gmax - g), (1, Gmax - g),
                     (0, LANE - CLS_OUT_CHANNELS)),
                    constant_values=-1e9)
        slabs.append(x)
    xp = jnp.concatenate(slabs, axis=0)                                  # (5B, 41, 41, 128) bf16
    n = NUM_LEVELS * B
    return pl.pallas_call(
        _point_nms_kernel,
        out_shape=jax.ShapeDtypeStruct((n, Gmax, Gmax, LANE), jnp.bfloat16),
        grid=(NUM_LEVELS,),
        in_specs=[pl.BlockSpec((B, Gmax + 1, Gmax + 1, LANE), lambda l: (l, 0, 0, 0))],
        out_specs=pl.BlockSpec((B, Gmax, Gmax, LANE), lambda l: (l, 0, 0, 0)),
        compiler_params=pltpu.CompilerParams(dimension_semantics=("parallel",)),
    )(xp)


# =============================================================================
# Kernel 2: dynamic 1x1 conv + sigmoid, FUSED with threshold / per-row sums
#   pred      = sigmoid(K @ F)              (written back as bf16 -- the ONLY big output)
#   mask      = (K @ F > 0)                 (== pred > 0.5, never written to HBM)
#   sum_masks = sum(mask, HW)               (f32, per row)
#   numer     = sum(pred * mask, HW)        (f32, per row; mask-score numerator)
# =============================================================================
def _dynconv_fused_kernel(k_ref, f_ref, pred_ref, sum_ref, num_ref):
    acc = jnp.dot(k_ref[...], f_ref[...], preferred_element_type=jnp.float32)  # (TN, HWpad)
    mask = (acc > 0.0).astype(jnp.float32)     # == sigmoid(acc) > 0.5; exact, EUP-free,
                                               # and padded (zero) columns are excluded
    pred = jax.nn.sigmoid(acc)
    pred_ref[...] = pred.astype(jnp.bfloat16)
    sum_ref[...] = jnp.sum(mask, axis=1, keepdims=True)
    num_ref[...] = jnp.sum(pred * mask, axis=1, keepdims=True)


def dyn_conv_fused(kernels, feats_flat):
    """kernels: (N, C); feats_flat: (C, HW).

    Returns (pred[N,HW] bf16, sum_masks[N] f32, numer[N] f32).
    """
    N, C = int(kernels.shape[0]), int(kernels.shape[1])
    HW = int(feats_flat.shape[1])
    TN = 128
    Npad = _round_up(max(N, 1), TN)
    Cpad = _round_up(C, LANE)
    HWpad = _round_up(HW, LANE)
    k = jnp.pad(kernels.astype(jnp.bfloat16), ((0, Npad - N), (0, Cpad - C)))
    f = jnp.pad(feats_flat.astype(jnp.bfloat16), ((0, Cpad - C), (0, HWpad - HW)))
    pred, sum_m, num = pl.pallas_call(
        _dynconv_fused_kernel,
        out_shape=(
            jax.ShapeDtypeStruct((Npad, HWpad), jnp.bfloat16),
            jax.ShapeDtypeStruct((Npad, 1), jnp.float32),
            jax.ShapeDtypeStruct((Npad, 1), jnp.float32),
        ),
        grid=(Npad // TN,),
        in_specs=[pl.BlockSpec((TN, Cpad), lambda i: (i, 0)),
                  pl.BlockSpec((Cpad, HWpad), lambda i: (0, 0))],   # F resident across rows
        out_specs=(pl.BlockSpec((TN, HWpad), lambda i: (i, 0)),
                   pl.BlockSpec((TN, 1), lambda i: (i, 0)),
                   pl.BlockSpec((TN, 1), lambda i: (i, 0))),
        compiler_params=pltpu.CompilerParams(dimension_semantics=("parallel",)),
    )(k, f)
    return pred[:N, :HW], sum_m[:N, 0], num[:N, 0]


# =============================================================================
# Kernel 3: mask intersection matrix  M @ M^T  (for matrix NMS)
#   Takes the bf16 pred slab; the 0/1 mask is recomputed in-register (> 0.5).
#   RHS passed once as a full resident block.
# =============================================================================
def _inter_kernel(a_ref, b_ref, o_ref):
    a = (a_ref[...] > 0.5).astype(jnp.bfloat16)
    b = (b_ref[...] > 0.5).astype(jnp.bfloat16)
    o_ref[...] = lax.dot_general(
        a, b,
        dimension_numbers=(((1,), (1,)), ((), ())),
        preferred_element_type=jnp.float32)


def mask_inter_matrix(pred_flat):
    """pred_flat: (N, HW) bf16 sigmoid probabilities -> (N, N) intersection matrix (f32)."""
    N, HW = int(pred_flat.shape[0]), int(pred_flat.shape[1])
    if N == 0:
        return jnp.zeros((0, 0), jnp.float32)
    TB = 128
    Npad = _round_up(N, TB)
    HWpad = _round_up(HW, LANE)
    m = jnp.pad(pred_flat.astype(jnp.bfloat16), ((0, Npad - N), (0, HWpad - HW)))
    out = pl.pallas_call(
        _inter_kernel,
        out_shape=jax.ShapeDtypeStruct((Npad, Npad), jnp.float32),
        grid=(Npad // TB,),
        in_specs=[pl.BlockSpec((TB, HWpad), lambda i: (i, 0)),
                  pl.BlockSpec((Npad, HWpad), lambda i: (0, 0))],   # full RHS, DMA'd once
        out_specs=pl.BlockSpec((TB, Npad), lambda i: (i, 0)),
        compiler_params=pltpu.CompilerParams(dimension_semantics=("parallel",)),
    )(m, m)
    return out[:N, :N]


# =============================================================================
# mask_matrix_nms (eager JAX glue; heavy matmul done in Pallas kernel 3).
# The intersection matrix is computed on the pre-sort row order and the small (N, N)
# result is permuted, avoiding the (N, HW) gather by sort order.  The reordered masks
# returned by the PyTorch reference are never used by the caller, so only
# (scores, labels, keep_inds) are returned.
# =============================================================================
def mask_matrix_nms(pred_flat, labels, scores, mask_area):
    inter_full = mask_inter_matrix(pred_flat)                         # Pallas matmul, pre-sort

    sort_inds = jnp.argsort(-scores)
    sort_inds = sort_inds[:NMS_PRE]
    keep_inds = sort_inds
    scores = scores[sort_inds]
    mask_area = mask_area[sort_inds]
    labels = labels[sort_inds]

    num_masks = int(labels.shape[0])
    inter_matrix = inter_full[sort_inds][:, sort_inds]                # small (N,N) permute

    expanded_area = jnp.broadcast_to(mask_area[None, :], (num_masks, num_masks))
    iou_matrix = jnp.triu(inter_matrix / (expanded_area + expanded_area.T - inter_matrix), k=1)
    expanded_labels = jnp.broadcast_to(labels[None, :], (num_masks, num_masks))
    label_matrix = jnp.triu((expanded_labels == expanded_labels.T).astype(jnp.float32), k=1)

    if num_masks != 0:
        compensate_iou = (iou_matrix * label_matrix).max(axis=0)
    else:
        compensate_iou = jnp.zeros((0,), jnp.float32)
    compensate_iou = jnp.broadcast_to(compensate_iou[None, :], (num_masks, num_masks)).T

    decay_iou = iou_matrix * label_matrix
    decay_matrix = jnp.exp(-SIGMA * decay_iou ** 2)
    compensate_matrix = jnp.exp(-SIGMA * compensate_iou ** 2)
    if num_masks != 0:
        decay_coefficient = (decay_matrix / compensate_matrix).min(axis=0)
    else:
        decay_coefficient = jnp.zeros((0,), jnp.float32)

    scores = scores * decay_coefficient
    keep = scores >= FILTER_THR
    keep_inds = keep_inds[keep]
    scores = scores[keep]
    labels = labels[keep]

    sort2 = jnp.argsort(-scores)
    sort2 = sort2[:MAX_NUM]
    scores = scores[sort2]
    keep_inds = keep_inds[sort2]
    labels = labels[sort2]
    return scores, labels, keep_inds


# =============================================================================
# _get_results_single
# =============================================================================
def _build_strides_vector():
    total = sum(g * g for g in NUM_GRIDS)
    li = np.cumsum(np.array(NUM_GRIDS, np.int64) ** 2)
    sf = np.ones(total, np.float32)
    sf[:li[0]] *= STRIDES[0]
    for lvl in range(NUM_LEVELS - 1):
        sf[li[lvl]:li[lvl + 1]] *= STRIDES[lvl + 1]
    return jnp.asarray(sf)


_STRIDES_FULL = _build_strides_vector()


def get_results_single(kernel_preds, cls_scores, mask_feats):
    """kernel_preds: (sumG2, 128), cls_scores: (sumG2, 80) bf16, mask_feats: (128, Hm, Wm)."""
    Hm, Wm = int(mask_feats.shape[-2]), int(mask_feats.shape[-1])
    HW = Hm * Wm
    h, w = IMG_SHAPE
    upsampled = (Hm * MASK_STRIDE, Wm * MASK_STRIDE)

    score_mask = cls_scores > 0.1
    sel_scores = cls_scores[score_mask].astype(jnp.float32)
    inds = jnp.stack(jnp.nonzero(score_mask), axis=1)          # (N, 2)
    cls_labels = inds[:, 1].astype(jnp.int32)
    sel_kernels = kernel_preds[inds[:, 0]]
    strides_sel = _STRIDES_FULL[inds[:, 0]]

    N = int(sel_kernels.shape[0])
    if N != 0:
        feats_flat = mask_feats.reshape(KERNEL_OUT_CHANNELS, HW)
        pred_flat, sum_masks, numer = dyn_conv_fused(sel_kernels, feats_flat)
        keep = sum_masks > strides_sel
        pred_flat = pred_flat[keep]                            # (Nk, HW) bf16
        sum_masks = sum_masks[keep]
        sel_scores = sel_scores[keep]
        cls_labels = cls_labels[keep]
        mask_scores = numer[keep] / sum_masks
        sel_scores = sel_scores * mask_scores
    else:
        pred_flat = jnp.zeros((0, HW), jnp.bfloat16)
        cls_labels = jnp.zeros((0,), jnp.int32)
        sel_scores = jnp.zeros((0,), jnp.float32)
        sum_masks = jnp.zeros((0,), jnp.float32)

    scores, labels, keep_inds = mask_matrix_nms(pred_flat, cls_labels, sel_scores, sum_masks)
    mask_preds = pred_flat[keep_inds].astype(jnp.float32).reshape(-1, Hm, Wm)

    nk = int(mask_preds.shape[0])
    if nk != 0:
        mp = jax.image.resize(mask_preds[None], (1, nk, upsampled[0], upsampled[1]),
                              method="bilinear")
        mp = mp[:, :, :h, :w]
        mp = jax.image.resize(mp, (1, nk, h, w), method="bilinear")[0]
    else:
        mp = jnp.zeros((0, h, w), jnp.float32)

    out_masks = mp > 0.5
    return out_masks, labels, scores


# =============================================================================
# SOLOV2Mask.forward
# =============================================================================
def solov2_mask_forward(mlvl_kernel_preds, mlvl_cls_scores, mask_feats):
    B = int(mlvl_kernel_preds[0].shape[0])
    nms_all = point_nms_all(mlvl_cls_scores)     # (5B, 40, 40, 128) bf16, one Pallas call

    results = []
    for img_id in range(B):
        img_cls_pred = jnp.concatenate(
            [nms_all[l * B + img_id, :g, :g, :CLS_OUT_CHANNELS].reshape(-1, CLS_OUT_CHANNELS)
             for l, g in enumerate(NUM_GRIDS)], axis=0)
        img_kernel_pred = jnp.concatenate(
            [jnp.transpose(mlvl_kernel_preds[l][img_id], (1, 2, 0)).reshape(-1, KERNEL_OUT_CHANNELS)
             for l in range(NUM_LEVELS)], axis=0)
        results.append(get_results_single(img_kernel_pred, img_cls_pred, mask_feats[img_id]))
    return results


# =============================================================================
if __name__ == "__main__":
    key = jax.random.PRNGKey(0)
    B, Hm, Wm = 2, 32, 32
    keys = jax.random.split(key, 2 * NUM_LEVELS + 1)

    # raw cls logits biased negative so only a sparse set of candidates passes the 0.1 threshold
    mlvl_cls_scores = [
        jax.random.normal(keys[i], (B, CLS_OUT_CHANNELS, g, g), jnp.float32) - 5.5
        for i, g in enumerate(NUM_GRIDS)
    ]
    mlvl_kernel_preds = [
        jax.random.normal(keys[NUM_LEVELS + i], (B, KERNEL_OUT_CHANNELS, g, g), jnp.float32) * 0.1
        for i, g in enumerate(NUM_GRIDS)
    ]
    mask_feats = jax.random.normal(keys[-1], (B, KERNEL_OUT_CHANNELS, Hm, Wm), jnp.float32)

    results = solov2_mask_forward(mlvl_kernel_preds, mlvl_cls_scores, mask_feats)
    for masks, labels, scores in results:
        jax.block_until_ready((masks, labels, scores))
    print("KERNEL_OK")
</pallas_src>

<mosaic_0001>
module attributes {stable_mosaic.version = 11 : i64} {
  func.func @_point_nms_kernel(%arg0: i32, %arg1: memref<2x41x41x128xbf16, #tpu.memory_space<vmem>>, %arg2: memref<2x40x40x128xbf16, #tpu.memory_space<vmem>>) attributes {dimension_semantics = [#tpu.dimension_semantics<parallel>], iteration_bounds = array<i64: 5>, scalar_prefetch = 0 : i64, scratch_operands = 0 : i64, tpu.core_type = #tpu.core_type<tc>, window_params = [{transform_indices = @transform_0, window_bounds = array<i64: 2, 41, 41, 128>}, {transform_indices = @transform_1, window_bounds = array<i64: 2, 40, 40, 128>}]} {
    %c0 = arith.constant 0 : index
    %c0_0 = arith.constant 0 : index
    %c0_1 = arith.constant 0 : index
    %c0_2 = arith.constant 0 : index
    %0 = vector.load %arg1[%c0, %c0_0, %c0_1, %c0_2] : memref<2x41x41x128xbf16, #tpu.memory_space<vmem>>, vector<1x41x41x128xbf16>
    %1 = vector.shape_cast %0 : vector<1x41x41x128xbf16> to vector<41x41x128xbf16>
    %2 = arith.extf %1 : vector<41x41x128xbf16> to vector<41x41x128xf32>
    %3 = arith.negf %2 : vector<41x41x128xf32>
    %4 = math.exp %3 : vector<41x41x128xf32>
    %cst = arith.constant 1.000000e+00 : f32
    %5 = vector.broadcast %cst : f32 to vector<41x41x128xf32>
    %6 = arith.addf %5, %4 : vector<41x41x128xf32>
    %7 = arith.divf %5, %6 : vector<41x41x128xf32>
    %8 = vector.extract_strided_slice %7 {offsets = [1, 1, 0], sizes = [40, 40, 128], strides = [1, 1, 1]} : vector<41x41x128xf32> to vector<40x40x128xf32>
    %9 = vector.extract_strided_slice %7 {offsets = [0, 0, 0], sizes = [40, 40, 128], strides = [1, 1, 1]} : vector<41x41x128xf32> to vector<40x40x128xf32>
    %10 = vector.extract_strided_slice %7 {offsets = [0, 1, 0], sizes = [40, 40, 128], strides = [1, 1, 1]} : vector<41x41x128xf32> to vector<40x40x128xf32>
    %11 = arith.maximumf %9, %10 : vector<40x40x128xf32>
    %12 = vector.extract_strided_slice %7 {offsets = [1, 0, 0], sizes = [40, 40, 128], strides = [1, 1, 1]} : vector<41x41x128xf32> to vector<40x40x128xf32>
    %13 = arith.maximumf %12, %8 : vector<40x40x128xf32>
    %14 = arith.maximumf %11, %13 : vector<40x40x128xf32>
    %15 = arith.cmpf oeq, %14, %8 : vector<40x40x128xf32>
    %cst_3 = arith.constant 0.000000e+00 : f32
    %16 = vector.broadcast %cst_3 : f32 to vector<40x40x128xf32>
    %17 = arith.select %15, %8, %16 : vector<40x40x128xi1>, vector<40x40x128xf32>
    %18 = arith.truncf %17 : vector<40x40x128xf32> to vector<40x40x128xbf16>
    %c0_4 = arith.constant 0 : index
    %c0_5 = arith.constant 0 : index
    %c0_6 = arith.constant 0 : index
    %c0_7 = arith.constant 0 : index
    %19 = vector.load %arg2[%c0_4, %c0_5, %c0_6, %c0_7] : memref<2x40x40x128xbf16, #tpu.memory_space<vmem>>, vector<1x40x40x128xbf16>
    %20 = vector.shape_cast %19 : vector<1x40x40x128xbf16> to vector<40x40x128xbf16>
    %21 = vector.shape_cast %18 : vector<40x40x128xbf16> to vector<1x40x40x128xbf16>
    tpu.vector_store %arg2[%c0_4, %c0_5, %c0_6, %c0_7], %21 {strides = array<i32>} : memref<2x40x40x128xbf16, #tpu.memory_space<vmem>>, vector<1x40x40x128xbf16>,
    %c1 = arith.constant 1 : index
    %c0_8 = arith.constant 0 : index
    %c0_9 = arith.constant 0 : index
    %c0_10 = arith.constant 0 : index
    %22 = vector.load %arg1[%c1, %c0_8, %c0_9, %c0_10] : memref<2x41x41x128xbf16, #tpu.memory_space<vmem>>, vector<1x41x41x128xbf16>
    %23 = vector.shape_cast %22 : vector<1x41x41x128xbf16> to vector<41x41x128xbf16>
    %24 = arith.extf %23 : vector<41x41x128xbf16> to vector<41x41x128xf32>
    %25 = arith.negf %24 : vector<41x41x128xf32>
    %26 = math.exp %25 : vector<41x41x128xf32>
    %cst_11 = arith.constant 1.000000e+00 : f32
    %27 = vector.broadcast %cst_11 : f32 to vector<41x41x128xf32>
    %28 = arith.addf %27, %26 : vector<41x41x128xf32>
    %29 = arith.divf %27, %28 : vector<41x41x128xf32>
    %30 = vector.extract_strided_slice %29 {offsets = [1, 1, 0], sizes = [40, 40, 128], strides = [1, 1, 1]} : vector<41x41x128xf32> to vector<40x40x128xf32>
    %31 = vector.extract_strided_slice %29 {offsets = [0, 0, 0], sizes = [40, 40, 128], strides = [1, 1, 1]} : vector<41x41x128xf32> to vector<40x40x128xf32>
    %32 = vector.extract_strided_slice %29 {offsets = [0, 1, 0], sizes = [40, 40, 128], strides = [1, 1, 1]} : vector<41x41x128xf32> to vector<40x40x128xf32>
    %33 = arith.maximumf %31, %32 : vector<40x40x128xf32>
    %34 = vector.extract_strided_slice %29 {offsets = [1, 0, 0], sizes = [40, 40, 128], strides = [1, 1, 1]} : vector<41x41x128xf32> to vector<40x40x128xf32>
    %35 = arith.maximumf %34, %30 : vector<40x40x128xf32>
    %36 = arith.maximumf %33, %35 : vector<40x40x128xf32>
    %37 = arith.cmpf oeq, %36, %30 : vector<40x40x128xf32>
    %cst_12 = arith.constant 0.000000e+00 : f32
    %38 = vector.broadcast %cst_12 : f32 to vector<40x40x128xf32>
    %39 = arith.select %37, %30, %38 : vector<40x40x128xi1>, vector<40x40x128xf32>
    %40 = arith.truncf %39 : vector<40x40x128xf32> to vector<40x40x128xbf16>
    %c1_13 = arith.constant 1 : index
    %c0_14 = arith.constant 0 : index
    %c0_15 = arith.constant 0 : index
    %c0_16 = arith.constant 0 : index
    %41 = vector.load %arg2[%c1_13, %c0_14, %c0_15, %c0_16] : memref<2x40x40x128xbf16, #tpu.memory_space<vmem>>, vector<1x40x40x128xbf16>
    %42 = vector.shape_cast %41 : vector<1x40x40x128xbf16> to vector<40x40x128xbf16>
    %43 = vector.shape_cast %40 : vector<40x40x128xbf16> to vector<1x40x40x128xbf16>
    tpu.vector_store %arg2[%c1_13, %c0_14, %c0_15, %c0_16], %43 {strides = array<i32>} : memref<2x40x40x128xbf16, #tpu.memory_space<vmem>>, vector<1x40x40x128xbf16>,
    return
  }
  func.func @transform_0(%arg0: i32) -> (i32, i32, i32, i32) {
    %c0_i32 = arith.constant 0 : i32
    %c0_i32_0 = arith.constant 0 : i32
    %c0_i32_1 = arith.constant 0 : i32
    %c0_i32_2 = arith.constant 0 : i32
    return %arg0, %c0_i32, %c0_i32_0, %c0_i32_1 : i32, i32, i32, i32
  }
  func.func @transform_1(%arg0: i32) -> (i32, i32, i32, i32) {
    %c0_i32 = arith.constant 0 : i32
    %c0_i32_0 = arith.constant 0 : i32
    %c0_i32_1 = arith.constant 0 : i32
    %c0_i32_2 = arith.constant 0 : i32
    return %arg0, %c0_i32, %c0_i32_0, %c0_i32_1 : i32, i32, i32, i32
  }
}

</mosaic_0001>

<bundles_post_ra>
// kernel: tpu_custom_call.1
= control target key start
LH: loop header
LB: loop body
LE: loop exit
PB: predicated region body
PF: predicated region fallthrough
CT: control target
= control target key end

     0   :  { %6 = vsyncpa [#allocation3], 0  ;;  %s19963_s0 = inlined_call_operand.hbm [shape: bf16[10,41,41,128], index: 0, kind: input, shape index: {}]   ;;  %s19964_s1 = inlined_call_operand.hbm [shape: bf16[10,40,40,128], index: 1, kind: output, shape index: {}]  }
   0x1   :  { %8 = vsyncpa [#allocation3 + $0x1], 0 }
   0x2   :  { %9 = vsyncpa [#allocation4], 0 }
   0x3   :  { %11 = vsyncpa [#allocation4 + $0x1], 0  ;;  %s15564_s6 = smov 0   ;;  %s15566_s7 = smov 0  }
   0x4   :  { %s15568_s8 = smov 0   ;;  %s15570_s9 = smov 0  }
   0x5 LB: > { %s15585_s10 = sadd.s32 4294967295, %s15546_s9   ;;  %s9659_s11 = sadd.s32 4294967294, %s15546_s9   ;;  %s15546_s9 = sphi %s15570_s9, %s20219_s9   ;;  %s15542_s8 = sphi %s15568_s8, %s20218_s8   ;;  %s15538_s7 = sphi %s15566_s7, %s20217_s7   ;;  %s15534_s6 = sphi %s15564_s6, %s20216_s6  }
   0x6   : > { %s15589_s12 = sadd.s32 1, %s15546_s9   ;;  %s24_s13 = sadd.s32 1, %s15542_s8 }
   0x7   : > { %s21_s14 = ssub.s32 %s15546_s9, %s15589_s12  ;;  %p31_p0 = scmp.ne.s32.totalorder %s15542_s8, %s15538_s7 }
   0x8   : > { %p22_p1 = scmp.eq.s32.totalorder %s21_s14, 0  ;;  %p32_p2 = scmp.eq.s32.totalorder %s15546_s9, 0 }
   0x9   : > { %p37_p3 = scmp.ne.s32.totalorder %s15538_s7, %s15534_s6  ;;  %p38_p4 = scmp.eq.s32.totalorder %s15585_s10, 0 }
   0xa   : > { %s15601_s15 = scalar_select %p22_p1, %s15542_s8, %s24_s13  }
   0xb   : > { %p33_p5 = por %p32_p2, %p31_p0  ;;  %p15603_p6 = por %p38_p4, %p37_p3 }
   0xc   : > { %p61_p7 = scmp.eq.s32.totalorder %s15585_s10, 4  ;;  %p67_p8 = scmp.eq.s32.totalorder %s9659_s11, 4 }
   0xd   : > { %p13444_p9 = scmp.lt.s32.totalorder %s15546_s9, 5  ;;  %s87_s19 = sand.u32 1, %s15542_s8  }
   0xe   : > { %p15609_p10 = por %p61_p7, %p31_p0  ;;  %p15613_p11 = por %p67_p8, %p37_p3 }
   0xf   : > { %s13428_s20 = smul.u32 31488, %s15546_s9  ;;  %p15624_p12 = pnand %p13444_p9, %p33_p5 }
  0x10   : > { %s19967_s17 = scalar_select %p15609_p10, 1, 0 }
  0x11   : > { %s19968_s18 = scalar_select %p15613_p11, 1, 0 }
  0x12   : > { %s13427_s21 = smul.u32 1968, %s87_s19  ;;  %s15622_s24 = scalar_lea.hbm %s19963_s0, %s13428_s20 }
  0x13   : > { %s15630_s28 = scalar_lea.sflag [#allocation3], %s87_s19  ;;  %s15450_s29 = scalar_lea.hbm %s15622_s24, 31488 }
  0x14   : > { %s91_s26 = scalar_lea.vmem [#allocation2], %s13427_s21  ;;  %p15451_p13 = scmp.ne.s32.totalorder %s15622_s24, %s15450_s29 }
  0x15   : > { %s99_s27 = sshll.u32 %s91_s26, 4  ;;  %p15452_p0 = pneg %p15624_p12  ;;  %s15628_s27 = int_to_ptr.vmem [resolvable:$true] %s99_s27 }
  0x16   : > { %s15455_s3 = scalar_lea.hbm %s19963_s0, 157440  ;;  %p15456_p3 = scmp.lt.u32.totalorder %s15622_s24, %s19963_s0 }
  0x17   : > { %p15453_p1 = pnand %p15452_p0, %p15451_p13  ;;  %p15457_p4 = scmp.lt.u32.totalorder %s15455_s3, %s15450_s29 }
  0x18   : > { %p15459_p7 = scmp.lt.u32.totalorder %s15450_s29, %s15622_s24 }
  0x19   : > { %p15454_p2 = pneg %p15453_p1  ;;  %p15458_p5 = por %p15457_p4, %p15456_p3 }
  0x1b   : > { %p15460_p8 = por %p15459_p7, %p15458_p5 }
  0x1d   : > { %p15461_p9 = pnand %p15460_p8, %p15454_p2 }
  0x1f   : > { %15464 = shalt.err (!%p15461_p9)
}
  0x20   : > { %s15465_s11 = scalar_lea.vmem %s15628_s27, 31488  ;;  %s15548_s13 = smov [#allocation2]  }
  0x21   : > { %p15466_p13 = scmp.ne.s32.totalorder %s15628_s27, %s15465_s11  ;;  %s15470_s14 = sshll.u32 %s15548_s13, 4  ;;  %s15471_s14 = int_to_ptr.vmem [resolvable:$false] %s15470_s14 }
  0x22   : > { %s15472_s19 = scalar_lea.vmem %s15471_s14, 62976  ;;  %p15473_p10 = scmp.lt.s32.totalorder %s15628_s27, %s15471_s14 }
  0x23   : > { %p15468_p1 = pnand %p15466_p13, %p15452_p0  ;;  %p15474_p3 = scmp.lt.s32.totalorder %s15472_s19, %s15465_s11 }
  0x25   : > { %p15469_p11 = pneg %p15468_p1  ;;  %p15475_p4 = por %p15474_p3, %p15473_p10 }
  0x27   : > { %p15476_p5 = pnand %p15475_p4, %p15469_p11 }
  0x29   : > { %15479 = shalt.err (!%p15476_p5)
}
  0x2a   : > { %s15549_s20 = smov 64   ;;  %s15550_s21 = smov 4  }
  0x2b   : > { %13439 = dma.hbm_to_vmem [thread:$0]  (!%p15624_p12), %s15622_s24, 31488, %s15628_s27, %s15630_s28, %s15549_s20, %s15549_s20, %s15550_s21  }
  0x2c   : > { %p9665_p0 = scmp.ge.s32.totalorder %s15546_s9, 1  ;;  %p107_p2 = scmp.lt.s32.totalorder %s15546_s9, 6 }
  0x2e   : > { %p108_p7 = pnand %p9665_p0, %p107_p2 }
  0x2f   : > { %s15661_s22 = sand.u32 (!%p108_p7), 1, %s15538_s7  }
  0x30   : > { %111 = sbr.rel (%p108_p7) target bundleno = 1487 (0x5cf), region = 24  ;;  %s114_s26 = scalar_lea.sflag (!%p108_p7), [#allocation3], %s15661_s22 }
  0x31   : > { %s13429_s23 = smul.u32 (!%p108_p7), 1968, %s15661_s22 }
  0x33   : > { %s15665_s29 = scalar_lea.vmem (!%p108_p7), [#allocation2], %s13429_s23 }
  0x37   : > { %15525 = dma.done.wait (%p15603_p6), %s114_s26, 31488  }
  0x38   : > { %15527 = vsyncadd (%p15603_p6), %s114_s26, 4294935808  ;;  %v11410_v0 = vld [vmem:[%s15665_s29] sm:$0xff]   ;;  %v13065_v1 = vld [vmem:[%s15665_s29 + $0x8] sm:$0xff]   ;;  %vm2346_vm0 = vcmask 1046528   ;;  %s13430_s16 = smul.u32 1600, %s15661_s22  ;;  %s9572_s3 = scalar_lea.sflag [#allocation4], %s15661_s22 }
  0x39   : > { %v13066_v2 = vld [vmem:[%s15665_s29 + $0x18] sm:$0xff]   ;;  %v11411_v3 = vunpack.c.l.bf16 %v11410_v0  ;;  %v11412_v4 = vunpack.c.h.bf16 %v11410_v0  ;;  %v11415_v5 = vunpack.c.l.bf16 %v13065_v1  ;;  %v13067_v7 = vld [vmem:[%s15665_s29 + $0x20] sm:$0xff]   ;;  %v142_v8 = vld [vmem:[%s15665_s29 + $0x10] ss:$24 sps:$4 sm:$0xff]   ;;  %v11416_v14 = vunpack.c.h.bf16 %v13065_v1  ;;  %s13431_s25 = smul.u32 25600, %s15585_s10  ;;  %p20214_p10 = scmp.ne.s32.totalorder %s19967_s17, 0 }
  0x3a   : > { %v11419_v6 = vunpack.c.l.bf16 %v13066_v2  ;;  %v11420_v9 = vunpack.c.h.bf16 %v13066_v2  ;;  %v11423_v10 = vunpack.c.l.bf16 %v13067_v7  ;;  %v388_v16 = vunpack.c.l.bf16 %v142_v8  ;;  %v143_v17 = vld [vmem:[%s15665_s29 + $0x14] sm:$0x1]  ;;  %v149_v20 = vld [vmem:[%s15665_s29 + $0x2c] sm:$0x1]  ;;  %v13069_v48 = vld [vmem:[%s15665_s29 + $0x38] sm:$0xff]   ;;  %s15729_s24 = scalar_lea.vmem [#allocation5], %s13430_s16 }
  0x3b   : > { %v9666_v11 = vmul.f32 -1.442695, %v11411_v3  ;;  %v9667_v12 = vmul.f32 -1.442695, %v11412_v4  ;;  %v9668_v13 = vmul.f32 -1.442695, %v11415_v5  ;;  %v11424_v19 = vunpack.c.h.bf16 %v13067_v7  ;;  %s19917_s2 = scalar_lea.hbm %s19964_s1, %s13431_s25 }
  0x3c   : > { %v9672_v15 = vmul.f32 -1.442695, %v11419_v6  ;;  %v9673_v18 = vmul.f32 -1.442695, %v11420_v9  ;;  %v9674_v21 = vmul.f32 -1.442695, %v11423_v10  ;;  %v394_v22 = vunpack.c.h.bf16 %v142_v8 }
  0x3d   : > { %13482 = vpow2.f32 %v9666_v11  ;;  %v13068_v23 = vld [vmem:[%s15665_s29 + $0x30] sm:$0xff]   ;;  %v9669_v24 = vmul.f32 -1.442695, %v11416_v14  ;;  %v389_v25 = vunpack.c.l.bf16 %v143_v17  ;;  %v9670_v26 = vmul.f32 -1.442695, %v388_v16  ;;  %v13070_v62 = vld [vmem:[%s15665_s29 + $0x48] sm:$0xff]  }
  0x3e   : > { %13484 = vpow2.f32 %v9667_v12  ;;  %v395_v27 = vunpack.c.l.bf16 %v149_v20  ;;  %v9675_v28 = vmul.f32 -1.442695, %v11424_v19  ;;  %v11427_v29 = vunpack.c.l.bf16 %v13068_v23  ;;  %v15681_v53 = vld [vmem:[%s15665_s29 + $0x40] ss:$24 sps:$4 sm:$0xff]   ;;  %v155_v58 = vld [vmem:[%s15665_s29 + $0x44] sm:$0x1] }
  0x3f   : > { %13486 = vpow2.f32 %v9668_v13  ;;  %v9676_v30 = vmul.f32 -1.442695, %v394_v22  ;;  %v9671_v31 = vmul.f32 -1.442695, %v389_v25  ;;  %v11428_v45 = vunpack.c.h.bf16 %v13068_v23  ;;  %v15687_v9 = vld [vmem:[%s15665_s29 + $0x50] sm:$0xff]   ;;  %s9586_s27 = sshll.u32 %s15729_s24, 4  ;;  %s19919_s27 = int_to_ptr.vmem [resolvable:$true] %s9586_s27 }
  0x40   : > { %13488 = vpow2.f32 %v9672_v15  ;;  %v9677_v32 = vmul.f32 -1.442695, %v395_v27  ;;  %v9678_v33 = vmul.f32 -1.442695, %v11427_v29  ;;  %v11431_v57 = vunpack.c.l.bf16 %v13069_v48  ;;  %s15480_s4 = scalar_lea.vmem %s19919_s27, 25600  ;;  %s15551_s10 = smov [#allocation5]  }
  0x41   : > { %13490 = vpow2.f32 %v9673_v18  ;;  %v9679_v56 = vmul.f32 -1.442695, %v11428_v45  ;;  %v11432_v61 = vunpack.c.h.bf16 %v13069_v48  ;;  %v400_v1 = vunpack.c.l.bf16 %v15681_v53  ;;  %p15481_p6 = scmp.ne.s32.totalorder %s19919_s27, %s15480_s4  ;;  %s15484_s5 = sshll.u32 %s15551_s10, 4  ;;  %s15485_s5 = int_to_ptr.vmem [resolvable:$false] %s15484_s5 }
  0x42   : > { %13492 = vpow2.f32 %v9674_v21  ;;  %v401_v4 = vunpack.c.l.bf16 %v155_v58  ;;  %v9680_v7 = vmul.f32 -1.442695, %v11431_v57  ;;  %v11435_v8 = vunpack.c.l.bf16 %v13070_v62  ;;  %s15486_s11 = scalar_lea.vmem %s15485_s5, 51200  ;;  %p15487_p8 = scmp.lt.s32.totalorder %s19919_s27, %s15485_s5 }
  0x43   : > { %13494 = vpow2.f32 %v9669_v24  ;;  %v9681_v12 = vmul.f32 -1.442695, %v11432_v61  ;;  %v11436_v13 = vunpack.c.h.bf16 %v13070_v62  ;;  %v9682_v16 = vmul.f32 -1.442695, %v400_v1  ;;  %p15482_p11 = pnand %p15481_p6, %p20214_p10  ;;  %p15488_p9 = scmp.lt.s32.totalorder %s15486_s11, %s15480_s4 }
  0x44   : > { %13496 = vpow2.f32 %v9670_v26  ;;  %v9683_v19 = vmul.f32 -1.442695, %v401_v4  ;;  %v11439_v20 = vunpack.c.l.bf16 %v15687_v9  ;;  %v9684_v24 = vmul.f32 -1.442695, %v11435_v8  ;;  %v161_v4 = vld [vmem:[%s15665_s29 + $0x5c] sm:$0x1] }
  0x45   : > { %13498 = vpow2.f32 %v9675_v28  ;;  %v9685_v28 = vmul.f32 -1.442695, %v11436_v13  ;;  %p15483_p12 = pneg %p15482_p11  ;;  %p15489_p13 = por %p15488_p9, %p15487_p8 }
  0x46   : > { %13500 = vpow2.f32 %v9676_v30 }
  0x47   : > { %v13483_v34 = vpop.eup %13482  ;;  %13502 = vpow2.f32 %v9671_v31  ;;  %p15490_p1 = pnand %p15489_p13, %p15483_p12 }
  0x48   : > { %v13485_v35 = vpop.eup %13484  ;;  %v1368_v36 = vadd.f32 1.0, %v13483_v34  ;;  %13504 = vpow2.f32 %v9677_v32  ;;  %v11440_v32 = vunpack.c.h.bf16 %v15687_v9 }
  0x49   : > { %v13487_v37 = vpop.eup %13486  ;;  %v1369_v38 = vadd.f32 1.0, %v13485_v35  ;;  %13506 = vpow2.f32 %v9678_v33 }
  0x4a   : > { %v13489_v39 = vpop.eup %13488  ;;  %v1370_v40 = vadd.f32 1.0, %v13487_v37  ;;  %13508 = vrcp.f32 %v1368_v36 }
  0x4b   : > { %v13491_v41 = vpop.eup %13490  ;;  %v1374_v42 = vadd.f32 1.0, %v13489_v39  ;;  %13510 = vrcp.f32 %v1369_v38 }
  0x4c   : > { %v13493_v43 = vpop.eup %13492  ;;  %v1375_v44 = vadd.f32 1.0, %v13491_v41  ;;  %13512 = vrcp.f32 %v1370_v40 }
  0x4d   : > { %v13495_v46 = vpop.eup %13494  ;;  %v1376_v47 = vadd.f32 1.0, %v13493_v43  ;;  %13514 = vrcp.f32 %v1374_v42 }
  0x4e   : > { %v13497_v49 = vpop.eup %13496  ;;  %13516 = vrcp.f32 %v1375_v44  ;;  %v1371_v50 = vadd.f32 1.0, %v13495_v46 }
  0x4f   : > { %v13499_v51 = vpop.eup %13498  ;;  %13518 = vrcp.f32 %v1376_v47  ;;  %v1372_v52 = vadd.f32 1.0, %v13497_v49 }
  0x50   : > { %v13501_v54 = vpop.eup %13500  ;;  %v1377_v55 = vadd.f32 1.0, %v13499_v51  ;;  %13520 = vrcp.f32 %v1371_v50 }
  0x51   : > { %v13503_v59 = vpop.eup %13502  ;;  %v1378_v60 = vadd.f32 1.0, %v13501_v54  ;;  %13522 = vrcp.f32 %v1372_v52 }
  0x52   : > { %v13505_v63 = vpop.eup %13504  ;;  %13524 = vrcp.f32 %v1377_v55  ;;  %v1373_v0 = vadd.f32 1.0, %v13503_v59 }
  0x53   : > { %v13507_v2 = vpop.eup %13506  ;;  %13526 = vrcp.f32 %v1378_v60  ;;  %v1379_v3 = vadd.f32 1.0, %v13505_v63 }
  0x54   : > { %v13509_v5 = vpop.eup %13508  ;;  %13528 = vpow2.f32 %v9679_v56  ;;  %v1380_v6 = vadd.f32 1.0, %v13507_v2 }
  0x55   : > { %v13511_v10 = vpop.eup %13510  ;;  %v2347_v11 = vrot.slane %v13509_v5, 1  ;;  %13530 = vrcp.f32 %v1373_v0 }
  0x56   : > { %v15689_v14 = vpop.eup %13512  ;;  %v2348_v15 = vrot.slane %v13511_v10, 1  ;;  %13532 = vrcp.f32 %v1379_v3  ;;  %v9686_v3 = vmul.f32 -1.442695, %v11439_v20 }
  0x57   : > { %v13515_v17 = vpop.eup %13514  ;;  %v2350_v18 = vrot.slane %v15689_v14, 1  ;;  %13534 = vrcp.f32 %v1380_v6 }
  0x58   : > { %v13517_v21 = vpop.eup %13516  ;;  %v2349_v22 = vsel %vm2346_vm0, %v2347_v11, %v2348_v15  ;;  %v2358_v23 = vrot.slane %v13515_v17, 1  ;;  %13536 = vpow2.f32 %v9680_v7 }
  0x59   : > { %v13519_v25 = vpop.eup %13518  ;;  %v2351_v26 = vsel %vm2346_vm0, %v2348_v15, %v2350_v18  ;;  %v2359_v27 = vrot.slane %v13517_v21, 1  ;;  %13538 = vpow2.f32 %v9681_v12  ;;  %v2987_v31 = vmax.f32 %v13509_v5, %v2349_v22 }
  0x5a   : > { %v13521_v29 = vpop.eup %13520  ;;  %v2361_v30 = vrot.slane %v13519_v25, 1  ;;  %13540 = vpow2.f32 %v9682_v16  ;;  %v2988_v35 = vmax.f32 %v13511_v10, %v2351_v26  ;;  %v406_v10 = vunpack.c.h.bf16 %v15681_v53 }
  0x5b   : > { %v15696_v33 = vpop.eup %13522  ;;  %v2360_v34 = vsel %vm2346_vm0, %v2358_v23, %v2359_v27  ;;  %v2352_v36 = vrot.slane %v13521_v29, 1  ;;  %13542 = vpow2.f32 %v9683_v19  ;;  %v407_v53 = vunpack.c.l.bf16 %v161_v4 }
  0x5c   : > { %v13525_v37 = vpop.eup %13524  ;;  %v2362_v38 = vsel %vm2346_vm0, %v2359_v27, %v2361_v30  ;;  %v15700_v39 = vmax.f32 %v13515_v17, %v2360_v34  ;;  %v2354_v40 = vrot.slane %v15696_v33, 1  ;;  %13544 = vpow2.f32 %v9684_v24  ;;  %v13073_v27 = vld [vmem:[%s15665_s29 + $0x68] sm:$0xff]  }
  0x5d   : > { %v13527_v41 = vpop.eup %13526  ;;  %v15704_v42 = vmax.f32 %v13517_v21, %v2362_v38  ;;  %v2353_v43 = vsel %vm2346_vm0, %v2350_v18, %v2352_v36  ;;  %v2363_v44 = vrot.slane %v13525_v37, 1  ;;  %13546 = vpow2.f32 %v9685_v28  ;;  %v13072_v18 = vld [vmem:[%s15665_s29 + $0x60] sm:$0xff]  }
  0x5e   : > { %v13529_v45 = vpop.eup %13528  ;;  %v3214_v46 = vmax.f32 %v2987_v31, %v15700_v39  ;;  %v2355_v47 = vsel %vm2346_vm0, %v2352_v36, %v2354_v40  ;;  %v2365_v48 = vrot.slane %v13527_v41, 1  ;;  %v2989_v49 = vmax.f32 %v15689_v14, %v2353_v43 }
  0x5f   : > { %v13531_v50 = vpop.eup %13530  ;;  %v3215_v51 = vmax.f32 %v2988_v35, %v15704_v42  ;;  %v2364_v52 = vsel %vm2346_vm0, %v2361_v30, %v2363_v44  ;;  %v2990_v54 = vmax.f32 %v13521_v29, %v2355_v47  ;;  %v1381_v55 = vadd.f32 1.0, %v13529_v45 }
  0x60   : > { %v13533_v56 = vpop.eup %13532  ;;  %vm3414_vm1 = vcmp.eq.f32.partialorder %v3214_v46, %v2360_v34  ;;  %v2366_v57 = vsel %vm2346_vm0, %v2363_v44, %v2365_v48  ;;  %v15713_v58 = vmax.f32 %v13519_v25, %v2364_v52  ;;  %v2356_v59 = vrot.slane %v13531_v50, 1  ;;  %v15747_v44 = vld [vmem:[%s15665_s29 + $0x74] sm:$0x1] }
  0x61   : > { %v15715_v60 = vpop.eup %13534  ;;  %vm3415_vm2 = vcmp.eq.f32.partialorder %v3215_v51, %v2362_v38  ;;  %v3614_v61 = vsel %vm3414_vm1, %v2360_v34, 0.0  ;;  %v15717_v62 = vmax.f32 %v13525_v37, %v2366_v57  ;;  %13548 = vrcp.f32 %v1381_v55 }
  0x62   : > { %v13537_v63 = vpop.eup %13536  ;;  %v3615_v0 = vsel %vm3415_vm2, %v2362_v38, 0.0  ;;  %v3216_v1 = vmax.f32 %v2989_v49, %v15713_v58  ;;  %v2367_v2 = vrot.slane %v13533_v56, 1  ;;  %v2357_v8 = vsel %vm2346_vm0, %v2354_v40, %v2356_v59 }
  0x63   : > { %v13539_v5 = vpop.eup %13538  ;;  %v11740_v6 = vpack.c.bf16 %v3615_v0, %v3614_v61  ;;  %v3217_v7 = vmax.f32 %v2990_v54, %v15717_v62  ;;  %v1382_v13 = vadd.f32 1.0, %v13537_v63  ;;  %v2991_v21 = vmax.f32 %v15696_v33, %v2357_v8 }
  0x64   : > { %v13541_v11 = vpop.eup %13540  ;;  %vm3416_vm3 = vcmp.eq.f32.partialorder %v3216_v1, %v2364_v52  ;;  %v15725_v12 = vsel %vm2346_vm0, %v2365_v48, %v2367_v2  ;;  %v1383_v14 = vadd.f32 1.0, %v13539_v5  ;;  %v11443_v29 = vunpack.c.l.bf16 %v13072_v18  ;;  %v15752_v48 = vld [vmem:[%s15665_s29 + $0x78] sm:$0xff]  }
  0x65   : > { %v13543_v15 = vpop.eup %13542  ;;  %11741 = vst [vmem:[%s15729_s24] sm:$0xff] %v11740_v6   ;;  %vm3417_vm4 = vcmp.eq.f32.partialorder %v3217_v7, %v2366_v57  ;;  %v3616_v16 = vsel %vm3416_vm3, %v2364_v52, 0.0  ;;  %v1384_v17 = vadd.f32 1.0, %v13541_v11  ;;  %13550 = vrcp.f32 %v1382_v13 }
  0x66   : > { %v13545_v19 = vpop.eup %13544  ;;  %v3617_v20 = vsel %vm3417_vm4, %v2366_v57, 0.0  ;;  %v1385_v22 = vadd.f32 1.0, %v13543_v15  ;;  %v15735_v25 = vmax.f32 %v13527_v41, %v15725_v12  ;;  %13552 = vrcp.f32 %v1383_v14  ;;  %v15744_v41 = vld [vmem:[%s15665_s29 + $0x70] ss:$24 sps:$4 sm:$0xff]  }
  0x67   : > { %v13547_v23 = vpop.eup %13546  ;;  %v11745_v24 = vpack.c.bf16 %v3617_v20, %v3616_v16  ;;  %v1386_v26 = vadd.f32 1.0, %v13545_v19  ;;  %13554 = vrcp.f32 %v1384_v17  ;;  %v9687_v30 = vmul.f32 -1.442695, %v11440_v32 }
  0x68   : > { %v1387_v28 = vadd.f32 1.0, %v13547_v23  ;;  %13556 = vrcp.f32 %v1385_v22  ;;  %v11444_v31 = vunpack.c.h.bf16 %v13072_v18  ;;  %v2369_v33 = vrot.slane %v15715_v60, 1 }
  0x69   : > { %13146 = vst [vmem:[%s15729_s24 + $0x8] sm:$0xff] %v11745_v24   ;;  %13558 = vpow2.f32 %v9686_v3  ;;  %v9688_v34 = vmul.f32 -1.442695, %v406_v10  ;;  %v11447_v35 = vunpack.c.l.bf16 %v13073_v27  ;;  %v3218_v37 = vmax.f32 %v2991_v21, %v15735_v25 }
  0x6a   : > { %13560 = vrcp.f32 %v1386_v26  ;;  %v9689_v38 = vmul.f32 -1.442695, %v407_v53  ;;  %v11448_v40 = vunpack.c.h.bf16 %v13073_v27  ;;  %v9690_v9 = vmul.f32 -1.442695, %v11443_v29 }
  0x6b   : > { %v13549_v36 = vpop.eup %13548  ;;  %13562 = vrcp.f32 %v1387_v28  ;;  %v9691_v32 = vmul.f32 -1.442695, %v11444_v31  ;;  %v9692_v46 = vmul.f32 -1.442695, %v11447_v35  ;;  %v412_v47 = vunpack.c.l.bf16 %v15744_v41 }
  0x6c   : > { %v2370_v43 = vrot.slane %v13549_v36, 1  ;;  %13564 = vpow2.f32 %v9687_v30  ;;  %vm3418_vm5 = vcmp.eq.f32.partialorder %v3218_v37, %v15725_v12  ;;  %v9693_v50 = vmul.f32 -1.442695, %v11448_v40 }
  0x6d   : > { %13566 = vpow2.f32 %v9688_v34  ;;  %v413_v52 = vunpack.c.l.bf16 %v15747_v44  ;;  %v11451_v57 = vunpack.c.l.bf16 %v15752_v48  ;;  %v9694_v63 = vmul.f32 -1.442695, %v412_v47  ;;  %v13076_v47 = vld [vmem:[%s15665_s29 + $0x90] sm:$0xff]  }
  0x6e   : > { %v2371_v45 = vsel %vm2346_vm0, %v2369_v33, %v2370_v43  ;;  %13568 = vpow2.f32 %v9689_v38  ;;  %v11452_v30 = vunpack.c.h.bf16 %v15752_v48  ;;  %v13075_v38 = vld [vmem:[%s15665_s29 + $0x80] sm:$0xff]  }
  0x6f   : > { %v15755_v49 = vmax.f32 %v15715_v60, %v2371_v45  ;;  %v13551_v51 = vpop.eup %13550  ;;  %13570 = vpow2.f32 %v9690_v9  ;;  %v3618_v60 = vsel %vm3418_vm5, %v15725_v12, 0.0 }
  0x70   : > { %v13553_v54 = vpop.eup %13552  ;;  %v2372_v56 = vrot.slane %v13551_v51, 1  ;;  %13572 = vpow2.f32 %v9691_v32 }
  0x71   : > { %v3219_v55 = vmax.f32 %v15700_v39, %v15755_v49  ;;  %v13555_v59 = vpop.eup %13554  ;;  %v2374_v61 = vrot.slane %v13553_v54, 1  ;;  %13574 = vpow2.f32 %v9692_v46 }
  0x72   : > { %v13557_v0 = vpop.eup %13556  ;;  %v2373_v1 = vsel %vm2346_vm0, %v2370_v43, %v2372_v56  ;;  %v2376_v2 = vrot.slane %v13555_v59, 1  ;;  %13576 = vpow2.f32 %v9693_v50  ;;  %v9695_v50 = vmul.f32 -1.442695, %v413_v52 }
  0x73   : > { %vm3419_vm6 = vcmp.eq.f32.partialorder %v3219_v55, %v2371_v45  ;;  %v13559_v3 = vpop.eup %13558  ;;  %v2375_v39 = vsel %vm2346_vm0, %v2372_v56, %v2374_v61  ;;  %v15765_v5 = vmax.f32 %v13549_v36, %v2373_v1  ;;  %v2378_v6 = vrot.slane %v13557_v0, 1 }
  0x74   : > { %v3619_v4 = vsel %vm3419_vm6, %v2371_v45, 0.0  ;;  %v13561_v7 = vpop.eup %13560  ;;  %v15767_v10 = vmax.f32 %v13551_v51, %v2375_v39  ;;  %v2377_v11 = vsel %vm2346_vm0, %v2374_v61, %v2376_v2  ;;  %v1388_v12 = vadd.f32 1.0, %v13559_v3 }
  0x75   : > { %v11750_v8 = vpack.c.bf16 %v3619_v4, %v3618_v60  ;;  %v15770_v13 = vpop.eup %13562  ;;  %v3220_v14 = vmax.f32 %v15704_v42, %v15765_v5  ;;  %v2379_v15 = vsel %vm2346_vm0, %v2376_v2, %v2378_v6  ;;  %v15775_v16 = vmax.f32 %v13553_v54, %v2377_v11  ;;  %v173_v54 = vld [vmem:[%s15665_s29 + $0x8c] sm:$0x1] }
  0x76   : > { %v2380_v17 = vrot.slane %v13561_v7, 1  ;;  %v13565_v18 = vpop.eup %13564  ;;  %v3221_v53 = vmax.f32 %v15713_v58, %v15767_v10  ;;  %v15780_v19 = vmax.f32 %v13555_v59, %v2379_v15  ;;  %13578 = vrcp.f32 %v1388_v12 }
  0x77   : > { %13147 = vst [vmem:[%s15729_s24 + $0x10] sm:$0xff] %v11750_v8   ;;  %v2381_v20 = vrot.slane %v15770_v13, 1  ;;  %v13567_v21 = vpop.eup %13566  ;;  %vm3420_vm7 = vcmp.eq.f32.partialorder %v3220_v14, %v2373_v1  ;;  %v3222_v42 = vmax.f32 %v15717_v62, %v15775_v16  ;;  %v1389_v22 = vadd.f32 1.0, %v13565_v18 }
  0x78   : > { %13580 = vpow2.f32 %v9694_v63  ;;  %v13569_v23 = vpop.eup %13568  ;;  %vm3421_vm8 = vcmp.eq.f32.partialorder %v3221_v53, %v2375_v39  ;;  %v3620_v24 = vsel %vm3420_vm7, %v2373_v1, 0.0  ;;  %v3223_v26 = vmax.f32 %v15735_v25, %v15780_v19 }
  0x79   : > { %v15788_v58 = vsel %vm2346_vm0, %v2380_v17, %v2381_v20  ;;  %v13571_v27 = vpop.eup %13570  ;;  %v3621_v28 = vsel %vm3421_vm8, %v2375_v39, 0.0  ;;  %vm15790_vm9 = vcmp.eq.f32.partialorder %v3222_v42, %v2377_v11  ;;  %v1390_v62 = vadd.f32 1.0, %v13567_v21  ;;  %v15814_v39 = vld [vmem:[%s15665_s29 + $0x98] sm:$0xff]  }
  0x7a   : > { %v13573_v31 = vpop.eup %13572  ;;  %v11755_v33 = vpack.c.bf16 %v3621_v28, %v3620_v24  ;;  %vm3423_vm10 = vcmp.eq.f32.partialorder %v3223_v26, %v2379_v15  ;;  %v3622_v25 = vsel %vm15790_vm9, %v2377_v11, 0.0  ;;  %13582 = vrcp.f32 %v1389_v22 }
  0x7b   : > { %v13575_v34 = vpop.eup %13574  ;;  %v3623_v35 = vsel %vm3423_vm10, %v2379_v15, 0.0  ;;  %v15798_v36 = vmax.f32 %v13561_v7, %v15788_v58  ;;  %13584 = vrcp.f32 %v1390_v62  ;;  %v1391_v37 = vadd.f32 1.0, %v13569_v23 }
  0x7c   : > { %v13577_v40 = vpop.eup %13576  ;;  %13148 = vst [vmem:[%s15729_s24 + $0x18] sm:$0xff] %v11755_v33   ;;  %v11760_v43 = vpack.c.bf16 %v3623_v35, %v3622_v25  ;;  %v1392_v9 = vadd.f32 1.0, %v13571_v27  ;;  %v1393_v32 = vadd.f32 1.0, %v13573_v31  ;;  %v1394_v45 = vadd.f32 1.0, %v13575_v34 }
  0x7d   : > { %13586 = vrcp.f32 %v1391_v37  ;;  %v1395_v46 = vadd.f32 1.0, %v13577_v40  ;;  %v11455_v51 = vunpack.c.l.bf16 %v13075_v38  ;;  %v9696_v55 = vmul.f32 -1.442695, %v11451_v57 }
  0x7e   : > { %13149 = vst [vmem:[%s15729_s24 + $0x20] sm:$0xff] %v11760_v43   ;;  %13588 = vrcp.f32 %v1392_v9  ;;  %v11456_v56 = vunpack.c.h.bf16 %v13075_v38  ;;  %v418_v59 = vunpack.c.h.bf16 %v15744_v41  ;;  %v3224_v61 = vmax.f32 %v15755_v49, %v15798_v36 }
  0x7f   : > { %13590 = vrcp.f32 %v1393_v32  ;;  %v9697_v63 = vmul.f32 -1.442695, %v11452_v30  ;;  %v11459_v0 = vunpack.c.l.bf16 %v13076_v47  ;;  %v11460_v52 = vunpack.c.h.bf16 %v13076_v47 }
  0x80   : > { %v13579_v60 = vpop.eup %13578  ;;  %13592 = vrcp.f32 %v1394_v45  ;;  %v419_v2 = vunpack.c.l.bf16 %v173_v54  ;;  %v9698_v48 = vmul.f32 -1.442695, %v11455_v51  ;;  %v9699_v41 = vmul.f32 -1.442695, %v11456_v56 }
  0x81   : > { %v2383_v44 = vrot.slane %v13579_v60, 1  ;;  %13594 = vrcp.f32 %v1395_v46  ;;  %v9700_v4 = vmul.f32 -1.442695, %v418_v59  ;;  %vm15820_vm11 = vcmp.eq.f32.partialorder %v3224_v61, %v15788_v58 }
  0x82   : > { %v13581_v1 = vpop.eup %13580  ;;  %13596 = vpow2.f32 %v9695_v50  ;;  %v9702_v8 = vmul.f32 -1.442695, %v11459_v0  ;;  %v9701_v14 = vmul.f32 -1.442695, %v419_v2  ;;  %v15824_v15 = vmul.f32 -1.442695, %v11460_v52 }
  0x83   : > { %v1396_v3 = vadd.f32 1.0, %v13581_v1  ;;  %v2384_v57 = vsel %vm2346_vm0, %v2381_v20, %v2383_v44  ;;  %13598 = vpow2.f32 %v9696_v55  ;;  %v3624_v20 = vsel %vm15820_vm11, %v15788_v58, 0.0 }
  0x84   : > { %v13583_v49 = vpop.eup %13582  ;;  %v15817_v6 = vmax.f32 %v15770_v13, %v2384_v57  ;;  %v11463_v13 = vunpack.c.l.bf16 %v15814_v39  ;;  %v11464_v42 = vunpack.c.h.bf16 %v15814_v39 }
  0x85   : > { %13600 = vrcp.f32 %v1396_v3  ;;  %v13585_v11 = vpop.eup %13584  ;;  %v2385_v12 = vrot.slane %v13583_v49, 1 }
  0x86   : > { %13602 = vpow2.f32 %v9697_v63  ;;  %v3225_v17 = vmax.f32 %v15765_v5, %v15817_v6  ;;  %v2387_v18 = vrot.slane %v13585_v11, 1 }
  0x87   : > { %13604 = vpow2.f32 %v9698_v48  ;;  %v13587_v53 = vpop.eup %13586  ;;  %v2386_v21 = vsel %vm2346_vm0, %v2383_v44, %v2385_v12 }
  0x88   : > { %13606 = vpow2.f32 %v9699_v41  ;;  %v13589_v22 = vpop.eup %13588  ;;  %vm3425_vm12 = vcmp.eq.f32.partialorder %v3225_v17, %v2384_v57  ;;  %v2388_v23 = vsel %vm2346_vm0, %v2385_v12, %v2387_v18  ;;  %v3004_v24 = vmax.f32 %v13579_v60, %v2386_v21  ;;  %v179_v41 = vld [vmem:[%s15665_s29 + $0xa4] sm:$0x1]  ;;  %v13078_v12 = vld [vmem:[%s15665_s29 + $0xa8] sm:$0xff]  }
  0x89   : > { %v2389_v5 = vrot.slane %v13587_v53, 1  ;;  %v13591_v26 = vpop.eup %13590  ;;  %v3625_v27 = vsel %vm3425_vm12, %v2384_v57, 0.0  ;;  %v15835_v28 = vmax.f32 %v13583_v49, %v2388_v23  ;;  %v2391_v29 = vrot.slane %v13589_v22, 1 }
  0x8a   : > { %13608 = vpow2.f32 %v9700_v4  ;;  %v13593_v62 = vpop.eup %13592  ;;  %v11765_v58 = vpack.c.bf16 %v3625_v27, %v3624_v20  ;;  %v3226_v30 = vmax.f32 %v15767_v10, %v3004_v24  ;;  %v2392_v33 = vrot.slane %v13591_v26, 1 }
  0x8b   : > { %v2390_v31 = vsel %vm2346_vm0, %v2387_v18, %v2389_v5  ;;  %v13595_v25 = vpop.eup %13594  ;;  %v3227_v34 = vmax.f32 %v15775_v16, %v15835_v28  ;;  %v2394_v37 = vrot.slane %v13593_v62, 1  ;;  %13610 = vpow2.f32 %v9701_v14 }
  0x8c   : > { %v15841_v35 = vmax.f32 %v13585_v11, %v2390_v31  ;;  %v13597_v38 = vpop.eup %13596  ;;  %13150 = vst [vmem:[%s15729_s24 + $0x28] sm:$0xff] %v11765_v58   ;;  %vm3426_vm13 = vcmp.eq.f32.partialorder %v3226_v30, %v2386_v21  ;;  %v2393_v40 = vsel %vm2346_vm0, %v2391_v29, %v2392_v33  ;;  %v2396_v43 = vrot.slane %v13595_v25, 1 }
  0x8d   : > { %13612 = vpow2.f32 %v9702_v8  ;;  %v13599_v10 = vpop.eup %13598  ;;  %vm3427_vm14 = vcmp.eq.f32.partialorder %v3227_v34, %v2388_v23  ;;  %v3626_v9 = vsel %vm3426_vm13, %v2386_v21, 0.0  ;;  %v15845_v32 = vmax.f32 %v13589_v22, %v2393_v40 }
  0x8e   : > { %v3228_v16 = vmax.f32 %v15780_v19, %v15841_v35  ;;  %v3627_v46 = vsel %vm3427_vm14, %v2388_v23, 0.0  ;;  %v2395_v47 = vsel %vm2346_vm0, %v2392_v33, %v2394_v37  ;;  %v2397_v50 = vsel %vm2346_vm0, %v2394_v37, %v2396_v43  ;;  %v15862_v19 = vld [vmem:[%s15665_s29 + $0xa0] ss:$24 sps:$4 sm:$0xff]  }
  0x8f   : > { %v15849_v45 = vpop.eup %13600  ;;  %v1397_v51 = vadd.f32 1.0, %v13597_v38  ;;  %v11770_v55 = vpack.c.bf16 %v3627_v46, %v3626_v9  ;;  %v3229_v56 = vmax.f32 %v15798_v36, %v15845_v32  ;;  %v15859_v60 = vmax.f32 %v13591_v26, %v2395_v47 }
  0x90   : > { %v13603_v54 = vpop.eup %13602  ;;  %vm15855_vm15 = vcmp.eq.f32.partialorder %v3228_v16, %v2390_v31  ;;  %v15866_v0 = vmax.f32 %v13593_v62, %v2397_v50  ;;  %v2398_v1 = vrot.slane %v15849_v45, 1  ;;  %v1398_v52 = vadd.f32 1.0, %v13599_v10 }
  0x91   : > { %v13605_v61 = vpop.eup %13604  ;;  %v3628_v63 = vsel %vm15855_vm15, %v2390_v31, 0.0  ;;  %13614 = vrcp.f32 %v1397_v51  ;;  %13151 = vst [vmem:[%s15729_s24 + $0x30] sm:$0xff] %v11770_v55   ;;  %vm3429_vm1 = vcmp.eq.f32.partialorder %v3229_v56, %v2393_v40  ;;  %v3230_v36 = vmax.f32 %v15817_v6, %v15859_v60 }
  0x92   : > { %v13607_v44 = vpop.eup %13606  ;;  %v1399_v2 = vadd.f32 1.0, %v13603_v54  ;;  %v3629_v3 = vsel %vm3429_vm1, %v2393_v40, 0.0  ;;  %v3231_v48 = vmax.f32 %v3004_v24, %v15866_v0  ;;  %v1400_v57 = vadd.f32 1.0, %v13605_v61  ;;  %v15884_v24 = vld [vmem:[%s15665_s29 + $0xb0] sm:$0xff]  }
  0x93   : > { %v424_v4 = vunpack.c.l.bf16 %v15862_v19  ;;  %v11775_v7 = vpack.c.bf16 %v3629_v3, %v3628_v63  ;;  %vm3430_vm2 = vcmp.eq.f32.partialorder %v3230_v36, %v2395_v47  ;;  %v15876_v8 = vsel %vm2346_vm0, %v2396_v43, %v2398_v1  ;;  %v15919_v3 = vld [vmem:[%s15665_s29 + $0xc0] sm:$0xff]  }
  0x94   : > { %v13609_v49 = vpop.eup %13608  ;;  %13616 = vrcp.f32 %v1398_v52  ;;  %vm3431_vm3 = vcmp.eq.f32.partialorder %v3231_v48, %v2397_v50  ;;  %v3630_v6 = vsel %vm3430_vm2, %v2395_v47, 0.0  ;;  %v1401_v11 = vadd.f32 1.0, %v13607_v44 }
  0x95   : > { %13618 = vrcp.f32 %v1399_v2  ;;  %v13611_v14 = vpop.eup %13610  ;;  %13152 = vst [vmem:[%s15729_s24 + $0x38] sm:$0xff] %v11775_v7   ;;  %v3631_v17 = vsel %vm3431_vm3, %v2397_v50, 0.0  ;;  %v1402_v18 = vadd.f32 1.0, %v13609_v49  ;;  %v425_v53 = vunpack.c.l.bf16 %v179_v41 }
  0x96   : > { %13620 = vrcp.f32 %v1400_v57  ;;  %v11780_v21 = vpack.c.bf16 %v3631_v17, %v3630_v6  ;;  %v15881_v22 = vmax.f32 %v13595_v25, %v15876_v8  ;;  %v1403_v23 = vadd.f32 1.0, %v13611_v14 }
  0x97   : > { %v13613_v20 = vpop.eup %13612  ;;  %13622 = vrcp.f32 %v1401_v11  ;;  %v9704_v26 = vmul.f32 -1.442695, %v11463_v13  ;;  %v11467_v27 = vunpack.c.l.bf16 %v13078_v12  ;;  %v9705_v29 = vmul.f32 -1.442695, %v11464_v42 }
  0x98   : > { %13624 = vrcp.f32 %v1402_v18  ;;  %v1404_v5 = vadd.f32 1.0, %v13613_v20  ;;  %13153 = vst [vmem:[%s15729_s24 + $0x40] sm:$0xff] %v11780_v21   ;;  %v11468_v62 = vunpack.c.h.bf16 %v13078_v12  ;;  %v9706_v58 = vmul.f32 -1.442695, %v424_v4  ;;  %v185_v12 = vld [vmem:[%s15665_s29 + $0xbc] sm:$0x1] }
  0x99   : > { %13626 = vpow2.f32 %v15824_v15  ;;  %v11471_v30 = vunpack.c.l.bf16 %v15884_v24  ;;  %v3232_v33 = vmax.f32 %v15835_v28, %v15881_v22  ;;  %v9707_v25 = vmul.f32 -1.442695, %v425_v53 }
  0x9a   : > { %13628 = vrcp.f32 %v1403_v23  ;;  %v9708_v13 = vmul.f32 -1.442695, %v11467_v27  ;;  %v9709_v37 = vmul.f32 -1.442695, %v11468_v62  ;;  %v11472_v16 = vunpack.c.h.bf16 %v15884_v24  ;;  %v15961_v24 = vld [vmem:[%s15665_s29 + $0xd8] sm:$0xff]  }
  0x9b   : > { %v13615_v31 = vpop.eup %13614  ;;  %13630 = vrcp.f32 %v1404_v5  ;;  %v9710_v42 = vmul.f32 -1.442695, %v11471_v30  ;;  %vm15900_vm4 = vcmp.eq.f32.partialorder %v3232_v33, %v15876_v8  ;;  %v11475_v18 = vunpack.c.l.bf16 %v15919_v3 }
  0x9c   : > { %v2400_v34 = vrot.slane %v13615_v31, 1  ;;  %13632 = vpow2.f32 %v9704_v26  ;;  %v3632_v54 = vsel %vm15900_vm4, %v15876_v8, 0.0  ;;  %v431_v27 = vunpack.c.l.bf16 %v185_v12 }
  0x9d   : > { %13634 = vpow2.f32 %v9705_v29 }
  0x9e   : > { %v13617_v15 = vpop.eup %13616  ;;  %v2401_v39 = vsel %vm2346_vm0, %v2398_v1, %v2400_v34  ;;  %13636 = vpow2.f32 %v9706_v58 }
  0x9f   : > { %v13619_v38 = vpop.eup %13618  ;;  %v15897_v40 = vmax.f32 %v15849_v45, %v2401_v39  ;;  %v2402_v28 = vrot.slane %v13617_v15, 1  ;;  %13638 = vpow2.f32 %v9707_v25  ;;  %v430_v45 = vunpack.c.h.bf16 %v15862_v19 }
  0xa0   : > { %v13621_v10 = vpop.eup %13620  ;;  %v2403_v9 = vrot.slane %v13619_v38, 1  ;;  %13640 = vpow2.f32 %v9708_v13 }
  0xa1   : > { %v13623_v46 = vpop.eup %13622  ;;  %v3233_v47 = vmax.f32 %v15841_v35, %v15897_v40  ;;  %v2405_v50 = vrot.slane %v13621_v10, 1  ;;  %13642 = vpow2.f32 %v9709_v37  ;;  %v9712_v43 = vmul.f32 -1.442695, %v430_v45 }
  0xa2   : > { %v13625_v51 = vpop.eup %13624  ;;  %v2404_v55 = vsel %vm2346_vm0, %v2402_v28, %v2403_v9  ;;  %v2407_v56 = vrot.slane %v13623_v46, 1  ;;  %13644 = vpow2.f32 %v9710_v42  ;;  %v15948_v42 = vld [vmem:[%s15665_s29 + $0xd0] ss:$24 sps:$4 sm:$0xff]   ;;  %v11476_v28 = vunpack.c.h.bf16 %v15919_v3 }
  0xa3   : > { %v13627_v59 = vpop.eup %13626  ;;  %vm3433_vm5 = vcmp.eq.f32.partialorder %v3233_v47, %v2401_v39  ;;  %v2406_v61 = vsel %vm2346_vm0, %v2403_v9, %v2405_v50  ;;  %v15913_v63 = vmax.f32 %v13617_v15, %v2404_v55  ;;  %v2409_v35 = vrot.slane %v13625_v51, 1  ;;  %v13081_v15 = vld [vmem:[%s15665_s29 + $0xc8] sm:$0xff]  }
  0xa4   : > { %v13629_v1 = vpop.eup %13628  ;;  %v3633_v44 = vsel %vm3433_vm5, %v2401_v39, 0.0  ;;  %v15915_v36 = vmax.f32 %v13619_v38, %v2406_v61  ;;  %v2408_v52 = vsel %vm2346_vm0, %v2405_v50, %v2407_v56  ;;  %v1405_v2 = vadd.f32 1.0, %v13627_v59 }
  0xa5   : > { %v15921_v48 = vpop.eup %13630  ;;  %v11785_v57 = vpack.c.bf16 %v3633_v44, %v3632_v54  ;;  %v3234_v41 = vmax.f32 %v15845_v32, %v15913_v63  ;;  %v2410_v4 = vsel %vm2346_vm0, %v2407_v56, %v2409_v35  ;;  %v15926_v49 = vmax.f32 %v13621_v10, %v2408_v52  ;;  %v191_v10 = vld [vmem:[%s15665_s29 + $0xd4] sm:$0x1] }
  0xa6   : > { %v13633_v7 = vpop.eup %13632  ;;  %v3235_v8 = vmax.f32 %v15859_v60, %v15915_v36  ;;  %v15930_v6 = vmax.f32 %v13623_v46, %v2410_v4  ;;  %13646 = vrcp.f32 %v1405_v2  ;;  %v2411_v11 = vrot.slane %v13629_v1, 1  ;;  %v15975_v2 = vld [vmem:[%s15665_s29 + $0xe0] sm:$0xff]  }
  0xa7   : > { %v13635_v14 = vpop.eup %13634  ;;  %13154 = vst [vmem:[%s15729_s24 + $0x48] sm:$0xff] %v11785_v57   ;;  %vm3434_vm6 = vcmp.eq.f32.partialorder %v3234_v41, %v2404_v55  ;;  %v3236_v17 = vmax.f32 %v15866_v0, %v15926_v49  ;;  %v1406_v32 = vadd.f32 1.0, %v13633_v7  ;;  %v9711_v38 = vmul.f32 -1.442695, %v11472_v16 }
  0xa8   : > { %v13637_v53 = vpop.eup %13636  ;;  %vm3435_vm7 = vcmp.eq.f32.partialorder %v3235_v8, %v2406_v61  ;;  %v3634_v20 = vsel %vm3434_vm6, %v2404_v55, 0.0  ;;  %v3237_v60 = vmax.f32 %v15881_v22, %v15930_v6  ;;  %v15940_v21 = vsel %vm2346_vm0, %v2409_v35, %v2411_v11 }
  0xa9   : > { %v13639_v23 = vpop.eup %13638  ;;  %v3635_v5 = vsel %vm3435_vm7, %v2406_v61, 0.0  ;;  %vm3436_vm8 = vcmp.eq.f32.partialorder %v3236_v17, %v2408_v52  ;;  %v1407_v26 = vadd.f32 1.0, %v13635_v14  ;;  %13648 = vrcp.f32 %v1406_v32 }
  0xaa   : > { %v13641_v29 = vpop.eup %13640  ;;  %v11790_v0 = vpack.c.bf16 %v3635_v5, %v3634_v20  ;;  %vm3437_vm9 = vcmp.eq.f32.partialorder %v3237_v60, %v2410_v4  ;;  %v3636_v62 = vsel %vm3436_vm8, %v2408_v52, 0.0  ;;  %v15943_v22 = vmax.f32 %v13625_v51, %v15940_v21 }
  0xab   : > { %v13643_v58 = vpop.eup %13642  ;;  %v3637_v30 = vsel %vm3437_vm9, %v2410_v4, 0.0  ;;  %13650 = vrcp.f32 %v1407_v26  ;;  %v1408_v31 = vadd.f32 1.0, %v13637_v53  ;;  %v1409_v34 = vadd.f32 1.0, %v13639_v23 }
  0xac   : > { %v13645_v33 = vpop.eup %13644  ;;  %13155 = vst [vmem:[%s15729_s24 + $0x50] sm:$0xff] %v11790_v0   ;;  %v11795_v25 = vpack.c.bf16 %v3637_v30, %v3636_v62  ;;  %v1410_v13 = vadd.f32 1.0, %v13641_v29  ;;  %v1411_v37 = vadd.f32 1.0, %v13643_v58  ;;  %v2413_v9 = vrot.slane %v15921_v48, 1 }
  0xad   : > { %13652 = vrcp.f32 %v1408_v31  ;;  %v1412_v39 = vadd.f32 1.0, %v13645_v33  ;;  %v9714_v46 = vmul.f32 -1.442695, %v11475_v18  ;;  %v11479_v47 = vunpack.c.l.bf16 %v13081_v15 }
  0xae   : > { %13156 = vst [vmem:[%s15729_s24 + $0x58] sm:$0xff] %v11795_v25   ;;  %13654 = vrcp.f32 %v1409_v34  ;;  %v3238_v51 = vmax.f32 %v15897_v40, %v15943_v22  ;;  %v9713_v54 = vmul.f32 -1.442695, %v431_v27  ;;  %v11480_v55 = vunpack.c.h.bf16 %v13081_v15 }
  0xaf   : > { %13656 = vrcp.f32 %v1410_v13  ;;  %v436_v16 = vunpack.c.l.bf16 %v15948_v42  ;;  %v437_v45 = vunpack.c.l.bf16 %v191_v10  ;;  %v9715_v56 = vmul.f32 -1.442695, %v11476_v28 }
  0xb0   : > { %v13647_v50 = vpop.eup %13646  ;;  %13658 = vrcp.f32 %v1411_v37  ;;  %v9716_v61 = vmul.f32 -1.442695, %v11479_v47  ;;  %v11483_v35 = vunpack.c.l.bf16 %v15961_v24  ;;  %vm15970_vm10 = vcmp.eq.f32.partialorder %v3238_v51, %v15940_v21 }
  0xb1   : > { %v2414_v19 = vrot.slane %v13647_v50, 1  ;;  %13660 = vrcp.f32 %v1412_v39  ;;  %v9717_v52 = vmul.f32 -1.442695, %v11480_v55  ;;  %v9718_v41 = vmul.f32 -1.442695, %v436_v16 }
  0xb2   : > { %13662 = vpow2.f32 %v9711_v38  ;;  %v15977_v4 = vmul.f32 -1.442695, %v437_v45  ;;  %v11484_v8 = vunpack.c.h.bf16 %v15961_v24  ;;  %v3638_v12 = vsel %vm15970_vm10, %v15940_v21, 0.0 }
  0xb3   : > { %v2415_v59 = vsel %vm2346_vm0, %v2413_v9, %v2414_v19  ;;  %13664 = vpow2.f32 %v9712_v43  ;;  %v13649_v40 = vpop.eup %13648  ;;  %v11487_v17 = vunpack.c.l.bf16 %v15975_v2 }
  0xb4   : > { %v15967_v1 = vmax.f32 %v15921_v48, %v2415_v59  ;;  %13666 = vpow2.f32 %v9713_v54  ;;  %v2416_v57 = vrot.slane %v13649_v40, 1 }
  0xb5   : > { %v13651_v3 = vpop.eup %13650  ;;  %13668 = vpow2.f32 %v9714_v46 }
  0xb6   : > { %v3239_v7 = vmax.f32 %v15913_v63, %v15967_v1  ;;  %v2418_v48 = vrot.slane %v13651_v3, 1  ;;  %13670 = vpow2.f32 %v9715_v56  ;;  %v2417_v14 = vsel %vm2346_vm0, %v2414_v19, %v2416_v57 }
  0xb7   : > { %v13653_v11 = vpop.eup %13652  ;;  %13672 = vpow2.f32 %v9716_v61  ;;  %v3018_v53 = vmax.f32 %v13647_v50, %v2417_v14 }
  0xb8   : > { %v13655_v32 = vpop.eup %13654  ;;  %vm3439_vm11 = vcmp.eq.f32.partialorder %v3239_v7, %v2415_v59  ;;  %v2419_v18 = vsel %vm2346_vm0, %v2416_v57, %v2418_v48  ;;  %v2420_v63 = vrot.slane %v13653_v11, 1  ;;  %13674 = vpow2.f32 %v9717_v52  ;;  %v197_v57 = vld [vmem:[%s15665_s29 + $0xec] sm:$0x1] }
  0xb9   : > { %v13657_v20 = vpop.eup %13656  ;;  %v3639_v60 = vsel %vm3439_vm11, %v2415_v59, 0.0  ;;  %v15988_v23 = vmax.f32 %v13649_v40, %v2419_v18  ;;  %v2422_v5 = vrot.slane %v13655_v32, 1  ;;  %v3240_v27 = vmax.f32 %v15915_v36, %v3018_v53 }
  0xba   : > { %v13659_v26 = vpop.eup %13658  ;;  %v11800_v21 = vpack.c.bf16 %v3639_v60, %v3638_v12  ;;  %v2421_v29 = vsel %vm2346_vm0, %v2418_v48, %v2420_v63  ;;  %v2424_v0 = vrot.slane %v13657_v20, 1  ;;  %13676 = vpow2.f32 %v9718_v41  ;;  %v13084_v48 = vld [vmem:[%s15665_s29 + $0xf0] sm:$0xff]  }
  0xbb   : > { %v15992_v62 = vpop.eup %13660  ;;  %v3241_v58 = vmax.f32 %v15926_v49, %v15988_v23  ;;  %v2423_v30 = vsel %vm2346_vm0, %v2420_v63, %v2422_v5  ;;  %v15997_v31 = vmax.f32 %v13651_v3, %v2421_v29  ;;  %v2425_v33 = vrot.slane %v13659_v26, 1  ;;  %v16030_v63 = vld [vmem:[%s15665_s29 + $0xf8] sm:$0xff]  }
  0xbc   : > { %v13663_v25 = vpop.eup %13662  ;;  %13157 = vst [vmem:[%s15729_s24 + $0x60] sm:$0xff] %v11800_v21   ;;  %vm3440_vm12 = vcmp.eq.f32.partialorder %v3240_v27, %v2417_v14  ;;  %v16000_v34 = vmax.f32 %v13653_v11, %v2423_v30  ;;  %v2427_v36 = vrot.slane %v15992_v62, 1  ;;  %v11488_v7 = vunpack.c.h.bf16 %v15975_v2 }
  0xbd   : > { %v13665_v13 = vpop.eup %13664  ;;  %vm3441_vm13 = vcmp.eq.f32.partialorder %v3241_v58, %v2419_v18  ;;  %v3640_v37 = vsel %vm3440_vm12, %v2417_v14, 0.0  ;;  %v3242_v15 = vmax.f32 %v15930_v6, %v15997_v31  ;;  %v2426_v49 = vsel %vm2346_vm0, %v2424_v0, %v2425_v33 }
  0xbe   : > { %v13667_v39 = vpop.eup %13666  ;;  %v3641_v38 = vsel %vm3441_vm13, %v2419_v18, 0.0  ;;  %v3243_v43 = vmax.f32 %v15943_v22, %v16000_v34  ;;  %v2428_v28 = vsel %vm2346_vm0, %v2425_v33, %v2427_v36  ;;  %v16011_v10 = vmax.f32 %v13657_v20, %v2426_v49 }
  0xbf   : > { %v13669_v9 = vpop.eup %13668  ;;  %v11805_v46 = vpack.c.bf16 %v3641_v38, %v3640_v37  ;;  %vm3442_vm14 = vcmp.eq.f32.partialorder %v3242_v15, %v2421_v29  ;;  %v16013_v47 = vmax.f32 %v13659_v26, %v2428_v28  ;;  %v1413_v6 = vadd.f32 1.0, %v13663_v25 }
  0xc0   : > { %v13671_v50 = vpop.eup %13670  ;;  %vm3443_vm15 = vcmp.eq.f32.partialorder %v3243_v43, %v2423_v30  ;;  %v3642_v51 = vsel %vm3442_vm14, %v2421_v29, 0.0  ;;  %v3244_v54 = vmax.f32 %v15967_v1, %v16011_v10  ;;  %v1414_v55 = vadd.f32 1.0, %v13665_v13 }
  0xc1   : > { %v13673_v22 = vpop.eup %13672  ;;  %13158 = vst [vmem:[%s15729_s24 + $0x68] sm:$0xff] %v11805_v46   ;;  %v3643_v19 = vsel %vm3443_vm15, %v2423_v30, 0.0  ;;  %v3245_v16 = vmax.f32 %v3018_v53, %v16013_v47  ;;  %13678 = vrcp.f32 %v1413_v6  ;;  %v1415_v45 = vadd.f32 1.0, %v13667_v39 }
  0xc2   : > { %v11810_v56 = vpack.c.bf16 %v3643_v19, %v3642_v51  ;;  %vm3444_vm1 = vcmp.eq.f32.partialorder %v3244_v54, %v2426_v49  ;;  %13680 = vrcp.f32 %v1414_v55  ;;  %v1416_v59 = vadd.f32 1.0, %v13669_v9  ;;  %v13675_v61 = vpop.eup %13674 }
  0xc3   : > { %vm3445_vm2 = vcmp.eq.f32.partialorder %v3245_v16, %v2428_v28  ;;  %v3644_v40 = vsel %vm3444_vm1, %v2426_v49, 0.0  ;;  %v1417_v44 = vadd.f32 1.0, %v13671_v50  ;;  %13682 = vrcp.f32 %v1415_v45 }
  0xc4   : > { %13159 = vst [vmem:[%s15729_s24 + $0x70] sm:$0xff] %v11810_v56   ;;  %v3645_v1 = vsel %vm3445_vm2, %v2428_v28, 0.0  ;;  %13684 = vrcp.f32 %v1416_v59  ;;  %v1418_v52 = vadd.f32 1.0, %v13673_v22  ;;  %v1419_v3 = vadd.f32 1.0, %v13675_v61  ;;  %v13677_v11 = vpop.eup %13676 }
  0xc5   : > { %v11815_v41 = vpack.c.bf16 %v3645_v1, %v3644_v40  ;;  %13686 = vrcp.f32 %v1417_v44  ;;  %v9720_v12 = vmul.f32 -1.442695, %v11483_v35  ;;  %v442_v14 = vunpack.c.h.bf16 %v15948_v42 }
  0xc6   : > { %13688 = vrcp.f32 %v1418_v52  ;;  %v1420_v32 = vadd.f32 1.0, %v13677_v11  ;;  %v9721_v18 = vmul.f32 -1.442695, %v11484_v8  ;;  %v443_v53 = vunpack.c.l.bf16 %v197_v57 }
  0xc7   : > { %13160 = vst [vmem:[%s15729_s24 + $0x78] sm:$0xff] %v11815_v41   ;;  %13690 = vrcp.f32 %v1419_v3  ;;  %v9722_v20 = vmul.f32 -1.442695, %v11487_v17  ;;  %v11491_v60 = vunpack.c.l.bf16 %v13084_v48  ;;  %v9723_v5 = vmul.f32 -1.442695, %v11488_v7 }
  0xc8   : > { %13692 = vpow2.f32 %v15977_v4  ;;  %v11492_v35 = vunpack.c.h.bf16 %v13084_v48  ;;  %v9724_v42 = vmul.f32 -1.442695, %v442_v14  ;;  %v11495_v26 = vunpack.c.l.bf16 %v16030_v63 }
  0xc9   : > { %13694 = vrcp.f32 %v1420_v32  ;;  %v9725_v24 = vmul.f32 -1.442695, %v443_v53  ;;  %v9726_v29 = vmul.f32 -1.442695, %v11491_v60  ;;  %v11496_v17 = vunpack.c.h.bf16 %v16030_v63 }
  0xca   : > { %13696 = vpow2.f32 %v9720_v12  ;;  %v9727_v2 = vmul.f32 -1.442695, %v11492_v35  ;;  %v9728_v25 = vmul.f32 -1.442695, %v11495_v26  ;;  %v16076_v12 = vld [vmem:[%s15665_s29 + $0x100] ss:$24 sps:$4 sm:$0xff]  }
  0xcb   : > { %v13679_v21 = vpop.eup %13678  ;;  %13698 = vpow2.f32 %v9721_v18 }
  0xcc   : > { %v13681_v8 = vpop.eup %13680  ;;  %v2429_v27 = vrot.slane %v13679_v21, 1  ;;  %13700 = vpow2.f32 %v9722_v20 }
  0xcd   : > { %v13683_v0 = vpop.eup %13682  ;;  %v2431_v4 = vrot.slane %v13681_v8, 1  ;;  %13702 = vpow2.f32 %v9723_v5 }
  0xce   : > { %v13685_v58 = vpop.eup %13684  ;;  %v2430_v30 = vsel %vm2346_vm0, %v2427_v36, %v2429_v27  ;;  %v2433_v33 = vrot.slane %v13683_v0, 1  ;;  %13704 = vpow2.f32 %v9724_v42 }
  0xcf   : > { %v13687_v13 = vpop.eup %13686  ;;  %v2432_v37 = vsel %vm2346_vm0, %v2429_v27, %v2431_v4  ;;  %v3024_v15 = vmax.f32 %v15992_v62, %v2430_v30  ;;  %v2435_v49 = vrot.slane %v13685_v58, 1  ;;  %13706 = vpow2.f32 %v9725_v24 }
  0xd0   : > { %v13689_v39 = vpop.eup %13688  ;;  %v16042_v38 = vmax.f32 %v13679_v21, %v2432_v37  ;;  %v2434_v43 = vsel %vm2346_vm0, %v2431_v4, %v2433_v33  ;;  %v2436_v28 = vrot.slane %v13687_v13, 1  ;;  %13708 = vpow2.f32 %v9726_v29  ;;  %v203_v21 = vld [vmem:[%s15665_s29 + $0x104] sm:$0x1]  ;;  %v13086_v4 = vld [vmem:[%s15665_s29 + $0x108] sm:$0xff]  }
  0xd1   : > { %v13691_v9 = vpop.eup %13690  ;;  %v3246_v36 = vmax.f32 %v15988_v23, %v3024_v15  ;;  %v16046_v46 = vmax.f32 %v13681_v8, %v2434_v43  ;;  %v2438_v6 = vrot.slane %v13689_v39, 1  ;;  %13710 = vpow2.f32 %v9727_v2 }
  0xd2   : > { %v13693_v50 = vpop.eup %13692  ;;  %v3247_v62 = vmax.f32 %v15997_v31, %v16042_v38  ;;  %v2437_v51 = vsel %vm2346_vm0, %v2435_v49, %v2436_v28  ;;  %v2440_v54 = vrot.slane %v13691_v9, 1  ;;  %13712 = vpow2.f32 %v9728_v25 }
  0xd3   : > { %v16051_v55 = vpop.eup %13694  ;;  %vm3446_vm3 = vcmp.eq.f32.partialorder %v3246_v36, %v2430_v30  ;;  %v16053_v22 = vmax.f32 %v13685_v58, %v2437_v51  ;;  %v3248_v23 = vmax.f32 %v16000_v34, %v16046_v46  ;;  %v2439_v19 = vsel %vm2346_vm0, %v2436_v28, %v2438_v6 }
  0xd4   : > { %v13697_v16 = vpop.eup %13696  ;;  %vm3447_vm4 = vcmp.eq.f32.partialorder %v3247_v62, %v2432_v37  ;;  %v3646_v45 = vsel %vm3446_vm3, %v2430_v30, 0.0  ;;  %v2441_v56 = vsel %vm2346_vm0, %v2438_v6, %v2440_v54  ;;  %v16059_v31 = vmax.f32 %v13687_v13, %v2439_v19  ;;  %v16104_v62 = vld [vmem:[%s15665_s29 + $0x120] sm:$0xff]  }
  0xd5   : > { %v13699_v59 = vpop.eup %13698  ;;  %v3647_v61 = vsel %vm3447_vm4, %v2432_v37, 0.0  ;;  %v3249_v40 = vmax.f32 %v16011_v10, %v16053_v22  ;;  %vm16063_vm5 = vcmp.eq.f32.partialorder %v3248_v23, %v2434_v43  ;;  %v16067_v34 = vmax.f32 %v13689_v39, %v2441_v56  ;;  %v13087_v37 = vld [vmem:[%s15665_s29 + $0x110] sm:$0xff]  }
  0xd6   : > { %v13701_v1 = vpop.eup %13700  ;;  %v11820_v52 = vpack.c.bf16 %v3647_v61, %v3646_v45  ;;  %v3648_v3 = vsel %vm16063_vm5, %v2434_v43, 0.0  ;;  %v3250_v57 = vmax.f32 %v16013_v47, %v16059_v31  ;;  %v1421_v41 = vadd.f32 1.0, %v13693_v50  ;;  %v16113_v45 = vld [vmem:[%s15665_s29 + $0x11c] sm:$0x1] }
  0xd7   : > { %v13703_v7 = vpop.eup %13702  ;;  %vm3449_vm6 = vcmp.eq.f32.partialorder %v3249_v40, %v2437_v51  ;;  %v3251_v48 = vmax.f32 %v3024_v15, %v16067_v34  ;;  %v2442_v10 = vrot.slane %v16051_v55, 1  ;;  %v1422_v11 = vadd.f32 1.0, %v13697_v16 }
  0xd8   : > { %v13705_v14 = vpop.eup %13704  ;;  %13161 = vst [vmem:[%s15729_s24 + $0x80] sm:$0xff] %v11820_v52   ;;  %v3649_v32 = vsel %vm3449_vm6, %v2437_v51, 0.0  ;;  %vm16079_vm7 = vcmp.eq.f32.partialorder %v3250_v57, %v2439_v19  ;;  %13714 = vrcp.f32 %v1421_v41  ;;  %v1423_v47 = vadd.f32 1.0, %v13699_v59 }
  0xd9   : > { %v13707_v53 = vpop.eup %13706  ;;  %v11825_v20 = vpack.c.bf16 %v3649_v32, %v3648_v3  ;;  %vm3451_vm8 = vcmp.eq.f32.partialorder %v3251_v48, %v2441_v56  ;;  %v3650_v60 = vsel %vm16079_vm7, %v2439_v19, 0.0  ;;  %v16088_v5 = vsel %vm2346_vm0, %v2440_v54, %v2442_v10 }
  0xda   : > { %v13709_v35 = vpop.eup %13708  ;;  %v3651_v42 = vsel %vm3451_vm8, %v2441_v56, 0.0  ;;  %v1424_v26 = vadd.f32 1.0, %v13701_v1  ;;  %13716 = vrcp.f32 %v1422_v11  ;;  %v448_v24 = vunpack.c.l.bf16 %v16076_v12 }
  0xdb   : > { %v13711_v8 = vpop.eup %13710  ;;  %13162 = vst [vmem:[%s15729_s24 + $0x88] sm:$0xff] %v11825_v20   ;;  %v11830_v27 = vpack.c.bf16 %v3651_v42, %v3650_v60  ;;  %13718 = vrcp.f32 %v1423_v47  ;;  %v1425_v29 = vadd.f32 1.0, %v13703_v7  ;;  %v1426_v0 = vadd.f32 1.0, %v13705_v14 }
  0xdc   : > { %v13713_v2 = vpop.eup %13712  ;;  %v16095_v58 = vmax.f32 %v13691_v9, %v16088_v5  ;;  %13720 = vrcp.f32 %v1424_v26  ;;  %v1427_v30 = vadd.f32 1.0, %v13707_v53  ;;  %v1428_v33 = vadd.f32 1.0, %v13709_v35 }
  0xdd   : > { %13163 = vst [vmem:[%s15729_s24 + $0x90] sm:$0xff] %v11830_v27   ;;  %13722 = vrcp.f32 %v1425_v29  ;;  %v1429_v25 = vadd.f32 1.0, %v13711_v8  ;;  %v449_v13 = vunpack.c.l.bf16 %v203_v21  ;;  %v9729_v15 = vmul.f32 -1.442695, %v11496_v17 }
  0xde   : > { %13724 = vrcp.f32 %v1426_v0  ;;  %v11499_v49 = vunpack.c.l.bf16 %v13086_v4  ;;  %v1430_v39 = vadd.f32 1.0, %v13713_v2  ;;  %v11500_v43 = vunpack.c.h.bf16 %v13086_v4 }
  0xdf   : > { %13726 = vrcp.f32 %v1427_v30  ;;  %v3252_v28 = vmax.f32 %v16042_v38, %v16095_v58  ;;  %v9730_v9 = vmul.f32 -1.442695, %v448_v24  ;;  %v11503_v36 = vunpack.c.l.bf16 %v13087_v37 }
  0xe0   : > { %13728 = vrcp.f32 %v1428_v33  ;;  %v9731_v6 = vmul.f32 -1.442695, %v449_v13  ;;  %v11504_v50 = vunpack.c.h.bf16 %v13087_v37  ;;  %v9732_v63 = vmul.f32 -1.442695, %v11499_v49 }
  0xe1   : > { %13730 = vrcp.f32 %v1429_v25  ;;  %v454_v17 = vunpack.c.h.bf16 %v16076_v12  ;;  %v9733_v23 = vmul.f32 -1.442695, %v11500_v43  ;;  %vm16108_vm9 = vcmp.eq.f32.partialorder %v3252_v28, %v16088_v5 }
  0xe2   : > { %v13715_v51 = vpop.eup %13714  ;;  %13732 = vpow2.f32 %v9729_v15  ;;  %v9734_v16 = vmul.f32 -1.442695, %v11503_v36  ;;  %v11507_v56 = vunpack.c.l.bf16 %v16104_v62  ;;  %v9735_v44 = vmul.f32 -1.442695, %v11504_v50 }
  0xe3   : > { %v2444_v54 = vrot.slane %v13715_v51, 1  ;;  %13734 = vrcp.f32 %v1430_v39  ;;  %v16122_v57 = vmul.f32 -1.442695, %v454_v17  ;;  %v3652_v7 = vsel %vm16108_vm9, %v16088_v5, 0.0 }
  0xe4   : > { %v13717_v19 = vpop.eup %13716  ;;  %13736 = vpow2.f32 %v9730_v9 }
  0xe5   : > { %v13719_v59 = vpop.eup %13718  ;;  %v2445_v61 = vsel %vm2346_vm0, %v2442_v10, %v2444_v54  ;;  %v2446_v40 = vrot.slane %v13717_v19, 1  ;;  %13738 = vpow2.f32 %v9731_v6  ;;  %v455_v10 = vunpack.c.l.bf16 %v16113_v45 }
  0xe6   : > { %v13721_v1 = vpop.eup %13720  ;;  %v16120_v52 = vmax.f32 %v16051_v55, %v2445_v61  ;;  %v2447_v3 = vrot.slane %v13719_v59, 1  ;;  %13740 = vpow2.f32 %v9732_v63 }
  0xe7   : > { %v13723_v41 = vpop.eup %13722  ;;  %v2449_v48 = vrot.slane %v13721_v1, 1  ;;  %13742 = vpow2.f32 %v9733_v23 }
  0xe8   : > { %v13725_v11 = vpop.eup %13724  ;;  %v3253_v12 = vmax.f32 %v16046_v46, %v16120_v52  ;;  %v2448_v55 = vsel %vm2346_vm0, %v2446_v40, %v2447_v3  ;;  %v2451_v14 = vrot.slane %v13723_v41, 1  ;;  %13744 = vpow2.f32 %v9734_v16 }
  0xe9   : > { %v13727_v32 = vpop.eup %13726  ;;  %v2450_v18 = vsel %vm2346_vm0, %v2447_v3, %v2449_v48  ;;  %v3032_v47 = vmax.f32 %v13717_v19, %v2448_v55  ;;  %v2453_v53 = vrot.slane %v13725_v11, 1  ;;  %13746 = vpow2.f32 %v9735_v44  ;;  %v13089_v44 = vld [vmem:[%s15665_s29 + $0x128] sm:$0xff]  }
  0xea   : > { %v13729_v20 = vpop.eup %13728  ;;  %vm3453_vm10 = vcmp.eq.f32.partialorder %v3253_v12, %v2445_v61  ;;  %v16132_v60 = vmax.f32 %v13719_v59, %v2450_v18  ;;  %v2452_v5 = vsel %vm2346_vm0, %v2449_v48, %v2451_v14  ;;  %v2455_v35 = vrot.slane %v13727_v32, 1  ;;  %v16177_v48 = vld [vmem:[%s15665_s29 + $0x130] ss:$24 sps:$4 sm:$0xff]  }
  0xeb   : > { %v13731_v42 = vpop.eup %13730  ;;  %v3653_v46 = vsel %vm3453_vm10, %v2445_v61, 0.0  ;;  %v3254_v26 = vmax.f32 %v16053_v22, %v3032_v47  ;;  %v2454_v21 = vsel %vm2346_vm0, %v2451_v14, %v2453_v53  ;;  %v16137_v24 = vmax.f32 %v13721_v1, %v2452_v5  ;;  %v215_v14 = vld [vmem:[%s15665_s29 + $0x134] sm:$0x1] }
  0xec   : > { %v13733_v8 = vpop.eup %13732  ;;  %v11835_v27 = vpack.c.bf16 %v3653_v46, %v3652_v7  ;;  %v3255_v29 = vmax.f32 %v16059_v31, %v16132_v60  ;;  %v16141_v0 = vmax.f32 %v13723_v41, %v2454_v21  ;;  %v2456_v4 = vsel %vm2346_vm0, %v2453_v53, %v2455_v35 }
  0xed   : > { %v16144_v2 = vpop.eup %13734  ;;  %vm16146_vm11 = vcmp.eq.f32.partialorder %v3254_v26, %v2448_v55  ;;  %v3256_v22 = vmax.f32 %v16067_v34, %v16137_v24  ;;  %v2457_v33 = vrot.slane %v13729_v20, 1  ;;  %v2458_v25 = vrot.slane %v13731_v42, 1 }
  0xee   : > { %v13737_v13 = vpop.eup %13736  ;;  %13164 = vst [vmem:[%s15729_s24 + $0x98] sm:$0xff] %v11835_v27   ;;  %vm3455_vm12 = vcmp.eq.f32.partialorder %v3255_v29, %v2450_v18  ;;  %v3654_v31 = vsel %vm16146_vm11, %v2448_v55, 0.0  ;;  %v3257_v37 = vmax.f32 %v16095_v58, %v16141_v0  ;;  %v16157_v15 = vmax.f32 %v13725_v11, %v2456_v4 }
  0xef   : > { %v13739_v49 = vpop.eup %13738  ;;  %v3655_v39 = vsel %vm3455_vm12, %v2450_v18, 0.0  ;;  %vm3456_vm13 = vcmp.eq.f32.partialorder %v3256_v22, %v2452_v5  ;;  %v2459_v43 = vsel %vm2346_vm0, %v2457_v33, %v2458_v25  ;;  %v1431_v34 = vadd.f32 1.0, %v13733_v8 }
  0xf0   : > { %v13741_v28 = vpop.eup %13740  ;;  %v11840_v9 = vpack.c.bf16 %v3655_v39, %v3654_v31  ;;  %vm3457_vm14 = vcmp.eq.f32.partialorder %v3257_v37, %v2454_v21  ;;  %v3656_v36 = vsel %vm3456_vm13, %v2452_v5, 0.0  ;;  %v16160_v6 = vmax.f32 %v13729_v20, %v2459_v43 }
  0xf1   : > { %v13743_v50 = vpop.eup %13742  ;;  %v3657_v51 = vsel %vm3457_vm14, %v2454_v21, 0.0  ;;  %v3258_v58 = vmax.f32 %v16120_v52, %v16157_v15  ;;  %13748 = vrcp.f32 %v1431_v34  ;;  %v2460_v63 = vrot.slane %v16144_v2, 1 }
  0xf2   : > { %v13745_v17 = vpop.eup %13744  ;;  %13165 = vst [vmem:[%s15729_s24 + $0xa0] sm:$0xff] %v11840_v9   ;;  %v11845_v54 = vpack.c.bf16 %v3657_v51, %v3656_v36  ;;  %v3259_v23 = vmax.f32 %v3032_v47, %v16160_v6  ;;  %v1432_v19 = vadd.f32 1.0, %v13737_v13  ;;  %v1433_v38 = vadd.f32 1.0, %v13739_v49  ;;  %v13090_v47 = vld [vmem:[%s15665_s29 + $0x138] sm:$0xff]  }
  0xf3   : > { %v13747_v16 = vpop.eup %13746  ;;  %vm3458_vm15 = vcmp.eq.f32.partialorder %v3258_v58, %v2456_v4  ;;  %v16168_v59 = vsel %vm2346_vm0, %v2458_v25, %v2460_v63  ;;  %v1434_v61 = vadd.f32 1.0, %v13741_v28  ;;  %v1435_v40 = vadd.f32 1.0, %v13743_v50 }
  0xf4   : > { %13166 = vst [vmem:[%s15729_s24 + $0xa8] sm:$0xff] %v11845_v54   ;;  %vm3459_vm1 = vcmp.eq.f32.partialorder %v3259_v23, %v2459_v43  ;;  %v3658_v1 = vsel %vm3458_vm15, %v2456_v4, 0.0  ;;  %13750 = vrcp.f32 %v1432_v19  ;;  %v11508_v52 = vunpack.c.h.bf16 %v16104_v62 }
  0xf5   : > { %v3659_v3 = vsel %vm3459_vm1, %v2459_v43, 0.0  ;;  %v16174_v41 = vmax.f32 %v13731_v42, %v16168_v59  ;;  %13752 = vrcp.f32 %v1433_v38  ;;  %v1436_v7 = vadd.f32 1.0, %v13745_v17 }
  0xf6   : > { %v11850_v11 = vpack.c.bf16 %v3659_v3, %v3658_v1  ;;  %13754 = vrcp.f32 %v1434_v61  ;;  %v1437_v12 = vadd.f32 1.0, %v13747_v16  ;;  %v11511_v55 = vunpack.c.l.bf16 %v13089_v44 }
  0xf7   : > { %13756 = vrcp.f32 %v1435_v40  ;;  %v9737_v32 = vmul.f32 -1.442695, %v455_v10  ;;  %v11512_v18 = vunpack.c.h.bf16 %v13089_v44  ;;  %v9738_v53 = vmul.f32 -1.442695, %v11507_v56 }
  0xf8   : > { %13167 = vst [vmem:[%s15729_s24 + $0xb0] sm:$0xff] %v11850_v11   ;;  %13758 = vrcp.f32 %v1436_v7  ;;  %v460_v20 = vunpack.c.l.bf16 %v16177_v48  ;;  %v3260_v5 = vmax.f32 %v16132_v60, %v16174_v41  ;;  %v9739_v35 = vmul.f32 -1.442695, %v11508_v52  ;;  %v16196_v60 = vld [vmem:[%s15665_s29 + $0x140] sm:$0xff]  }
  0xf9   : > { %13760 = vpow2.f32 %v16122_v57  ;;  %v461_v42 = vunpack.c.l.bf16 %v215_v14  ;;  %v9740_v45 = vmul.f32 -1.442695, %v11511_v55  ;;  %v11515_v10 = vunpack.c.l.bf16 %v13090_v47 }
  0xfa   : > { %13762 = vrcp.f32 %v1437_v12  ;;  %v9741_v26 = vmul.f32 -1.442695, %v11512_v18  ;;  %v11516_v21 = vunpack.c.h.bf16 %v13090_v47  ;;  %v9742_v62 = vmul.f32 -1.442695, %v460_v20 }
  0xfb   : > { %v13749_v46 = vpop.eup %13748  ;;  %13764 = vpow2.f32 %v9737_v32  ;;  %vm16191_vm2 = vcmp.eq.f32.partialorder %v3260_v5, %v16168_v59  ;;  %v9743_v57 = vmul.f32 -1.442695, %v461_v42  ;;  %v9744_v4 = vmul.f32 -1.442695, %v11515_v10 }
  0xfc   : > { %v2462_v8 = vrot.slane %v13749_v46, 1  ;;  %13766 = vpow2.f32 %v9738_v53  ;;  %v9745_v25 = vmul.f32 -1.442695, %v11516_v21  ;;  %v3660_v31 = vsel %vm16191_vm2, %v16168_v59, 0.0 }
  0xfd   : > { %13768 = vpow2.f32 %v9739_v35  ;;  %v11519_v49 = vunpack.c.l.bf16 %v16196_v60  ;;  %v11520_v5 = vunpack.c.h.bf16 %v16196_v60 }
  0xfe   : > { %v13751_v27 = vpop.eup %13750  ;;  %v2463_v29 = vsel %vm2346_vm0, %v2460_v63, %v2462_v8  ;;  %13770 = vpow2.f32 %v9740_v45  ;;  %v13092_v45 = vld [vmem:[%s15665_s29 + $0x150] sm:$0xff]  }
  0xff   : > { %v13753_v30 = vpop.eup %13752  ;;  %v16200_v22 = vmax.f32 %v16144_v2, %v2463_v29  ;;  %v2464_v33 = vrot.slane %v13751_v27, 1  ;;  %13772 = vpow2.f32 %v9741_v26  ;;  %v9747_v60 = vmul.f32 -1.442695, %v11520_v5 }
 0x100   : > { %v13755_v13 = vpop.eup %13754  ;;  %v2466_v37 = vrot.slane %v13753_v30, 1  ;;  %13774 = vpow2.f32 %v9742_v62  ;;  %v9746_v30 = vmul.f32 -1.442695, %v11519_v49 }
 0x101   : > { %v13757_v39 = vpop.eup %13756  ;;  %v3261_v43 = vmax.f32 %v16137_v24, %v16200_v22  ;;  %v2465_v34 = vsel %vm2346_vm0, %v2462_v8, %v2464_v33  ;;  %v2468_v2 = vrot.slane %v13755_v13, 1  ;;  %13776 = vpow2.f32 %v9743_v57  ;;  %v221_v8 = vld [vmem:[%s15665_s29 + $0x14c] sm:$0x1] }
 0x102   : > { %v13759_v28 = vpop.eup %13758  ;;  %v2467_v9 = vsel %vm2346_vm0, %v2464_v33, %v2466_v37  ;;  %v16210_v36 = vmax.f32 %v13749_v46, %v2465_v34  ;;  %v2469_v50 = vrot.slane %v13757_v39, 1  ;;  %13778 = vpow2.f32 %v9744_v4 }
 0x103   : > { %v13761_v51 = vpop.eup %13760  ;;  %vm3461_vm3 = vcmp.eq.f32.partialorder %v3261_v43, %v2463_v29  ;;  %v16212_v58 = vmax.f32 %v13751_v27, %v2467_v9  ;;  %v2471_v63 = vrot.slane %v13759_v28, 1  ;;  %13780 = vpow2.f32 %v9745_v25 }
 0x104   : > { %v16214_v17 = vpop.eup %13762  ;;  %v3661_v24 = vsel %vm3461_vm3, %v2463_v29, 0.0  ;;  %v3262_v54 = vmax.f32 %v16141_v0, %v16210_v36  ;;  %v2470_v23 = vsel %vm2346_vm0, %v2468_v2, %v2469_v50  ;;  %v1438_v19 = vadd.f32 1.0, %v13761_v51  ;;  %v13093_v29 = vld [vmem:[%s15665_s29 + $0x158] sm:$0xff]   ;;  %v16270_v51 = vld [vmem:[%s15665_s29 + $0x168] sm:$0xff]  }
 0x105   : > { %v13765_v38 = vpop.eup %13764  ;;  %v11855_v16 = vpack.c.bf16 %v3661_v24, %v3660_v31  ;;  %v3263_v59 = vmax.f32 %v16157_v15, %v16212_v58  ;;  %v2472_v61 = vsel %vm2346_vm0, %v2469_v50, %v2471_v63  ;;  %v16222_v40 = vmax.f32 %v13755_v13, %v2470_v23  ;;  %v16267_v50 = vld [vmem:[%s15665_s29 + $0x164] sm:$0x1] }
 0x106   : > { %v13767_v44 = vpop.eup %13766  ;;  %vm16224_vm4 = vcmp.eq.f32.partialorder %v3262_v54, %v2465_v34  ;;  %v16228_v52 = vmax.f32 %v13757_v39, %v2472_v61  ;;  %13782 = vrcp.f32 %v1438_v19  ;;  %v2473_v0 = vrot.slane %v16214_v17, 1 }
 0x107   : > { %v13769_v3 = vpop.eup %13768  ;;  %13168 = vst [vmem:[%s15729_s24 + $0xb8] sm:$0xff] %v11855_v16   ;;  %vm3463_vm5 = vcmp.eq.f32.partialorder %v3263_v59, %v2467_v9  ;;  %v3662_v15 = vsel %vm16224_vm4, %v2465_v34, 0.0  ;;  %v3264_v7 = vmax.f32 %v16160_v6, %v16222_v40  ;;  %v1439_v11 = vadd.f32 1.0, %v13765_v38 }
 0x108   : > { %v13771_v12 = vpop.eup %13770  ;;  %v3663_v55 = vsel %vm3463_vm5, %v2467_v9, 0.0  ;;  %v3265_v14 = vmax.f32 %v16174_v41, %v16228_v52  ;;  %v16241_v32 = vsel %vm2346_vm0, %v2471_v63, %v2473_v0  ;;  %v1440_v18 = vadd.f32 1.0, %v13767_v44 }
 0x109   : > { %v13773_v47 = vpop.eup %13772  ;;  %v11860_v53 = vpack.c.bf16 %v3663_v55, %v3662_v15  ;;  %vm16243_vm6 = vcmp.eq.f32.partialorder %v3264_v7, %v2470_v23  ;;  %v1441_v6 = vadd.f32 1.0, %v13769_v3  ;;  %13784 = vrcp.f32 %v1439_v11 }
 0x10a   : > { %v13775_v35 = vpop.eup %13774  ;;  %vm3465_vm7 = vcmp.eq.f32.partialorder %v3265_v14, %v2472_v61  ;;  %v3664_v41 = vsel %vm16243_vm6, %v2470_v23, 0.0  ;;  %v1442_v42 = vadd.f32 1.0, %v13771_v12  ;;  %v16253_v26 = vmax.f32 %v13759_v28, %v16241_v32  ;;  %v16264_v28 = vld [vmem:[%s15665_s29 + $0x160] ss:$24 sps:$4 sm:$0xff]  }
 0x10b   : > { %v13777_v10 = vpop.eup %13776  ;;  %13169 = vst [vmem:[%s15729_s24 + $0xc0] sm:$0xff] %v11860_v53   ;;  %v3665_v46 = vsel %vm3465_vm7, %v2472_v61, 0.0  ;;  %13786 = vrcp.f32 %v1440_v18  ;;  %v1443_v21 = vadd.f32 1.0, %v13773_v47  ;;  %v1444_v57 = vadd.f32 1.0, %v13775_v35 }
 0x10c   : > { %v13779_v62 = vpop.eup %13778  ;;  %v11865_v56 = vpack.c.bf16 %v3665_v46, %v3664_v41  ;;  %13788 = vrcp.f32 %v1441_v6  ;;  %v1445_v27 = vadd.f32 1.0, %v13777_v10  ;;  %v466_v33 = vunpack.c.h.bf16 %v16177_v48 }
 0x10d   : > { %v13781_v4 = vpop.eup %13780  ;;  %13790 = vrcp.f32 %v1442_v42  ;;  %v11523_v25 = vunpack.c.l.bf16 %v13092_v45  ;;  %v1446_v13 = vadd.f32 1.0, %v13779_v62  ;;  %v11524_v31 = vunpack.c.h.bf16 %v13092_v45 }
 0x10e   : > { %13170 = vst [vmem:[%s15729_s24 + $0xc8] sm:$0xff] %v11865_v56   ;;  %13792 = vrcp.f32 %v1443_v21  ;;  %v467_v37 = vunpack.c.l.bf16 %v221_v8  ;;  %v1447_v39 = vadd.f32 1.0, %v13781_v4  ;;  %v11527_v43 = vunpack.c.l.bf16 %v13093_v29 }
 0x10f   : > { %13794 = vrcp.f32 %v1444_v57  ;;  %v3266_v2 = vmax.f32 %v16200_v22, %v16253_v26  ;;  %v11528_v49 = vunpack.c.h.bf16 %v13093_v29  ;;  %v9748_v9 = vmul.f32 -1.442695, %v466_v33 }
 0x110   : > { %v13783_v34 = vpop.eup %13782  ;;  %13796 = vrcp.f32 %v1445_v27  ;;  %v9749_v63 = vmul.f32 -1.442695, %v467_v37  ;;  %v9750_v24 = vmul.f32 -1.442695, %v11523_v25  ;;  %v9751_v54 = vmul.f32 -1.442695, %v11524_v31 }
 0x111   : > { %v2475_v48 = vrot.slane %v13783_v34, 1  ;;  %13798 = vpow2.f32 %v9746_v30  ;;  %v9752_v23 = vmul.f32 -1.442695, %v11527_v43  ;;  %v472_v19 = vunpack.c.l.bf16 %v16264_v28 }
 0x112   : > { %13800 = vrcp.f32 %v1446_v13  ;;  %vm16280_vm8 = vcmp.eq.f32.partialorder %v3266_v2, %v16241_v32  ;;  %v16284_v61 = vmul.f32 -1.442695, %v11528_v49  ;;  %v11531_v3 = vunpack.c.l.bf16 %v16270_v51 }
 0x113   : > { %v2476_v22 = vsel %vm2346_vm0, %v2473_v0, %v2475_v48  ;;  %13802 = vrcp.f32 %v1447_v39  ;;  %v13785_v38 = vpop.eup %13784  ;;  %v473_v0 = vunpack.c.l.bf16 %v16267_v50  ;;  %v11532_v11 = vunpack.c.h.bf16 %v16270_v51 }
 0x114   : > { %v16277_v16 = vmax.f32 %v16214_v17, %v2476_v22  ;;  %13804 = vpow2.f32 %v9747_v60  ;;  %v2477_v1 = vrot.slane %v13785_v38, 1  ;;  %v3666_v55 = vsel %vm16280_vm8, %v16241_v32, 0.0 }
 0x115   : > { %v13787_v44 = vpop.eup %13786  ;;  %13806 = vpow2.f32 %v9748_v9 }
 0x116   : > { %v13789_v15 = vpop.eup %13788  ;;  %v3267_v17 = vmax.f32 %v16210_v36, %v16277_v16  ;;  %v2479_v7 = vrot.slane %v13787_v44, 1  ;;  %13808 = vpow2.f32 %v9749_v63  ;;  %v2478_v14 = vsel %vm2346_vm0, %v2475_v48, %v2477_v1 }
 0x117   : > { %v13791_v12 = vpop.eup %13790  ;;  %v2480_v18 = vrot.slane %v13789_v15, 1  ;;  %13810 = vpow2.f32 %v9750_v24  ;;  %v3046_v53 = vmax.f32 %v13783_v34, %v2478_v14 }
 0x118   : > { %v13793_v47 = vpop.eup %13792  ;;  %vm3467_vm9 = vcmp.eq.f32.partialorder %v3267_v17, %v2476_v22  ;;  %v2482_v20 = vrot.slane %v13791_v12, 1  ;;  %13812 = vpow2.f32 %v9751_v54  ;;  %v13095_v17 = vld [vmem:[%s15665_s29 + $0x170] sm:$0xff]  }
 0x119   : > { %v13795_v6 = vpop.eup %13794  ;;  %v3667_v36 = vsel %vm3467_vm9, %v2476_v22, 0.0  ;;  %v2481_v5 = vsel %vm2346_vm0, %v2479_v7, %v2480_v18  ;;  %v2484_v35 = vrot.slane %v13793_v47, 1  ;;  %13814 = vpow2.f32 %v9752_v23 }
 0x11a   : > { %v13797_v41 = vpop.eup %13796  ;;  %v11870_v42 = vpack.c.bf16 %v3667_v36, %v3666_v55  ;;  %v16296_v45 = vmax.f32 %v13787_v44, %v2481_v5  ;;  %v3268_v32 = vmax.f32 %v16212_v58, %v3046_v53  ;;  %v2483_v10 = vsel %vm2346_vm0, %v2480_v18, %v2482_v20 }
 0x11b   : > { %v13799_v46 = vpop.eup %13798  ;;  %v2485_v21 = vsel %vm2346_vm0, %v2482_v20, %v2484_v35  ;;  %v16301_v8 = vmax.f32 %v13789_v15, %v2483_v10  ;;  %v2486_v62 = vrot.slane %v13795_v6, 1  ;;  %v2488_v56 = vrot.slane %v13797_v41, 1  ;;  %v233_v41 = vld [vmem:[%s15665_s29 + $0x17c] sm:$0x1] }
 0x11c   : > { %v13801_v57 = vpop.eup %13800  ;;  %13171 = vst [vmem:[%s15729_s24 + $0xd0] sm:$0xff] %v11870_v42   ;;  %v3269_v27 = vmax.f32 %v16222_v40, %v16296_v45  ;;  %vm16306_vm10 = vcmp.eq.f32.partialorder %v3268_v32, %v2478_v14  ;;  %v16310_v4 = vmax.f32 %v13791_v12, %v2485_v21  ;;  %v1448_v58 = vadd.f32 1.0, %v13799_v46 }
 0x11d   : > { %v16312_v30 = vpop.eup %13802  ;;  %v3668_v33 = vsel %vm16306_vm10, %v2478_v14, 0.0  ;;  %v3270_v25 = vmax.f32 %v16228_v52, %v16301_v8  ;;  %v2487_v13 = vsel %vm2346_vm0, %v2484_v35, %v2486_v62  ;;  %v2489_v31 = vsel %vm2346_vm0, %v2486_v62, %v2488_v56 }
 0x11e   : > { %v13805_v40 = vpop.eup %13804  ;;  %vm3469_vm11 = vcmp.eq.f32.partialorder %v3269_v27, %v2481_v5  ;;  %v3271_v37 = vmax.f32 %v16253_v26, %v16310_v4  ;;  %v16322_v39 = vmax.f32 %v13793_v47, %v2487_v13  ;;  %v16324_v43 = vmax.f32 %v13795_v6, %v2489_v31 }
 0x11f   : > { %v13807_v34 = vpop.eup %13806  ;;  %v3669_v2 = vsel %vm3469_vm11, %v2481_v5, 0.0  ;;  %vm3470_vm12 = vcmp.eq.f32.partialorder %v3270_v25, %v2483_v10  ;;  %13816 = vrcp.f32 %v1448_v58  ;;  %v2490_v60 = vrot.slane %v13801_v57, 1 }
 0x120   : > { %v13809_v52 = vpop.eup %13808  ;;  %v11875_v49 = vpack.c.bf16 %v3669_v2, %v3668_v33  ;;  %vm3471_vm13 = vcmp.eq.f32.partialorder %v3271_v37, %v2485_v21  ;;  %v3670_v48 = vsel %vm3470_vm12, %v2483_v10, 0.0  ;;  %v3272_v9 = vmax.f32 %v16277_v16, %v16322_v39 }
 0x121   : > { %v13811_v63 = vpop.eup %13810  ;;  %v3671_v26 = vsel %vm3471_vm13, %v2485_v21, 0.0  ;;  %v3273_v24 = vmax.f32 %v3046_v53, %v16324_v43  ;;  %v2491_v54 = vrot.slane %v16312_v30, 1  ;;  %v1449_v22 = vadd.f32 1.0, %v13805_v40 }
 0x122   : > { %v13813_v23 = vpop.eup %13812  ;;  %13172 = vst [vmem:[%s15729_s24 + $0xd8] sm:$0xff] %v11875_v49   ;;  %v11880_v38 = vpack.c.bf16 %v3671_v26, %v3670_v48  ;;  %vm3472_vm14 = vcmp.eq.f32.partialorder %v3272_v9, %v2487_v13  ;;  %v1450_v59 = vadd.f32 1.0, %v13807_v34  ;;  %v1451_v44 = vadd.f32 1.0, %v13809_v52 }
 0x123   : > { %v13815_v1 = vpop.eup %13814  ;;  %vm3473_vm15 = vcmp.eq.f32.partialorder %v3273_v24, %v2489_v31  ;;  %v3672_v15 = vsel %vm3472_vm14, %v2487_v13, 0.0  ;;  %v16332_v16 = vsel %vm2346_vm0, %v2490_v60, %v2491_v54  ;;  %13818 = vrcp.f32 %v1449_v22 }
 0x124   : > { %13173 = vst [vmem:[%s15729_s24 + $0xe0] sm:$0xff] %v11880_v38   ;;  %v3673_v7 = vsel %vm3473_vm15, %v2489_v31, 0.0  ;;  %v16337_v12 = vmax.f32 %v13801_v57, %v16332_v16  ;;  %13820 = vrcp.f32 %v1450_v59  ;;  %v1452_v55 = vadd.f32 1.0, %v13811_v63 }
 0x125   : > { %v11885_v14 = vpack.c.bf16 %v3673_v7, %v3672_v15  ;;  %v1453_v18 = vadd.f32 1.0, %v13813_v23  ;;  %13822 = vrcp.f32 %v1451_v44  ;;  %v1454_v47 = vadd.f32 1.0, %v13815_v1  ;;  %v13097_v7 = vld [vmem:[%s15665_s29 + $0x188] sm:$0xff]  }
 0x126   : > { %13824 = vrcp.f32 %v1452_v55  ;;  %v9754_v53 = vmul.f32 -1.442695, %v472_v19  ;;  %v11535_v20 = vunpack.c.l.bf16 %v13095_v17  ;;  %v9755_v6 = vmul.f32 -1.442695, %v473_v0 }
 0x127   : > { %13174 = vst [vmem:[%s15729_s24 + $0xe8] sm:$0xff] %v11885_v14   ;;  %13826 = vrcp.f32 %v1453_v18  ;;  %v11536_v36 = vunpack.c.h.bf16 %v13095_v17  ;;  %v9756_v5 = vmul.f32 -1.442695, %v11531_v3  ;;  %v478_v35 = vunpack.c.h.bf16 %v16264_v28 }
 0x128   : > { %13828 = vpow2.f32 %v16284_v61  ;;  %v3274_v19 = vmax.f32 %v16296_v45, %v16337_v12  ;;  %v9757_v32 = vmul.f32 -1.442695, %v11532_v11  ;;  %v9758_v0 = vmul.f32 -1.442695, %v11535_v20  ;;  %v16354_v61 = vld [vmem:[%s15665_s29 + $0x180] sm:$0xff]  }
 0x129   : > { %v13817_v42 = vpop.eup %13816  ;;  %13830 = vrcp.f32 %v1454_v47  ;;  %v9759_v10 = vmul.f32 -1.442695, %v11536_v36  ;;  %v479_v46 = vunpack.c.l.bf16 %v233_v41  ;;  %v9760_v28 = vmul.f32 -1.442695, %v478_v35 }
 0x12a   : > { %v2493_v50 = vrot.slane %v13817_v42, 1  ;;  %13832 = vpow2.f32 %v9754_v53  ;;  %vm16361_vm1 = vcmp.eq.f32.partialorder %v3274_v19, %v16332_v16  ;;  %v11539_v56 = vunpack.c.l.bf16 %v16354_v61 }
 0x12b   : > { %13834 = vpow2.f32 %v9755_v6  ;;  %v9761_v58 = vmul.f32 -1.442695, %v479_v46  ;;  %v3674_v33 = vsel %vm16361_vm1, %v16332_v16, 0.0  ;;  %v11540_v17 = vunpack.c.h.bf16 %v16354_v61  ;;  %v16430_v61 = vld [vmem:[%s15665_s29 + $0x1a0] sm:$0xff]  }
 0x12c   : > { %v2494_v3 = vsel %vm2346_vm0, %v2491_v54, %v2493_v50  ;;  %13836 = vpow2.f32 %v9756_v5  ;;  %v11543_v41 = vunpack.c.l.bf16 %v13097_v7  ;;  %v9762_v51 = vmul.f32 -1.442695, %v11539_v56 }
 0x12d   : > { %v13819_v21 = vpop.eup %13818  ;;  %v16358_v62 = vmax.f32 %v16312_v30, %v2494_v3  ;;  %13838 = vpow2.f32 %v9757_v32 }
 0x12e   : > { %v13821_v11 = vpop.eup %13820  ;;  %v2495_v45 = vrot.slane %v13819_v21, 1  ;;  %13840 = vpow2.f32 %v9758_v0 }
 0x12f   : > { %v13823_v57 = vpop.eup %13822  ;;  %v3275_v27 = vmax.f32 %v16301_v8, %v16358_v62  ;;  %v2497_v29 = vrot.slane %v13821_v11, 1  ;;  %13842 = vpow2.f32 %v9759_v10  ;;  %v239_v10 = vld [vmem:[%s15665_s29 + $0x194] sm:$0x1] }
 0x130   : > { %v13825_v30 = vpop.eup %13824  ;;  %v2496_v25 = vsel %vm2346_vm0, %v2493_v50, %v2495_v45  ;;  %v2499_v13 = vrot.slane %v13823_v57, 1  ;;  %13844 = vpow2.f32 %v9760_v28 }
 0x131   : > { %v13827_v31 = vpop.eup %13826  ;;  %vm3475_vm2 = vcmp.eq.f32.partialorder %v3275_v27, %v2494_v3  ;;  %v2498_v40 = vsel %vm2346_vm0, %v2495_v45, %v2497_v29  ;;  %v16373_v37 = vmax.f32 %v13817_v42, %v2496_v25  ;;  %v2501_v34 = vrot.slane %v13825_v30, 1  ;;  %v16415_v42 = vld [vmem:[%s15665_s29 + $0x190] ss:$24 sps:$4 sm:$0xff]  }
 0x132   : > { %v13829_v8 = vpop.eup %13828  ;;  %v3675_v2 = vsel %vm3475_vm2, %v2494_v3, 0.0  ;;  %v16375_v60 = vmax.f32 %v13819_v21, %v2498_v40  ;;  %v2500_v52 = vsel %vm2346_vm0, %v2497_v29, %v2499_v13  ;;  %v2502_v49 = vrot.slane %v13827_v31, 1  ;;  %v13098_v21 = vld [vmem:[%s15665_s29 + $0x198] sm:$0xff]  }
 0x133   : > { %v16378_v48 = vpop.eup %13830  ;;  %v11890_v9 = vpack.c.bf16 %v3675_v2, %v3674_v33  ;;  %v3276_v63 = vmax.f32 %v16310_v4, %v16373_v37  ;;  %v16382_v26 = vmax.f32 %v13821_v11, %v2500_v52  ;;  %v1455_v24 = vadd.f32 1.0, %v13829_v8 }
 0x134   : > { %v13833_v54 = vpop.eup %13832  ;;  %v3277_v22 = vmax.f32 %v16322_v39, %v16375_v60  ;;  %v2503_v23 = vsel %vm2346_vm0, %v2501_v34, %v2502_v49  ;;  %v2504_v38 = vrot.slane %v16378_v48, 1  ;;  %13846 = vpow2.f32 %v9761_v58 }
 0x135   : > { %v13835_v59 = vpop.eup %13834  ;;  %13175 = vst [vmem:[%s15729_s24 + $0xf0] sm:$0xff] %v11890_v9   ;;  %vm16389_vm3 = vcmp.eq.f32.partialorder %v3276_v63, %v2496_v25  ;;  %v16393_v4 = vmax.f32 %v13825_v30, %v2503_v23  ;;  %v3278_v1 = vmax.f32 %v16324_v43, %v16382_v26  ;;  %13848 = vrcp.f32 %v1455_v24 }
 0x136   : > { %v13837_v15 = vpop.eup %13836  ;;  %vm3477_vm4 = vcmp.eq.f32.partialorder %v3277_v22, %v2498_v40  ;;  %v3676_v39 = vsel %vm16389_vm3, %v2496_v25, 0.0  ;;  %v1456_v16 = vadd.f32 1.0, %v13833_v54  ;;  %v16410_v43 = vsel %vm2346_vm0, %v2502_v49, %v2504_v38 }
 0x137   : > { %v13839_v55 = vpop.eup %13838  ;;  %v3677_v14 = vsel %vm3477_vm4, %v2498_v40, 0.0  ;;  %v3279_v18 = vmax.f32 %v16337_v12, %v16393_v4  ;;  %vm16403_vm5 = vcmp.eq.f32.partialorder %v3278_v1, %v2500_v52  ;;  %v1457_v36 = vadd.f32 1.0, %v13835_v59 }
 0x138   : > { %v13841_v53 = vpop.eup %13840  ;;  %v11895_v20 = vpack.c.bf16 %v3677_v14, %v3676_v39  ;;  %v3678_v6 = vsel %vm16403_vm5, %v2500_v52, 0.0  ;;  %13850 = vrcp.f32 %v1456_v16  ;;  %v1458_v12 = vadd.f32 1.0, %v13837_v15 }
 0x139   : > { %v13843_v5 = vpop.eup %13842  ;;  %vm3479_vm6 = vcmp.eq.f32.partialorder %v3279_v18, %v2503_v23  ;;  %v1459_v35 = vadd.f32 1.0, %v13839_v55  ;;  %13852 = vrcp.f32 %v1457_v36  ;;  %v1460_v50 = vadd.f32 1.0, %v13841_v53 }
 0x13a   : > { %v13845_v19 = vpop.eup %13844  ;;  %13176 = vst [vmem:[%s15729_s24 + $0xf8] sm:$0xff] %v11895_v20   ;;  %v3679_v32 = vsel %vm3479_vm6, %v2503_v23, 0.0  ;;  %v1461_v0 = vadd.f32 1.0, %v13843_v5  ;;  %v16420_v3 = vmax.f32 %v13827_v31, %v16410_v43  ;;  %13854 = vrcp.f32 %v1458_v12 }
 0x13b   : > { %v11900_v46 = vpack.c.bf16 %v3679_v32, %v3678_v6  ;;  %v1462_v28 = vadd.f32 1.0, %v13845_v19  ;;  %13856 = vrcp.f32 %v1459_v35  ;;  %v11544_v11 = vunpack.c.h.bf16 %v13097_v7 }
 0x13c   : > { %13858 = vrcp.f32 %v1460_v50  ;;  %v9763_v45 = vmul.f32 -1.442695, %v11540_v17  ;;  %v484_v57 = vunpack.c.l.bf16 %v16415_v42  ;;  %v485_v27 = vunpack.c.l.bf16 %v239_v10 }
 0x13d   : > { %13177 = vst [vmem:[%s15729_s24 + $0x100] sm:$0xff] %v11900_v46   ;;  %13860 = vrcp.f32 %v1461_v0  ;;  %v11547_v58 = vunpack.c.l.bf16 %v13098_v21  ;;  %v3280_v33 = vmax.f32 %v16358_v62, %v16420_v3  ;;  %v9764_v13 = vmul.f32 -1.442695, %v11543_v41 }
 0x13e   : > { %v13847_v29 = vpop.eup %13846  ;;  %13862 = vrcp.f32 %v1462_v28  ;;  %v9765_v31 = vmul.f32 -1.442695, %v11544_v11  ;;  %v11548_v40 = vunpack.c.h.bf16 %v13098_v21  ;;  %v9766_v34 = vmul.f32 -1.442695, %v484_v57 }
 0x13f   : > { %v13849_v30 = vpop.eup %13848  ;;  %v1463_v25 = vadd.f32 1.0, %v13847_v29  ;;  %13864 = vpow2.f32 %v9762_v51  ;;  %v9767_v8 = vmul.f32 -1.442695, %v485_v27  ;;  %v11551_v62 = vunpack.c.l.bf16 %v16430_v61 }
 0x140   : > { %v2506_v56 = vrot.slane %v13849_v30, 1  ;;  %13866 = vpow2.f32 %v9763_v45  ;;  %v9768_v49 = vmul.f32 -1.442695, %v11547_v58  ;;  %vm16440_vm7 = vcmp.eq.f32.partialorder %v3280_v33, %v16410_v43 }
 0x141   : > { %13868 = vrcp.f32 %v1463_v25  ;;  %v9769_v22 = vmul.f32 -1.442695, %v11548_v40  ;;  %v11552_v23 = vunpack.c.h.bf16 %v16430_v61  ;;  %v3680_v39 = vsel %vm16440_vm7, %v16410_v43, 0.0 }
 0x142   : > { %v13851_v2 = vpop.eup %13850  ;;  %v2507_v52 = vsel %vm2346_vm0, %v2504_v38, %v2506_v56  ;;  %13870 = vpow2.f32 %v9764_v13  ;;  %v490_v38 = vunpack.c.h.bf16 %v16415_v42 }
 0x143   : > { %v16437_v9 = vmax.f32 %v16378_v48, %v2507_v52  ;;  %v2508_v24 = vrot.slane %v13851_v2, 1  ;;  %v13853_v54 = vpop.eup %13852  ;;  %13872 = vpow2.f32 %v9765_v31 }
 0x144   : > { %v13855_v59 = vpop.eup %13854  ;;  %v2510_v1 = vrot.slane %v13853_v54, 1  ;;  %13874 = vpow2.f32 %v9766_v34 }
 0x145   : > { %v3281_v44 = vmax.f32 %v16373_v37, %v16437_v9  ;;  %v2509_v48 = vsel %vm2346_vm0, %v2506_v56, %v2508_v24  ;;  %v13857_v15 = vpop.eup %13856  ;;  %v2512_v17 = vrot.slane %v13855_v59, 1  ;;  %13876 = vpow2.f32 %v9767_v8 }
 0x146   : > { %v3060_v16 = vmax.f32 %v13849_v30, %v2509_v48  ;;  %v13859_v7 = vpop.eup %13858  ;;  %v2511_v55 = vsel %vm2346_vm0, %v2508_v24, %v2510_v1  ;;  %v2513_v14 = vrot.slane %v13857_v15, 1  ;;  %13878 = vpow2.f32 %v9768_v49 }
 0x147   : > { %vm3481_vm8 = vcmp.eq.f32.partialorder %v3281_v44, %v2507_v52  ;;  %v13861_v18 = vpop.eup %13860  ;;  %v16453_v47 = vmax.f32 %v13851_v2, %v2511_v55  ;;  %v2515_v20 = vrot.slane %v13859_v7, 1  ;;  %13880 = vpow2.f32 %v9769_v22  ;;  %v245_v2 = vld [vmem:[%s15665_s29 + $0x1ac] sm:$0x1]  ;;  %v13100_v44 = vld [vmem:[%s15665_s29 + $0x1b0] sm:$0xff]  }
 0x148   : > { %v3681_v37 = vsel %vm3481_vm8, %v2507_v52, 0.0  ;;  %v3282_v53 = vmax.f32 %v16375_v60, %v3060_v16  ;;  %v13863_v6 = vpop.eup %13862  ;;  %v2514_v43 = vsel %vm2346_vm0, %v2512_v17, %v2513_v14  ;;  %v2517_v5 = vrot.slane %v13861_v18, 1 }
 0x149   : > { %v11905_v36 = vpack.c.bf16 %v3681_v37, %v3680_v39  ;;  %v13865_v12 = vpop.eup %13864  ;;  %v3283_v35 = vmax.f32 %v16382_v26, %v16453_v47  ;;  %v2516_v19 = vsel %vm2346_vm0, %v2513_v14, %v2515_v20  ;;  %v16464_v32 = vmax.f32 %v13855_v59, %v2514_v43 }
 0x14a   : > { %vm16459_vm9 = vcmp.eq.f32.partialorder %v3282_v53, %v2509_v48  ;;  %v13867_v60 = vpop.eup %13866  ;;  %v16469_v0 = vmax.f32 %v13857_v15, %v2516_v19  ;;  %v2518_v10 = vsel %vm2346_vm0, %v2515_v20, %v2517_v5  ;;  %v2519_v46 = vrot.slane %v13863_v6, 1  ;;  %v16513_v53 = vld [vmem:[%s15665_s29 + $0x1c0] ss:$24 sps:$4 sm:$0xff]  }
 0x14b   : > { %13178 = vst [vmem:[%s15729_s24 + $0x108] sm:$0xff] %v11905_v36   ;;  %v3682_v50 = vsel %vm16459_vm9, %v2509_v48, 0.0  ;;  %v13869_v28 = vpop.eup %13868  ;;  %vm3483_vm10 = vcmp.eq.f32.partialorder %v3283_v35, %v2511_v55  ;;  %v3284_v26 = vmax.f32 %v16393_v4, %v16464_v32  ;;  %v16474_v21 = vmax.f32 %v13859_v7, %v2518_v10 }
 0x14c   : > { %v1464_v51 = vadd.f32 1.0, %v13865_v12  ;;  %v13871_v11 = vpop.eup %13870  ;;  %v3683_v45 = vsel %vm3483_vm10, %v2511_v55, 0.0  ;;  %v3285_v57 = vmax.f32 %v16420_v3, %v16469_v0  ;;  %v2520_v27 = vsel %vm2346_vm0, %v2517_v5, %v2519_v46  ;;  %v13101_v55 = vld [vmem:[%s15665_s29 + $0x1b8] sm:$0xff]  }
 0x14d   : > { %v1465_v29 = vadd.f32 1.0, %v13867_v60  ;;  %v13873_v58 = vpop.eup %13872  ;;  %v11910_v30 = vpack.c.bf16 %v3683_v45, %v3682_v50  ;;  %vm16479_vm11 = vcmp.eq.f32.partialorder %v3284_v26, %v2514_v43  ;;  %v16483_v4 = vmax.f32 %v13861_v18, %v2520_v27  ;;  %v16521_v60 = vld [vmem:[%s15665_s29 + $0x1c4] sm:$0x1] }
 0x14e   : > { %v3286_v25 = vmax.f32 %v16437_v9, %v16474_v21  ;;  %v13875_v13 = vpop.eup %13874  ;;  %vm3485_vm12 = vcmp.eq.f32.partialorder %v3285_v57, %v2516_v19  ;;  %v3684_v3 = vsel %vm16479_vm11, %v2514_v43, 0.0  ;;  %13882 = vrcp.f32 %v1464_v51 }
 0x14f   : > { %v2521_v56 = vrot.slane %v13869_v28, 1  ;;  %v13877_v31 = vpop.eup %13876  ;;  %13179 = vst [vmem:[%s15729_s24 + $0x110] sm:$0xff] %v11910_v30   ;;  %v3685_v40 = vsel %vm3485_vm12, %v2516_v19, 0.0  ;;  %v3287_v34 = vmax.f32 %v3060_v16, %v16483_v4  ;;  %13884 = vrcp.f32 %v1465_v29 }
 0x150   : > { %vm16491_vm13 = vcmp.eq.f32.partialorder %v3286_v25, %v2518_v10  ;;  %v13879_v52 = vpop.eup %13878  ;;  %v11915_v49 = vpack.c.bf16 %v3685_v40, %v3684_v3  ;;  %v1466_v24 = vadd.f32 1.0, %v13871_v11  ;;  %v1467_v54 = vadd.f32 1.0, %v13873_v58 }
 0x151   : > { %v3686_v9 = vsel %vm16491_vm13, %v2518_v10, 0.0  ;;  %v16499_v63 = vsel %vm2346_vm0, %v2519_v46, %v2521_v56  ;;  %vm3487_vm14 = vcmp.eq.f32.partialorder %v3287_v34, %v2520_v27  ;;  %v1468_v22 = vadd.f32 1.0, %v13875_v13  ;;  %v13881_v48 = vpop.eup %13880  ;;  %v16529_v10 = vld [vmem:[%s15665_s29 + $0x1c8] sm:$0xff]  }
 0x152   : > { %v9770_v59 = vmul.f32 -1.442695, %v11551_v62  ;;  %13180 = vst [vmem:[%s15729_s24 + $0x118] sm:$0xff] %v11915_v49   ;;  %v3687_v1 = vsel %vm3487_vm14, %v2520_v27, 0.0  ;;  %13886 = vrcp.f32 %v1466_v24  ;;  %v1469_v15 = vadd.f32 1.0, %v13877_v31 }
 0x153   : > { %v491_v39 = vunpack.c.l.bf16 %v245_v2  ;;  %v11920_v16 = vpack.c.bf16 %v3687_v1, %v3686_v9  ;;  %v16506_v17 = vmax.f32 %v13863_v6, %v16499_v63  ;;  %13888 = vrcp.f32 %v1467_v54 }
 0x154   : > { %v1470_v7 = vadd.f32 1.0, %v13879_v52  ;;  %13890 = vrcp.f32 %v1468_v22  ;;  %v1471_v14 = vadd.f32 1.0, %v13881_v48  ;;  %v11555_v18 = vunpack.c.l.bf16 %v13100_v44 }
 0x155   : > { %13181 = vst [vmem:[%s15729_s24 + $0x120] sm:$0xff] %v11920_v16   ;;  %13892 = vrcp.f32 %v1469_v15  ;;  %v9771_v62 = vmul.f32 -1.442695, %v11552_v23  ;;  %v11556_v37 = vunpack.c.h.bf16 %v13100_v44  ;;  %v9772_v20 = vmul.f32 -1.442695, %v490_v38 }
 0x156   : > { %13894 = vpow2.f32 %v9770_v59  ;;  %v11559_v6 = vunpack.c.l.bf16 %v13101_v55  ;;  %v3288_v36 = vmax.f32 %v16453_v47, %v16506_v17  ;;  %v9773_v43 = vmul.f32 -1.442695, %v491_v39 }
 0x157   : > { %13896 = vrcp.f32 %v1470_v7  ;;  %v11560_v5 = vunpack.c.h.bf16 %v13101_v55  ;;  %v9774_v61 = vmul.f32 -1.442695, %v11555_v18  ;;  %v496_v23 = vunpack.c.l.bf16 %v16513_v53 }
 0x158   : > { %v13883_v12 = vpop.eup %13882  ;;  %13898 = vrcp.f32 %v1471_v14  ;;  %v9775_v19 = vmul.f32 -1.442695, %v11556_v37  ;;  %v9776_v38 = vmul.f32 -1.442695, %v11559_v6  ;;  %vm16524_vm15 = vcmp.eq.f32.partialorder %v3288_v36, %v16499_v63 }
 0x159   : > { %v13885_v35 = vpop.eup %13884  ;;  %v2523_v41 = vrot.slane %v13883_v12, 1  ;;  %13900 = vpow2.f32 %v9771_v62  ;;  %v9777_v50 = vmul.f32 -1.442695, %v11560_v5  ;;  %v9778_v26 = vmul.f32 -1.442695, %v496_v23 }
 0x15a   : > { %v2524_v42 = vrot.slane %v13885_v35, 1  ;;  %13902 = vpow2.f32 %v9772_v20  ;;  %v497_v57 = vunpack.c.l.bf16 %v16521_v60  ;;  %v3688_v29 = vsel %vm16524_vm15, %v16499_v63, 0.0 }
 0x15b   : > { %13904 = vpow2.f32 %v9773_v43  ;;  %v11563_v30 = vunpack.c.l.bf16 %v16529_v10 }
 0x15c   : > { %v13887_v46 = vpop.eup %13886  ;;  %v2525_v28 = vsel %vm2346_vm0, %v2523_v41, %v2524_v42  ;;  %13906 = vpow2.f32 %v9774_v61 }
 0x15d   : > { %v13889_v51 = vpop.eup %13888  ;;  %v16532_v11 = vmax.f32 %v13883_v12, %v2525_v28  ;;  %v2526_v45 = vrot.slane %v13887_v46, 1  ;;  %13908 = vpow2.f32 %v9775_v19 }
 0x15e   : > { %v13891_v27 = vpop.eup %13890  ;;  %v2528_v58 = vrot.slane %v13889_v51, 1  ;;  %13910 = vpow2.f32 %v9776_v38 }
 0x15f   : > { %v13893_v33 = vpop.eup %13892  ;;  %v3289_v25 = vmax.f32 %v16464_v32, %v16532_v11  ;;  %v2527_v13 = vsel %vm2346_vm0, %v2524_v42, %v2526_v45  ;;  %v2530_v3 = vrot.slane %v13891_v27, 1  ;;  %13912 = vpow2.f32 %v9777_v50 }
 0x160   : > { %v13895_v56 = vpop.eup %13894  ;;  %v2529_v31 = vsel %vm2346_vm0, %v2526_v45, %v2528_v58  ;;  %v16543_v40 = vmax.f32 %v13885_v35, %v2527_v13  ;;  %v2532_v34 = vrot.slane %v13893_v33, 1  ;;  %13914 = vpow2.f32 %v9778_v26  ;;  %v13103_v35 = vld [vmem:[%s15665_s29 + $0x1d0] sm:$0xff]   ;;  %v13104_v45 = vld [vmem:[%s15665_s29 + $0x1e0] sm:$0xff]  }
 0x161   : > { %v13897_v8 = vpop.eup %13896  ;;  %vm3489_vm1 = vcmp.eq.f32.partialorder %v3289_v25, %v2525_v28  ;;  %v16545_v2 = vmax.f32 %v13887_v46, %v2529_v31  ;;  %v2531_v52 = vsel %vm2346_vm0, %v2528_v58, %v2530_v3  ;;  %v1472_v49 = vadd.f32 1.0, %v13895_v56 }
 0x162   : > { %v16548_v9 = vpop.eup %13898  ;;  %v3689_v32 = vsel %vm3489_vm1, %v2525_v28, 0.0  ;;  %v3290_v63 = vmax.f32 %v16469_v0, %v16543_v40  ;;  %v2533_v24 = vsel %vm2346_vm0, %v2530_v3, %v2532_v34  ;;  %v16553_v54 = vmax.f32 %v13889_v51, %v2531_v52  ;;  %v257_v51 = vld [vmem:[%s15665_s29 + $0x1dc] sm:$0x1] }
 0x163   : > { %v13901_v22 = vpop.eup %13900  ;;  %v11925_v59 = vpack.c.bf16 %v3689_v32, %v3688_v29  ;;  %v3291_v44 = vmax.f32 %v16474_v21, %v16545_v2  ;;  %v16557_v48 = vmax.f32 %v13891_v27, %v2533_v24  ;;  %13916 = vrcp.f32 %v1472_v49 }
 0x164   : > { %v13903_v1 = vpop.eup %13902  ;;  %vm16559_vm2 = vcmp.eq.f32.partialorder %v3290_v63, %v2527_v13  ;;  %v3292_v0 = vmax.f32 %v16483_v4, %v16553_v54  ;;  %v2534_v39 = vrot.slane %v13897_v8, 1  ;;  %v2535_v16 = vrot.slane %v16548_v9, 1 }
 0x165   : > { %v13905_v7 = vpop.eup %13904  ;;  %13182 = vst [vmem:[%s15729_s24 + $0x128] sm:$0xff] %v11925_v59   ;;  %vm3491_vm3 = vcmp.eq.f32.partialorder %v3291_v44, %v2529_v31  ;;  %v3690_v21 = vsel %vm16559_vm2, %v2527_v13, 0.0  ;;  %v3293_v55 = vmax.f32 %v16506_v17, %v16557_v48  ;;  %v1473_v14 = vadd.f32 1.0, %v13901_v22 }
 0x166   : > { %v13907_v18 = vpop.eup %13906  ;;  %v3691_v62 = vsel %vm3491_vm3, %v2529_v31, 0.0  ;;  %vm16571_vm4 = vcmp.eq.f32.partialorder %v3292_v0, %v2531_v52  ;;  %v16576_v4 = vsel %vm2346_vm0, %v2534_v39, %v2535_v16  ;;  %v1474_v20 = vadd.f32 1.0, %v13903_v1 }
 0x167   : > { %v13909_v6 = vpop.eup %13908  ;;  %v11930_v36 = vpack.c.bf16 %v3691_v62, %v3690_v21  ;;  %vm3493_vm5 = vcmp.eq.f32.partialorder %v3293_v55, %v2533_v24  ;;  %v3692_v43 = vsel %vm16571_vm4, %v2531_v52, 0.0  ;;  %v11564_v17 = vunpack.c.h.bf16 %v16529_v10  ;;  %v16606_v52 = vld [vmem:[%s15665_s29 + $0x1e8] sm:$0xff]  }
 0x168   : > { %v13911_v5 = vpop.eup %13910  ;;  %v3693_v12 = vsel %vm3493_vm5, %v2533_v24, 0.0  ;;  %13918 = vrcp.f32 %v1473_v14  ;;  %v1475_v61 = vadd.f32 1.0, %v13905_v7  ;;  %v1476_v23 = vadd.f32 1.0, %v13907_v18 }
 0x169   : > { %v13913_v41 = vpop.eup %13912  ;;  %13183 = vst [vmem:[%s15729_s24 + $0x130] sm:$0xff] %v11930_v36   ;;  %v11935_v19 = vpack.c.bf16 %v3693_v12, %v3692_v43  ;;  %v16584_v42 = vmax.f32 %v13897_v8, %v16576_v4  ;;  %13920 = vrcp.f32 %v1474_v20  ;;  %v1477_v38 = vadd.f32 1.0, %v13909_v6 }
 0x16a   : > { %v13915_v47 = vpop.eup %13914  ;;  %13922 = vrcp.f32 %v1475_v61  ;;  %v1478_v50 = vadd.f32 1.0, %v13911_v5  ;;  %v1479_v46 = vadd.f32 1.0, %v13913_v41  ;;  %v9779_v28 = vmul.f32 -1.442695, %v497_v57 }
 0x16b   : > { %13184 = vst [vmem:[%s15729_s24 + $0x138] sm:$0xff] %v11935_v19   ;;  %13924 = vrcp.f32 %v1476_v23  ;;  %v11567_v26 = vunpack.c.l.bf16 %v13103_v35  ;;  %v1480_v27 = vadd.f32 1.0, %v13915_v47  ;;  %v9780_v29 = vmul.f32 -1.442695, %v11563_v30 }
 0x16c   : > { %13926 = vrcp.f32 %v1477_v38  ;;  %v11568_v58 = vunpack.c.h.bf16 %v13103_v35  ;;  %v3294_v25 = vmax.f32 %v16532_v11, %v16584_v42  ;;  %v9781_v13 = vmul.f32 -1.442695, %v11564_v17 }
 0x16d   : > { %v13917_v33 = vpop.eup %13916  ;;  %13928 = vrcp.f32 %v1478_v50  ;;  %v502_v3 = vunpack.c.h.bf16 %v16513_v53  ;;  %v11571_v57 = vunpack.c.l.bf16 %v13104_v45  ;;  %v503_v56 = vunpack.c.l.bf16 %v257_v51 }
 0x16e   : > { %v2537_v60 = vrot.slane %v13917_v33, 1  ;;  %13930 = vrcp.f32 %v1479_v46  ;;  %v9782_v31 = vmul.f32 -1.442695, %v11567_v26  ;;  %v11572_v34 = vunpack.c.h.bf16 %v13104_v45 }
 0x16f   : > { %13932 = vpow2.f32 %v9779_v28  ;;  %v9783_v30 = vmul.f32 -1.442695, %v11568_v58  ;;  %vm16601_vm6 = vcmp.eq.f32.partialorder %v3294_v25, %v16576_v4  ;;  %v9784_v53 = vmul.f32 -1.442695, %v502_v3 }
 0x170   : > { %v2538_v10 = vsel %vm2346_vm0, %v2535_v16, %v2537_v60  ;;  %13934 = vrcp.f32 %v1480_v27  ;;  %v9785_v32 = vmul.f32 -1.442695, %v503_v56  ;;  %v9786_v63 = vmul.f32 -1.442695, %v11571_v57 }
 0x171   : > { %v16598_v8 = vmax.f32 %v16548_v9, %v2538_v10  ;;  %13936 = vpow2.f32 %v9780_v29  ;;  %v16610_v9 = vmul.f32 -1.442695, %v11572_v34  ;;  %v3694_v1 = vsel %vm16601_vm6, %v16576_v4, 0.0 }
 0x172   : > { %v13919_v49 = vpop.eup %13918  ;;  %13938 = vpow2.f32 %v9781_v13  ;;  %v11575_v0 = vunpack.c.l.bf16 %v16606_v52 }
 0x173   : > { %v13921_v24 = vpop.eup %13920  ;;  %v3295_v22 = vmax.f32 %v16543_v40, %v16598_v8  ;;  %v2539_v59 = vrot.slane %v13919_v49, 1  ;;  %13940 = vpow2.f32 %v9782_v31 }
 0x174   : > { %v13923_v44 = vpop.eup %13922  ;;  %v2541_v15 = vrot.slane %v13921_v24, 1  ;;  %13942 = vpow2.f32 %v9783_v30 }
 0x175   : > { %v13925_v39 = vpop.eup %13924  ;;  %vm3495_vm7 = vcmp.eq.f32.partialorder %v3295_v22, %v2538_v10  ;;  %v2540_v16 = vsel %vm2346_vm0, %v2537_v60, %v2539_v59  ;;  %v2543_v7 = vrot.slane %v13923_v44, 1  ;;  %13944 = vpow2.f32 %v9784_v53  ;;  %v13106_v44 = vld [vmem:[%s15665_s29 + $0x1f8] sm:$0xff]  }
 0x176   : > { %v13927_v40 = vpop.eup %13926  ;;  %v3695_v21 = vsel %vm3495_vm7, %v2538_v10, 0.0  ;;  %v2542_v55 = vsel %vm2346_vm0, %v2539_v59, %v2541_v15  ;;  %v3074_v14 = vmax.f32 %v13917_v33, %v2540_v16  ;;  %v2545_v18 = vrot.slane %v13925_v39, 1 }
 0x177   : > { %v13929_v62 = vpop.eup %13928  ;;  %v11940_v37 = vpack.c.bf16 %v3695_v21, %v3694_v1  ;;  %v16618_v4 = vmax.f32 %v13919_v49, %v2542_v55  ;;  %v2544_v20 = vsel %vm2346_vm0, %v2541_v15, %v2543_v7  ;;  %v2546_v6 = vrot.slane %v13927_v40, 1  ;;  %v13107_v21 = vld [vmem:[%s15665_s29 + $0x200] sm:$0xff]  }
 0x178   : > { %v13931_v36 = vpop.eup %13930  ;;  %v3296_v43 = vmax.f32 %v16545_v2, %v3074_v14  ;;  %v16622_v17 = vmax.f32 %v13921_v24, %v2544_v20  ;;  %v2548_v5 = vrot.slane %v13929_v62, 1  ;;  %13946 = vpow2.f32 %v9785_v32  ;;  %v263_v32 = vld [vmem:[%s15665_s29 + $0x1f4] sm:$0x1] }
 0x179   : > { %v13933_v12 = vpop.eup %13932  ;;  %13185 = vst [vmem:[%s15729_s24 + $0x140] sm:$0xff] %v11940_v37   ;;  %v3297_v61 = vmax.f32 %v16553_v54, %v16618_v4  ;;  %v2547_v23 = vsel %vm2346_vm0, %v2545_v18, %v2546_v6  ;;  %v2550_v35 = vrot.slane %v13931_v36, 1  ;;  %13948 = vpow2.f32 %v9786_v63 }
 0x17a   : > { %v16628_v41 = vpop.eup %13934  ;;  %vm3496_vm8 = vcmp.eq.f32.partialorder %v3296_v43, %v2540_v16  ;;  %v16630_v19 = vmax.f32 %v13925_v39, %v2547_v23  ;;  %v3298_v2 = vmax.f32 %v16557_v48, %v16622_v17  ;;  %v2549_v38 = vsel %vm2346_vm0, %v2546_v6, %v2548_v5 }
 0x17b   : > { %v13937_v47 = vpop.eup %13936  ;;  %vm3497_vm9 = vcmp.eq.f32.partialorder %v3297_v61, %v2542_v55  ;;  %v3696_v50 = vsel %vm3496_vm8, %v2540_v16, 0.0  ;;  %v2551_v46 = vsel %vm2346_vm0, %v2548_v5, %v2550_v35  ;;  %v16636_v54 = vmax.f32 %v13927_v40, %v2549_v38 }
 0x17c   : > { %v13939_v28 = vpop.eup %13938  ;;  %v3697_v26 = vsel %vm3497_vm9, %v2542_v55, 0.0  ;;  %v3299_v51 = vmax.f32 %v16584_v42, %v16630_v19  ;;  %vm16640_vm10 = vcmp.eq.f32.partialorder %v3298_v2, %v2544_v20  ;;  %v16644_v48 = vmax.f32 %v13929_v62, %v2551_v46 }
 0x17d   : > { %v13941_v27 = vpop.eup %13940  ;;  %v11945_v29 = vpack.c.bf16 %v3697_v26, %v3696_v50  ;;  %v3698_v58 = vsel %vm16640_vm10, %v2544_v20, 0.0  ;;  %v3300_v33 = vmax.f32 %v16598_v8, %v16636_v54  ;;  %v1481_v25 = vadd.f32 1.0, %v13933_v12  ;;  %v16657_v8 = vld [vmem:[%s15665_s29 + $0x1f0] ss:$24 sps:$4 sm:$0xff]  }
 0x17e   : > { %v13943_v13 = vpop.eup %13942  ;;  %vm3499_vm11 = vcmp.eq.f32.partialorder %v3299_v51, %v2547_v23  ;;  %v3301_v42 = vmax.f32 %v3074_v14, %v16644_v48  ;;  %v2552_v3 = vrot.slane %v16628_v41, 1  ;;  %v1482_v60 = vadd.f32 1.0, %v13937_v47 }
 0x17f   : > { %v13945_v57 = vpop.eup %13944  ;;  %13186 = vst [vmem:[%s15729_s24 + $0x148] sm:$0xff] %v11945_v29   ;;  %v3699_v56 = vsel %vm3499_vm11, %v2547_v23, 0.0  ;;  %vm3500_vm12 = vcmp.eq.f32.partialorder %v3300_v33, %v2549_v38  ;;  %13950 = vrcp.f32 %v1481_v25  ;;  %v1483_v31 = vadd.f32 1.0, %v13939_v28 }
 0x180   : > { %v11950_v34 = vpack.c.bf16 %v3699_v56, %v3698_v58  ;;  %vm3501_vm13 = vcmp.eq.f32.partialorder %v3301_v42, %v2551_v46  ;;  %v3700_v10 = vsel %vm3500_vm12, %v2549_v38, 0.0  ;;  %v16654_v30 = vsel %vm2346_vm0, %v2550_v35, %v2552_v3 }
 0x181   : > { %v3701_v11 = vsel %vm3501_vm13, %v2551_v46, 0.0  ;;  %v1484_v53 = vadd.f32 1.0, %v13941_v27  ;;  %13952 = vrcp.f32 %v1482_v60  ;;  %v11576_v49 = vunpack.c.h.bf16 %v16606_v52 }
 0x182   : > { %v13947_v63 = vpop.eup %13946  ;;  %13187 = vst [vmem:[%s15729_s24 + $0x150] sm:$0xff] %v11950_v34   ;;  %v11955_v24 = vpack.c.bf16 %v3701_v11, %v3700_v10  ;;  %13954 = vrcp.f32 %v1483_v31  ;;  %v1485_v22 = vadd.f32 1.0, %v13943_v13  ;;  %v1486_v59 = vadd.f32 1.0, %v13945_v57 }
 0x183   : > { %v13949_v1 = vpop.eup %13948  ;;  %v16664_v15 = vmax.f32 %v13931_v36, %v16654_v30  ;;  %13956 = vrcp.f32 %v1484_v53  ;;  %v1487_v39 = vadd.f32 1.0, %v13947_v63  ;;  %v508_v16 = vunpack.c.l.bf16 %v16657_v8 }
 0x184   : > { %13188 = vst [vmem:[%s15729_s24 + $0x158] sm:$0xff] %v11955_v24   ;;  %13958 = vrcp.f32 %v1485_v22  ;;  %v1488_v7 = vadd.f32 1.0, %v13949_v1  ;;  %v509_v40 = vunpack.c.l.bf16 %v263_v32  ;;  %v9788_v55 = vmul.f32 -1.442695, %v11575_v0 }
 0x185   : > { %13960 = vrcp.f32 %v1486_v59  ;;  %v11579_v14 = vunpack.c.l.bf16 %v13106_v44  ;;  %v9789_v18 = vmul.f32 -1.442695, %v11576_v49  ;;  %v11580_v62 = vunpack.c.h.bf16 %v13106_v44  ;;  %v269_v59 = vld [vmem:[%s15665_s29 + $0x20c] sm:$0x1] }
 0x186   : > { %13962 = vpow2.f32 %v16610_v9  ;;  %v3302_v37 = vmax.f32 %v16618_v4, %v16664_v15  ;;  %v9790_v20 = vmul.f32 -1.442695, %v508_v16  ;;  %v11583_v6 = vunpack.c.l.bf16 %v13107_v21 }
 0x187   : > { %13964 = vrcp.f32 %v1487_v39  ;;  %v9791_v36 = vmul.f32 -1.442695, %v509_v40  ;;  %v11584_v43 = vunpack.c.h.bf16 %v13107_v21  ;;  %v9792_v12 = vmul.f32 -1.442695, %v11579_v14 }
 0x188   : > { %13966 = vrcp.f32 %v1488_v7  ;;  %v9793_v52 = vmul.f32 -1.442695, %v11580_v62  ;;  %vm16675_vm14 = vcmp.eq.f32.partialorder %v3302_v37, %v16654_v30  ;;  %v9794_v4 = vmul.f32 -1.442695, %v11583_v6 }
 0x189   : > { %v13951_v5 = vpop.eup %13950  ;;  %13968 = vpow2.f32 %v9788_v55  ;;  %v9795_v38 = vmul.f32 -1.442695, %v11584_v43  ;;  %v3702_v26 = vsel %vm16675_vm14, %v16654_v30, 0.0  ;;  %v514_v22 = vunpack.c.h.bf16 %v16657_v8 }
 0x18a   : > { %v2554_v61 = vrot.slane %v13951_v5, 1  ;;  %13970 = vpow2.f32 %v9789_v18  ;;  %v515_v18 = vunpack.c.l.bf16 %v269_v59 }
 0x18b   : > { %v13953_v0 = vpop.eup %13952  ;;  %13972 = vpow2.f32 %v9790_v20 }
 0x18c   : > { %v13955_v23 = vpop.eup %13954  ;;  %v2555_v35 = vsel %vm2346_vm0, %v2552_v3, %v2554_v61  ;;  %v2556_v2 = vrot.slane %v13953_v0, 1  ;;  %13974 = vpow2.f32 %v9791_v36  ;;  %v13109_v61 = vld [vmem:[%s15665_s29 + $0x218] sm:$0xff]  }
 0x18d   : > { %v13957_v47 = vpop.eup %13956  ;;  %v16681_v50 = vmax.f32 %v16628_v41, %v2555_v35  ;;  %v2557_v46 = vrot.slane %v13955_v23, 1  ;;  %13976 = vpow2.f32 %v9792_v12 }
 0x18e   : > { %v13959_v28 = vpop.eup %13958  ;;  %v2559_v51 = vrot.slane %v13957_v47, 1  ;;  %13978 = vpow2.f32 %v9793_v52 }
 0x18f   : > { %v13961_v45 = vpop.eup %13960  ;;  %v3303_v27 = vmax.f32 %v16622_v17, %v16681_v50  ;;  %v2558_v29 = vsel %vm2346_vm0, %v2556_v2, %v2557_v46  ;;  %v2561_v58 = vrot.slane %v13959_v28, 1  ;;  %13980 = vpow2.f32 %v9794_v4  ;;  %v16736_v2 = vld [vmem:[%s15665_s29 + $0x220] ss:$24 sps:$4 sm:$0xff]  }
 0x190   : > { %v13963_v33 = vpop.eup %13962  ;;  %v2560_v41 = vsel %vm2346_vm0, %v2557_v46, %v2559_v51  ;;  %v16690_v25 = vmax.f32 %v13953_v0, %v2558_v29  ;;  %v2563_v13 = vrot.slane %v13961_v45, 1  ;;  %13982 = vpow2.f32 %v9795_v38 }
 0x191   : > { %v13965_v42 = vpop.eup %13964  ;;  %vm3503_vm15 = vcmp.eq.f32.partialorder %v3303_v27, %v2555_v35  ;;  %v16692_v3 = vmax.f32 %v13955_v23, %v2560_v41  ;;  %v2562_v60 = vsel %vm2346_vm0, %v2559_v51, %v2561_v58  ;;  %v1489_v57 = vadd.f32 1.0, %v13963_v33 }
 0x192   : > { %v16695_v17 = vpop.eup %13966  ;;  %v3703_v56 = vsel %vm3503_vm15, %v2555_v35, 0.0  ;;  %v3304_v31 = vmax.f32 %v16630_v19, %v16690_v25  ;;  %v2564_v34 = vsel %vm2346_vm0, %v2561_v58, %v2563_v13  ;;  %v16700_v10 = vmax.f32 %v13957_v47, %v2562_v60 }
 0x193   : > { %v13969_v30 = vpop.eup %13968  ;;  %v11960_v11 = vpack.c.bf16 %v3703_v56, %v3702_v26  ;;  %v3305_v53 = vmax.f32 %v16636_v54, %v16692_v3  ;;  %v16704_v49 = vmax.f32 %v13959_v28, %v2564_v34  ;;  %13984 = vrcp.f32 %v1489_v57  ;;  %v275_v28 = vld [vmem:[%s15665_s29 + $0x224] sm:$0x1] }
 0x194   : > { %v13971_v32 = vpop.eup %13970  ;;  %vm16706_vm1 = vcmp.eq.f32.partialorder %v3304_v31, %v2558_v29  ;;  %v3306_v19 = vmax.f32 %v16644_v48, %v16700_v10  ;;  %v2565_v24 = vrot.slane %v13965_v42, 1  ;;  %v1490_v39 = vadd.f32 1.0, %v13969_v30  ;;  %v16753_v31 = vld [vmem:[%s15665_s29 + $0x228] sm:$0xff]  }
 0x195   : > { %v13973_v44 = vpop.eup %13972  ;;  %13189 = vst [vmem:[%s15729_s24 + $0x160] sm:$0xff] %v11960_v11   ;;  %vm3505_vm2 = vcmp.eq.f32.partialorder %v3305_v53, %v2560_v41  ;;  %v3704_v54 = vsel %vm16706_vm1, %v2558_v29, 0.0  ;;  %v3307_v1 = vmax.f32 %v16664_v15, %v16704_v49  ;;  %v1491_v40 = vadd.f32 1.0, %v13971_v32  ;;  %v13108_v15 = vld [vmem:[%s15665_s29 + $0x210] sm:$0xff]  }
 0x196   : > { %v13975_v16 = vpop.eup %13974  ;;  %v3705_v7 = vsel %vm3505_vm2, %v2560_v41, 0.0  ;;  %vm16719_vm3 = vcmp.eq.f32.partialorder %v3306_v19, %v2562_v60  ;;  %v16724_v8 = vsel %vm2346_vm0, %v2563_v13, %v2565_v24  ;;  %13986 = vrcp.f32 %v1490_v39 }
 0x197   : > { %v13977_v21 = vpop.eup %13976  ;;  %v11965_v55 = vpack.c.bf16 %v3705_v7, %v3704_v54  ;;  %vm3507_vm4 = vcmp.eq.f32.partialorder %v3307_v1, %v2564_v34  ;;  %v3706_v14 = vsel %vm16719_vm3, %v2562_v60, 0.0  ;;  %v1492_v20 = vadd.f32 1.0, %v13973_v44 }
 0x198   : > { %v13979_v62 = vpop.eup %13978  ;;  %v3707_v37 = vsel %vm3507_vm4, %v2564_v34, 0.0  ;;  %v1493_v6 = vadd.f32 1.0, %v13975_v16  ;;  %v16731_v5 = vmax.f32 %v13961_v45, %v16724_v8  ;;  %13988 = vrcp.f32 %v1491_v40 }
 0x199   : > { %v13981_v36 = vpop.eup %13980  ;;  %13190 = vst [vmem:[%s15729_s24 + $0x168] sm:$0xff] %v11965_v55   ;;  %v11970_v43 = vpack.c.bf16 %v3707_v37, %v3706_v14  ;;  %v1494_v12 = vadd.f32 1.0, %v13977_v21  ;;  %13990 = vrcp.f32 %v1492_v20  ;;  %v1495_v0 = vadd.f32 1.0, %v13979_v62 }
 0x19a   : > { %v13983_v52 = vpop.eup %13982  ;;  %v1496_v9 = vadd.f32 1.0, %v13981_v36  ;;  %v11587_v4 = vunpack.c.l.bf16 %v13108_v15  ;;  %13992 = vrcp.f32 %v1493_v6  ;;  %v9796_v23 = vmul.f32 -1.442695, %v514_v22 }
 0x19b   : > { %13191 = vst [vmem:[%s15729_s24 + $0x170] sm:$0xff] %v11970_v43   ;;  %v11588_v35 = vunpack.c.h.bf16 %v13108_v15  ;;  %v2567_v38 = vrot.slane %v16695_v17, 1  ;;  %13994 = vrcp.f32 %v1494_v12  ;;  %v1497_v47 = vadd.f32 1.0, %v13983_v52 }
 0x19c   : > { %v11591_v46 = vunpack.c.l.bf16 %v13109_v61  ;;  %v3308_v51 = vmax.f32 %v16681_v50, %v16731_v5  ;;  %13996 = vrcp.f32 %v1495_v0  ;;  %v9797_v45 = vmul.f32 -1.442695, %v515_v18 }
 0x19d   : > { %v13985_v26 = vpop.eup %13984  ;;  %v11592_v27 = vunpack.c.h.bf16 %v13109_v61  ;;  %13998 = vrcp.f32 %v1496_v9  ;;  %v9798_v58 = vmul.f32 -1.442695, %v11587_v4  ;;  %v520_v33 = vunpack.c.l.bf16 %v16736_v2 }
 0x19e   : > { %v2568_v29 = vrot.slane %v13985_v26, 1  ;;  %14000 = vpow2.f32 %v9796_v23  ;;  %v9799_v41 = vmul.f32 -1.442695, %v11588_v35  ;;  %v521_v13 = vunpack.c.l.bf16 %v275_v28 }
 0x19f   : > { %14002 = vrcp.f32 %v1497_v47  ;;  %v9800_v60 = vmul.f32 -1.442695, %v11591_v46  ;;  %vm16748_vm5 = vcmp.eq.f32.partialorder %v3308_v51, %v16724_v8  ;;  %v9801_v56 = vmul.f32 -1.442695, %v11592_v27 }
 0x1a0   : > { %v2569_v42 = vsel %vm2346_vm0, %v2567_v38, %v2568_v29  ;;  %14004 = vpow2.f32 %v9797_v45  ;;  %v13987_v34 = vpop.eup %13986  ;;  %v9802_v30 = vmul.f32 -1.442695, %v520_v33  ;;  %v3708_v19 = vsel %vm16748_vm5, %v16724_v8, 0.0 }
 0x1a1   : > { %v16745_v57 = vmax.f32 %v16695_v17, %v2569_v42  ;;  %14006 = vpow2.f32 %v9798_v58  ;;  %v2570_v32 = vrot.slane %v13987_v34, 1  ;;  %v16757_v17 = vmul.f32 -1.442695, %v521_v13 }
 0x1a2   : > { %v13989_v11 = vpop.eup %13988  ;;  %14008 = vpow2.f32 %v9799_v41  ;;  %v11595_v22 = vunpack.c.l.bf16 %v16753_v31 }
 0x1a3   : > { %v3309_v53 = vmax.f32 %v16690_v25, %v16745_v57  ;;  %v13991_v63 = vpop.eup %13990  ;;  %v2572_v24 = vrot.slane %v13989_v11, 1  ;;  %14010 = vpow2.f32 %v9800_v60  ;;  %v2571_v44 = vsel %vm2346_vm0, %v2568_v29, %v2570_v32 }
 0x1a4   : > { %v13993_v59 = vpop.eup %13992  ;;  %v2574_v54 = vrot.slane %v13991_v63, 1  ;;  %14012 = vpow2.f32 %v9801_v56  ;;  %v3088_v16 = vmax.f32 %v13985_v26, %v2571_v44 }
 0x1a5   : > { %vm3509_vm6 = vcmp.eq.f32.partialorder %v3309_v53, %v2569_v42  ;;  %v13995_v25 = vpop.eup %13994  ;;  %v2573_v39 = vsel %vm2346_vm0, %v2570_v32, %v2572_v24  ;;  %v2576_v7 = vrot.slane %v13993_v59, 1  ;;  %14014 = vpow2.f32 %v9802_v30  ;;  %v281_v32 = vld [vmem:[%s15665_s29 + $0x23c] sm:$0x1]  ;;  %v13112_v59 = vld [vmem:[%s15665_s29 + $0x240] sm:$0xff]  }
 0x1a6   : > { %v3709_v1 = vsel %vm3509_vm6, %v2569_v42, 0.0  ;;  %v13997_v48 = vpop.eup %13996  ;;  %v16765_v8 = vmax.f32 %v13987_v34, %v2573_v39  ;;  %v2575_v21 = vsel %vm2346_vm0, %v2572_v24, %v2574_v54  ;;  %v2578_v55 = vrot.slane %v13995_v25, 1  ;;  %v13111_v42 = vld [vmem:[%s15665_s29 + $0x230] sm:$0xff]  }
 0x1a7   : > { %v11975_v40 = vpack.c.bf16 %v3709_v1, %v3708_v19  ;;  %v13999_v14 = vpop.eup %13998  ;;  %v3310_v15 = vmax.f32 %v16692_v3, %v3088_v16  ;;  %v2577_v18 = vsel %vm2346_vm0, %v2574_v54, %v2576_v7  ;;  %v16770_v62 = vmax.f32 %v13989_v11, %v2575_v21 }
 0x1a8   : > { %v2579_v37 = vrot.slane %v13997_v48, 1  ;;  %v14001_v20 = vpop.eup %14000  ;;  %v3311_v6 = vmax.f32 %v16700_v10, %v16765_v8  ;;  %v16775_v36 = vmax.f32 %v13991_v63, %v2577_v18  ;;  %v2581_v43 = vrot.slane %v13999_v14, 1 }
 0x1a9   : > { %13192 = vst [vmem:[%s15729_s24 + $0x178] sm:$0xff] %v11975_v40   ;;  %v16777_v12 = vpop.eup %14002  ;;  %vm3510_vm7 = vcmp.eq.f32.partialorder %v3310_v15, %v2571_v44  ;;  %v3312_v3 = vmax.f32 %v16704_v49, %v16770_v62  ;;  %v1498_v52 = vadd.f32 1.0, %v14001_v20  ;;  %v11596_v34 = vunpack.c.h.bf16 %v16753_v31 }
 0x1aa   : > { %v2580_v61 = vsel %vm2346_vm0, %v2578_v55, %v2579_v37  ;;  %v14005_v0 = vpop.eup %14004  ;;  %vm3511_vm8 = vcmp.eq.f32.partialorder %v3311_v6, %v2573_v39  ;;  %v3710_v9 = vsel %vm3510_vm7, %v2571_v44, 0.0  ;;  %v3313_v4 = vmax.f32 %v16731_v5, %v16775_v36 }
 0x1ab   : > { %v2582_v10 = vsel %vm2346_vm0, %v2579_v37, %v2581_v43  ;;  %v14007_v23 = vpop.eup %14006  ;;  %v3711_v35 = vsel %vm3511_vm8, %v2573_v39, 0.0  ;;  %vm3512_vm9 = vcmp.eq.f32.partialorder %v3312_v3, %v2575_v21  ;;  %v16785_v38 = vmax.f32 %v13995_v25, %v2580_v61 }
 0x1ac   : > { %v16787_v47 = vmax.f32 %v13997_v48, %v2582_v10  ;;  %v14009_v49 = vpop.eup %14008  ;;  %v11980_v46 = vpack.c.bf16 %v3711_v35, %v3710_v9  ;;  %vm3513_vm10 = vcmp.eq.f32.partialorder %v3313_v4, %v2577_v18  ;;  %v3712_v28 = vsel %vm3512_vm9, %v2575_v21, 0.0 }
 0x1ad   : > { %14016 = vrcp.f32 %v1498_v52  ;;  %v14011_v26 = vpop.eup %14010  ;;  %v3713_v51 = vsel %vm3513_vm10, %v2577_v18, 0.0  ;;  %v3314_v5 = vmax.f32 %v16745_v57, %v16785_v38  ;;  %v2583_v27 = vrot.slane %v16777_v12, 1 }
 0x1ae   : > { %v3315_v45 = vmax.f32 %v3088_v16, %v16787_v47  ;;  %v14013_v29 = vpop.eup %14012  ;;  %13193 = vst [vmem:[%s15729_s24 + $0x180] sm:$0xff] %v11980_v46   ;;  %v11985_v58 = vpack.c.bf16 %v3713_v51, %v3712_v28  ;;  %v1499_v33 = vadd.f32 1.0, %v14005_v0  ;;  %v1500_v41 = vadd.f32 1.0, %v14007_v23  ;;  %v16810_v16 = vld [vmem:[%s15665_s29 + $0x248] sm:$0xff]  }
 0x1af   : > { %v1501_v13 = vadd.f32 1.0, %v14009_v49  ;;  %vm3514_vm11 = vcmp.eq.f32.partialorder %v3314_v5, %v2580_v61  ;;  %v16796_v60 = vsel %vm2346_vm0, %v2581_v43, %v2583_v27  ;;  %v1502_v50 = vadd.f32 1.0, %v14011_v26  ;;  %v14015_v63 = vpop.eup %14014 }
 0x1b0   : > { %vm3515_vm12 = vcmp.eq.f32.partialorder %v3315_v45, %v2582_v10  ;;  %13194 = vst [vmem:[%s15729_s24 + $0x188] sm:$0xff] %v11985_v58   ;;  %v3714_v57 = vsel %vm3514_vm11, %v2580_v61, 0.0  ;;  %14018 = vrcp.f32 %v1499_v33  ;;  %v1503_v11 = vadd.f32 1.0, %v14013_v29 }
 0x1b1   : > { %v3715_v56 = vsel %vm3515_vm12, %v2582_v10, 0.0  ;;  %14020 = vrcp.f32 %v1500_v41  ;;  %v11599_v53 = vunpack.c.l.bf16 %v13111_v42  ;;  %v16802_v19 = vmax.f32 %v13999_v14, %v16796_v60 }
 0x1b2   : > { %v11990_v30 = vpack.c.bf16 %v3715_v56, %v3714_v57  ;;  %14022 = vrcp.f32 %v1501_v13  ;;  %v11600_v24 = vunpack.c.h.bf16 %v13111_v42  ;;  %v1504_v44 = vadd.f32 1.0, %v14015_v63 }
 0x1b3   : > { %14024 = vrcp.f32 %v1502_v50  ;;  %v9804_v54 = vmul.f32 -1.442695, %v11595_v22  ;;  %v526_v25 = vunpack.c.h.bf16 %v16736_v2  ;;  %v9805_v1 = vmul.f32 -1.442695, %v11596_v34  ;;  %v16846_v50 = vld [vmem:[%s15665_s29 + $0x250] ss:$24 sps:$4 sm:$0xff]  }
 0x1b4   : > { %13195 = vst [vmem:[%s15729_s24 + $0x190] sm:$0xff] %v11990_v30   ;;  %14026 = vrcp.f32 %v1503_v11  ;;  %v527_v39 = vunpack.c.l.bf16 %v281_v32  ;;  %v9806_v7 = vmul.f32 -1.442695, %v11599_v53  ;;  %v11603_v48 = vunpack.c.l.bf16 %v13112_v59 }
 0x1b5   : > { %14028 = vpow2.f32 %v16757_v17  ;;  %v3316_v21 = vmax.f32 %v16765_v8, %v16802_v19  ;;  %v9807_v55 = vmul.f32 -1.442695, %v11600_v24  ;;  %v11604_v14 = vunpack.c.h.bf16 %v13112_v59 }
 0x1b6   : > { %14030 = vrcp.f32 %v1504_v44  ;;  %v9808_v22 = vmul.f32 -1.442695, %v526_v25  ;;  %v11607_v2 = vunpack.c.l.bf16 %v16810_v16  ;;  %v9809_v15 = vmul.f32 -1.442695, %v527_v39  ;;  %v287_v39 = vld [vmem:[%s15665_s29 + $0x254] sm:$0x1] }
 0x1b7   : > { %v14017_v40 = vpop.eup %14016  ;;  %14032 = vpow2.f32 %v9804_v54  ;;  %v9810_v17 = vmul.f32 -1.442695, %v11603_v48  ;;  %vm16821_vm13 = vcmp.eq.f32.partialorder %v3316_v21, %v16796_v60  ;;  %v9811_v6 = vmul.f32 -1.442695, %v11604_v14 }
 0x1b8   : > { %v2585_v31 = vrot.slane %v14017_v40, 1  ;;  %14034 = vpow2.f32 %v9805_v1  ;;  %v9812_v61 = vmul.f32 -1.442695, %v11607_v2  ;;  %v11608_v63 = vunpack.c.h.bf16 %v16810_v16 }
 0x1b9   : > { %14036 = vpow2.f32 %v9806_v7  ;;  %v532_v44 = vunpack.c.l.bf16 %v16846_v50 }
 0x1ba   : > { %v2586_v18 = vsel %vm2346_vm0, %v2583_v27, %v2585_v31  ;;  %v14019_v37 = vpop.eup %14018  ;;  %14038 = vpow2.f32 %v9807_v55 }
 0x1bb   : > { %v16818_v20 = vmax.f32 %v16777_v12, %v2586_v18  ;;  %v14021_v43 = vpop.eup %14020  ;;  %v2587_v3 = vrot.slane %v14019_v37, 1  ;;  %14040 = vpow2.f32 %v9808_v22  ;;  %v3716_v12 = vsel %vm16821_vm13, %v16796_v60, 0.0 }
 0x1bc   : > { %v14023_v52 = vpop.eup %14022  ;;  %v2589_v9 = vrot.slane %v14021_v43, 1  ;;  %14042 = vpow2.f32 %v9809_v15 }
 0x1bd   : > { %v3317_v0 = vmax.f32 %v16770_v62, %v16818_v20  ;;  %v14025_v4 = vpop.eup %14024  ;;  %v2588_v10 = vsel %vm2346_vm0, %v2585_v31, %v2587_v3  ;;  %v2590_v23 = vrot.slane %v14023_v52, 1  ;;  %14044 = vpow2.f32 %v9810_v17  ;;  %v13114_v31 = vld [vmem:[%s15665_s29 + $0x258] sm:$0xff]  }
 0x1be   : > { %v14027_v35 = vpop.eup %14026  ;;  %v16831_v49 = vmax.f32 %v14017_v40, %v2588_v10  ;;  %v2592_v46 = vrot.slane %v14025_v4, 1  ;;  %14046 = vpow2.f32 %v9811_v6  ;;  %v9813_v3 = vmul.f32 -1.442695, %v11608_v63 }
 0x1bf   : > { %vm3517_vm14 = vcmp.eq.f32.partialorder %v3317_v0, %v2586_v18  ;;  %v14029_v28 = vpop.eup %14028  ;;  %v2591_v26 = vsel %vm2346_vm0, %v2589_v9, %v2590_v23  ;;  %v2594_v51 = vrot.slane %v14027_v35, 1  ;;  %14048 = vpow2.f32 %v9812_v61 }
 0x1c0   : > { %v3717_v62 = vsel %vm3517_vm14, %v2586_v18, 0.0  ;;  %v16834_v5 = vpop.eup %14030  ;;  %v16836_v27 = vmax.f32 %v14021_v43, %v2591_v26  ;;  %v3318_v29 = vmax.f32 %v16775_v36, %v16831_v49  ;;  %v2593_v58 = vsel %vm2346_vm0, %v2590_v23, %v2592_v46  ;;  %v16883_v43 = vld [vmem:[%s15665_s29 + $0x260] sm:$0xff]  }
 0x1c1   : > { %v11995_v45 = vpack.c.bf16 %v3717_v62, %v3716_v12  ;;  %v14033_v33 = vpop.eup %14032  ;;  %v2595_v41 = vsel %vm2346_vm0, %v2592_v46, %v2594_v51  ;;  %v16842_v13 = vmax.f32 %v14023_v52, %v2593_v58  ;;  %v1505_v42 = vadd.f32 1.0, %v14029_v28 }
 0x1c2   : > { %v2596_v60 = vrot.slane %v16834_v5, 1  ;;  %v14035_v57 = vpop.eup %14034  ;;  %v3319_v56 = vmax.f32 %v16785_v38, %v16836_v27  ;;  %vm16851_vm15 = vcmp.eq.f32.partialorder %v3318_v29, %v2588_v10  ;;  %v16855_v36 = vmax.f32 %v14025_v4, %v2595_v41 }
 0x1c3   : > { %13196 = vst [vmem:[%s15729_s24 + $0x198] sm:$0xff] %v11995_v45   ;;  %v1506_v30 = vadd.f32 1.0, %v14033_v33  ;;  %v14037_v11 = vpop.eup %14036  ;;  %v3718_v53 = vsel %vm16851_vm15, %v2588_v10, 0.0  ;;  %v3320_v32 = vmax.f32 %v16787_v47, %v16842_v13  ;;  %14050 = vrcp.f32 %v1505_v42 }
 0x1c4   : > { %v14039_v24 = vpop.eup %14038  ;;  %vm3519_vm1 = vcmp.eq.f32.partialorder %v3319_v56, %v2591_v26  ;;  %v3321_v38 = vmax.f32 %v16802_v19, %v16855_v36  ;;  %v1507_v59 = vadd.f32 1.0, %v14035_v57  ;;  %v1508_v47 = vadd.f32 1.0, %v14037_v11 }
 0x1c5   : > { %v14041_v54 = vpop.eup %14040  ;;  %v3719_v25 = vsel %vm3519_vm1, %v2591_v26, 0.0  ;;  %vm16865_vm2 = vcmp.eq.f32.partialorder %v3320_v32, %v2593_v58  ;;  %14052 = vrcp.f32 %v1506_v30  ;;  %v16875_v48 = vsel %vm2346_vm0, %v2594_v51, %v2596_v60  ;;  %v16890_v26 = vld [vmem:[%s15665_s29 + $0x270] sm:$0xff]  }
 0x1c6   : > { %v14043_v16 = vpop.eup %14042  ;;  %v12000_v7 = vpack.c.bf16 %v3719_v25, %v3718_v53  ;;  %vm3521_vm3 = vcmp.eq.f32.partialorder %v3321_v38, %v2595_v41  ;;  %v3720_v19 = vsel %vm16865_vm2, %v2593_v58, 0.0  ;;  %14054 = vrcp.f32 %v1507_v59  ;;  %v16896_v58 = vld [vmem:[%s15665_s29 + $0x26c] sm:$0x1] }
 0x1c7   : > { %v14045_v40 = vpop.eup %14044  ;;  %v3721_v21 = vsel %vm3521_vm3, %v2595_v41, 0.0  ;;  %v1509_v55 = vadd.f32 1.0, %v14039_v24  ;;  %v1510_v14 = vadd.f32 1.0, %v14041_v54  ;;  %14056 = vrcp.f32 %v1508_v47 }
 0x1c8   : > { %v14047_v22 = vpop.eup %14046  ;;  %13197 = vst [vmem:[%s15729_s24 + $0x1a0] sm:$0xff] %v12000_v7   ;;  %v12005_v2 = vpack.c.bf16 %v3721_v21, %v3720_v19  ;;  %v1511_v15 = vadd.f32 1.0, %v14043_v16  ;;  %v533_v18 = vunpack.c.l.bf16 %v287_v39  ;;  %v16880_v37 = vmax.f32 %v14027_v35, %v16875_v48 }
 0x1c9   : > { %v14049_v17 = vpop.eup %14048  ;;  %14058 = vrcp.f32 %v1509_v55  ;;  %v1512_v8 = vadd.f32 1.0, %v14045_v40  ;;  %v1513_v6 = vadd.f32 1.0, %v14047_v22  ;;  %v11611_v61 = vunpack.c.l.bf16 %v13114_v31 }
 0x1ca   : > { %13198 = vst [vmem:[%s15729_s24 + $0x1a8] sm:$0xff] %v12005_v2   ;;  %14060 = vrcp.f32 %v1510_v14  ;;  %v1514_v52 = vadd.f32 1.0, %v14049_v17  ;;  %v11612_v0 = vunpack.c.h.bf16 %v13114_v31  ;;  %v9814_v9 = vmul.f32 -1.442695, %v532_v44 }
 0x1cb   : > { %14062 = vrcp.f32 %v1511_v15  ;;  %v11615_v4 = vunpack.c.l.bf16 %v16883_v43  ;;  %v3322_v10 = vmax.f32 %v16818_v20, %v16880_v37  ;;  %v9815_v23 = vmul.f32 -1.442695, %v533_v18 }
 0x1cc   : > { %14064 = vrcp.f32 %v1512_v8  ;;  %v9816_v46 = vmul.f32 -1.442695, %v11611_v61  ;;  %v9817_v62 = vmul.f32 -1.442695, %v11612_v0  ;;  %v11616_v42 = vunpack.c.h.bf16 %v16883_v43 }
 0x1cd   : > { %v14051_v12 = vpop.eup %14050  ;;  %14066 = vrcp.f32 %v1513_v6  ;;  %v9818_v29 = vmul.f32 -1.442695, %v11615_v4  ;;  %vm16902_vm4 = vcmp.eq.f32.partialorder %v3322_v10, %v16875_v48  ;;  %v11619_v34 = vunpack.c.l.bf16 %v16890_v26 }
 0x1ce   : > { %v2598_v35 = vrot.slane %v14051_v12, 1  ;;  %14068 = vpow2.f32 %v9813_v3  ;;  %v539_v53 = vunpack.c.l.bf16 %v16896_v58  ;;  %v3722_v63 = vsel %vm16902_vm4, %v16875_v48, 0.0 }
 0x1cf   : > { %v14053_v28 = vpop.eup %14052  ;;  %14070 = vrcp.f32 %v1514_v52  ;;  %v9822_v43 = vmul.f32 -1.442695, %v11619_v34 }
 0x1d0   : > { %v2599_v51 = vsel %vm2346_vm0, %v2596_v60, %v2598_v35  ;;  %v2600_v45 = vrot.slane %v14053_v28, 1  ;;  %14072 = vpow2.f32 %v9814_v9  ;;  %v14055_v20 = vpop.eup %14054  ;;  %v538_v60 = vunpack.c.h.bf16 %v16846_v50 }
 0x1d1   : > { %v16899_v33 = vmax.f32 %v16834_v5, %v2599_v51  ;;  %14074 = vpow2.f32 %v9815_v23  ;;  %v14057_v57 = vpop.eup %14056  ;;  %v2601_v56 = vrot.slane %v14055_v20, 1 }
 0x1d2   : > { %14076 = vpow2.f32 %v9816_v46  ;;  %v2603_v11 = vrot.slane %v14057_v57, 1 }
 0x1d3   : > { %v14059_v30 = vpop.eup %14058  ;;  %v3323_v5 = vmax.f32 %v16831_v49, %v16899_v33  ;;  %14078 = vpow2.f32 %v9817_v62  ;;  %v2602_v24 = vsel %vm2346_vm0, %v2600_v45, %v2601_v56 }
 0x1d4   : > { %v14061_v32 = vpop.eup %14060  ;;  %v2605_v38 = vrot.slane %v14059_v30, 1  ;;  %14080 = vpow2.f32 %v9818_v29  ;;  %v2604_v44 = vsel %vm2346_vm0, %v2601_v56, %v2603_v11  ;;  %v3102_v54 = vmax.f32 %v14053_v28, %v2602_v24  ;;  %v13117_v56 = vld [vmem:[%s15665_s29 + $0x278] sm:$0xff]  }
 0x1d5   : > { %v14063_v59 = vpop.eup %14062  ;;  %vm3523_vm5 = vcmp.eq.f32.partialorder %v3323_v5, %v2599_v51  ;;  %v2607_v25 = vrot.slane %v14061_v32, 1  ;;  %v16917_v47 = vmax.f32 %v14055_v20, %v2604_v44  ;;  %v11620_v5 = vunpack.c.h.bf16 %v16890_v26 }
 0x1d6   : > { %v14065_v49 = vpop.eup %14064  ;;  %v3723_v1 = vsel %vm3523_vm5, %v2599_v51, 0.0  ;;  %v2606_v39 = vsel %vm2346_vm0, %v2603_v11, %v2605_v38  ;;  %v2609_v16 = vrot.slane %v14063_v59, 1  ;;  %v3324_v48 = vmax.f32 %v16836_v27, %v3102_v54 }
 0x1d7   : > { %v14067_v7 = vpop.eup %14066  ;;  %v12010_v19 = vpack.c.bf16 %v3723_v1, %v3722_v63  ;;  %v2608_v40 = vsel %vm2346_vm0, %v2605_v38, %v2607_v25  ;;  %v16922_v21 = vmax.f32 %v14057_v57, %v2606_v39  ;;  %v3325_v14 = vmax.f32 %v16842_v13, %v16917_v47 }
 0x1d8   : > { %v14069_v55 = vpop.eup %14068  ;;  %v16926_v31 = vmax.f32 %v14059_v30, %v2608_v40  ;;  %v2610_v22 = vsel %vm2346_vm0, %v2607_v25, %v2609_v16  ;;  %v2611_v2 = vrot.slane %v14065_v49, 1  ;;  %vm3524_vm6 = vcmp.eq.f32.partialorder %v3324_v48, %v2602_v24  ;;  %v13118_v25 = vld [vmem:[%s15665_s29 + $0x288] sm:$0xff]  }
 0x1d9   : > { %v16929_v15 = vpop.eup %14070  ;;  %13199 = vst [vmem:[%s15729_s24 + $0x1b0] sm:$0xff] %v12010_v19   ;;  %v3326_v27 = vmax.f32 %v16855_v36, %v16922_v21  ;;  %v2612_v18 = vrot.slane %v14067_v7, 1  ;;  %v16934_v17 = vmax.f32 %v14061_v32, %v2610_v22  ;;  %vm3525_vm7 = vcmp.eq.f32.partialorder %v3325_v14, %v2604_v44 }
 0x1da   : > { %v14073_v8 = vpop.eup %14072  ;;  %v3724_v6 = vsel %vm3524_vm6, %v2602_v24, 0.0  ;;  %v3327_v13 = vmax.f32 %v16880_v37, %v16926_v31  ;;  %v1515_v3 = vadd.f32 1.0, %v14069_v55  ;;  %v3725_v52 = vsel %vm3525_vm7, %v2604_v44, 0.0  ;;  %v16964_v24 = vld [vmem:[%s15665_s29 + $0x280] ss:$24 sps:$4 sm:$0xff]  }
 0x1db   : > { %v14075_v61 = vpop.eup %14074  ;;  %vm3526_vm8 = vcmp.eq.f32.partialorder %v3326_v27, %v2606_v39  ;;  %v2613_v0 = vsel %vm2346_vm0, %v2611_v2, %v2612_v18  ;;  %v3328_v9 = vmax.f32 %v16899_v33, %v16934_v17  ;;  %v12015_v4 = vpack.c.bf16 %v3725_v52, %v3724_v6 }
 0x1dc   : > { %v14077_v36 = vpop.eup %14076  ;;  %vm3527_vm9 = vcmp.eq.f32.partialorder %v3327_v13, %v2608_v40  ;;  %v3726_v12 = vsel %vm3526_vm8, %v2606_v39, 0.0  ;;  %v16941_v10 = vmax.f32 %v14065_v49, %v2613_v0  ;;  %14082 = vrcp.f32 %v1515_v3  ;;  %v16973_v39 = vld [vmem:[%s15665_s29 + $0x290] sm:$0xff]  }
 0x1dd   : > { %v14079_v23 = vpop.eup %14078  ;;  %v3727_v37 = vsel %vm3527_vm9, %v2608_v40, 0.0  ;;  %vm16943_vm10 = vcmp.eq.f32.partialorder %v3328_v9, %v2610_v22  ;;  %v2614_v46 = vrot.slane %v16929_v15, 1  ;;  %13200 = vst [vmem:[%s15729_s24 + $0x1b8] sm:$0xff] %v12015_v4   ;;  %v1516_v29 = vadd.f32 1.0, %v14073_v8 }
 0x1de   : > { %v14081_v28 = vpop.eup %14080  ;;  %v12020_v62 = vpack.c.bf16 %v3727_v37, %v3726_v12  ;;  %v3329_v51 = vmax.f32 %v3102_v54, %v16941_v10  ;;  %v3728_v45 = vsel %vm16943_vm10, %v2610_v22, 0.0  ;;  %v1517_v33 = vadd.f32 1.0, %v14075_v61  ;;  %v299_v54 = vld [vmem:[%s15665_s29 + $0x284] sm:$0x1] }
 0x1df   : > { %v16953_v20 = vsel %vm2346_vm0, %v2612_v18, %v2614_v46  ;;  %v1518_v41 = vadd.f32 1.0, %v14077_v36  ;;  %v1519_v57 = vadd.f32 1.0, %v14079_v23  ;;  %14084 = vrcp.f32 %v1516_v29 }
 0x1e0   : > { %13201 = vst [vmem:[%s15729_s24 + $0x1c0] sm:$0xff] %v12020_v62   ;;  %vm3529_vm11 = vcmp.eq.f32.partialorder %v3329_v51, %v2613_v0  ;;  %v1520_v30 = vadd.f32 1.0, %v14081_v28  ;;  %v16959_v32 = vmax.f32 %v14067_v7, %v16953_v20  ;;  %14086 = vrcp.f32 %v1517_v33 }
 0x1e1   : > { %v3729_v11 = vsel %vm3529_vm11, %v2613_v0, 0.0  ;;  %v9819_v63 = vmul.f32 -1.442695, %v11616_v42  ;;  %14088 = vrcp.f32 %v1518_v41  ;;  %v9820_v59 = vmul.f32 -1.442695, %v538_v60 }
 0x1e2   : > { %v12025_v38 = vpack.c.bf16 %v3729_v11, %v3728_v45  ;;  %v11623_v44 = vunpack.c.l.bf16 %v13117_v56  ;;  %14090 = vrcp.f32 %v1519_v57  ;;  %v9821_v49 = vmul.f32 -1.442695, %v539_v53 }
 0x1e3   : > { %v11624_v1 = vunpack.c.h.bf16 %v13117_v56  ;;  %14092 = vrcp.f32 %v1520_v30  ;;  %v9823_v42 = vmul.f32 -1.442695, %v11620_v5  ;;  %v544_v16 = vunpack.c.l.bf16 %v16964_v24 }
 0x1e4   : > { %13202 = vst [vmem:[%s15729_s24 + $0x1c8] sm:$0xff] %v12025_v38   ;;  %v3330_v50 = vmax.f32 %v16917_v47, %v16959_v32  ;;  %14094 = vpow2.f32 %v9819_v63  ;;  %v545_v60 = vunpack.c.l.bf16 %v299_v54  ;;  %v11627_v7 = vunpack.c.l.bf16 %v13118_v25 }
 0x1e5   : > { %14096 = vpow2.f32 %v9820_v59  ;;  %v9824_v58 = vmul.f32 -1.442695, %v11623_v44  ;;  %v11628_v53 = vunpack.c.h.bf16 %v13118_v25  ;;  %v11631_v19 = vunpack.c.l.bf16 %v16973_v39 }
 0x1e6   : > { %v14083_v48 = vpop.eup %14082  ;;  %14098 = vpow2.f32 %v9821_v49  ;;  %v9825_v40 = vmul.f32 -1.442695, %v11624_v1  ;;  %v9826_v26 = vmul.f32 -1.442695, %v544_v16  ;;  %vm16983_vm12 = vcmp.eq.f32.partialorder %v3330_v50, %v16953_v20 }
 0x1e7   : > { %v2616_v55 = vrot.slane %v14083_v48, 1  ;;  %14100 = vpow2.f32 %v9822_v43  ;;  %v9827_v47 = vmul.f32 -1.442695, %v545_v60  ;;  %v9828_v14 = vmul.f32 -1.442695, %v11627_v7 }
 0x1e8   : > { %14102 = vpow2.f32 %v9823_v42  ;;  %v9829_v27 = vmul.f32 -1.442695, %v11628_v53  ;;  %v16988_v18 = vmul.f32 -1.442695, %v11631_v19  ;;  %v11632_v3 = vunpack.c.h.bf16 %v16973_v39  ;;  %v305_v53 = vld [vmem:[%s15665_s29 + $0x29c] sm:$0x1] }
 0x1e9   : > { %v14085_v22 = vpop.eup %14084  ;;  %v2617_v2 = vsel %vm2346_vm0, %v2614_v46, %v2616_v55  ;;  %14104 = vpow2.f32 %v9824_v58  ;;  %v3730_v52 = vsel %vm16983_vm12, %v16953_v20, 0.0  ;;  %v550_v9 = vunpack.c.h.bf16 %v16964_v24 }
 0x1ea   : > { %v14087_v8 = vpop.eup %14086  ;;  %v16991_v6 = vmax.f32 %v16929_v15, %v2617_v2  ;;  %v2618_v13 = vrot.slane %v14085_v22, 1  ;;  %14106 = vpow2.f32 %v9825_v40 }
 0x1eb   : > { %v14089_v61 = vpop.eup %14088  ;;  %v2620_v0 = vrot.slane %v14087_v8, 1  ;;  %14108 = vpow2.f32 %v9826_v26  ;;  %v13121_v26 = vld [vmem:[%s15665_s29 + $0x2a8] sm:$0xff]   ;;  %v551_v8 = vunpack.c.l.bf16 %v305_v53 }
 0x1ec   : > { %v14091_v36 = vpop.eup %14090  ;;  %v3331_v4 = vmax.f32 %v16922_v21, %v16991_v6  ;;  %v2619_v15 = vsel %vm2346_vm0, %v2616_v55, %v2618_v13  ;;  %v2622_v12 = vrot.slane %v14089_v61, 1  ;;  %14110 = vpow2.f32 %v9827_v47 }
 0x1ed   : > { %v17001_v23 = vpop.eup %14092  ;;  %v2621_v37 = vsel %vm2346_vm0, %v2618_v13, %v2620_v0  ;;  %v17004_v35 = vmax.f32 %v14083_v48, %v2619_v15  ;;  %v2623_v46 = vrot.slane %v14091_v36, 1  ;;  %14112 = vpow2.f32 %v9828_v14 }
 0x1ee   : > { %v14095_v28 = vpop.eup %14094  ;;  %vm3531_vm13 = vcmp.eq.f32.partialorder %v3331_v4, %v2617_v2  ;;  %v17006_v62 = vmax.f32 %v14085_v22, %v2621_v37  ;;  %v2625_v51 = vrot.slane %v17001_v23, 1  ;;  %14114 = vpow2.f32 %v9829_v27 }
 0x1ef   : > { %v14097_v21 = vpop.eup %14096  ;;  %v3731_v45 = vsel %vm3531_vm13, %v2617_v2, 0.0  ;;  %v3332_v29 = vmax.f32 %v16926_v31, %v17004_v35  ;;  %v2624_v20 = vsel %vm2346_vm0, %v2622_v12, %v2623_v46  ;;  %v1521_v33 = vadd.f32 1.0, %v14095_v28  ;;  %v17049_v28 = vld [vmem:[%s15665_s29 + $0x2b0] ss:$24 sps:$4 sm:$0xff]  }
 0x1f0   : > { %v14099_v41 = vpop.eup %14098  ;;  %v12030_v57 = vpack.c.bf16 %v3731_v45, %v3730_v52  ;;  %v3333_v56 = vmax.f32 %v16934_v17, %v17006_v62  ;;  %v2626_v30 = vsel %vm2346_vm0, %v2623_v46, %v2625_v51  ;;  %v17017_v5 = vmax.f32 %v14089_v61, %v2624_v20 }
 0x1f1   : > { %v14101_v11 = vpop.eup %14100  ;;  %vm17019_vm14 = vcmp.eq.f32.partialorder %v3332_v29, %v2619_v15  ;;  %v17023_v31 = vmax.f32 %v14091_v36, %v2626_v30  ;;  %v1522_v38 = vadd.f32 1.0, %v14097_v21  ;;  %14116 = vrcp.f32 %v1521_v33 }
 0x1f2   : > { %v14103_v59 = vpop.eup %14102  ;;  %13203 = vst [vmem:[%s15729_s24 + $0x1d0] sm:$0xff] %v12030_v57   ;;  %vm3533_vm15 = vcmp.eq.f32.partialorder %v3333_v56, %v2621_v37  ;;  %v3732_v17 = vsel %vm17019_vm14, %v2619_v15, 0.0  ;;  %v3334_v44 = vmax.f32 %v16941_v10, %v17017_v5  ;;  %v1523_v54 = vadd.f32 1.0, %v14099_v41  ;;  %v13120_v10 = vld [vmem:[%s15665_s29 + $0x2a0] sm:$0xff]   ;;  %v17066_v56 = vld [vmem:[%s15665_s29 + $0x2b8] sm:$0xff]  }
 0x1f3   : > { %v14105_v25 = vpop.eup %14104  ;;  %v3733_v49 = vsel %vm3533_vm15, %v2621_v37, 0.0  ;;  %v3335_v1 = vmax.f32 %v16959_v32, %v17023_v31  ;;  %14118 = vrcp.f32 %v1522_v38  ;;  %v1524_v43 = vadd.f32 1.0, %v14101_v11 }
 0x1f4   : > { %v14107_v42 = vpop.eup %14106  ;;  %v12035_v16 = vpack.c.bf16 %v3733_v49, %v3732_v17  ;;  %vm17032_vm1 = vcmp.eq.f32.partialorder %v3334_v44, %v2624_v20  ;;  %v1525_v60 = vadd.f32 1.0, %v14103_v59  ;;  %14120 = vrcp.f32 %v1523_v54 }
 0x1f5   : > { %v14109_v7 = vpop.eup %14108  ;;  %vm3535_vm2 = vcmp.eq.f32.partialorder %v3335_v1, %v2626_v30  ;;  %v3734_v58 = vsel %vm17032_vm1, %v2624_v20, 0.0  ;;  %14122 = vrcp.f32 %v1524_v43  ;;  %v1526_v32 = vadd.f32 1.0, %v14105_v25 }
 0x1f6   : > { %v14111_v19 = vpop.eup %14110  ;;  %13204 = vst [vmem:[%s15729_s24 + $0x1d8] sm:$0xff] %v12035_v16   ;;  %v3735_v48 = vsel %vm3535_vm2, %v2626_v30, 0.0  ;;  %14124 = vrcp.f32 %v1525_v60  ;;  %v1527_v40 = vadd.f32 1.0, %v14107_v42  ;;  %v1528_v55 = vadd.f32 1.0, %v14109_v7 }
 0x1f7   : > { %v14113_v34 = vpop.eup %14112  ;;  %v12040_v47 = vpack.c.bf16 %v3735_v48, %v3734_v58  ;;  %14126 = vrcp.f32 %v1526_v32  ;;  %v1529_v14 = vadd.f32 1.0, %v14111_v19  ;;  %v11635_v22 = vunpack.c.l.bf16 %v13120_v10 }
 0x1f8   : > { %v14115_v2 = vpop.eup %14114  ;;  %14128 = vrcp.f32 %v1527_v40  ;;  %v1530_v27 = vadd.f32 1.0, %v14113_v34  ;;  %v11636_v61 = vunpack.c.h.bf16 %v13120_v10  ;;  %v11639_v52 = vunpack.c.l.bf16 %v13121_v26 }
 0x1f9   : > { %13205 = vst [vmem:[%s15729_s24 + $0x1e0] sm:$0xff] %v12040_v47   ;;  %14130 = vrcp.f32 %v1528_v55  ;;  %v1531_v13 = vadd.f32 1.0, %v14115_v2  ;;  %v9831_v0 = vmul.f32 -1.442695, %v11632_v3  ;;  %v11640_v36 = vunpack.c.h.bf16 %v13121_v26  ;;  %v17056_v3 = vld [vmem:[%s15665_s29 + $0x2b4] sm:$0x1] }
 0x1fa   : > { %14132 = vrcp.f32 %v1529_v14  ;;  %v9832_v15 = vmul.f32 -1.442695, %v550_v9  ;;  %v9834_v12 = vmul.f32 -1.442695, %v11635_v22  ;;  %v9833_v46 = vmul.f32 -1.442695, %v551_v8 }
 0x1fb   : > { %v14117_v4 = vpop.eup %14116  ;;  %14134 = vpow2.f32 %v16988_v18  ;;  %v17051_v45 = vmul.f32 -1.442695, %v11636_v61  ;;  %v17053_v39 = vmul.f32 -1.442695, %v11639_v52  ;;  %v17061_v9 = vmul.f32 -1.442695, %v11640_v36 }
 0x1fc   : > { %v2627_v37 = vrot.slane %v14117_v4, 1  ;;  %14136 = vrcp.f32 %v1530_v27  ;;  %v556_v57 = vunpack.c.l.bf16 %v17049_v28  ;;  %v11643_v1 = vunpack.c.l.bf16 %v17066_v56 }
 0x1fd   : > { %v14119_v21 = vpop.eup %14118  ;;  %14138 = vrcp.f32 %v1531_v13 }
 0x1fe   : > { %v14121_v29 = vpop.eup %14120  ;;  %v2628_v24 = vsel %vm2346_vm0, %v2625_v51, %v2627_v37  ;;  %v2629_v18 = vrot.slane %v14119_v21, 1  ;;  %14140 = vpow2.f32 %v9831_v0  ;;  %v557_v51 = vunpack.c.l.bf16 %v17056_v3 }
 0x1ff   : > { %v14123_v20 = vpop.eup %14122  ;;  %v3114_v33 = vmax.f32 %v17001_v23, %v2628_v24  ;;  %v2631_v41 = vrot.slane %v14121_v29, 1  ;;  %14142 = vpow2.f32 %v9832_v15  ;;  %v562_v3 = vunpack.c.h.bf16 %v17049_v28 }
 0x200   : > { %v14125_v30 = vpop.eup %14124  ;;  %v2630_v11 = vsel %vm2346_vm0, %v2627_v37, %v2629_v18  ;;  %v2633_v63 = vrot.slane %v14123_v20, 1  ;;  %14144 = vpow2.f32 %v9833_v46 }
 0x201   : > { %v14127_v38 = vpop.eup %14126  ;;  %v3115_v59 = vmax.f32 %v14117_v4, %v2630_v11  ;;  %v3336_v17 = vmax.f32 %v16991_v6, %v3114_v33  ;;  %v2632_v44 = vsel %vm2346_vm0, %v2629_v18, %v2631_v41  ;;  %v2634_v23 = vrot.slane %v14125_v30, 1 }
 0x202   : > { %v14129_v54 = vpop.eup %14128  ;;  %v17072_v25 = vmax.f32 %v14119_v21, %v2632_v44  ;;  %v2636_v49 = vrot.slane %v14127_v38, 1  ;;  %14146 = vpow2.f32 %v9834_v12 }
 0x203   : > { %v14131_v43 = vpop.eup %14130  ;;  %v3337_v42 = vmax.f32 %v17004_v35, %v3115_v59  ;;  %vm17076_vm3 = vcmp.eq.f32.partialorder %v3336_v17, %v2628_v24  ;;  %v2635_v50 = vsel %vm2346_vm0, %v2633_v63, %v2634_v23  ;;  %v2638_v6 = vrot.slane %v14129_v54, 1 }
 0x204   : > { %v14133_v60 = vpop.eup %14132  ;;  %v3736_v10 = vsel %vm17076_vm3, %v2628_v24, 0.0  ;;  %v17083_v7 = vmax.f32 %v14123_v20, %v2635_v50  ;;  %v3338_v58 = vmax.f32 %v17006_v62, %v17072_v25  ;;  %v2637_v32 = vsel %vm2346_vm0, %v2634_v23, %v2636_v49 }
 0x205   : > { %v14135_v53 = vpop.eup %14134  ;;  %vm3537_vm4 = vcmp.eq.f32.partialorder %v3337_v42, %v2630_v11  ;;  %v2639_v35 = vsel %vm2346_vm0, %v2636_v49, %v2638_v6  ;;  %v17089_v19 = vmax.f32 %v14125_v30, %v2637_v32  ;;  %v2640_v48 = vrot.slane %v14131_v43, 1 }
 0x206   : > { %v14137_v40 = vpop.eup %14136  ;;  %v3737_v55 = vsel %vm3537_vm4, %v2630_v11, 0.0  ;;  %v3339_v26 = vmax.f32 %v17017_v5, %v17083_v7  ;;  %vm17093_vm5 = vcmp.eq.f32.partialorder %v3338_v58, %v2632_v44  ;;  %v17097_v62 = vmax.f32 %v14127_v38, %v2639_v35  ;;  %v13123_v38 = vld [vmem:[%s15665_s29 + $0x2c0] sm:$0xff]  }
 0x207   : > { %v17099_v47 = vpop.eup %14138  ;;  %v12045_v14 = vpack.c.bf16 %v3737_v55, %v3736_v10  ;;  %v3738_v22 = vsel %vm17093_vm5, %v2632_v44, 0.0  ;;  %v3340_v2 = vmax.f32 %v17023_v31, %v17089_v19  ;;  %v2641_v27 = vsel %vm2346_vm0, %v2638_v6, %v2640_v48 }
 0x208   : > { %v14141_v8 = vpop.eup %14140  ;;  %vm3539_vm6 = vcmp.eq.f32.partialorder %v3339_v26, %v2635_v50  ;;  %v3341_v5 = vmax.f32 %v3114_v33, %v17097_v62  ;;  %v2642_v13 = vrot.slane %v14133_v60, 1  ;;  %v17107_v61 = vmax.f32 %v14129_v54, %v2641_v27 }
 0x209   : > { %v14143_v52 = vpop.eup %14142  ;;  %13206 = vst [vmem:[%s15729_s24 + $0x1e8] sm:$0xff] %v12045_v14   ;;  %v3739_v0 = vsel %vm3539_vm6, %v2635_v50, 0.0  ;;  %vm3540_vm7 = vcmp.eq.f32.partialorder %v3340_v2, %v2637_v32  ;;  %v1532_v36 = vadd.f32 1.0, %v14135_v53  ;;  %v2644_v4 = vrot.slane %v14137_v40, 1  ;;  %v317_v50 = vld [vmem:[%s15665_s29 + $0x2cc] sm:$0x1] }
 0x20a   : > { %v14145_v15 = vpop.eup %14144  ;;  %v12050_v12 = vpack.c.bf16 %v3739_v0, %v3738_v22  ;;  %vm3541_vm8 = vcmp.eq.f32.partialorder %v3341_v5, %v2639_v35  ;;  %v3740_v31 = vsel %vm3540_vm7, %v2637_v32, 0.0  ;;  %v2643_v37 = vsel %vm2346_vm0, %v2640_v48, %v2642_v13  ;;  %v17167_v0 = vld [vmem:[%s15665_s29 + $0x2d8] sm:$0xff]  }
 0x20b   : > { %v3741_v46 = vsel %vm3541_vm8, %v2639_v35, 0.0  ;;  %v17111_v21 = vmax.f32 %v14131_v43, %v2643_v37  ;;  %v3342_v29 = vmax.f32 %v3115_v59, %v17107_v61  ;;  %14148 = vrcp.f32 %v1532_v36 }
 0x20c   : > { %v14147_v24 = vpop.eup %14146  ;;  %13207 = vst [vmem:[%s15729_s24 + $0x1f0] sm:$0xff] %v12050_v12   ;;  %v12055_v18 = vpack.c.bf16 %v3741_v46, %v3740_v31  ;;  %v2645_v20 = vrot.slane %v17099_v47, 1  ;;  %v1533_v33 = vadd.f32 1.0, %v14141_v8  ;;  %v1534_v41 = vadd.f32 1.0, %v14143_v52 }
 0x20d   : > { %v3343_v30 = vmax.f32 %v17072_v25, %v17111_v21  ;;  %vm17118_vm9 = vcmp.eq.f32.partialorder %v3342_v29, %v2641_v27  ;;  %14150 = vpow2.f32 %v17051_v45  ;;  %v1535_v63 = vadd.f32 1.0, %v14145_v15 }
 0x20e   : > { %13208 = vst [vmem:[%s15729_s24 + $0x1f8] sm:$0xff] %v12055_v18   ;;  %v3742_v59 = vsel %vm17118_vm9, %v2641_v27, 0.0  ;;  %v17128_v17 = vsel %vm2346_vm0, %v2644_v4, %v2645_v20  ;;  %14152 = vrcp.f32 %v1533_v33  ;;  %v1536_v44 = vadd.f32 1.0, %v14147_v24 }
 0x20f   : > { %vm3543_vm10 = vcmp.eq.f32.partialorder %v3343_v30, %v2643_v37  ;;  %14154 = vrcp.f32 %v1534_v41  ;;  %v9838_v23 = vmul.f32 -1.442695, %v556_v57  ;;  %v11644_v45 = vunpack.c.h.bf16 %v17066_v56 }
 0x210   : > { %v3743_v54 = vsel %vm3543_vm10, %v2643_v37, 0.0  ;;  %14156 = vrcp.f32 %v1535_v63  ;;  %v9839_v25 = vmul.f32 -1.442695, %v557_v51  ;;  %v11647_v49 = vunpack.c.l.bf16 %v13123_v38  ;;  %v13124_v51 = vld [vmem:[%s15665_s29 + $0x2d0] sm:$0xff]  }
 0x211   : > { %v12060_v43 = vpack.c.bf16 %v3743_v54, %v3742_v59  ;;  %v17136_v42 = vmax.f32 %v14137_v40, %v17128_v17  ;;  %14158 = vrcp.f32 %v1536_v44  ;;  %v11648_v16 = vunpack.c.h.bf16 %v13123_v38 }
 0x212   : > { %14160 = vpow2.f32 %v17053_v39  ;;  %v9840_v57 = vmul.f32 -1.442695, %v11643_v1  ;;  %v9841_v6 = vmul.f32 -1.442695, %v11644_v45  ;;  %v9842_v60 = vmul.f32 -1.442695, %v11647_v49 }
 0x213   : > { %13209 = vst [vmem:[%s15729_s24 + $0x200] sm:$0xff] %v12060_v43   ;;  %14162 = vpow2.f32 %v17061_v9  ;;  %v563_v10 = vunpack.c.l.bf16 %v317_v50  ;;  %v3344_v32 = vmax.f32 %v17083_v7, %v17136_v42  ;;  %v9843_v53 = vmul.f32 -1.442695, %v11648_v16  ;;  %v17196_v45 = vld [vmem:[%s15665_s29 + $0x2e0] ss:$24 sps:$4 sm:$0xff]   ;;  %v13126_v50 = vld [vmem:[%s15665_s29 + $0x2e8] sm:$0xff]  }
 0x214   : > { %14164 = vpow2.f32 %v9838_v23  ;;  %v11651_v56 = vunpack.c.l.bf16 %v13124_v51  ;;  %v11652_v1 = vunpack.c.h.bf16 %v13124_v51  ;;  %v9844_v9 = vmul.f32 -1.442695, %v562_v3  ;;  %v323_v16 = vld [vmem:[%s15665_s29 + $0x2e4] sm:$0x1] }
 0x215   : > { %v14149_v58 = vpop.eup %14148  ;;  %14166 = vpow2.f32 %v9839_v25  ;;  %v9845_v55 = vmul.f32 -1.442695, %v563_v10  ;;  %vm17153_vm11 = vcmp.eq.f32.partialorder %v3344_v32, %v17128_v17  ;;  %v11655_v33 = vunpack.c.l.bf16 %v17167_v0 }
 0x216   : > { %v2647_v39 = vrot.slane %v14149_v58, 1  ;;  %14168 = vpow2.f32 %v9840_v57  ;;  %v17157_v27 = vmul.f32 -1.442695, %v11651_v56  ;;  %v17159_v8 = vmul.f32 -1.442695, %v11652_v1 }
 0x217   : > { %v14151_v35 = vpop.eup %14150  ;;  %14170 = vpow2.f32 %v9841_v6  ;;  %v3744_v4 = vsel %vm17153_vm11, %v17128_v17, 0.0  ;;  %v11656_v43 = vunpack.c.h.bf16 %v17167_v0  ;;  %v568_v32 = vunpack.c.l.bf16 %v17196_v45 }
 0x218   : > { %v14153_v48 = vpop.eup %14152  ;;  %v2648_v28 = vsel %vm2346_vm0, %v2645_v20, %v2647_v39  ;;  %v1537_v40 = vadd.f32 1.0, %v14151_v35  ;;  %14172 = vpow2.f32 %v9842_v60  ;;  %v569_v56 = vunpack.c.l.bf16 %v323_v16 }
 0x219   : > { %v14155_v26 = vpop.eup %14154  ;;  %v17150_v34 = vmax.f32 %v17099_v47, %v2648_v28  ;;  %v2649_v14 = vrot.slane %v14153_v48, 1  ;;  %14174 = vpow2.f32 %v9843_v53  ;;  %v11659_v1 = vunpack.c.l.bf16 %v13126_v50 }
 0x21a   : > { %v14157_v22 = vpop.eup %14156  ;;  %v2651_v2 = vrot.slane %v14155_v26, 1  ;;  %14176 = vrcp.f32 %v1537_v40  ;;  %v17207_v40 = vld [vmem:[%s15665_s29 + $0x2f0] sm:$0xff]  }
 0x21b   : > { %v17161_v5 = vpop.eup %14158  ;;  %v3345_v47 = vmax.f32 %v17089_v19, %v17150_v34  ;;  %v2650_v13 = vsel %vm2346_vm0, %v2647_v39, %v2649_v14  ;;  %v2653_v52 = vrot.slane %v14157_v22, 1  ;;  %14178 = vpow2.f32 %v9844_v9 }
 0x21c   : > { %v14161_v36 = vpop.eup %14160  ;;  %v2652_v15 = vsel %vm2346_vm0, %v2649_v14, %v2651_v2  ;;  %v17173_v12 = vmax.f32 %v14149_v58, %v2650_v13  ;;  %14180 = vpow2.f32 %v9845_v55  ;;  %v2655_v3 = vrot.slane %v17161_v5, 1 }
 0x21d   : > { %v14163_v31 = vpop.eup %14162  ;;  %vm3545_vm12 = vcmp.eq.f32.partialorder %v3345_v47, %v2648_v28  ;;  %v17175_v37 = vmax.f32 %v14153_v48, %v2652_v15  ;;  %v17178_v19 = vsel %vm2346_vm0, %v2651_v2, %v2653_v52  ;;  %v1538_v46 = vadd.f32 1.0, %v14161_v36 }
 0x21e   : > { %v14165_v29 = vpop.eup %14164  ;;  %v3745_v24 = vsel %vm3545_vm12, %v2648_v28, 0.0  ;;  %v3346_v18 = vmax.f32 %v17097_v62, %v17173_v12  ;;  %v1539_v20 = vadd.f32 1.0, %v14163_v31  ;;  %v17190_v17 = vmax.f32 %v14155_v26, %v17178_v19 }
 0x21f   : > { %v14167_v41 = vpop.eup %14166  ;;  %v12065_v30 = vpack.c.bf16 %v3745_v24, %v3744_v4  ;;  %v3347_v11 = vmax.f32 %v17107_v61, %v17175_v37  ;;  %14182 = vrcp.f32 %v1538_v46  ;;  %v1540_v63 = vadd.f32 1.0, %v14165_v29 }
 0x220   : > { %v14169_v38 = vpop.eup %14168  ;;  %vm17185_vm13 = vcmp.eq.f32.partialorder %v3346_v18, %v2650_v13  ;;  %14184 = vrcp.f32 %v1539_v20  ;;  %v1541_v62 = vadd.f32 1.0, %v14167_v41  ;;  %v3348_v10 = vmax.f32 %v17111_v21, %v17190_v17 }
 0x221   : > { %v14171_v44 = vpop.eup %14170  ;;  %13210 = vst [vmem:[%s15729_s24 + $0x208] sm:$0xff] %v12065_v30   ;;  %vm3547_vm14 = vcmp.eq.f32.partialorder %v3347_v11, %v2652_v15  ;;  %v3746_v61 = vsel %vm17185_vm13, %v2650_v13, 0.0  ;;  %14186 = vrcp.f32 %v1540_v63  ;;  %v1542_v23 = vadd.f32 1.0, %v14169_v38 }
 0x222   : > { %v14173_v54 = vpop.eup %14172  ;;  %v3747_v25 = vsel %vm3547_vm14, %v2652_v15, 0.0  ;;  %14188 = vrcp.f32 %v1541_v62  ;;  %v1543_v49 = vadd.f32 1.0, %v14171_v44  ;;  %v9848_v48 = vmul.f32 -1.442695, %v11655_v33 }
 0x223   : > { %v14175_v57 = vpop.eup %14174  ;;  %v12070_v6 = vpack.c.bf16 %v3747_v25, %v3746_v61  ;;  %v1544_v51 = vadd.f32 1.0, %v14173_v54  ;;  %14190 = vrcp.f32 %v1542_v23  ;;  %v11660_v28 = vunpack.c.h.bf16 %v13126_v50 }
 0x224   : > { %v14177_v60 = vpop.eup %14176  ;;  %14192 = vrcp.f32 %v1543_v49  ;;  %v1545_v58 = vadd.f32 1.0, %v14175_v57  ;;  %v9849_v26 = vmul.f32 -1.442695, %v11656_v43  ;;  %vm17215_vm15 = vcmp.eq.f32.partialorder %v3348_v10, %v17178_v19 }
 0x225   : > { %v14179_v53 = vpop.eup %14178  ;;  %13211 = vst [vmem:[%s15729_s24 + $0x210] sm:$0xff] %v12070_v6   ;;  %v2656_v39 = vrot.slane %v14177_v60, 1  ;;  %14194 = vrcp.f32 %v1544_v51  ;;  %v9850_v22 = vmul.f32 -1.442695, %v568_v32  ;;  %v17220_v47 = vmul.f32 -1.442695, %v569_v56 }
 0x226   : > { %v14181_v35 = vpop.eup %14180  ;;  %v1546_v9 = vadd.f32 1.0, %v14179_v53  ;;  %14196 = vrcp.f32 %v1545_v58  ;;  %v11663_v13 = vunpack.c.l.bf16 %v17207_v40  ;;  %v17227_v36 = vmul.f32 -1.442695, %v11660_v28 }
 0x227   : > { %v2657_v55 = vsel %vm2346_vm0, %v2655_v3, %v2656_v39  ;;  %14198 = vpow2.f32 %v17157_v27  ;;  %v1547_v21 = vadd.f32 1.0, %v14181_v35  ;;  %v17223_v27 = vmul.f32 -1.442695, %v11659_v1 }
 0x228   : > { %v17212_v7 = vmax.f32 %v17161_v5, %v2657_v55  ;;  %14200 = vrcp.f32 %v1546_v9  ;;  %v3748_v15 = vsel %vm17215_vm15, %v17178_v19, 0.0  ;;  %v11664_v31 = vunpack.c.h.bf16 %v17207_v40 }
 0x229   : > { %v14183_v2 = vpop.eup %14182  ;;  %14202 = vpow2.f32 %v17159_v8 }
 0x22a   : > { %v14185_v52 = vpop.eup %14184  ;;  %v3349_v5 = vmax.f32 %v17136_v42, %v17212_v7  ;;  %v2658_v0 = vrot.slane %v14183_v2, 1  ;;  %14204 = vrcp.f32 %v1547_v21 }
 0x22b   : > { %v14187_v4 = vpop.eup %14186  ;;  %v2660_v8 = vrot.slane %v14185_v52, 1  ;;  %14206 = vpow2.f32 %v9848_v48 }
 0x22c   : > { %v14189_v46 = vpop.eup %14188  ;;  %vm3549_vm1 = vcmp.eq.f32.partialorder %v3349_v5, %v2657_v55  ;;  %v2659_v29 = vsel %vm2346_vm0, %v2656_v39, %v2658_v0  ;;  %v2662_v24 = vrot.slane %v14187_v4, 1  ;;  %14208 = vpow2.f32 %v9849_v26 }
 0x22d   : > { %v14191_v42 = vpop.eup %14190  ;;  %v3749_v18 = vsel %vm3549_vm1, %v2657_v55, 0.0  ;;  %v2661_v20 = vsel %vm2346_vm0, %v2658_v0, %v2660_v8  ;;  %v3128_v33 = vmax.f32 %v14177_v60, %v2659_v29  ;;  %v2664_v41 = vrot.slane %v14189_v46, 1  ;;  %v329_v46 = vld [vmem:[%s15665_s29 + $0x2fc] sm:$0x1] }
 0x22e   : > { %v14193_v30 = vpop.eup %14192  ;;  %v12075_v11 = vpack.c.bf16 %v3749_v18, %v3748_v15  ;;  %v3129_v19 = vmax.f32 %v14183_v2, %v2661_v20  ;;  %v2663_v63 = vsel %vm2346_vm0, %v2660_v8, %v2662_v24  ;;  %v2666_v38 = vrot.slane %v14191_v42, 1 }
 0x22f   : > { %v14195_v59 = vpop.eup %14194  ;;  %v3350_v62 = vmax.f32 %v17150_v34, %v3128_v33  ;;  %v2665_v44 = vsel %vm2346_vm0, %v2662_v24, %v2664_v41  ;;  %v17238_v61 = vmax.f32 %v14185_v52, %v2663_v63  ;;  %v2667_v23 = vrot.slane %v14193_v30, 1 }
 0x230   : > { %v14197_v54 = vpop.eup %14196  ;;  %13212 = vst [vmem:[%s15729_s24 + $0x218] sm:$0xff] %v12075_v11   ;;  %v3351_v25 = vmax.f32 %v17173_v12, %v3129_v19  ;;  %v17242_v49 = vmax.f32 %v14187_v4, %v2665_v44  ;;  %v2669_v43 = vrot.slane %v14195_v59, 1  ;;  %14210 = vpow2.f32 %v9850_v22 }
 0x231   : > { %v14199_v16 = vpop.eup %14198  ;;  %vm3550_vm2 = vcmp.eq.f32.partialorder %v3350_v62, %v2659_v29  ;;  %v3352_v50 = vmax.f32 %v17175_v37, %v17238_v61  ;;  %v2668_v34 = vsel %vm2346_vm0, %v2666_v38, %v2667_v23  ;;  %v2671_v57 = vrot.slane %v14197_v54, 1 }
 0x232   : > { %v14201_v6 = vpop.eup %14200  ;;  %vm3551_vm3 = vcmp.eq.f32.partialorder %v3351_v25, %v2661_v20  ;;  %v3750_v3 = vsel %vm3550_vm2, %v2659_v29, 0.0  ;;  %v3353_v51 = vmax.f32 %v17190_v17, %v17242_v49  ;;  %v2670_v12 = vsel %vm2346_vm0, %v2667_v23, %v2669_v43  ;;  %v17291_v23 = vld [vmem:[%s15665_s29 + $0x310] ss:$24 sps:$4 sm:$0xff]  }
 0x233   : > { %v14203_v60 = vpop.eup %14202  ;;  %v3751_v10 = vsel %vm3551_vm3, %v2661_v20, 0.0  ;;  %vm3552_vm4 = vcmp.eq.f32.partialorder %v3352_v50, %v2663_v63  ;;  %v17250_v58 = vmax.f32 %v14191_v42, %v2668_v34  ;;  %v17252_v32 = vmax.f32 %v14193_v30, %v2670_v12  ;;  %v13128_v20 = vld [vmem:[%s15665_s29 + $0x300] sm:$0xff]  }
 0x234   : > { %v14205_v37 = vpop.eup %14204  ;;  %v12080_v53 = vpack.c.bf16 %v3751_v10, %v3750_v3  ;;  %vm3553_vm5 = vcmp.eq.f32.partialorder %v3353_v51, %v2665_v44  ;;  %v3752_v39 = vsel %vm3552_vm4, %v2663_v63, 0.0  ;;  %v2672_v56 = vsel %vm2346_vm0, %v2669_v43, %v2671_v57 }
 0x235   : > { %v14207_v1 = vpop.eup %14206  ;;  %v3753_v35 = vsel %vm3553_vm5, %v2665_v44, 0.0  ;;  %v3354_v17 = vmax.f32 %v17212_v7, %v17250_v58  ;;  %v3355_v9 = vmax.f32 %v3128_v33, %v17252_v32  ;;  %v2673_v48 = vrot.slane %v14201_v6, 1 }
 0x236   : > { %v14209_v28 = vpop.eup %14208  ;;  %13213 = vst [vmem:[%s15729_s24 + $0x220] sm:$0xff] %v12080_v53   ;;  %v12085_v55 = vpack.c.bf16 %v3753_v35, %v3752_v39  ;;  %v17259_v21 = vmax.f32 %v14195_v59, %v2672_v56  ;;  %v1548_v26 = vadd.f32 1.0, %v14199_v16  ;;  %v1549_v14 = vadd.f32 1.0, %v14203_v60 }
 0x237   : > { %vm3554_vm6 = vcmp.eq.f32.partialorder %v3354_v17, %v2668_v34  ;;  %vm3555_vm7 = vcmp.eq.f32.partialorder %v3355_v9, %v2670_v12  ;;  %v2674_v22 = vsel %vm2346_vm0, %v2671_v57, %v2673_v48  ;;  %v2675_v2 = vrot.slane %v14205_v37, 1 }
 0x238   : > { %13214 = vst [vmem:[%s15729_s24 + $0x228] sm:$0xff] %v12085_v55   ;;  %v3754_v7 = vsel %vm3554_vm6, %v2668_v34, 0.0  ;;  %v3755_v52 = vsel %vm3555_vm7, %v2670_v12, 0.0  ;;  %v17263_v5 = vmax.f32 %v14197_v54, %v2674_v22  ;;  %v3356_v0 = vmax.f32 %v3129_v19, %v17259_v21  ;;  %v13129_v19 = vld [vmem:[%s15665_s29 + $0x308] sm:$0xff]  }
 0x239   : > { %v12090_v4 = vpack.c.bf16 %v3755_v52, %v3754_v7  ;;  %14212 = vrcp.f32 %v1548_v26  ;;  %v1550_v15 = vadd.f32 1.0, %v14207_v1  ;;  %v574_v8 = vunpack.c.h.bf16 %v17196_v45  ;;  %v17323_v52 = vld [vmem:[%s15665_s29 + $0x320] sm:$0xff]  }
 0x23a   : > { %v14211_v29 = vpop.eup %14210  ;;  %v3357_v24 = vmax.f32 %v17238_v61, %v17263_v5  ;;  %vm17270_vm8 = vcmp.eq.f32.partialorder %v3356_v0, %v2672_v56  ;;  %14214 = vrcp.f32 %v1549_v14  ;;  %v17275_v18 = vsel %vm2346_vm0, %v2673_v48, %v2675_v2 }
 0x23b   : > { %13215 = vst [vmem:[%s15729_s24 + $0x230] sm:$0xff] %v12090_v4   ;;  %v3756_v33 = vsel %vm17270_vm8, %v2672_v56, 0.0  ;;  %v1551_v45 = vadd.f32 1.0, %v14209_v28  ;;  %14216 = vrcp.f32 %v1550_v15  ;;  %v1552_v41 = vadd.f32 1.0, %v14211_v29 }
 0x23c   : > { %vm3557_vm9 = vcmp.eq.f32.partialorder %v3357_v24, %v2674_v22  ;;  %14218 = vpow2.f32 %v17220_v47  ;;  %v9854_v30 = vmul.f32 -1.442695, %v11663_v13  ;;  %v575_v11 = vunpack.c.l.bf16 %v329_v46  ;;  %v335_v47 = vld [vmem:[%s15665_s29 + $0x314] sm:$0x1] }
 0x23d   : > { %v3757_v63 = vsel %vm3557_vm9, %v2674_v22, 0.0  ;;  %14220 = vrcp.f32 %v1551_v45  ;;  %v11667_v38 = vunpack.c.l.bf16 %v13128_v20  ;;  %v11668_v59 = vunpack.c.h.bf16 %v13128_v20 }
 0x23e   : > { %v12095_v62 = vpack.c.bf16 %v3757_v63, %v3756_v33  ;;  %v17286_v44 = vmax.f32 %v14201_v6, %v17275_v18  ;;  %14222 = vrcp.f32 %v1552_v41  ;;  %v9855_v61 = vmul.f32 -1.442695, %v11664_v31  ;;  %v17301_v6 = vld [vmem:[%s15665_s29 + $0x318] sm:$0xff]  }
 0x23f   : > { %14224 = vpow2.f32 %v17223_v27  ;;  %v9856_v13 = vmul.f32 -1.442695, %v574_v8  ;;  %v11671_v54 = vunpack.c.l.bf16 %v13129_v19  ;;  %v9857_v25 = vmul.f32 -1.442695, %v575_v11 }
 0x240   : > { %13216 = vst [vmem:[%s15729_s24 + $0x238] sm:$0xff] %v12095_v62   ;;  %14226 = vpow2.f32 %v17227_v36  ;;  %v11672_v43 = vunpack.c.h.bf16 %v13129_v19  ;;  %v9858_v16 = vmul.f32 -1.442695, %v11667_v38  ;;  %v580_v50 = vunpack.c.l.bf16 %v17291_v23 }
 0x241   : > { %14228 = vpow2.f32 %v9854_v30  ;;  %v581_v34 = vunpack.c.l.bf16 %v335_v47  ;;  %v3358_v40 = vmax.f32 %v17242_v49, %v17286_v44  ;;  %v9859_v31 = vmul.f32 -1.442695, %v11668_v59  ;;  %v341_v47 = vld [vmem:[%s15665_s29 + $0x32c] sm:$0x1] }
 0x242   : > { %14230 = vpow2.f32 %v9855_v61  ;;  %v9860_v27 = vmul.f32 -1.442695, %v11671_v54  ;;  %v9861_v36 = vmul.f32 -1.442695, %v11672_v43  ;;  %v9862_v10 = vmul.f32 -1.442695, %v580_v50 }
 0x243   : > { %v14213_v57 = vpop.eup %14212  ;;  %14232 = vpow2.f32 %v9856_v13  ;;  %v9863_v37 = vmul.f32 -1.442695, %v581_v34  ;;  %vm17304_vm10 = vcmp.eq.f32.partialorder %v3358_v40, %v17275_v18  ;;  %v11675_v56 = vunpack.c.l.bf16 %v17301_v6 }
 0x244   : > { %v14215_v3 = vpop.eup %14214  ;;  %v2677_v51 = vrot.slane %v14213_v57, 1  ;;  %14234 = vpow2.f32 %v9857_v25  ;;  %v11676_v9 = vunpack.c.h.bf16 %v17301_v6  ;;  %v3758_v22 = vsel %vm17304_vm10, %v17275_v18, 0.0 }
 0x245   : > { %v14217_v12 = vpop.eup %14216  ;;  %v2678_v60 = vrot.slane %v14215_v3, 1  ;;  %14236 = vpow2.f32 %v9858_v16  ;;  %v9864_v43 = vmul.f32 -1.442695, %v11675_v56  ;;  %v11680_v40 = vunpack.c.h.bf16 %v17323_v52 }
 0x246   : > { %v14219_v53 = vpop.eup %14218  ;;  %v2680_v39 = vrot.slane %v14217_v12, 1  ;;  %14238 = vpow2.f32 %v9859_v31  ;;  %v13132_v31 = vld [vmem:[%s15665_s29 + $0x330] sm:$0xff]  }
 0x247   : > { %v14221_v1 = vpop.eup %14220  ;;  %v2679_v35 = vsel %vm2346_vm0, %v2677_v51, %v2678_v60  ;;  %v1553_v17 = vadd.f32 1.0, %v14219_v53  ;;  %14240 = vpow2.f32 %v9860_v27  ;;  %v587_v51 = vunpack.c.l.bf16 %v341_v47 }
 0x248   : > { %v17311_v48 = vpop.eup %14222  ;;  %v17313_v28 = vmax.f32 %v14213_v57, %v2679_v35  ;;  %v2681_v55 = vsel %vm2346_vm0, %v2678_v60, %v2680_v39  ;;  %v2682_v26 = vrot.slane %v14221_v1, 1  ;;  %14242 = vpow2.f32 %v9861_v36 }
 0x249   : > { %v14225_v14 = vpop.eup %14224  ;;  %v17319_v2 = vmax.f32 %v14215_v3, %v2681_v55  ;;  %14244 = vrcp.f32 %v1553_v17  ;;  %v2684_v7 = vrot.slane %v17311_v48, 1  ;;  %v586_v3 = vunpack.c.h.bf16 %v17291_v23 }
 0x24a   : > { %v14227_v0 = vpop.eup %14226  ;;  %v3359_v4 = vmax.f32 %v17250_v58, %v17313_v28  ;;  %v2683_v15 = vsel %vm2346_vm0, %v2680_v39, %v2682_v26  ;;  %v1554_v8 = vadd.f32 1.0, %v14225_v14  ;;  %14246 = vpow2.f32 %v9862_v10 }
 0x24b   : > { %v14229_v46 = vpop.eup %14228  ;;  %v17328_v29 = vmax.f32 %v14217_v12, %v2683_v15  ;;  %v3360_v24 = vmax.f32 %v17252_v32, %v17319_v2  ;;  %v17335_v42 = vsel %vm2346_vm0, %v2682_v26, %v2684_v7  ;;  %v1555_v18 = vadd.f32 1.0, %v14227_v0 }
 0x24c   : > { %v14231_v20 = vpop.eup %14230  ;;  %vm3559_vm11 = vcmp.eq.f32.partialorder %v3359_v4, %v2679_v35  ;;  %v1556_v33 = vadd.f32 1.0, %v14229_v46  ;;  %14248 = vrcp.f32 %v1554_v8  ;;  %v11679_v58 = vunpack.c.l.bf16 %v17323_v52 }
 0x24d   : > { %v14233_v45 = vpop.eup %14232  ;;  %v3759_v41 = vsel %vm3559_vm11, %v2679_v35, 0.0  ;;  %v3361_v30 = vmax.f32 %v17259_v21, %v17328_v29  ;;  %vm17340_vm12 = vcmp.eq.f32.partialorder %v3360_v24, %v2681_v55  ;;  %14250 = vrcp.f32 %v1555_v18 }
 0x24e   : > { %v14235_v11 = vpop.eup %14234  ;;  %v12100_v19 = vpack.c.bf16 %v3759_v41, %v3758_v22  ;;  %v3760_v63 = vsel %vm17340_vm12, %v2681_v55, 0.0  ;;  %v17347_v38 = vmax.f32 %v14221_v1, %v17335_v42  ;;  %14252 = vrcp.f32 %v1556_v33 }
 0x24f   : > { %v14237_v59 = vpop.eup %14236  ;;  %vm3561_vm13 = vcmp.eq.f32.partialorder %v3361_v30, %v2683_v15  ;;  %v1557_v62 = vadd.f32 1.0, %v14231_v20  ;;  %v1558_v61 = vadd.f32 1.0, %v14233_v45  ;;  %v1559_v21 = vadd.f32 1.0, %v14235_v11 }
 0x250   : > { %v14239_v13 = vpop.eup %14238  ;;  %13217 = vst [vmem:[%s15729_s24 + $0x240] sm:$0xff] %v12100_v19   ;;  %v3761_v54 = vsel %vm3561_vm13, %v2683_v15, 0.0  ;;  %v1560_v25 = vadd.f32 1.0, %v14237_v59  ;;  %14254 = vpow2.f32 %v9863_v37  ;;  %v3362_v12 = vmax.f32 %v17263_v5, %v17347_v38 }
 0x251   : > { %v14241_v16 = vpop.eup %14240  ;;  %v12105_v50 = vpack.c.bf16 %v3761_v54, %v3760_v63  ;;  %14256 = vrcp.f32 %v1557_v62  ;;  %v1561_v34 = vadd.f32 1.0, %v14239_v13  ;;  %v9865_v10 = vmul.f32 -1.442695, %v11676_v9  ;;  %v17367_v9 = vld [vmem:[%s15665_s29 + $0x338] sm:$0xff]  }
 0x252   : > { %v14243_v57 = vpop.eup %14242  ;;  %14258 = vrcp.f32 %v1558_v61  ;;  %v1562_v27 = vadd.f32 1.0, %v14241_v16  ;;  %v11683_v49 = vunpack.c.l.bf16 %v13132_v31  ;;  %v11684_v39 = vunpack.c.h.bf16 %v13132_v31 }
 0x253   : > { %v14245_v36 = vpop.eup %14244  ;;  %13218 = vst [vmem:[%s15729_s24 + $0x248] sm:$0xff] %v12105_v50   ;;  %14260 = vrcp.f32 %v1559_v21  ;;  %v1563_v60 = vadd.f32 1.0, %v14243_v57  ;;  %v9866_v23 = vmul.f32 -1.442695, %v11679_v58  ;;  %v9867_v1 = vmul.f32 -1.442695, %v11680_v40 }
 0x254   : > { %v14247_v37 = vpop.eup %14246  ;;  %v2686_v53 = vrot.slane %v14245_v36, 1  ;;  %14262 = vrcp.f32 %v1560_v25  ;;  %v17362_v17 = vmul.f32 -1.442695, %v586_v3  ;;  %v17364_v6 = vmul.f32 -1.442695, %v587_v51 }
 0x255   : > { %14264 = vrcp.f32 %v1561_v34  ;;  %v1564_v56 = vadd.f32 1.0, %v14247_v37  ;;  %vm17373_vm14 = vcmp.eq.f32.partialorder %v3362_v12, %v17335_v42  ;;  %v17377_v0 = vmul.f32 -1.442695, %v11683_v49 }
 0x256   : > { %v14249_v35 = vpop.eup %14248  ;;  %v2687_v5 = vsel %vm2346_vm0, %v2684_v7, %v2686_v53  ;;  %14266 = vrcp.f32 %v1562_v27  ;;  %v17379_v4 = vmul.f32 -1.442695, %v11684_v39  ;;  %v3762_v24 = vsel %vm17373_vm14, %v17335_v42, 0.0 }
 0x257   : > { %v14251_v55 = vpop.eup %14250  ;;  %v17370_v26 = vmax.f32 %v17311_v48, %v2687_v5  ;;  %v2688_v22 = vrot.slane %v14249_v35, 1  ;;  %14268 = vrcp.f32 %v1563_v60  ;;  %v11687_v48 = vunpack.c.l.bf16 %v17367_v9 }
 0x258   : > { %v14253_v52 = vpop.eup %14252  ;;  %v2689_v7 = vrot.slane %v14251_v55, 1  ;;  %14270 = vrcp.f32 %v1564_v56  ;;  %v11688_v20 = vunpack.c.h.bf16 %v17367_v9 }
 0x259   : > { %v3363_v15 = vmax.f32 %v17286_v44, %v17370_v26  ;;  %v2691_v8 = vrot.slane %v14253_v52, 1  ;;  %14272 = vpow2.f32 %v9864_v43 }
 0x25a   : > { %v14255_v46 = vpop.eup %14254  ;;  %v2690_v18 = vsel %vm2346_vm0, %v2688_v22, %v2689_v7  ;;  %14274 = vpow2.f32 %v9865_v10 }
 0x25b   : > { %v14257_v33 = vpop.eup %14256  ;;  %vm3563_vm15 = vcmp.eq.f32.partialorder %v3363_v15, %v2687_v5  ;;  %v2692_v58 = vsel %vm2346_vm0, %v2689_v7, %v2691_v8  ;;  %v17390_v45 = vmax.f32 %v14249_v35, %v2690_v18  ;;  %v1565_v44 = vadd.f32 1.0, %v14255_v46 }
 0x25c   : > { %v14259_v41 = vpop.eup %14258  ;;  %v3763_v30 = vsel %vm3563_vm15, %v2687_v5, 0.0  ;;  %v17392_v32 = vmax.f32 %v14251_v55, %v2692_v58  ;;  %v2693_v11 = vrot.slane %v14257_v33, 1  ;;  %14276 = vpow2.f32 %v9866_v23 }
 0x25d   : > { %v14261_v42 = vpop.eup %14260  ;;  %v12110_v19 = vpack.c.bf16 %v3763_v30, %v3762_v24  ;;  %v3364_v63 = vmax.f32 %v17313_v28, %v17390_v45  ;;  %v2695_v59 = vrot.slane %v14259_v41, 1  ;;  %14278 = vrcp.f32 %v1565_v44  ;;  %v346_v30 = vld [vmem:[%s15665_s29 + $0x340] ss:$24 sps:$4 sm:$0xff]  }
 0x25e   : > { %v14263_v62 = vpop.eup %14262  ;;  %v3365_v61 = vmax.f32 %v17319_v2, %v17392_v32  ;;  %v2694_v21 = vsel %vm2346_vm0, %v2691_v8, %v2693_v11  ;;  %v2697_v47 = vrot.slane %v14261_v42, 1  ;;  %14280 = vpow2.f32 %v9867_v1  ;;  %v17470_v1 = vld [vmem:[%s15665_s29 + $0x368] sm:$0xff]  }
 0x25f   : > { %v14265_v13 = vpop.eup %14264  ;;  %13219 = vst [vmem:[%s15729_s24 + $0x250] sm:$0xff] %v12110_v19   ;;  %vm3564_vm1 = vcmp.eq.f32.partialorder %v3364_v63, %v2690_v18  ;;  %v2696_v54 = vsel %vm2346_vm0, %v2693_v11, %v2695_v59  ;;  %v3144_v25 = vmax.f32 %v14253_v52, %v2694_v21  ;;  %v2699_v43 = vrot.slane %v14263_v62, 1  ;;  %v347_v19 = vld [vmem:[%s15665_s29 + $0x344] sm:$0x1] }
 0x260   : > { %v14267_v16 = vpop.eup %14266  ;;  %vm3565_vm2 = vcmp.eq.f32.partialorder %v3365_v61, %v2692_v58  ;;  %v3764_v28 = vsel %vm3564_vm1, %v2690_v18, 0.0  ;;  %v17401_v50 = vmax.f32 %v14257_v33, %v2696_v54  ;;  %v2698_v34 = vsel %vm2346_vm0, %v2695_v59, %v2697_v47  ;;  %v13134_v61 = vld [vmem:[%s15665_s29 + $0x348] sm:$0xff]  }
 0x261   : > { %v14269_v40 = vpop.eup %14268  ;;  %v3765_v2 = vsel %vm3565_vm2, %v2692_v58, 0.0  ;;  %v3366_v31 = vmax.f32 %v17328_v29, %v3144_v25  ;;  %v2700_v57 = vrot.slane %v14265_v13, 1  ;;  %v17405_v27 = vmax.f32 %v14259_v41, %v2698_v34 }
 0x262   : > { %v14271_v3 = vpop.eup %14270  ;;  %v12115_v51 = vpack.c.bf16 %v3765_v2, %v3764_v28  ;;  %v3367_v36 = vmax.f32 %v17347_v38, %v17401_v50  ;;  %v2702_v12 = vrot.slane %v14267_v16, 1  ;;  %v2704_v60 = vrot.slane %v14269_v40, 1 }
 0x263   : > { %v14273_v10 = vpop.eup %14272  ;;  %vm3566_vm3 = vcmp.eq.f32.partialorder %v3366_v31, %v2694_v21  ;;  %v2701_v37 = vsel %vm2346_vm0, %v2699_v43, %v2700_v57  ;;  %v3368_v53 = vmax.f32 %v17370_v26, %v17405_v27  ;;  %v2706_v49 = vrot.slane %v14271_v3, 1 }
 0x264   : > { %v14275_v39 = vpop.eup %14274  ;;  %13220 = vst [vmem:[%s15729_s24 + $0x258] sm:$0xff] %v12115_v51   ;;  %vm3567_vm4 = vcmp.eq.f32.partialorder %v3367_v36, %v2696_v54  ;;  %v3766_v29 = vsel %vm3566_vm3, %v2694_v21, 0.0  ;;  %v17413_v56 = vmax.f32 %v14263_v62, %v2701_v37  ;;  %v2703_v23 = vsel %vm2346_vm0, %v2700_v57, %v2702_v12 }
 0x265   : > { %v3767_v38 = vsel %vm3567_vm4, %v2696_v54, 0.0  ;;  %vm17416_vm5 = vcmp.eq.f32.partialorder %v3368_v53, %v2698_v34  ;;  %v2705_v35 = vsel %vm2346_vm0, %v2702_v12, %v2704_v60  ;;  %v17421_v5 = vmax.f32 %v14265_v13, %v2703_v23  ;;  %v353_v12 = vld [vmem:[%s15665_s29 + $0x35c] sm:$0x1] }
 0x266   : > { %v14277_v55 = vpop.eup %14276  ;;  %v12120_v26 = vpack.c.bf16 %v3767_v38, %v3766_v29  ;;  %v3369_v14 = vmax.f32 %v17390_v45, %v17413_v56  ;;  %v3768_v22 = vsel %vm17416_vm5, %v2698_v34, 0.0  ;;  %v17427_v52 = vmax.f32 %v14267_v16, %v2705_v35  ;;  %v13135_v16 = vld [vmem:[%s15665_s29 + $0x350] sm:$0xff]  }
 0x267   : > { %v14279_v7 = vpop.eup %14278  ;;  %v3370_v15 = vmax.f32 %v17392_v32, %v17421_v5  ;;  %v2707_v8 = vsel %vm2346_vm0, %v2704_v60, %v2706_v49  ;;  %v1566_v46 = vadd.f32 1.0, %v14273_v10  ;;  %v1567_v24 = vadd.f32 1.0, %v14275_v39  ;;  %v17466_v60 = vld [vmem:[%s15665_s29 + $0x360] sm:$0xff]  }
 0x268   : > { %v14281_v18 = vpop.eup %14280  ;;  %13221 = vst [vmem:[%s15729_s24 + $0x260] sm:$0xff] %v12120_v26   ;;  %vm3569_vm6 = vcmp.eq.f32.partialorder %v3369_v14, %v2701_v37  ;;  %v3371_v33 = vmax.f32 %v3144_v25, %v17427_v52  ;;  %v2708_v58 = vrot.slane %v14279_v7, 1  ;;  %v17434_v45 = vmax.f32 %v14269_v40, %v2707_v8 }
 0x269   : > { %v3769_v44 = vsel %vm3569_vm6, %v2701_v37, 0.0  ;;  %vm3570_vm7 = vcmp.eq.f32.partialorder %v3370_v15, %v2703_v23  ;;  %v1568_v41 = vadd.f32 1.0, %v14277_v55  ;;  %14282 = vrcp.f32 %v1566_v46 }
 0x26a   : > { %v12125_v32 = vpack.c.bf16 %v3769_v44, %v3768_v22  ;;  %vm3571_vm8 = vcmp.eq.f32.partialorder %v3371_v33, %v2705_v35  ;;  %v3770_v11 = vsel %vm3570_vm7, %v2703_v23, 0.0  ;;  %v2709_v42 = vsel %vm2346_vm0, %v2706_v49, %v2708_v58 }
 0x26b   : > { %v3771_v63 = vsel %vm3571_vm8, %v2705_v35, 0.0  ;;  %v17439_v59 = vmax.f32 %v14271_v3, %v2709_v42  ;;  %v3372_v62 = vmax.f32 %v17401_v50, %v17434_v45  ;;  %14284 = vrcp.f32 %v1567_v24 }
 0x26c   : > { %13222 = vst [vmem:[%s15729_s24 + $0x268] sm:$0xff] %v12125_v32   ;;  %v12130_v21 = vpack.c.bf16 %v3771_v63, %v3770_v11  ;;  %14286 = vrcp.f32 %v1568_v41  ;;  %v1569_v47 = vadd.f32 1.0, %v14281_v18  ;;  %v592_v13 = vunpack.c.l.bf16 %v346_v30  ;;  %v17486_v32 = vld [vmem:[%s15665_s29 + $0x370] ss:$24 sps:$4 sm:$0xff]  }
 0x26d   : > { %v3373_v54 = vmax.f32 %v17405_v27, %v17439_v59  ;;  %vm17447_vm9 = vcmp.eq.f32.partialorder %v3372_v62, %v2707_v8  ;;  %14288 = vpow2.f32 %v17362_v17  ;;  %v593_v43 = vunpack.c.l.bf16 %v347_v19 }
 0x26e   : > { %13223 = vst [vmem:[%s15729_s24 + $0x270] sm:$0xff] %v12130_v21   ;;  %v3772_v28 = vsel %vm17447_vm9, %v2707_v8, 0.0  ;;  %14290 = vrcp.f32 %v1569_v47  ;;  %v9872_v50 = vmul.f32 -1.442695, %v11687_v48  ;;  %v11691_v34 = vunpack.c.l.bf16 %v13134_v61 }
 0x26f   : > { %vm3573_vm10 = vcmp.eq.f32.partialorder %v3373_v54, %v2709_v42  ;;  %14292 = vpow2.f32 %v17364_v6  ;;  %v9873_v40 = vmul.f32 -1.442695, %v11688_v20  ;;  %v11692_v2 = vunpack.c.h.bf16 %v13134_v61 }
 0x270   : > { %v3773_v17 = vsel %vm3573_vm10, %v2709_v42, 0.0  ;;  %14294 = vpow2.f32 %v17377_v0  ;;  %v9874_v31 = vmul.f32 -1.442695, %v592_v13  ;;  %v11695_v57 = vunpack.c.l.bf16 %v13135_v16  ;;  %v359_v13 = vld [vmem:[%s15665_s29 + $0x374] sm:$0x1] }
 0x271   : > { %v12135_v27 = vpack.c.bf16 %v3773_v17, %v3772_v28  ;;  %14296 = vpow2.f32 %v17379_v4  ;;  %v9875_v48 = vmul.f32 -1.442695, %v593_v43  ;;  %v11696_v3 = vunpack.c.h.bf16 %v13135_v16 }
 0x272   : > { %14298 = vpow2.f32 %v9872_v50  ;;  %v9876_v51 = vmul.f32 -1.442695, %v11691_v34  ;;  %v598_v36 = vunpack.c.h.bf16 %v346_v30  ;;  %v9877_v9 = vmul.f32 -1.442695, %v11692_v2  ;;  %v13138_v50 = vld [vmem:[%s15665_s29 + $0x378] sm:$0xff]  }
 0x273   : > { %v14283_v6 = vpop.eup %14282  ;;  %13224 = vst [vmem:[%s15729_s24 + $0x278] sm:$0xff] %v12135_v27   ;;  %14300 = vpow2.f32 %v9873_v40  ;;  %v9878_v0 = vmul.f32 -1.442695, %v11695_v57  ;;  %v9879_v37 = vmul.f32 -1.442695, %v11696_v3  ;;  %v11699_v23 = vunpack.c.l.bf16 %v17466_v60 }
 0x274   : > { %v2710_v20 = vrot.slane %v14283_v6, 1  ;;  %14302 = vpow2.f32 %v9874_v31  ;;  %v9880_v49 = vmul.f32 -1.442695, %v598_v36  ;;  %v599_v38 = vunpack.c.l.bf16 %v353_v12 }
 0x275   : > { %v14285_v10 = vpop.eup %14284  ;;  %14304 = vpow2.f32 %v9875_v48  ;;  %v11700_v14 = vunpack.c.h.bf16 %v17466_v60  ;;  %v11703_v33 = vunpack.c.l.bf16 %v17470_v1  ;;  %v11704_v63 = vunpack.c.h.bf16 %v17470_v1  ;;  %v17512_v60 = vld [vmem:[%s15665_s29 + $0x380] sm:$0xff]  }
 0x276   : > { %v14287_v4 = vpop.eup %14286  ;;  %v2711_v53 = vrot.slane %v14285_v10, 1  ;;  %14306 = vpow2.f32 %v9876_v51  ;;  %v9881_v30 = vmul.f32 -1.442695, %v599_v38  ;;  %v604_v54 = vunpack.c.l.bf16 %v17486_v32 }
 0x277   : > { %v14289_v39 = vpop.eup %14288  ;;  %v2713_v29 = vrot.slane %v14287_v4, 1  ;;  %14308 = vpow2.f32 %v9877_v9  ;;  %v9882_v27 = vmul.f32 -1.442695, %v11699_v23  ;;  %v605_v48 = vunpack.c.l.bf16 %v359_v13 }
 0x278   : > { %v17472_v35 = vpop.eup %14290  ;;  %v2712_v55 = vsel %vm2346_vm0, %v2710_v20, %v2711_v53  ;;  %v1570_v26 = vadd.f32 1.0, %v14289_v39  ;;  %14310 = vpow2.f32 %v9878_v0  ;;  %v9883_v36 = vmul.f32 -1.442695, %v11700_v14 }
 0x279   : > { %v14293_v22 = vpop.eup %14292  ;;  %v2714_v7 = vsel %vm2346_vm0, %v2711_v53, %v2713_v29  ;;  %v17477_v15 = vmax.f32 %v14283_v6, %v2712_v55  ;;  %v2715_v8 = vrot.slane %v17472_v35, 1  ;;  %14312 = vpow2.f32 %v9879_v37 }
 0x27a   : > { %v14295_v46 = vpop.eup %14294  ;;  %v17480_v24 = vmax.f32 %v14285_v10, %v2714_v7  ;;  %14314 = vrcp.f32 %v1570_v26  ;;  %v1571_v18 = vadd.f32 1.0, %v14293_v22  ;;  %v11707_v6 = vunpack.c.l.bf16 %v13138_v50 }
 0x27b   : > { %v14297_v58 = vpop.eup %14296  ;;  %v3374_v44 = vmax.f32 %v17413_v56, %v17477_v15  ;;  %v1572_v41 = vadd.f32 1.0, %v14295_v46  ;;  %14316 = vpow2.f32 %v9880_v49  ;;  %v17498_v56 = vsel %vm2346_vm0, %v2713_v29, %v2715_v8 }
 0x27c   : > { %v14299_v11 = vpop.eup %14298  ;;  %v3375_v42 = vmax.f32 %v17421_v5, %v17480_v24  ;;  %v1573_v19 = vadd.f32 1.0, %v14297_v58  ;;  %14318 = vrcp.f32 %v1571_v18  ;;  %v17506_v2 = vmax.f32 %v14287_v4, %v17498_v56 }
 0x27d   : > { %v14301_v62 = vpop.eup %14300  ;;  %vm17491_vm11 = vcmp.eq.f32.partialorder %v3374_v44, %v2712_v55  ;;  %14320 = vrcp.f32 %v1572_v41  ;;  %v1574_v21 = vadd.f32 1.0, %v14299_v11  ;;  %v9884_v0 = vmul.f32 -1.442695, %v11703_v33 }
 0x27e   : > { %v14303_v47 = vpop.eup %14302  ;;  %vm3575_vm12 = vcmp.eq.f32.partialorder %v3375_v42, %v2714_v7  ;;  %v3774_v5 = vsel %vm17491_vm11, %v2712_v55, 0.0  ;;  %14322 = vrcp.f32 %v1573_v19  ;;  %v1575_v16 = vadd.f32 1.0, %v14301_v62 }
 0x27f   : > { %v14305_v25 = vpop.eup %14304  ;;  %v3775_v43 = vsel %vm3575_vm12, %v2714_v7, 0.0  ;;  %14324 = vrcp.f32 %v1574_v21  ;;  %v1576_v28 = vadd.f32 1.0, %v14303_v47  ;;  %v17509_v12 = vmul.f32 -1.442695, %v11704_v63 }
 0x280   : > { %v14307_v34 = vpop.eup %14306  ;;  %v12140_v40 = vpack.c.bf16 %v3775_v43, %v3774_v5  ;;  %v1577_v17 = vadd.f32 1.0, %v14305_v25  ;;  %14326 = vpow2.f32 %v9881_v30  ;;  %v3376_v37 = vmax.f32 %v17427_v52, %v17506_v2 }
 0x281   : > { %v14309_v31 = vpop.eup %14308  ;;  %14328 = vrcp.f32 %v1575_v16  ;;  %v1578_v57 = vadd.f32 1.0, %v14307_v34  ;;  %v17516_v53 = vmul.f32 -1.442695, %v604_v54  ;;  %v17518_v29 = vmul.f32 -1.442695, %v605_v48 }
 0x282   : > { %v14311_v3 = vpop.eup %14310  ;;  %13225 = vst [vmem:[%s15729_s24 + $0x280] sm:$0xff] %v12140_v40   ;;  %14330 = vrcp.f32 %v1576_v28  ;;  %v1579_v51 = vadd.f32 1.0, %v14309_v31  ;;  %v11708_v23 = vunpack.c.h.bf16 %v13138_v50  ;;  %v11711_v55 = vunpack.c.l.bf16 %v17512_v60 }
 0x283   : > { %v14313_v9 = vpop.eup %14312  ;;  %14332 = vrcp.f32 %v1577_v17  ;;  %v1580_v20 = vadd.f32 1.0, %v14311_v3  ;;  %v17521_v26 = vmul.f32 -1.442695, %v11707_v6  ;;  %v11712_v7 = vunpack.c.h.bf16 %v17512_v60 }
 0x284   : > { %v14315_v10 = vpop.eup %14314  ;;  %14334 = vrcp.f32 %v1578_v57  ;;  %v1581_v4 = vadd.f32 1.0, %v14313_v9  ;;  %vm17531_vm13 = vcmp.eq.f32.partialorder %v3376_v37, %v17498_v56 }
 0x285   : > { %v14317_v49 = vpop.eup %14316  ;;  %v2717_v39 = vrot.slane %v14315_v10, 1  ;;  %14336 = vrcp.f32 %v1579_v51  ;;  %v3776_v62 = vsel %vm17531_vm13, %v17498_v56, 0.0 }
 0x286   : > { %v14319_v38 = vpop.eup %14318  ;;  %14338 = vrcp.f32 %v1580_v20  ;;  %v1582_v1 = vadd.f32 1.0, %v14317_v49 }
 0x287   : > { %v14321_v14 = vpop.eup %14320  ;;  %v2718_v52 = vsel %vm2346_vm0, %v2715_v8, %v2717_v39  ;;  %v2719_v22 = vrot.slane %v14319_v38, 1  ;;  %14340 = vrcp.f32 %v1581_v4  ;;  %v17536_v8 = vmul.f32 -1.442695, %v11708_v23 }
 0x288   : > { %v14323_v46 = vpop.eup %14322  ;;  %v17528_v18 = vmax.f32 %v17472_v35, %v2718_v52  ;;  %v2721_v58 = vrot.slane %v14321_v14, 1  ;;  %14342 = vrcp.f32 %v1582_v1 }
 0x289   : > { %v14325_v44 = vpop.eup %14324  ;;  %v2720_v41 = vsel %vm2346_vm0, %v2717_v39, %v2719_v22  ;;  %v2722_v30 = vrot.slane %v14323_v46, 1  ;;  %14344 = vpow2.f32 %v9882_v27 }
 0x28a   : > { %v14327_v11 = vpop.eup %14326  ;;  %v3377_v42 = vmax.f32 %v17434_v45, %v17528_v18  ;;  %v3156_v35 = vmax.f32 %v14315_v10, %v2720_v41  ;;  %v2724_v19 = vrot.slane %v14325_v44, 1  ;;  %14346 = vpow2.f32 %v9883_v36 }
 0x28b   : > { %v14329_v63 = vpop.eup %14328  ;;  %v2723_v61 = vsel %vm2346_vm0, %v2721_v58, %v2722_v30  ;;  %v17544_v21 = vadd.f32 1.0, %v14327_v11  ;;  %14348 = vpow2.f32 %v9884_v0 }
 0x28c   : > { %v14331_v47 = vpop.eup %14330  ;;  %vm3577_vm14 = vcmp.eq.f32.partialorder %v3377_v42, %v2718_v52  ;;  %v17546_v5 = vmax.f32 %v14321_v14, %v2723_v61  ;;  %v3378_v13 = vmax.f32 %v17439_v59, %v3156_v35  ;;  %v2725_v45 = vsel %vm2346_vm0, %v2722_v30, %v2724_v19 }
 0x28d   : > { %v14333_v54 = vpop.eup %14332  ;;  %v3777_v25 = vsel %vm3577_vm14, %v2718_v52, 0.0  ;;  %v2726_v43 = vrot.slane %v14329_v63, 1  ;;  %v17550_v16 = vmax.f32 %v14323_v46, %v2725_v45  ;;  %v2728_v56 = vrot.slane %v14331_v47, 1 }
 0x28e   : > { %v14335_v28 = vpop.eup %14334  ;;  %v12145_v50 = vpack.c.bf16 %v3777_v25, %v3776_v62  ;;  %v3379_v34 = vmax.f32 %v17477_v15, %v17546_v5  ;;  %vm17554_vm15 = vcmp.eq.f32.partialorder %v3378_v13, %v2720_v41  ;;  %v2730_v17 = vrot.slane %v14333_v54, 1  ;;  %v365_v54 = vld [vmem:[%s15665_s29 + $0x38c] sm:$0x1] }
 0x28f   : > { %v14337_v59 = vpop.eup %14336  ;;  %v3778_v31 = vsel %vm17554_vm15, %v2720_v41, 0.0  ;;  %v2727_v57 = vsel %vm2346_vm0, %v2724_v19, %v2726_v43  ;;  %v3380_v27 = vmax.f32 %v17480_v24, %v17550_v16  ;;  %v2729_v48 = vsel %vm2346_vm0, %v2726_v43, %v2728_v56 }
 0x290   : > { %v14339_v3 = vpop.eup %14338  ;;  %13226 = vst [vmem:[%s15729_s24 + $0x288] sm:$0xff] %v12145_v50   ;;  %vm3579_vm1 = vcmp.eq.f32.partialorder %v3379_v34, %v2723_v61  ;;  %v3159_v15 = vmax.f32 %v14325_v44, %v2727_v57  ;;  %v2731_v51 = vsel %vm2346_vm0, %v2728_v56, %v2730_v17  ;;  %v3160_v36 = vmax.f32 %v14329_v63, %v2729_v48  ;;  %v13140_v34 = vld [vmem:[%s15665_s29 + $0x390] sm:$0xff]  }
 0x291   : > { %v14341_v6 = vpop.eup %14340  ;;  %v3779_v9 = vsel %vm3579_vm1, %v2723_v61, 0.0  ;;  %vm17566_vm2 = vcmp.eq.f32.partialorder %v3380_v27, %v2725_v45  ;;  %v17570_v0 = vmax.f32 %v14331_v47, %v2731_v51  ;;  %v2732_v10 = vrot.slane %v14335_v28, 1 }
 0x292   : > { %v17572_v24 = vpop.eup %14342  ;;  %v12150_v37 = vpack.c.bf16 %v3779_v9, %v3778_v31  ;;  %v3381_v4 = vmax.f32 %v17506_v2, %v3159_v15  ;;  %v3780_v49 = vsel %vm17566_vm2, %v2725_v45, 0.0  ;;  %v3382_v39 = vmax.f32 %v17528_v18, %v3160_v36 }
 0x293   : > { %v14345_v23 = vpop.eup %14344  ;;  %v3383_v38 = vmax.f32 %v3156_v35, %v17570_v0  ;;  %v2733_v1 = vrot.slane %v14337_v59, 1  ;;  %v2735_v14 = vrot.slane %v14339_v3, 1  ;;  %v2737_v52 = vrot.slane %v14341_v6, 1 }
 0x294   : > { %v14347_v22 = vpop.eup %14346  ;;  %13227 = vst [vmem:[%s15729_s24 + $0x290] sm:$0xff] %v12150_v37   ;;  %vm3581_vm3 = vcmp.eq.f32.partialorder %v3381_v4, %v2727_v57  ;;  %vm3582_vm4 = vcmp.eq.f32.partialorder %v3382_v39, %v2729_v48  ;;  %v2739_v46 = vrot.slane %v17572_v24, 1  ;;  %v1584_v33 = vadd.f32 1.0, %v14345_v23 }
 0x295   : > { %v14349_v2 = vpop.eup %14348  ;;  %v3781_v58 = vsel %vm3581_vm3, %v2727_v57, 0.0  ;;  %vm3583_vm5 = vcmp.eq.f32.partialorder %v3383_v38, %v2731_v51  ;;  %v3782_v44 = vsel %vm3582_vm4, %v2729_v48, 0.0  ;;  %v2734_v18 = vsel %vm2346_vm0, %v2732_v10, %v2733_v1 }
 0x296   : > { %v12155_v41 = vpack.c.bf16 %v3781_v58, %v3780_v49  ;;  %v3783_v30 = vsel %vm3583_vm5, %v2731_v51, 0.0  ;;  %v2736_v11 = vsel %vm2346_vm0, %v2733_v1, %v2735_v14  ;;  %v17583_v42 = vmax.f32 %v14335_v28, %v2734_v18  ;;  %v17620_v51 = vld [vmem:[%s15665_s29 + $0x3a0] ss:$24 sps:$4 sm:$0xff]  }
 0x297   : > { %v12160_v35 = vpack.c.bf16 %v3783_v30, %v3782_v44  ;;  %v17585_v19 = vmax.f32 %v14337_v59, %v2736_v11  ;;  %v2738_v63 = vsel %vm2346_vm0, %v2735_v14, %v2737_v52  ;;  %v2740_v62 = vsel %vm2346_vm0, %v2737_v52, %v2739_v46  ;;  %v13141_v59 = vld [vmem:[%s15665_s29 + $0x398] sm:$0xff]   ;;  %v13142_v52 = vld [vmem:[%s15665_s29 + $0x3a8] sm:$0xff]  }
 0x298   : > { %13228 = vst [vmem:[%s15729_s24 + $0x298] sm:$0xff] %v12155_v41   ;;  %v3384_v61 = vmax.f32 %v17546_v5, %v17583_v42  ;;  %v17594_v47 = vmax.f32 %v14339_v3, %v2738_v63  ;;  %v17596_v13 = vmax.f32 %v14341_v6, %v2740_v62  ;;  %v1585_v45 = vadd.f32 1.0, %v14347_v22 }
 0x299   : > { %13229 = vst [vmem:[%s15729_s24 + $0x2a0] sm:$0xff] %v12160_v35   ;;  %v3385_v25 = vmax.f32 %v17550_v16, %v17585_v19  ;;  %14350 = vrcp.f32 %v17544_v21  ;;  %v1586_v43 = vadd.f32 1.0, %v14349_v2  ;;  %v610_v56 = vunpack.c.h.bf16 %v17486_v32 }
 0x29a   : > { %vm3584_vm6 = vcmp.eq.f32.partialorder %v3384_v61, %v2734_v18  ;;  %v3386_v28 = vmax.f32 %v3159_v15, %v17594_v47  ;;  %v3387_v5 = vmax.f32 %v3160_v36, %v17596_v13  ;;  %14352 = vrcp.f32 %v1584_v33 }
 0x29b   : > { %vm3585_vm7 = vcmp.eq.f32.partialorder %v3385_v25, %v2736_v11  ;;  %v3784_v50 = vsel %vm3584_vm6, %v2734_v18, 0.0  ;;  %14354 = vrcp.f32 %v1585_v45  ;;  %v611_v40 = vunpack.c.l.bf16 %v365_v54 }
 0x29c   : > { %v3785_v17 = vsel %vm3585_vm7, %v2736_v11, 0.0  ;;  %vm3586_vm8 = vcmp.eq.f32.partialorder %v3386_v28, %v2738_v63  ;;  %vm3587_vm9 = vcmp.eq.f32.partialorder %v3387_v5, %v2740_v62  ;;  %14356 = vpow2.f32 %v17509_v12 }
 0x29d   : > { %v12165_v32 = vpack.c.bf16 %v3785_v17, %v3784_v50  ;;  %v3786_v21 = vsel %vm3586_vm8, %v2738_v63, 0.0  ;;  %v3787_v16 = vsel %vm3587_vm9, %v2740_v62, 0.0  ;;  %14358 = vrcp.f32 %v1586_v43  ;;  %v13143_v63 = vld [vmem:[%s15665_s29 + $0x3b0] sm:$0xff]  }
 0x29e   : > { %v12170_v31 = vpack.c.bf16 %v3787_v16, %v3786_v21  ;;  %14360 = vpow2.f32 %v17516_v53  ;;  %v9890_v57 = vmul.f32 -1.442695, %v11711_v55  ;;  %v11715_v27 = vunpack.c.l.bf16 %v13140_v34 }
 0x29f   : > { %13230 = vst [vmem:[%s15729_s24 + $0x2a8] sm:$0xff] %v12165_v32   ;;  %14362 = vpow2.f32 %v17518_v29  ;;  %v9891_v48 = vmul.f32 -1.442695, %v11712_v7  ;;  %v11716_v12 = vunpack.c.h.bf16 %v13140_v34  ;;  %v9892_v3 = vmul.f32 -1.442695, %v610_v56  ;;  %v17654_v32 = vld [vmem:[%s15665_s29 + $0x3c0] sm:$0xff]  }
 0x2a0   : > { %13231 = vst [vmem:[%s15729_s24 + $0x2b0] sm:$0xff] %v12170_v31   ;;  %14364 = vpow2.f32 %v17521_v26  ;;  %v11719_v15 = vunpack.c.l.bf16 %v13141_v59  ;;  %v9893_v53 = vmul.f32 -1.442695, %v611_v40  ;;  %v9894_v55 = vmul.f32 -1.442695, %v11715_v27 }
 0x2a1   : > { %14366 = vpow2.f32 %v17536_v8  ;;  %v11720_v36 = vunpack.c.h.bf16 %v13141_v59  ;;  %v9895_v29 = vmul.f32 -1.442695, %v11716_v12  ;;  %v371_v26 = vld [vmem:[%s15665_s29 + $0x3a4] sm:$0x1]  ;;  %v616_v20 = vunpack.c.l.bf16 %v17620_v51 }
 0x2a2   : > { %14368 = vpow2.f32 %v9890_v57  ;;  %v9896_v9 = vmul.f32 -1.442695, %v11719_v15  ;;  %v617_v14 = vunpack.c.l.bf16 %v371_v26  ;;  %v11723_v11 = vunpack.c.l.bf16 %v13142_v52 }
 0x2a3   : > { %v14351_v6 = vpop.eup %14350  ;;  %14370 = vpow2.f32 %v9891_v48  ;;  %v9897_v39 = vmul.f32 -1.442695, %v11720_v36  ;;  %v11724_v35 = vunpack.c.h.bf16 %v13142_v52  ;;  %v11727_v5 = vunpack.c.l.bf16 %v13143_v63 }
 0x2a4   : > { %v14353_v60 = vpop.eup %14352  ;;  %v2741_v7 = vrot.slane %v14351_v6, 1  ;;  %14372 = vpow2.f32 %v9892_v3  ;;  %v11728_v17 = vunpack.c.h.bf16 %v13143_v63  ;;  %v9899_v48 = vmul.f32 -1.442695, %v617_v14 }
 0x2a5   : > { %v14355_v10 = vpop.eup %14354  ;;  %v2743_v37 = vrot.slane %v14353_v60, 1  ;;  %14374 = vpow2.f32 %v9893_v53  ;;  %v622_v12 = vunpack.c.h.bf16 %v17620_v51  ;;  %v9900_v53 = vmul.f32 -1.442695, %v11723_v11 }
 0x2a6   : > { %v14357_v8 = vpop.eup %14356  ;;  %v2742_v4 = vsel %vm2346_vm0, %v2739_v46, %v2741_v7  ;;  %v2744_v49 = vrot.slane %v14355_v10, 1  ;;  %14376 = vpow2.f32 %v9894_v55  ;;  %v9898_v46 = vmul.f32 -1.442695, %v616_v20  ;;  %v377_v55 = vld [vmem:[%s15665_s29 + $0x3bc] sm:$0x1] }
 0x2a7   : > { %v17627_v23 = vpop.eup %14358  ;;  %v17630_v38 = vmax.f32 %v17572_v24, %v2742_v4  ;;  %v1587_v1 = vadd.f32 1.0, %v14357_v8  ;;  %14378 = vpow2.f32 %v9895_v29  ;;  %v11731_v36 = vunpack.c.l.bf16 %v17654_v32 }
 0x2a8   : > { %v14361_v22 = vpop.eup %14360  ;;  %v2745_v33 = vsel %vm2346_vm0, %v2743_v37, %v2744_v49  ;;  %v2746_v2 = vrot.slane %v17627_v23, 1  ;;  %14380 = vpow2.f32 %v9896_v9  ;;  %v17665_v7 = vmul.f32 -1.442695, %v11727_v5 }
 0x2a9   : > { %v14363_v58 = vpop.eup %14362  ;;  %v17635_v44 = vmax.f32 %v14353_v60, %v2745_v33  ;;  %v3388_v18 = vmax.f32 %v17570_v0, %v17630_v38  ;;  %14382 = vrcp.f32 %v1587_v1  ;;  %v1588_v24 = vadd.f32 1.0, %v14361_v22 }
 0x2aa   : > { %v14365_v41 = vpop.eup %14364  ;;  %v1589_v30 = vadd.f32 1.0, %v14363_v58  ;;  %14384 = vpow2.f32 %v9897_v39  ;;  %v17649_v0 = vsel %vm2346_vm0, %v2744_v49, %v2746_v2  ;;  %v17663_v60 = vmul.f32 -1.442695, %v11724_v35 }
 0x2ab   : > { %v14367_v62 = vpop.eup %14366  ;;  %v3389_v61 = vmax.f32 %v17583_v42, %v17635_v44  ;;  %vm17642_vm10 = vcmp.eq.f32.partialorder %v3388_v18, %v2742_v4  ;;  %14386 = vrcp.f32 %v1588_v24  ;;  %v1590_v43 = vadd.f32 1.0, %v14365_v41 }
 0x2ac   : > { %v14369_v54 = vpop.eup %14368  ;;  %v3788_v25 = vsel %vm17642_vm10, %v2742_v4, 0.0  ;;  %14388 = vrcp.f32 %v1589_v30  ;;  %v1591_v56 = vadd.f32 1.0, %v14367_v62  ;;  %v17657_v59 = vmax.f32 %v14355_v10, %v17649_v0  ;;  %v17672_v10 = vld [vmem:[%s15665_s29 + $0x3c8] sm:$0xff]  }
 0x2ad   : > { %v14371_v28 = vpop.eup %14370  ;;  %vm3589_vm11 = vcmp.eq.f32.partialorder %v3389_v61, %v2745_v33  ;;  %v1592_v42 = vadd.f32 1.0, %v14369_v54  ;;  %14390 = vpow2.f32 %v9898_v46  ;;  %v17669_v20 = vmul.f32 -1.442695, %v11728_v17 }
 0x2ae   : > { %v14373_v50 = vpop.eup %14372  ;;  %v3789_v34 = vsel %vm3589_vm11, %v2745_v33, 0.0  ;;  %14392 = vrcp.f32 %v1590_v43  ;;  %v1593_v40 = vadd.f32 1.0, %v14371_v28  ;;  %v3390_v51 = vmax.f32 %v17585_v19, %v17657_v59 }
 0x2af   : > { %v14375_v21 = vpop.eup %14374  ;;  %v12175_v16 = vpack.c.bf16 %v3789_v34, %v3788_v25  ;;  %14394 = vrcp.f32 %v1591_v56  ;;  %v1594_v31 = vadd.f32 1.0, %v14373_v50  ;;  %v17674_v4 = vmul.f32 -1.442695, %v622_v12 }
 0x2b0   : > { %v14377_v57 = vpop.eup %14376  ;;  %14396 = vrcp.f32 %v1592_v42  ;;  %v1595_v27 = vadd.f32 1.0, %v14375_v21  ;;  %v623_v49 = vunpack.c.l.bf16 %v377_v55  ;;  %v11732_v14 = vunpack.c.h.bf16 %v17654_v32 }
 0x2b1   : > { %v14379_v3 = vpop.eup %14378  ;;  %13232 = vst [vmem:[%s15729_s24 + $0x2b8] sm:$0xff] %v12175_v16   ;;  %14398 = vrcp.f32 %v1593_v40  ;;  %v1596_v15 = vadd.f32 1.0, %v14377_v57  ;;  %v17677_v52 = vmul.f32 -1.442695, %v11731_v36  ;;  %v11735_v46 = vunpack.c.l.bf16 %v17672_v10 }
 0x2b2   : > { %v14381_v6 = vpop.eup %14380  ;;  %14400 = vrcp.f32 %v1594_v31  ;;  %v1597_v29 = vadd.f32 1.0, %v14379_v3  ;;  %vm17687_vm12 = vcmp.eq.f32.partialorder %v3390_v51, %v17649_v0  ;;  %v17692_v35 = vmul.f32 -1.442695, %v623_v49 }
 0x2b3   : > { %v14383_v9 = vpop.eup %14382  ;;  %14402 = vrcp.f32 %v1595_v27  ;;  %v1598_v26 = vadd.f32 1.0, %v14381_v6  ;;  %v3790_v25 = vsel %vm17687_vm12, %v17649_v0, 0.0  ;;  %v9908_v32 = vmul.f32 -1.442695, %v11735_v46 }
 0x2b4   : > { %v14385_v37 = vpop.eup %14384  ;;  %v2748_v8 = vrot.slane %v14383_v9, 1  ;;  %14404 = vrcp.f32 %v1596_v15 }
 0x2b5   : > { %v14387_v39 = vpop.eup %14386  ;;  %14406 = vrcp.f32 %v1597_v29  ;;  %v1599_v1 = vadd.f32 1.0, %v14385_v37 }
 0x2b6   : > { %v14389_v19 = vpop.eup %14388  ;;  %v2749_v22 = vsel %vm2346_vm0, %v2746_v2, %v2748_v8  ;;  %v2750_v33 = vrot.slane %v14387_v39, 1  ;;  %14408 = vrcp.f32 %v1598_v26 }
 0x2b7   : > { %v14391_v58 = vpop.eup %14390  ;;  %v17684_v18 = vmax.f32 %v17627_v23, %v2749_v22  ;;  %v2752_v41 = vrot.slane %v14389_v19, 1  ;;  %14410 = vrcp.f32 %v1599_v1 }
 0x2b8   : > { %v14393_v30 = vpop.eup %14392  ;;  %v2751_v11 = vsel %vm2346_vm0, %v2748_v8, %v2750_v33  ;;  %14412 = vpow2.f32 %v9899_v48  ;;  %v1600_v2 = vadd.f32 1.0, %v14391_v58 }
 0x2b9   : > { %v14395_v63 = vpop.eup %14394  ;;  %v3391_v62 = vmax.f32 %v17594_v47, %v17684_v18  ;;  %v2753_v23 = vsel %vm2346_vm0, %v2750_v33, %v2752_v41  ;;  %v17697_v61 = vmax.f32 %v14383_v9, %v2751_v11  ;;  %v2754_v45 = vrot.slane %v14393_v30, 1 }
 0x2ba   : > { %v14397_v54 = vpop.eup %14396  ;;  %v17702_v43 = vmax.f32 %v14387_v39, %v2753_v23  ;;  %v2755_v56 = vrot.slane %v14395_v63, 1  ;;  %14414 = vrcp.f32 %v1600_v2 }
 0x2bb   : > { %v14399_v28 = vpop.eup %14398  ;;  %vm3591_vm13 = vcmp.eq.f32.partialorder %v3391_v62, %v2749_v22  ;;  %v3392_v42 = vmax.f32 %v17596_v13, %v17697_v61  ;;  %v2757_v47 = vrot.slane %v14397_v54, 1  ;;  %14416 = vpow2.f32 %v9900_v53 }
 0x2bc   : > { %v14401_v5 = vpop.eup %14400  ;;  %v3791_v50 = vsel %vm3591_vm13, %v2749_v22, 0.0  ;;  %v3393_v34 = vmax.f32 %v17630_v38, %v17702_v43  ;;  %v2756_v40 = vsel %vm2346_vm0, %v2754_v45, %v2755_v56  ;;  %v2759_v0 = vrot.slane %v14399_v28, 1 }
 0x2bd   : > { %v14403_v17 = vpop.eup %14402  ;;  %v12180_v21 = vpack.c.bf16 %v3791_v50, %v3790_v25  ;;  %vm3592_vm14 = vcmp.eq.f32.partialorder %v3392_v42, %v2751_v11  ;;  %v2758_v16 = vsel %vm2346_vm0, %v2755_v56, %v2757_v47  ;;  %v3172_v31 = vmax.f32 %v14393_v30, %v2756_v40  ;;  %v17759_v50 = vld [vmem:[%s15665_s29 + $0x3d0] ss:$24 sps:$4 sm:$0xff]  }
 0x2be   : > { %v14405_v57 = vpop.eup %14404  ;;  %vm3593_vm15 = vcmp.eq.f32.partialorder %v3393_v34, %v2753_v23  ;;  %v3792_v13 = vsel %vm3592_vm14, %v2751_v11, 0.0  ;;  %v17710_v27 = vmax.f32 %v14395_v63, %v2758_v16  ;;  %v2760_v48 = vsel %vm2346_vm0, %v2757_v47, %v2759_v0 }
 0x2bf   : > { %v14407_v12 = vpop.eup %14406  ;;  %13233 = vst [vmem:[%s15729_s24 + $0x2c0] sm:$0xff] %v12180_v21   ;;  %v3793_v38 = vsel %vm3593_vm15, %v2753_v23, 0.0  ;;  %v3394_v3 = vmax.f32 %v17635_v44, %v3172_v31  ;;  %v2761_v15 = vrot.slane %v14401_v5, 1  ;;  %v17715_v53 = vmax.f32 %v14397_v54, %v2760_v48 }
 0x2c0   : > { %v14409_v55 = vpop.eup %14408  ;;  %v12185_v36 = vpack.c.bf16 %v3793_v38, %v3792_v13  ;;  %v3395_v6 = vmax.f32 %v17657_v59, %v17710_v27  ;;  %v2763_v29 = vrot.slane %v14403_v17, 1  ;;  %v2765_v9 = vrot.slane %v14405_v57, 1  ;;  %v383_v17 = vld [vmem:[%s15665_s29 + $0x3d4] sm:$0x1] }
 0x2c1   : > { %v17719_v51 = vpop.eup %14410  ;;  %vm3594_vm1 = vcmp.eq.f32.partialorder %v3394_v3, %v2756_v40  ;;  %v2762_v26 = vsel %vm2346_vm0, %v2759_v0, %v2761_v15  ;;  %v3396_v37 = vmax.f32 %v17684_v18, %v17715_v53  ;;  %v2766_v8 = vrot.slane %v14407_v12, 1 }
 0x2c2   : > { %v14413_v44 = vpop.eup %14412  ;;  %13234 = vst [vmem:[%s15729_s24 + $0x2c8] sm:$0xff] %v12185_v36   ;;  %vm3595_vm2 = vcmp.eq.f32.partialorder %v3395_v6, %v2758_v16  ;;  %v3794_v49 = vsel %vm3594_vm1, %v2756_v40, 0.0  ;;  %v17725_v39 = vmax.f32 %v14399_v28, %v2762_v26  ;;  %v2764_v59 = vsel %vm2346_vm0, %v2761_v15, %v2763_v29 }
 0x2c3   : > { %v3795_v1 = vsel %vm3595_vm2, %v2758_v16, 0.0  ;;  %vm17728_vm3 = vcmp.eq.f32.partialorder %v3396_v37, %v2760_v48  ;;  %v2767_v22 = vsel %vm2346_vm0, %v2765_v9, %v2766_v8  ;;  %v17733_v33 = vmax.f32 %v14401_v5, %v2764_v59 }
 0x2c4   : > { %v17735_v58 = vpop.eup %14414  ;;  %v12190_v18 = vpack.c.bf16 %v3795_v1, %v3794_v49  ;;  %v3397_v24 = vmax.f32 %v17697_v61, %v17725_v39  ;;  %v3796_v41 = vsel %vm17728_vm3, %v2760_v48, 0.0  ;;  %v17741_v30 = vmax.f32 %v14405_v57, %v2767_v22 }
 0x2c5   : > { %v14417_v11 = vpop.eup %14416  ;;  %v3398_v2 = vmax.f32 %v17702_v43, %v17733_v33  ;;  %v2768_v63 = vrot.slane %v14409_v55, 1  ;;  %v2770_v62 = vrot.slane %v17719_v51, 1  ;;  %v1601_v23 = vadd.f32 1.0, %v14413_v44  ;;  %v13247_v44 = vld [vmem:[%s15665_s29 + $0x3f0] sm:$0xff]  }
 0x2c6   : > { %13235 = vst [vmem:[%s15729_s24 + $0x2d0] sm:$0xff] %v12190_v18   ;;  %vm3597_vm4 = vcmp.eq.f32.partialorder %v3397_v24, %v2762_v26  ;;  %v3399_v45 = vmax.f32 %v3172_v31, %v17741_v30  ;;  %v2772_v61 = vrot.slane %v17735_v58, 1  ;;  %14418 = vpow2.f32 %v17663_v60 }
 0x2c7   : > { %v3797_v54 = vsel %vm3597_vm4, %v2762_v26, 0.0  ;;  %vm3598_vm5 = vcmp.eq.f32.partialorder %v3398_v2, %v2764_v59  ;;  %v2769_v25 = vsel %vm2346_vm0, %v2766_v8, %v2768_v63  ;;  %v2771_v43 = vsel %vm2346_vm0, %v2768_v63, %v2770_v62 }
 0x2c8   : > { %v12195_v56 = vpack.c.bf16 %v3797_v54, %v3796_v41  ;;  %vm3599_vm6 = vcmp.eq.f32.partialorder %v3399_v45, %v2767_v22  ;;  %v3798_v28 = vsel %vm3598_vm5, %v2764_v59, 0.0  ;;  %v17752_v42 = vmax.f32 %v14407_v12, %v2769_v25 }
 0x2c9   : > { %v3799_v47 = vsel %vm3599_vm6, %v2767_v22, 0.0  ;;  %v17754_v5 = vmax.f32 %v14409_v55, %v2771_v43  ;;  %14420 = vrcp.f32 %v1601_v23  ;;  %v9907_v60 = vmul.f32 -1.442695, %v11732_v14  ;;  %v13245_v14 = vld [vmem:[%s15665_s29 + $0x3d8] sm:$0xff]  }
 0x2ca   : > { %13236 = vst [vmem:[%s15729_s24 + $0x2d8] sm:$0xff] %v12195_v56   ;;  %v12200_v34 = vpack.c.bf16 %v3799_v47, %v3798_v28  ;;  %v3400_v40 = vmax.f32 %v17710_v27, %v17752_v42  ;;  %14422 = vpow2.f32 %v17665_v7  ;;  %v11736_v0 = vunpack.c.h.bf16 %v17672_v10  ;;  %v17812_v23 = vld [vmem:[%s15665_s29 + $0x3f8] sm:$0xff]  }
 0x2cb   : > { %v3401_v21 = vmax.f32 %v17715_v53, %v17754_v5  ;;  %v1602_v16 = vadd.f32 1.0, %v14417_v11  ;;  %14424 = vpow2.f32 %v17669_v20  ;;  %v17777_v31 = vsel %vm2346_vm0, %v2770_v62, %v2772_v61 }
 0x2cc   : > { %13237 = vst [vmem:[%s15729_s24 + $0x2e0] sm:$0xff] %v12200_v34   ;;  %vm3600_vm7 = vcmp.eq.f32.partialorder %v3400_v40, %v2769_v25  ;;  %14426 = vpow2.f32 %v17674_v4  ;;  %v628_v7 = vunpack.c.l.bf16 %v17759_v50  ;;  %v629_v20 = vunpack.c.l.bf16 %v383_v17 }
 0x2cd   : > { %vm3601_vm8 = vcmp.eq.f32.partialorder %v3401_v21, %v2771_v43  ;;  %v3800_v57 = vsel %vm3600_vm7, %v2769_v25, 0.0  ;;  %14428 = vrcp.f32 %v1602_v16  ;;  %v9909_v10 = vmul.f32 -1.442695, %v11736_v0 }
 0x2ce   : > { %v3801_v13 = vsel %vm3601_vm8, %v2771_v43, 0.0  ;;  %14430 = vpow2.f32 %v17692_v35  ;;  %v12239_v46 = vunpack.c.l.bf16 %v13245_v14  ;;  %v17784_v48 = vmax.f32 %v17719_v51, %v17777_v31  ;;  %v17789_v35 = vld [vmem:[%s15665_s29 + $0x3e0] sm:$0xff]  }
 0x2cf   : > { %v12205_v27 = vpack.c.bf16 %v3801_v13, %v3800_v57  ;;  %14432 = vpow2.f32 %v17677_v52  ;;  %v9910_v12 = vmul.f32 -1.442695, %v628_v7  ;;  %v9911_v3 = vmul.f32 -1.442695, %v629_v20 }
 0x2d0   : > { %v14419_v4 = vpop.eup %14418  ;;  %14434 = vpow2.f32 %v9907_v60  ;;  %v12240_v15 = vunpack.c.h.bf16 %v13245_v14  ;;  %v10358_v53 = vmul.f32 -1.442695, %v12239_v46  ;;  %v3402_v36 = vmax.f32 %v17725_v39, %v17784_v48  ;;  %v17818_v14 = vld [vmem:[%s15665_s29 + $0x400] ss:$24 sps:$4 sm:$0xff]  }
 0x2d1   : > { %13238 = vst [vmem:[%s15729_s24 + $0x2e8] sm:$0xff] %v12205_v27   ;;  %v1603_v38 = vadd.f32 1.0, %v14419_v4  ;;  %14436 = vpow2.f32 %v9908_v32  ;;  %v12243_v51 = vunpack.c.l.bf16 %v17789_v35  ;;  %v12247_v11 = vunpack.c.l.bf16 %v13247_v44 }
 0x2d2   : > { %14438 = vpow2.f32 %v9909_v10  ;;  %v10359_v49 = vmul.f32 -1.442695, %v12240_v15  ;;  %vm17802_vm9 = vcmp.eq.f32.partialorder %v3402_v36, %v17777_v31  ;;  %v12248_v62 = vunpack.c.h.bf16 %v13247_v44 }
 0x2d3   : > { %v14421_v55 = vpop.eup %14420  ;;  %14440 = vrcp.f32 %v1603_v38  ;;  %v10360_v54 = vmul.f32 -1.442695, %v12243_v51  ;;  %v12251_v34 = vunpack.c.l.bf16 %v17812_v23  ;;  %v10364_v16 = vmul.f32 -1.442695, %v12247_v11 }
 0x2d4   : > { %v14423_v6 = vpop.eup %14422  ;;  %v2774_v52 = vrot.slane %v14421_v55, 1  ;;  %14442 = vpow2.f32 %v9910_v12  ;;  %v12244_v32 = vunpack.c.h.bf16 %v17789_v35  ;;  %v10365_v20 = vmul.f32 -1.442695, %v12248_v62 }
 0x2d5   : > { %v14425_v29 = vpop.eup %14424  ;;  %v1604_v9 = vadd.f32 1.0, %v14423_v6  ;;  %14444 = vpow2.f32 %v9911_v3  ;;  %v10366_v46 = vmul.f32 -1.442695, %v12251_v34  ;;  %v12252_v27 = vunpack.c.h.bf16 %v17812_v23 }
 0x2d6   : > { %v14427_v26 = vpop.eup %14426  ;;  %v2775_v37 = vsel %vm2346_vm0, %v2772_v61, %v2774_v52  ;;  %v1605_v8 = vadd.f32 1.0, %v14425_v29  ;;  %14446 = vpow2.f32 %v10358_v53  ;;  %v5105_v38 = vunpack.c.h.bf16 %v17759_v50 }
 0x2d7   : > { %v14429_v59 = vpop.eup %14428  ;;  %v17799_v39 = vmax.f32 %v17735_v58, %v2775_v37  ;;  %14448 = vrcp.f32 %v1604_v9  ;;  %v1606_v19 = vadd.f32 1.0, %v14427_v26  ;;  %v3802_v58 = vsel %vm17802_vm9, %v17777_v31, 0.0 }
 0x2d8   : > { %v14431_v22 = vpop.eup %14430  ;;  %14450 = vrcp.f32 %v1605_v8  ;;  %v2776_v43 = vrot.slane %v14429_v59, 1  ;;  %v5111_v3 = vunpack.c.l.bf16 %v17818_v14  ;;  %v17825_v55 = vmul.f32 -1.442695, %v12244_v32 }
 0x2d9   : > { %v14433_v18 = vpop.eup %14432  ;;  %v3403_v24 = vmax.f32 %v17733_v33, %v17799_v39  ;;  %14452 = vrcp.f32 %v1606_v19  ;;  %v1607_v41 = vadd.f32 1.0, %v14431_v22 }
 0x2da   : > { %v14435_v2 = vpop.eup %14434  ;;  %v1608_v63 = vadd.f32 1.0, %v14433_v18  ;;  %14454 = vpow2.f32 %v10359_v49  ;;  %v10368_v50 = vmul.f32 -1.442695, %v5111_v3 }
 0x2db   : > { %v14437_v45 = vpop.eup %14436  ;;  %vm3603_vm10 = vcmp.eq.f32.partialorder %v3403_v24, %v2775_v37  ;;  %v1609_v61 = vadd.f32 1.0, %v14435_v2  ;;  %14456 = vrcp.f32 %v1607_v41 }
 0x2dc   : > { %v14439_v33 = vpop.eup %14438  ;;  %v3803_v25 = vsel %vm3603_vm10, %v2775_v37, 0.0  ;;  %14458 = vrcp.f32 %v1608_v63  ;;  %v1610_v56 = vadd.f32 1.0, %v14437_v45 }
 0x2dd   : > { %v14441_v28 = vpop.eup %14440  ;;  %v12210_v47 = vpack.c.bf16 %v3803_v25, %v3802_v58  ;;  %14460 = vrcp.f32 %v1609_v61  ;;  %v1611_v60 = vadd.f32 1.0, %v14439_v33 }
 0x2de   : > { %v14443_v40 = vpop.eup %14442  ;;  %v2777_v0 = vrot.slane %v14441_v28, 1  ;;  %14462 = vrcp.f32 %v1610_v56 }
 0x2df   : > { %v14445_v17 = vpop.eup %14444  ;;  %13239 = vst [vmem:[%s15729_s24 + $0x2f0] sm:$0xff] %v12210_v47   ;;  %14464 = vrcp.f32 %v1611_v60  ;;  %v1612_v21 = vadd.f32 1.0, %v14443_v40 }
 0x2e0   : > { %v14447_v31 = vpop.eup %14446  ;;  %v2778_v7 = vsel %vm2346_vm0, %v2776_v43, %v2777_v0  ;;  %v1613_v57 = vadd.f32 1.0, %v14445_v17  ;;  %14466 = vpow2.f32 %v10360_v54 }
 0x2e1   : > { %v14449_v13 = vpop.eup %14448  ;;  %v3182_v10 = vmax.f32 %v14429_v59, %v2778_v7  ;;  %14468 = vrcp.f32 %v1612_v21  ;;  %v6085_v29 = vadd.f32 1.0, %v14447_v31 }
 0x2e2   : > { %v14451_v4 = vpop.eup %14450  ;;  %v2779_v12 = vrot.slane %v14449_v13, 1  ;;  %14470 = vrcp.f32 %v1613_v57 }
 0x2e3   : > { %v14453_v15 = vpop.eup %14452  ;;  %v3404_v35 = vmax.f32 %v17741_v30, %v3182_v10  ;;  %v2781_v53 = vrot.slane %v14451_v4, 1  ;;  %14472 = vpow2.f32 %v10364_v16 }
 0x2e4   : > { %v14455_v36 = vpop.eup %14454  ;;  %v2780_v6 = vsel %vm2346_vm0, %v2777_v0, %v2779_v12  ;;  %v2783_v52 = vrot.slane %v14453_v15, 1  ;;  %14474 = vpow2.f32 %v10365_v20 }
 0x2e5   : > { %v14457_v9 = vpop.eup %14456  ;;  %v3183_v51 = vmax.f32 %v14441_v28, %v2780_v6  ;;  %vm17828_vm11 = vcmp.eq.f32.partialorder %v3404_v35, %v2778_v7  ;;  %v2782_v37 = vsel %vm2346_vm0, %v2779_v12, %v2781_v53  ;;  %14476 = vpow2.f32 %v10366_v46 }
 0x2e6   : > { %v14459_v30 = vpop.eup %14458  ;;  %v3804_v8 = vsel %vm17828_vm11, %v2778_v7, 0.0  ;;  %v2784_v44 = vsel %vm2346_vm0, %v2781_v53, %v2783_v52  ;;  %v3184_v49 = vmax.f32 %v14449_v13, %v2782_v37  ;;  %v2785_v59 = vrot.slane %v14457_v9, 1 }
 0x2e7   : > { %v14461_v1 = vpop.eup %14460  ;;  %v3405_v19 = vmax.f32 %v17752_v42, %v3183_v51  ;;  %v3185_v22 = vmax.f32 %v14451_v4, %v2784_v44  ;;  %v3193_v18 = vrot.slane %v14459_v30, 1  ;;  %v6086_v24 = vadd.f32 1.0, %v14455_v36 }
 0x2e8   : > { %v14463_v41 = vpop.eup %14462  ;;  %v3406_v11 = vmax.f32 %v17754_v5, %v3184_v49  ;;  %v2786_v2 = vsel %vm2346_vm0, %v2783_v52, %v2785_v59  ;;  %v3194_v58 = vrot.slane %v14461_v1, 1  ;;  %14478 = vrcp.f32 %v6085_v29 }
 0x2e9   : > { %v14465_v63 = vpop.eup %14464  ;;  %vm3605_vm12 = vcmp.eq.f32.partialorder %v3405_v19, %v2780_v6  ;;  %v3407_v62 = vmax.f32 %v17784_v48, %v3185_v22  ;;  %v3186_v45 = vmax.f32 %v14453_v15, %v2786_v2  ;;  %v3196_v61 = vrot.slane %v14463_v41, 1 }
 0x2ea   : > { %v14467_v54 = vpop.eup %14466  ;;  %v3805_v33 = vsel %vm3605_vm12, %v2780_v6, 0.0  ;;  %vm3606_vm13 = vcmp.eq.f32.partialorder %v3406_v11, %v2782_v37  ;;  %v3195_v42 = vsel %vm2346_vm0, %v3193_v18, %v3194_v58  ;;  %v3198_v25 = vrot.slane %v14465_v63, 1  ;;  %v10117_v6 = vld [vmem:[%s15665_s29 + $0x3ec] sm:$0x1]  ;;  %v13250_v11 = vld [vmem:[%s15665_s29 + $0x410] sm:$0xff]  }
 0x2eb   : > { %v14469_v43 = vpop.eup %14468  ;;  %v12215_v56 = vpack.c.bf16 %v3805_v33, %v3804_v8  ;;  %vm3607_vm14 = vcmp.eq.f32.partialorder %v3407_v62, %v2784_v44  ;;  %v3806_v5 = vsel %vm3606_vm13, %v2782_v37, 0.0  ;;  %v3209_v28 = vmax.f32 %v14459_v30, %v3195_v42  ;;  %v10123_v37 = vld [vmem:[%s15665_s29 + $0x404] sm:$0x1] }
 0x2ec   : > { %v14471_v47 = vpop.eup %14470  ;;  %v3807_v60 = vsel %vm3607_vm14, %v2784_v44, 0.0  ;;  %v3408_v34 = vmax.f32 %v17799_v39, %v3186_v45  ;;  %v3197_v48 = vsel %vm2346_vm0, %v3194_v58, %v3196_v61  ;;  %v3199_v40 = vsel %vm2346_vm0, %v3196_v61, %v3198_v25  ;;  %v17865_v61 = vld [vmem:[%s15665_s29 + $0x420] sm:$0xff]  }
 0x2ed   : > { %v14473_v0 = vpop.eup %14472  ;;  %13240 = vst [vmem:[%s15729_s24 + $0x2f8] sm:$0xff] %v12215_v56   ;;  %v12220_v17 = vpack.c.bf16 %v3807_v60, %v3806_v5  ;;  %v3409_v21 = vmax.f32 %v3182_v10, %v3209_v28  ;;  %v3210_v16 = vmax.f32 %v14461_v1, %v3197_v48  ;;  %v3211_v32 = vmax.f32 %v14463_v41, %v3199_v40 }
 0x2ee   : > { %v14475_v31 = vpop.eup %14474  ;;  %vm3608_vm15 = vcmp.eq.f32.partialorder %v3408_v34, %v2786_v2  ;;  %v3200_v7 = vrot.slane %v14469_v43, 1  ;;  %v3202_v57 = vrot.slane %v14471_v47, 1  ;;  %v6087_v20 = vadd.f32 1.0, %v14467_v54 }
 0x2ef   : > { %v14477_v13 = vpop.eup %14476  ;;  %13241 = vst [vmem:[%s15729_s24 + $0x300] sm:$0xff] %v12220_v17   ;;  %vm3609_vm1 = vcmp.eq.f32.partialorder %v3409_v21, %v3195_v42  ;;  %v3808_v39 = vsel %vm3608_vm15, %v2786_v2, 0.0  ;;  %v3410_v46 = vmax.f32 %v3183_v51, %v3210_v16  ;;  %v3411_v4 = vmax.f32 %v3184_v49, %v3211_v32  ;;  %v13249_v49 = vld [vmem:[%s15665_s29 + $0x408] sm:$0xff]  }
 0x2f0   : > { %v3809_v12 = vsel %vm3609_vm1, %v3195_v42, 0.0  ;;  %v3201_v15 = vsel %vm2346_vm0, %v3198_v25, %v3200_v7  ;;  %v3203_v10 = vsel %vm2346_vm0, %v3200_v7, %v3202_v57  ;;  %v6091_v35 = vadd.f32 1.0, %v14473_v0 }
 0x2f1   : > { %v12225_v53 = vpack.c.bf16 %v3809_v12, %v3808_v39  ;;  %vm3610_vm2 = vcmp.eq.f32.partialorder %v3410_v46, %v3197_v48  ;;  %vm3611_vm3 = vcmp.eq.f32.partialorder %v3411_v4, %v3199_v40  ;;  %v3212_v36 = vmax.f32 %v14465_v63, %v3201_v15 }
 0x2f2   : > { %v17849_v52 = vpop.eup %14478  ;;  %v3810_v29 = vsel %vm3610_vm2, %v3197_v48, 0.0  ;;  %v3811_v9 = vsel %vm3611_vm3, %v3199_v40, 0.0  ;;  %v3213_v51 = vmax.f32 %v14469_v43, %v3203_v10  ;;  %v6092_v26 = vadd.f32 1.0, %v14475_v31 }
 0x2f3   : > { %13242 = vst [vmem:[%s15729_s24 + $0x308] sm:$0xff] %v12225_v53   ;;  %v12230_v30 = vpack.c.bf16 %v3811_v9, %v3810_v29  ;;  %v3412_v8 = vmax.f32 %v3185_v22, %v3212_v36  ;;  %v6093_v44 = vadd.f32 1.0, %v14477_v13  ;;  %14480 = vrcp.f32 %v6086_v24 }
 0x2f4   : > { %v3413_v59 = vmax.f32 %v3186_v45, %v3213_v51  ;;  %14482 = vrcp.f32 %v6087_v20  ;;  %v10362_v1 = vmul.f32 -1.442695, %v5105_v38  ;;  %v5106_v19 = vunpack.c.l.bf16 %v10117_v6 }
 0x2f5   : > { %13243 = vst [vmem:[%s15729_s24 + $0x310] sm:$0xff] %v12230_v30   ;;  %vm3612_vm4 = vcmp.eq.f32.partialorder %v3412_v8, %v3201_v15  ;;  %14484 = vrcp.f32 %v6091_v35  ;;  %v10367_v18 = vmul.f32 -1.442695, %v12252_v27  ;;  %v5112_v41 = vunpack.c.l.bf16 %v10123_v37  ;;  %v10129_v27 = vld [vmem:[%s15665_s29 + $0x41c] sm:$0x1]  ;;  %v13252_v8 = vld [vmem:[%s15665_s29 + $0x428] sm:$0xff]  }
 0x2f6   : > { %vm3613_vm5 = vcmp.eq.f32.partialorder %v3413_v59, %v3203_v10  ;;  %v3812_v22 = vsel %vm3612_vm4, %v3201_v15, 0.0  ;;  %14486 = vrcp.f32 %v6092_v26  ;;  %v12255_v24 = vunpack.c.l.bf16 %v13249_v49 }
 0x2f7   : > { %v3813_v2 = vsel %vm3613_vm5, %v3203_v10, 0.0  ;;  %14488 = vrcp.f32 %v6093_v44  ;;  %v12256_v38 = vunpack.c.h.bf16 %v13249_v49  ;;  %v10363_v23 = vmul.f32 -1.442695, %v5106_v19 }
 0x2f8   : > { %v12235_v58 = vpack.c.bf16 %v3813_v2, %v3812_v22  ;;  %14490 = vpow2.f32 %v17825_v55  ;;  %v12259_v63 = vunpack.c.l.bf16 %v13250_v11  ;;  %v10369_v62 = vmul.f32 -1.442695, %v5112_v41  ;;  %v10135_v2 = vld [vmem:[%s15665_s29 + $0x434] sm:$0x1] }
 0x2f9   : > { %14492 = vpow2.f32 %v10362_v1  ;;  %v12260_v45 = vunpack.c.h.bf16 %v13250_v11  ;;  %v10370_v54 = vmul.f32 -1.442695, %v12255_v24  ;;  %v5117_v33 = vunpack.c.h.bf16 %v17818_v14 }
 0x2fa   : > { %13244 = vst [vmem:[%s15729_s24 + $0x318] sm:$0xff] %v12235_v58   ;;  %14494 = vpow2.f32 %v10367_v18  ;;  %v10371_v42 = vmul.f32 -1.442695, %v12256_v38  ;;  %v5118_v3 = vunpack.c.l.bf16 %v10129_v27  ;;  %v7063_v25 = vrot.slane %v17849_v52, 1  ;;  %v17895_v18 = vld [vmem:[%s15665_s29 + $0x430] ss:$24 sps:$4 sm:$0xff]  }
 0x2fb   : > { %14496 = vpow2.f32 %v10368_v50  ;;  %v10372_v55 = vmul.f32 -1.442695, %v12259_v63  ;;  %v12263_v43 = vunpack.c.l.bf16 %v17865_v61  ;;  %v10373_v5 = vmul.f32 -1.442695, %v12260_v45  ;;  %v13253_v50 = vld [vmem:[%s15665_s29 + $0x438] sm:$0xff]  }
 0x2fc   : > { %14498 = vpow2.f32 %v10363_v23  ;;  %v10374_v60 = vmul.f32 -1.442695, %v5117_v33  ;;  %v10375_v48 = vmul.f32 -1.442695, %v5118_v3  ;;  %v12264_v30 = vunpack.c.h.bf16 %v17865_v61 }
 0x2fd   : > { %v14481_v56 = vpop.eup %14480  ;;  %14500 = vpow2.f32 %v10369_v62  ;;  %v10376_v21 = vmul.f32 -1.442695, %v12263_v43  ;;  %v12267_v24 = vunpack.c.l.bf16 %v13252_v8  ;;  %v12268_v45 = vunpack.c.h.bf16 %v13252_v8 }
 0x2fe   : > { %v17871_v28 = vpop.eup %14482  ;;  %v7064_v47 = vrot.slane %v14481_v56, 1  ;;  %14502 = vpow2.f32 %v10370_v54  ;;  %v10377_v63 = vmul.f32 -1.442695, %v12264_v30  ;;  %v5123_v61 = vunpack.c.l.bf16 %v17895_v18  ;;  %v17901_v54 = vld [vmem:[%s15665_s29 + $0x440] sm:$0xff]  }
 0x2ff   : > { %v14485_v34 = vpop.eup %14484  ;;  %v7066_v14 = vrot.slane %v17871_v28, 1  ;;  %14504 = vpow2.f32 %v10371_v42  ;;  %v12271_v3 = vunpack.c.l.bf16 %v13253_v50 }
 0x300   : > { %v14487_v40 = vpop.eup %14486  ;;  %v7065_v0 = vsel %vm2346_vm0, %v7063_v25, %v7064_v47  ;;  %v7074_v17 = vrot.slane %v14485_v34, 1  ;;  %14506 = vpow2.f32 %v10372_v55  ;;  %v5124_v25 = vunpack.c.l.bf16 %v10135_v2 }
 0x301   : > { %v17875_v16 = vpop.eup %14488  ;;  %v7067_v32 = vsel %vm2346_vm0, %v7064_v47, %v7066_v14  ;;  %v7075_v31 = vrot.slane %v14487_v40, 1  ;;  %14508 = vpow2.f32 %v10373_v5  ;;  %v7703_v20 = vmax.f32 %v17849_v52, %v7065_v0 }
 0x302   : > { %v14491_v7 = vpop.eup %14490  ;;  %v7077_v57 = vrot.slane %v17875_v16, 1  ;;  %14510 = vpow2.f32 %v10374_v60  ;;  %v7704_v46 = vmax.f32 %v14481_v56, %v7067_v32  ;;  %v10378_v56 = vmul.f32 -1.442695, %v12267_v24 }
 0x303   : > { %v14493_v13 = vpop.eup %14492  ;;  %v7076_v39 = vsel %vm2346_vm0, %v7074_v17, %v7075_v31  ;;  %v6088_v4 = vadd.f32 1.0, %v14491_v7  ;;  %14512 = vpow2.f32 %v10375_v48  ;;  %v12272_v5 = vunpack.c.h.bf16 %v13253_v50 }
 0x304   : > { %v14495_v12 = vpop.eup %14494  ;;  %v7078_v15 = vsel %vm2346_vm0, %v7075_v31, %v7077_v57  ;;  %v17886_v10 = vmax.f32 %v14485_v34, %v7076_v39  ;;  %v6089_v35 = vadd.f32 1.0, %v14493_v13  ;;  %14514 = vpow2.f32 %v10376_v21 }
 0x305   : > { %v14497_v53 = vpop.eup %14496  ;;  %v17888_v36 = vmax.f32 %v14487_v40, %v7078_v15  ;;  %v6094_v6 = vadd.f32 1.0, %v14495_v12  ;;  %14516 = vrcp.f32 %v6088_v4  ;;  %v12275_v34 = vunpack.c.l.bf16 %v17901_v54 }
 0x306   : > { %v14499_v52 = vpop.eup %14498  ;;  %v7930_v29 = vmax.f32 %v7703_v20, %v17886_v10  ;;  %v6095_v9 = vadd.f32 1.0, %v14497_v53  ;;  %14518 = vrcp.f32 %v6089_v35  ;;  %v10379_v0 = vmul.f32 -1.442695, %v12268_v45 }
 0x307   : > { %v14501_v51 = vpop.eup %14500  ;;  %v7931_v26 = vmax.f32 %v7704_v46, %v17888_v36  ;;  %14520 = vrcp.f32 %v6094_v6  ;;  %v6090_v37 = vadd.f32 1.0, %v14499_v52  ;;  %v10380_v17 = vmul.f32 -1.442695, %v5123_v61 }
 0x308   : > { %v14503_v44 = vpop.eup %14502  ;;  %vm8130_vm6 = vcmp.eq.f32.partialorder %v7930_v29, %v7076_v39  ;;  %14522 = vrcp.f32 %v6095_v9  ;;  %v6096_v49 = vadd.f32 1.0, %v14501_v51  ;;  %v10381_v31 = vmul.f32 -1.442695, %v5124_v25 }
 0x309   : > { %v14505_v59 = vpop.eup %14504  ;;  %vm8131_vm7 = vcmp.eq.f32.partialorder %v7931_v26, %v7078_v15  ;;  %v8330_v1 = vsel %vm8130_vm6, %v7076_v39, 0.0  ;;  %v6097_v19 = vadd.f32 1.0, %v14503_v44  ;;  %14524 = vrcp.f32 %v6090_v37 }
 0x30a   : > { %v14507_v41 = vpop.eup %14506  ;;  %v8331_v11 = vsel %vm8131_vm7, %v7078_v15, 0.0  ;;  %v6098_v22 = vadd.f32 1.0, %v14505_v59  ;;  %14526 = vrcp.f32 %v6096_v49  ;;  %v10382_v7 = vmul.f32 -1.442695, %v12271_v3 }
 0x30b   : > { %v14509_v38 = vpop.eup %14508  ;;  %v12568_v58 = vpack.c.bf16 %v8331_v11, %v8330_v1  ;;  %14528 = vrcp.f32 %v6097_v19  ;;  %v6099_v23 = vadd.f32 1.0, %v14507_v41  ;;  %v10383_v46 = vmul.f32 -1.442695, %v12272_v5 }
 0x30c   : > { %v14511_v27 = vpop.eup %14510  ;;  %14530 = vrcp.f32 %v6098_v22  ;;  %v6100_v62 = vadd.f32 1.0, %v14509_v38 }
 0x30d   : > { %v14513_v33 = vpop.eup %14512  ;;  %13327 = vst [vmem:[%s15729_s24 + $0x320] sm:$0xff] %v12568_v58   ;;  %14532 = vrcp.f32 %v6099_v23  ;;  %v6101_v42 = vadd.f32 1.0, %v14511_v27 }
 0x30e   : > { %v14515_v55 = vpop.eup %14514  ;;  %14534 = vrcp.f32 %v6100_v62  ;;  %v6102_v43 = vadd.f32 1.0, %v14513_v33 }
 0x30f   : > { %v14517_v47 = vpop.eup %14516  ;;  %14536 = vrcp.f32 %v6101_v42  ;;  %v6103_v60 = vadd.f32 1.0, %v14515_v55 }
 0x310   : > { %v14519_v48 = vpop.eup %14518  ;;  %v7068_v40 = vrot.slane %v14517_v47, 1  ;;  %14538 = vrcp.f32 %v6102_v43 }
 0x311   : > { %v14521_v21 = vpop.eup %14520  ;;  %v7070_v32 = vrot.slane %v14519_v48, 1  ;;  %14540 = vpow2.f32 %v10377_v63 }
 0x312   : > { %v14523_v20 = vpop.eup %14522  ;;  %v7069_v13 = vsel %vm2346_vm0, %v7066_v14, %v7068_v40  ;;  %v7079_v39 = vrot.slane %v14521_v21, 1  ;;  %14542 = vpow2.f32 %v10378_v56 }
 0x313   : > { %v14525_v4 = vpop.eup %14524  ;;  %v7071_v12 = vsel %vm2346_vm0, %v7068_v40, %v7070_v32  ;;  %v7081_v15 = vrot.slane %v14523_v20, 1  ;;  %v7705_v35 = vmax.f32 %v17871_v28, %v7069_v13  ;;  %14544 = vrcp.f32 %v6103_v60 }
 0x314   : > { %v14527_v53 = vpop.eup %14526  ;;  %v7080_v6 = vsel %vm2346_vm0, %v7077_v57, %v7079_v39  ;;  %v7706_v52 = vmax.f32 %v14517_v47, %v7071_v12  ;;  %v7072_v29 = vrot.slane %v14525_v4, 1  ;;  %14546 = vpow2.f32 %v10379_v0 }
 0x315   : > { %v14529_v9 = vpop.eup %14528  ;;  %v7082_v14 = vsel %vm2346_vm0, %v7079_v39, %v7081_v15  ;;  %v7710_v51 = vmax.f32 %v17875_v16, %v7080_v6  ;;  %v7083_v26 = vrot.slane %v14527_v53, 1  ;;  %14548 = vpow2.f32 %v10380_v17  ;;  %v10141_v53 = vld [vmem:[%s15665_s29 + $0x44c] sm:$0x1] }
 0x316   : > { %v14531_v37 = vpop.eup %14530  ;;  %v17915_v30 = vmax.f32 %v14521_v21, %v7082_v14  ;;  %v7073_v28 = vsel %vm2346_vm0, %v7070_v32, %v7072_v29  ;;  %v7085_v8 = vrot.slane %v14529_v9, 1  ;;  %14550 = vpow2.f32 %v10381_v31 }
 0x317   : > { %v14533_v44 = vpop.eup %14532  ;;  %v7932_v49 = vmax.f32 %v7705_v35, %v7710_v51  ;;  %v7084_v57 = vsel %vm2346_vm0, %v7081_v15, %v7083_v26  ;;  %v7086_v59 = vrot.slane %v14531_v37, 1  ;;  %v7707_v1 = vmax.f32 %v14519_v48, %v7073_v28 }
 0x318   : > { %v14535_v19 = vpop.eup %14534  ;;  %v7933_v41 = vmax.f32 %v7706_v52, %v17915_v30  ;;  %v7712_v11 = vmax.f32 %v14523_v20, %v7084_v57  ;;  %v7088_v16 = vrot.slane %v14533_v44, 1  ;;  %14552 = vpow2.f32 %v10382_v7 }
 0x319   : > { %v14537_v22 = vpop.eup %14536  ;;  %vm8132_vm8 = vcmp.eq.f32.partialorder %v7932_v49, %v7080_v6  ;;  %v7087_v24 = vsel %vm2346_vm0, %v7085_v8, %v7086_v59  ;;  %v7090_v2 = vrot.slane %v14535_v19, 1  ;;  %14554 = vpow2.f32 %v10383_v46  ;;  %v13256_v49 = vld [vmem:[%s15665_s29 + $0x458] sm:$0xff]  }
 0x31a   : > { %v14539_v50 = vpop.eup %14538  ;;  %vm8133_vm9 = vcmp.eq.f32.partialorder %v7933_v41, %v7082_v14  ;;  %v8332_v38 = vsel %vm8132_vm8, %v7080_v6, 0.0  ;;  %v17921_v58 = vmax.f32 %v14529_v9, %v7087_v24  ;;  %v7934_v23 = vmax.f32 %v7707_v1, %v7712_v11 }
 0x31b   : > { %v14541_v63 = vpop.eup %14540  ;;  %v8333_v27 = vsel %vm8133_vm9, %v7082_v14, 0.0  ;;  %v7089_v62 = vsel %vm2346_vm0, %v7086_v59, %v7088_v16  ;;  %v7091_v45 = vsel %vm2346_vm0, %v7088_v16, %v7090_v2  ;;  %v7092_v61 = vrot.slane %v14537_v22, 1 }
 0x31c   : > { %v14543_v33 = vpop.eup %14542  ;;  %v12573_v42 = vpack.c.bf16 %v8333_v27, %v8332_v38  ;;  %v7935_v3 = vmax.f32 %v17886_v10, %v17921_v58  ;;  %vm8134_vm10 = vcmp.eq.f32.partialorder %v7934_v23, %v7084_v57  ;;  %v17927_v25 = vmax.f32 %v14531_v37, %v7089_v62 }
 0x31d   : > { %v17929_v55 = vpop.eup %14544  ;;  %v8334_v43 = vsel %vm8134_vm10, %v7084_v57, 0.0  ;;  %v17931_v56 = vmax.f32 %v14533_v44, %v7091_v45  ;;  %v7093_v5 = vsel %vm2346_vm0, %v7090_v2, %v7092_v61  ;;  %v7094_v47 = vrot.slane %v14539_v50, 1  ;;  %v17967_v50 = vld [vmem:[%s15665_s29 + $0x468] sm:$0xff]  }
 0x31e   : > { %v14547_v60 = vpop.eup %14546  ;;  %13328 = vst [vmem:[%s15729_s24 + $0x328] sm:$0xff] %v12573_v42   ;;  %vm8135_vm11 = vcmp.eq.f32.partialorder %v7935_v3, %v7087_v24  ;;  %v7936_v48 = vmax.f32 %v17888_v36, %v17927_v25  ;;  %v17937_v40 = vmax.f32 %v14535_v19, %v7093_v5  ;;  %v6104_v10 = vadd.f32 1.0, %v14541_v63 }
 0x31f   : > { %v14549_v0 = vpop.eup %14548  ;;  %v8335_v17 = vsel %vm8135_vm11, %v7087_v24, 0.0  ;;  %v7937_v21 = vmax.f32 %v7710_v51, %v17931_v56  ;;  %v7095_v32 = vsel %vm2346_vm0, %v7092_v61, %v7094_v47  ;;  %v6105_v31 = vadd.f32 1.0, %v14543_v33  ;;  %v13255_v51 = vld [vmem:[%s15665_s29 + $0x450] sm:$0xff]  }
 0x320   : > { %v14551_v7 = vpop.eup %14550  ;;  %v12578_v20 = vpack.c.bf16 %v8335_v17, %v8334_v43  ;;  %vm8136_vm12 = vcmp.eq.f32.partialorder %v7936_v48, %v7089_v62  ;;  %v17941_v13 = vmax.f32 %v14537_v22, %v7095_v32  ;;  %v7938_v36 = vmax.f32 %v17915_v30, %v17937_v40  ;;  %v10147_v22 = vld [vmem:[%s15665_s29 + $0x464] sm:$0x1] }
 0x321   : > { %vm8137_vm13 = vcmp.eq.f32.partialorder %v7937_v21, %v7091_v45  ;;  %v8336_v39 = vsel %vm8136_vm12, %v7089_v62, 0.0  ;;  %14556 = vrcp.f32 %v6104_v10  ;;  %v12276_v46 = vunpack.c.h.bf16 %v17901_v54 }
 0x322   : > { %v14553_v4 = vpop.eup %14552  ;;  %13329 = vst [vmem:[%s15729_s24 + $0x330] sm:$0xff] %v12578_v20   ;;  %v8337_v12 = vsel %vm8137_vm13, %v7091_v45, 0.0  ;;  %v7939_v15 = vmax.f32 %v7712_v11, %v17941_v13  ;;  %vm17948_vm14 = vcmp.eq.f32.partialorder %v7938_v36, %v7093_v5  ;;  %14558 = vrcp.f32 %v6105_v31  ;;  %v17962_v11 = vld [vmem:[%s15665_s29 + $0x460] ss:$24 sps:$4 sm:$0xff]  }
 0x323   : > { %v14555_v6 = vpop.eup %14554  ;;  %v12583_v52 = vpack.c.bf16 %v8337_v12, %v8336_v39  ;;  %v8338_v29 = vsel %vm17948_vm14, %v7093_v5, 0.0  ;;  %v6106_v9 = vadd.f32 1.0, %v14547_v60  ;;  %v6107_v14 = vadd.f32 1.0, %v14549_v0  ;;  %v17975_v60 = vld [vmem:[%s15665_s29 + $0x470] sm:$0xff]  }
 0x324   : > { %vm8139_vm15 = vcmp.eq.f32.partialorder %v7939_v15, %v7095_v32  ;;  %v6108_v26 = vadd.f32 1.0, %v14551_v7  ;;  %v6109_v37 = vadd.f32 1.0, %v14553_v4  ;;  %v5129_v30 = vunpack.c.h.bf16 %v17895_v18 }
 0x325   : > { %13330 = vst [vmem:[%s15729_s24 + $0x338] sm:$0xff] %v12583_v52   ;;  %v8339_v28 = vsel %vm8139_vm15, %v7095_v32, 0.0  ;;  %14560 = vrcp.f32 %v6106_v9  ;;  %v6110_v8 = vadd.f32 1.0, %v14555_v6  ;;  %v5130_v44 = vunpack.c.l.bf16 %v10141_v53 }
 0x326   : > { %v12588_v57 = vpack.c.bf16 %v8339_v28, %v8338_v29  ;;  %14562 = vrcp.f32 %v6107_v14  ;;  %v10384_v59 = vmul.f32 -1.442695, %v12275_v34  ;;  %v12279_v1 = vunpack.c.l.bf16 %v13255_v51 }
 0x327   : > { %14564 = vrcp.f32 %v6108_v26  ;;  %v10385_v19 = vmul.f32 -1.442695, %v12276_v46  ;;  %v12280_v41 = vunpack.c.h.bf16 %v13255_v51  ;;  %v10386_v18 = vmul.f32 -1.442695, %v5129_v30 }
 0x328   : > { %13331 = vst [vmem:[%s15729_s24 + $0x340] sm:$0xff] %v12588_v57   ;;  %14566 = vrcp.f32 %v6109_v37  ;;  %v12283_v16 = vunpack.c.l.bf16 %v13256_v49  ;;  %v10387_v24 = vmul.f32 -1.442695, %v5130_v44  ;;  %v12284_v2 = vunpack.c.h.bf16 %v13256_v49 }
 0x329   : > { %14568 = vrcp.f32 %v6110_v8  ;;  %v7096_v38 = vrot.slane %v17929_v55, 1  ;;  %v10388_v54 = vmul.f32 -1.442695, %v12279_v1  ;;  %v5135_v34 = vunpack.c.l.bf16 %v17962_v11 }
 0x32a   : > { %14570 = vpow2.f32 %v10384_v59  ;;  %v10389_v63 = vmul.f32 -1.442695, %v12280_v41  ;;  %v5136_v27 = vunpack.c.l.bf16 %v10147_v22  ;;  %v10390_v61 = vmul.f32 -1.442695, %v12283_v16 }
 0x32b   : > { %v14557_v23 = vpop.eup %14556  ;;  %14572 = vpow2.f32 %v10385_v19  ;;  %v12287_v33 = vunpack.c.l.bf16 %v17967_v50  ;;  %v10391_v3 = vmul.f32 -1.442695, %v12284_v2  ;;  %v10392_v5 = vmul.f32 -1.442695, %v5135_v34 }
 0x32c   : > { %v14559_v62 = vpop.eup %14558  ;;  %v7097_v45 = vrot.slane %v14557_v23, 1  ;;  %14574 = vpow2.f32 %v10386_v18  ;;  %v12288_v47 = vunpack.c.h.bf16 %v17967_v50  ;;  %v17981_v17 = vmul.f32 -1.442695, %v5136_v27 }
 0x32d   : > { %v7099_v42 = vrot.slane %v14559_v62, 1  ;;  %14576 = vpow2.f32 %v10387_v24  ;;  %v17985_v7 = vmul.f32 -1.442695, %v12287_v33  ;;  %v12291_v46 = vunpack.c.l.bf16 %v17975_v60  ;;  %v13259_v33 = vld [vmem:[%s15665_s29 + $0x480] sm:$0xff]  }
 0x32e   : > { %v7098_v43 = vsel %vm2346_vm0, %v7096_v38, %v7097_v45  ;;  %14578 = vpow2.f32 %v10388_v54 }
 0x32f   : > { %v14561_v48 = vpop.eup %14560  ;;  %v7100_v10 = vsel %vm2346_vm0, %v7097_v45, %v7099_v42  ;;  %v17979_v0 = vmax.f32 %v17929_v55, %v7098_v43  ;;  %14580 = vpow2.f32 %v10389_v63 }
 0x330   : > { %v14563_v21 = vpop.eup %14562  ;;  %v17983_v32 = vmax.f32 %v14557_v23, %v7100_v10  ;;  %v7101_v31 = vrot.slane %v14561_v48, 1  ;;  %14582 = vpow2.f32 %v10390_v61  ;;  %v10153_v61 = vld [vmem:[%s15665_s29 + $0x47c] sm:$0x1] }
 0x331   : > { %v14565_v20 = vpop.eup %14564  ;;  %v7940_v36 = vmax.f32 %v17921_v58, %v17979_v0  ;;  %v7103_v39 = vrot.slane %v14563_v21, 1  ;;  %14584 = vpow2.f32 %v10391_v3 }
 0x332   : > { %v14567_v55 = vpop.eup %14566  ;;  %v7941_v4 = vmax.f32 %v17927_v25, %v17983_v32  ;;  %v7102_v12 = vsel %vm2346_vm0, %v7099_v42, %v7101_v31  ;;  %v7105_v15 = vrot.slane %v14565_v20, 1  ;;  %14586 = vpow2.f32 %v10392_v5 }
 0x333   : > { %v17993_v35 = vpop.eup %14568  ;;  %vm8140_vm1 = vcmp.eq.f32.partialorder %v7940_v36, %v7098_v43  ;;  %v7104_v53 = vsel %vm2346_vm0, %v7101_v31, %v7103_v39  ;;  %v17996_v6 = vmax.f32 %v14559_v62, %v7102_v12  ;;  %v7107_v58 = vrot.slane %v14567_v55, 1 }
 0x334   : > { %v14571_v52 = vpop.eup %14570  ;;  %vm8141_vm2 = vcmp.eq.f32.partialorder %v7941_v4, %v7100_v10  ;;  %v8340_v29 = vsel %vm8140_vm1, %v7098_v43, 0.0  ;;  %v17998_v9 = vmax.f32 %v14561_v48, %v7104_v53  ;;  %v7106_v14 = vsel %vm2346_vm0, %v7103_v39, %v7105_v15 }
 0x335   : > { %v14573_v25 = vpop.eup %14572  ;;  %v8341_v51 = vsel %vm8141_vm2, %v7100_v10, 0.0  ;;  %v7942_v26 = vmax.f32 %v17931_v56, %v17996_v6  ;;  %v7108_v37 = vrot.slane %v17993_v35, 1  ;;  %v18004_v30 = vmax.f32 %v14563_v21, %v7106_v14 }
 0x336   : > { %v14575_v28 = vpop.eup %14574  ;;  %v12593_v8 = vpack.c.bf16 %v8341_v51, %v8340_v29  ;;  %v7943_v44 = vmax.f32 %v17937_v40, %v17998_v9  ;;  %v6111_v49 = vadd.f32 1.0, %v14571_v52  ;;  %v6112_v57 = vadd.f32 1.0, %v14573_v25  ;;  %v18047_v52 = vld [vmem:[%s15665_s29 + $0x498] sm:$0xff]  }
 0x337   : > { %v14577_v59 = vpop.eup %14576  ;;  %vm18008_vm3 = vcmp.eq.f32.partialorder %v7942_v26, %v7102_v12  ;;  %v7109_v56 = vsel %vm2346_vm0, %v7107_v58, %v7108_v37  ;;  %v7944_v19 = vmax.f32 %v17941_v13, %v18004_v30  ;;  %v6113_v41 = vadd.f32 1.0, %v14575_v28 }
 0x338   : > { %v14579_v18 = vpop.eup %14578  ;;  %13332 = vst [vmem:[%s15729_s24 + $0x348] sm:$0xff] %v12593_v8   ;;  %vm8143_vm4 = vcmp.eq.f32.partialorder %v7943_v44, %v7104_v53  ;;  %v8342_v40 = vsel %vm18008_vm3, %v7102_v12, 0.0  ;;  %v18020_v16 = vmax.f32 %v14567_v55, %v7109_v56  ;;  %14588 = vrcp.f32 %v6111_v49  ;;  %v18043_v12 = vld [vmem:[%s15665_s29 + $0x490] ss:$24 sps:$4 sm:$0xff]  }
 0x339   : > { %v14581_v22 = vpop.eup %14580  ;;  %v8343_v24 = vsel %vm8143_vm4, %v7104_v53, 0.0  ;;  %vm18022_vm5 = vcmp.eq.f32.partialorder %v7944_v19, %v7106_v14  ;;  %14590 = vrcp.f32 %v6112_v57  ;;  %v6114_v13 = vadd.f32 1.0, %v14577_v59 }
 0x33a   : > { %v14583_v38 = vpop.eup %14582  ;;  %v12598_v54 = vpack.c.bf16 %v8343_v24, %v8342_v40  ;;  %v7945_v34 = vmax.f32 %v17979_v0, %v18020_v16  ;;  %v8344_v23 = vsel %vm18022_vm5, %v7106_v14, 0.0  ;;  %14592 = vrcp.f32 %v6113_v41  ;;  %v13260_v0 = vld [vmem:[%s15665_s29 + $0x488] sm:$0xff]  }
 0x33b   : > { %v14585_v63 = vpop.eup %14584  ;;  %14594 = vrcp.f32 %v6114_v13  ;;  %v6115_v27 = vadd.f32 1.0, %v14579_v18  ;;  %v6116_v62 = vadd.f32 1.0, %v14581_v22  ;;  %v6117_v45 = vadd.f32 1.0, %v14583_v38 }
 0x33c   : > { %v14587_v42 = vpop.eup %14586  ;;  %13333 = vst [vmem:[%s15729_s24 + $0x350] sm:$0xff] %v12598_v54   ;;  %vm8145_vm6 = vcmp.eq.f32.partialorder %v7945_v34, %v7109_v56  ;;  %v6118_v3 = vadd.f32 1.0, %v14585_v63  ;;  %14596 = vpow2.f32 %v17981_v17  ;;  %v12292_v43 = vunpack.c.h.bf16 %v17975_v60 }
 0x33d   : > { %v8345_v5 = vsel %vm8145_vm6, %v7109_v56, 0.0  ;;  %14598 = vrcp.f32 %v6115_v27  ;;  %v6119_v48 = vadd.f32 1.0, %v14587_v42  ;;  %v5141_v10 = vunpack.c.h.bf16 %v17962_v11 }
 0x33e   : > { %v12603_v21 = vpack.c.bf16 %v8345_v5, %v8344_v23  ;;  %14600 = vrcp.f32 %v6116_v62  ;;  %v5142_v31 = vunpack.c.l.bf16 %v10153_v61  ;;  %v12295_v20 = vunpack.c.l.bf16 %v13259_v33 }
 0x33f   : > { %14602 = vrcp.f32 %v6117_v45  ;;  %v10395_v36 = vmul.f32 -1.442695, %v12288_v47  ;;  %v12296_v39 = vunpack.c.h.bf16 %v13259_v33  ;;  %v10396_v17 = vmul.f32 -1.442695, %v12291_v46 }
 0x340   : > { %13334 = vst [vmem:[%s15729_s24 + $0x358] sm:$0xff] %v12603_v21   ;;  %14604 = vrcp.f32 %v6118_v3  ;;  %v12299_v55 = vunpack.c.l.bf16 %v13260_v0  ;;  %v12300_v4 = vunpack.c.h.bf16 %v13260_v0  ;;  %v10397_v11 = vmul.f32 -1.442695, %v12292_v43 }
 0x341   : > { %14606 = vrcp.f32 %v6119_v48  ;;  %v10398_v15 = vmul.f32 -1.442695, %v5141_v10  ;;  %v10399_v58 = vmul.f32 -1.442695, %v5142_v31  ;;  %v10400_v50 = vmul.f32 -1.442695, %v12295_v20 }
 0x342   : > { %v14589_v53 = vpop.eup %14588  ;;  %14608 = vpow2.f32 %v17985_v7  ;;  %v18049_v14 = vmul.f32 -1.442695, %v12296_v39  ;;  %v5147_v60 = vunpack.c.l.bf16 %v18043_v12  ;;  %v18052_v51 = vmul.f32 -1.442695, %v12299_v55 }
 0x343   : > { %v14591_v47 = vpop.eup %14590  ;;  %v7110_v29 = vrot.slane %v14589_v53, 1  ;;  %14610 = vpow2.f32 %v10395_v36  ;;  %v18054_v26 = vmul.f32 -1.442695, %v12300_v4  ;;  %v12303_v44 = vunpack.c.l.bf16 %v18047_v52 }
 0x344   : > { %v14593_v46 = vpop.eup %14592  ;;  %v7112_v25 = vrot.slane %v14591_v47, 1  ;;  %14612 = vpow2.f32 %v10396_v17 }
 0x345   : > { %v14595_v28 = vpop.eup %14594  ;;  %v7111_v7 = vsel %vm2346_vm0, %v7108_v37, %v7110_v29  ;;  %v7114_v8 = vrot.slane %v14593_v46, 1  ;;  %14614 = vpow2.f32 %v10397_v11 }
 0x346   : > { %v14597_v49 = vpop.eup %14596  ;;  %v7113_v57 = vsel %vm2346_vm0, %v7110_v29, %v7112_v25  ;;  %v7724_v59 = vmax.f32 %v17993_v35, %v7111_v7  ;;  %v7116_v1 = vrot.slane %v14595_v28, 1  ;;  %14616 = vpow2.f32 %v10398_v15  ;;  %v10159_v29 = vld [vmem:[%s15665_s29 + $0x494] sm:$0x1] }
 0x347   : > { %v14599_v56 = vpop.eup %14598  ;;  %v18062_v19 = vmax.f32 %v14589_v53, %v7113_v57  ;;  %v7115_v41 = vsel %vm2346_vm0, %v7112_v25, %v7114_v8  ;;  %v6120_v18 = vadd.f32 1.0, %v14597_v49  ;;  %14618 = vpow2.f32 %v10399_v58 }
 0x348   : > { %v14601_v40 = vpop.eup %14600  ;;  %v7946_v37 = vmax.f32 %v17983_v32, %v7724_v59  ;;  %v7117_v22 = vsel %vm2346_vm0, %v7114_v8, %v7116_v1  ;;  %v18067_v24 = vmax.f32 %v14591_v47, %v7115_v41  ;;  %v7118_v2 = vrot.slane %v14599_v56, 1 }
 0x349   : > { %v14603_v13 = vpop.eup %14602  ;;  %v7947_v35 = vmax.f32 %v17996_v6, %v18062_v19  ;;  %v18071_v38 = vmax.f32 %v14593_v46, %v7117_v22  ;;  %v7119_v54 = vrot.slane %v14601_v40, 1  ;;  %14620 = vrcp.f32 %v6120_v18 }
 0x34a   : > { %v14605_v34 = vpop.eup %14604  ;;  %vm8146_vm7 = vcmp.eq.f32.partialorder %v7946_v37, %v7111_v7  ;;  %v7948_v23 = vmax.f32 %v17998_v9, %v18067_v24  ;;  %v7121_v63 = vrot.slane %v14603_v13, 1  ;;  %14622 = vpow2.f32 %v10400_v50 }
 0x34b   : > { %v18075_v32 = vpop.eup %14606  ;;  %vm8147_vm8 = vcmp.eq.f32.partialorder %v7947_v35, %v7113_v57  ;;  %v8346_v27 = vsel %vm8146_vm7, %v7111_v7, 0.0  ;;  %v7949_v62 = vmax.f32 %v18004_v30, %v18071_v38  ;;  %v7120_v6 = vsel %vm2346_vm0, %v7118_v2, %v7119_v54 }
 0x34c   : > { %v14609_v45 = vpop.eup %14608  ;;  %v8347_v61 = vsel %vm8147_vm8, %v7113_v57, 0.0  ;;  %vm8148_vm9 = vcmp.eq.f32.partialorder %v7948_v23, %v7115_v41  ;;  %v7122_v33 = vsel %vm2346_vm0, %v7119_v54, %v7121_v63  ;;  %v18081_v42 = vmax.f32 %v14599_v56, %v7120_v6 }
 0x34d   : > { %v14611_v9 = vpop.eup %14610  ;;  %v12608_v3 = vpack.c.bf16 %v8347_v61, %v8346_v27  ;;  %vm8149_vm10 = vcmp.eq.f32.partialorder %v7949_v62, %v7117_v22  ;;  %v8348_v43 = vsel %vm8148_vm9, %v7115_v41, 0.0  ;;  %v18083_v5 = vmax.f32 %v14601_v40, %v7122_v33  ;;  %v13262_v40 = vld [vmem:[%s15665_s29 + $0x4a0] sm:$0xff]  }
 0x34e   : > { %v14613_v48 = vpop.eup %14612  ;;  %v8349_v10 = vsel %vm8149_vm10, %v7117_v22, 0.0  ;;  %v7950_v30 = vmax.f32 %v18020_v16, %v18081_v42  ;;  %v7123_v0 = vrot.slane %v14605_v34, 1  ;;  %v7125_v21 = vrot.slane %v18075_v32, 1 }
 0x34f   : > { %v14615_v31 = vpop.eup %14614  ;;  %13335 = vst [vmem:[%s15729_s24 + $0x360] sm:$0xff] %v12608_v3   ;;  %v12613_v20 = vpack.c.bf16 %v8349_v10, %v8348_v43  ;;  %v7951_v36 = vmax.f32 %v7724_v59, %v18083_v5  ;;  %v6121_v39 = vadd.f32 1.0, %v14609_v45  ;;  %v6122_v17 = vadd.f32 1.0, %v14611_v9 }
 0x350   : > { %v14617_v55 = vpop.eup %14616  ;;  %vm18090_vm11 = vcmp.eq.f32.partialorder %v7950_v30, %v7120_v6  ;;  %v7124_v11 = vsel %vm2346_vm0, %v7121_v63, %v7123_v0  ;;  %v7126_v16 = vsel %vm2346_vm0, %v7123_v0, %v7125_v21  ;;  %v6123_v15 = vadd.f32 1.0, %v14613_v48 }
 0x351   : > { %v14619_v53 = vpop.eup %14618  ;;  %13336 = vst [vmem:[%s15729_s24 + $0x368] sm:$0xff] %v12613_v20   ;;  %vm8151_vm12 = vcmp.eq.f32.partialorder %v7951_v36, %v7122_v33  ;;  %v8350_v58 = vsel %vm18090_vm11, %v7120_v6, 0.0  ;;  %v18099_v50 = vmax.f32 %v14603_v13, %v7124_v11  ;;  %v18101_v47 = vmax.f32 %v14605_v34, %v7126_v16  ;;  %v18130_v6 = vld [vmem:[%s15665_s29 + $0x4ac] sm:$0x1] }
 0x352   : > { %v8351_v46 = vsel %vm8151_vm12, %v7122_v33, 0.0  ;;  %14624 = vrcp.f32 %v6121_v39  ;;  %v6124_v25 = vadd.f32 1.0, %v14615_v31  ;;  %v6125_v28 = vadd.f32 1.0, %v14617_v55 }
 0x353   : > { %v14621_v7 = vpop.eup %14620  ;;  %v12618_v8 = vpack.c.bf16 %v8351_v46, %v8350_v58  ;;  %v7952_v49 = vmax.f32 %v18062_v19, %v18099_v50  ;;  %v7953_v57 = vmax.f32 %v18067_v24, %v18101_v47  ;;  %14626 = vrcp.f32 %v6122_v17 }
 0x354   : > { %v14623_v59 = vpop.eup %14622  ;;  %v7127_v1 = vrot.slane %v14621_v7, 1  ;;  %14628 = vrcp.f32 %v6123_v15  ;;  %v6126_v56 = vadd.f32 1.0, %v14619_v53  ;;  %v5148_v41 = vunpack.c.l.bf16 %v10159_v29 }
 0x355   : > { %13337 = vst [vmem:[%s15729_s24 + $0x370] sm:$0xff] %v12618_v8   ;;  %vm8152_vm13 = vcmp.eq.f32.partialorder %v7952_v49, %v7124_v11  ;;  %vm8153_vm14 = vcmp.eq.f32.partialorder %v7953_v57, %v7126_v16  ;;  %14630 = vrcp.f32 %v6124_v25  ;;  %v6127_v18 = vadd.f32 1.0, %v14623_v59  ;;  %v13263_v8 = vld [vmem:[%s15665_s29 + $0x4b0] sm:$0xff]  }
 0x356   : > { %v8352_v37 = vsel %vm8152_vm13, %v7124_v11, 0.0  ;;  %v8353_v22 = vsel %vm8153_vm14, %v7126_v16, 0.0  ;;  %v18111_v19 = vsel %vm2346_vm0, %v7125_v21, %v7127_v1  ;;  %14632 = vrcp.f32 %v6125_v28 }
 0x357   : > { %v12623_v24 = vpack.c.bf16 %v8353_v22, %v8352_v37  ;;  %v18115_v2 = vmax.f32 %v18075_v32, %v18111_v19  ;;  %14634 = vrcp.f32 %v6126_v56  ;;  %v12304_v13 = vunpack.c.h.bf16 %v18047_v52 }
 0x358   : > { %14636 = vpow2.f32 %v18049_v14  ;;  %v10404_v35 = vmul.f32 -1.442695, %v5147_v60  ;;  %v12307_v54 = vunpack.c.l.bf16 %v13262_v40  ;;  %v10405_v23 = vmul.f32 -1.442695, %v5148_v41 }
 0x359   : > { %13338 = vst [vmem:[%s15729_s24 + $0x378] sm:$0xff] %v12623_v24   ;;  %v7954_v34 = vmax.f32 %v18071_v38, %v18115_v2  ;;  %14638 = vpow2.f32 %v18052_v51  ;;  %v12308_v63 = vunpack.c.h.bf16 %v13262_v40  ;;  %v10406_v32 = vmul.f32 -1.442695, %v12303_v44 }
 0x35a   : > { %14640 = vrcp.f32 %v6127_v18  ;;  %v5153_v27 = vunpack.c.h.bf16 %v18043_v12  ;;  %v10407_v14 = vmul.f32 -1.442695, %v12304_v13  ;;  %v10408_v60 = vmul.f32 -1.442695, %v12307_v54 }
 0x35b   : > { %14642 = vpow2.f32 %v18054_v26  ;;  %vm18133_vm15 = vcmp.eq.f32.partialorder %v7954_v34, %v18111_v19  ;;  %v10409_v52 = vmul.f32 -1.442695, %v12308_v63  ;;  %v5154_v9 = vunpack.c.l.bf16 %v18130_v6 }
 0x35c   : > { %v14625_v62 = vpop.eup %14624  ;;  %14644 = vpow2.f32 %v10404_v35  ;;  %v10410_v12 = vmul.f32 -1.442695, %v5153_v27  ;;  %v8354_v48 = vsel %vm18133_vm15, %v18111_v19, 0.0  ;;  %v12311_v22 = vunpack.c.l.bf16 %v13263_v8 }
 0x35d   : > { %v14627_v45 = vpop.eup %14626  ;;  %v7129_v38 = vrot.slane %v14625_v62, 1  ;;  %14646 = vpow2.f32 %v10405_v23  ;;  %v13264_v23 = vld [vmem:[%s15665_s29 + $0x4b8] sm:$0xff]   ;;  %v10411_v51 = vmul.f32 -1.442695, %v5154_v9 }
 0x35e   : > { %v14629_v44 = vpop.eup %14628  ;;  %v7130_v61 = vrot.slane %v14627_v45, 1  ;;  %14648 = vpow2.f32 %v10406_v32 }
 0x35f   : > { %v14631_v26 = vpop.eup %14630  ;;  %v7132_v33 = vrot.slane %v14629_v44, 1  ;;  %14650 = vpow2.f32 %v10407_v14 }
 0x360   : > { %v14633_v3 = vpop.eup %14632  ;;  %v7131_v43 = vsel %vm2346_vm0, %v7129_v38, %v7130_v61  ;;  %v7134_v10 = vrot.slane %v14631_v26, 1  ;;  %14652 = vpow2.f32 %v10408_v60  ;;  %v18179_v38 = vld [vmem:[%s15665_s29 + $0x4c0] ss:$24 sps:$4 sm:$0xff]  }
 0x361   : > { %v14635_v30 = vpop.eup %14634  ;;  %v18142_v0 = vmax.f32 %v14625_v62, %v7131_v43  ;;  %v7133_v21 = vsel %vm2346_vm0, %v7130_v61, %v7132_v33  ;;  %v7136_v31 = vrot.slane %v14633_v3, 1  ;;  %14654 = vpow2.f32 %v10409_v52 }
 0x362   : > { %v14637_v20 = vpop.eup %14636  ;;  %v7135_v36 = vsel %vm2346_vm0, %v7132_v33, %v7134_v10  ;;  %v18146_v39 = vmax.f32 %v14627_v45, %v7133_v21  ;;  %v7138_v17 = vrot.slane %v14635_v30, 1  ;;  %14656 = vpow2.f32 %v10410_v12  ;;  %v10171_v33 = vld [vmem:[%s15665_s29 + $0x4c4] sm:$0x1] }
 0x363   : > { %v14639_v55 = vpop.eup %14638  ;;  %v7955_v4 = vmax.f32 %v18081_v42, %v18142_v0  ;;  %v18150_v11 = vmax.f32 %v14629_v44, %v7135_v36  ;;  %v7137_v16 = vsel %vm2346_vm0, %v7134_v10, %v7136_v31  ;;  %v6128_v15 = vadd.f32 1.0, %v14637_v20  ;;  %v18185_v44 = vld [vmem:[%s15665_s29 + $0x4c8] sm:$0xff]  }
 0x364   : > { %v18153_v53 = vpop.eup %14640  ;;  %v7956_v58 = vmax.f32 %v18083_v5, %v18146_v39  ;;  %v7139_v29 = vsel %vm2346_vm0, %v7136_v31, %v7138_v17  ;;  %v18158_v46 = vmax.f32 %v14631_v26, %v7137_v16  ;;  %v6129_v25 = vadd.f32 1.0, %v14639_v55 }
 0x365   : > { %v14643_v28 = vpop.eup %14642  ;;  %vm8155_vm1 = vcmp.eq.f32.partialorder %v7955_v4, %v7131_v43  ;;  %v7957_v42 = vmax.f32 %v18099_v50, %v18150_v11  ;;  %v18162_v7 = vmax.f32 %v14633_v3, %v7139_v29  ;;  %14658 = vrcp.f32 %v6128_v15  ;;  %v18197_v15 = vld [vmem:[%s15665_s29 + $0x4d0] sm:$0xff]  }
 0x366   : > { %v14645_v49 = vpop.eup %14644  ;;  %v8355_v57 = vsel %vm8155_vm1, %v7131_v43, 0.0  ;;  %vm8156_vm2 = vcmp.eq.f32.partialorder %v7956_v58, %v7133_v21  ;;  %v7958_v5 = vmax.f32 %v18101_v47, %v18158_v46  ;;  %14660 = vrcp.f32 %v6129_v25 }
 0x367   : > { %v14647_v59 = vpop.eup %14646  ;;  %v12628_v1 = vpack.c.bf16 %v8355_v57, %v8354_v48  ;;  %vm8157_vm3 = vcmp.eq.f32.partialorder %v7957_v42, %v7135_v36  ;;  %v8356_v56 = vsel %vm8156_vm2, %v7133_v21, 0.0  ;;  %v7959_v41 = vmax.f32 %v18115_v2, %v18162_v7 }
 0x368   : > { %v14649_v50 = vpop.eup %14648  ;;  %v8357_v18 = vsel %vm8157_vm3, %v7135_v36, 0.0  ;;  %vm18169_vm4 = vcmp.eq.f32.partialorder %v7958_v5, %v7137_v16  ;;  %v6130_v37 = vadd.f32 1.0, %v14643_v28  ;;  %v6131_v13 = vadd.f32 1.0, %v14645_v49 }
 0x369   : > { %v14651_v19 = vpop.eup %14650  ;;  %13339 = vst [vmem:[%s15729_s24 + $0x380] sm:$0xff] %v12628_v1   ;;  %v12633_v47 = vpack.c.bf16 %v8357_v18, %v8356_v56  ;;  %vm8159_vm5 = vcmp.eq.f32.partialorder %v7959_v41, %v7139_v29  ;;  %v8358_v24 = vsel %vm18169_vm4, %v7137_v16, 0.0  ;;  %v6132_v54 = vadd.f32 1.0, %v14647_v59 }
 0x36a   : > { %v14653_v35 = vpop.eup %14652  ;;  %v8359_v2 = vsel %vm8159_vm5, %v7139_v29, 0.0  ;;  %14662 = vrcp.f32 %v6130_v37  ;;  %v6133_v34 = vadd.f32 1.0, %v14649_v50  ;;  %v6134_v27 = vadd.f32 1.0, %v14651_v19 }
 0x36b   : > { %v14655_v63 = vpop.eup %14654  ;;  %13340 = vst [vmem:[%s15729_s24 + $0x388] sm:$0xff] %v12633_v47   ;;  %v12638_v32 = vpack.c.bf16 %v8359_v2, %v8358_v24  ;;  %14664 = vrcp.f32 %v6131_v13  ;;  %v6135_v14 = vadd.f32 1.0, %v14653_v35  ;;  %v12312_v45 = vunpack.c.h.bf16 %v13263_v8 }
 0x36c   : > { %v14657_v62 = vpop.eup %14656  ;;  %14666 = vrcp.f32 %v6132_v54  ;;  %v6136_v60 = vadd.f32 1.0, %v14655_v63  ;;  %v12315_v52 = vunpack.c.l.bf16 %v13264_v23  ;;  %v7140_v61 = vrot.slane %v18153_v53, 1 }
 0x36d   : > { %13341 = vst [vmem:[%s15729_s24 + $0x390] sm:$0xff] %v12638_v32   ;;  %14668 = vrcp.f32 %v6133_v34  ;;  %v6137_v12 = vadd.f32 1.0, %v14657_v62  ;;  %v12316_v26 = vunpack.c.h.bf16 %v13264_v23  ;;  %v10412_v43 = vmul.f32 -1.442695, %v12311_v22 }
 0x36e   : > { %14670 = vrcp.f32 %v6134_v27  ;;  %v5159_v48 = vunpack.c.l.bf16 %v18179_v38  ;;  %v10413_v6 = vmul.f32 -1.442695, %v12312_v45  ;;  %v12319_v9 = vunpack.c.l.bf16 %v18185_v44 }
 0x36f   : > { %v14659_v3 = vpop.eup %14658  ;;  %14672 = vrcp.f32 %v6135_v14  ;;  %v10414_v31 = vmul.f32 -1.442695, %v12315_v52  ;;  %v5160_v20 = vunpack.c.l.bf16 %v10171_v33  ;;  %v10415_v17 = vmul.f32 -1.442695, %v12316_v26 }
 0x370   : > { %v14661_v10 = vpop.eup %14660  ;;  %v7141_v30 = vrot.slane %v14659_v3, 1  ;;  %14674 = vrcp.f32 %v6136_v60  ;;  %v10416_v16 = vmul.f32 -1.442695, %v5159_v48  ;;  %v12320_v25 = vunpack.c.h.bf16 %v18185_v44 }
 0x371   : > { %v7143_v21 = vrot.slane %v14661_v10, 1  ;;  %14676 = vpow2.f32 %v10411_v51  ;;  %v18202_v28 = vmul.f32 -1.442695, %v12319_v9  ;;  %v12323_v1 = vunpack.c.l.bf16 %v18197_v15 }
 0x372   : > { %v7142_v36 = vsel %vm2346_vm0, %v7140_v61, %v7141_v30  ;;  %14678 = vrcp.f32 %v6137_v12 }
 0x373   : > { %v7144_v55 = vsel %vm2346_vm0, %v7141_v30, %v7143_v21  ;;  %v18194_v4 = vmax.f32 %v18153_v53, %v7142_v36  ;;  %14680 = vpow2.f32 %v10412_v43  ;;  %v10417_v53 = vmul.f32 -1.442695, %v5160_v20 }
 0x374   : > { %v14663_v58 = vpop.eup %14662  ;;  %v18199_v29 = vmax.f32 %v14659_v3, %v7144_v55  ;;  %14682 = vpow2.f32 %v10413_v6 }
 0x375   : > { %v14665_v42 = vpop.eup %14664  ;;  %v7960_v8 = vmax.f32 %v18142_v0, %v18194_v4  ;;  %v7145_v49 = vrot.slane %v14663_v58, 1  ;;  %14684 = vpow2.f32 %v10414_v31 }
 0x376   : > { %v14667_v57 = vpop.eup %14666  ;;  %v7961_v5 = vmax.f32 %v18146_v39, %v18199_v29  ;;  %v7147_v59 = vrot.slane %v14665_v42, 1  ;;  %14686 = vpow2.f32 %v10415_v17 }
 0x377   : > { %v14669_v56 = vpop.eup %14668  ;;  %vm8160_vm6 = vcmp.eq.f32.partialorder %v7960_v8, %v7142_v36  ;;  %v7146_v41 = vsel %vm2346_vm0, %v7143_v21, %v7145_v49  ;;  %v7149_v50 = vrot.slane %v14667_v57, 1  ;;  %14688 = vpow2.f32 %v10416_v16  ;;  %v10177_v8 = vld [vmem:[%s15665_s29 + $0x4dc] sm:$0x1] }
 0x378   : > { %v14671_v18 = vpop.eup %14670  ;;  %vm8161_vm7 = vcmp.eq.f32.partialorder %v7961_v5, %v7144_v55  ;;  %v8360_v0 = vsel %vm8160_vm6, %v7142_v36, 0.0  ;;  %v7148_v40 = vsel %vm2346_vm0, %v7145_v49, %v7147_v59  ;;  %v7740_v37 = vmax.f32 %v14661_v10, %v7146_v41  ;;  %v13267_v5 = vld [vmem:[%s15665_s29 + $0x4e0] sm:$0xff]  }
 0x379   : > { %v14673_v22 = vpop.eup %14672  ;;  %v8361_v19 = vsel %vm8161_vm7, %v7144_v55, 0.0  ;;  %v18211_v39 = vmax.f32 %v14663_v58, %v7148_v40  ;;  %v7150_v47 = vsel %vm2346_vm0, %v7147_v59, %v7149_v50  ;;  %v7151_v24 = vrot.slane %v14669_v56, 1 }
 0x37a   : > { %v14675_v13 = vpop.eup %14674  ;;  %v12643_v35 = vpack.c.bf16 %v8361_v19, %v8360_v0  ;;  %v7962_v2 = vmax.f32 %v18150_v11, %v7740_v37  ;;  %v7152_v54 = vrot.slane %v14671_v18, 1  ;;  %v18215_v34 = vmax.f32 %v14665_v42, %v7150_v47 }
 0x37b   : > { %v14677_v23 = vpop.eup %14676  ;;  %v7963_v63 = vmax.f32 %v18158_v46, %v18211_v39  ;;  %v7154_v32 = vrot.slane %v14673_v22, 1  ;;  %v7156_v27 = vrot.slane %v14675_v13, 1  ;;  %14690 = vpow2.f32 %v10417_v53 }
 0x37c   : > { %v18219_v14 = vpop.eup %14678  ;;  %13342 = vst [vmem:[%s15729_s24 + $0x398] sm:$0xff] %v12643_v35   ;;  %vm8162_vm8 = vcmp.eq.f32.partialorder %v7962_v2, %v7146_v41  ;;  %v7153_v62 = vsel %vm2346_vm0, %v7151_v24, %v7152_v54  ;;  %v7964_v60 = vmax.f32 %v18162_v7, %v18215_v34  ;;  %v6138_v11 = vadd.f32 1.0, %v14677_v23 }
 0x37d   : > { %v14681_v45 = vpop.eup %14680  ;;  %vm8163_vm9 = vcmp.eq.f32.partialorder %v7963_v63, %v7148_v40  ;;  %v8362_v51 = vsel %vm8162_vm8, %v7146_v41, 0.0  ;;  %v18225_v52 = vmax.f32 %v14669_v56, %v7153_v62  ;;  %v7155_v46 = vsel %vm2346_vm0, %v7152_v54, %v7154_v32 }
 0x37e   : > { %v14683_v61 = vpop.eup %14682  ;;  %v8363_v12 = vsel %vm8163_vm9, %v7148_v40, 0.0  ;;  %vm18228_vm10 = vcmp.eq.f32.partialorder %v7964_v60, %v7150_v47  ;;  %v7157_v33 = vsel %vm2346_vm0, %v7154_v32, %v7156_v27  ;;  %v18233_v3 = vmax.f32 %v14671_v18, %v7155_v46  ;;  %v18271_v32 = vld [vmem:[%s15665_s29 + $0x4f0] ss:$24 sps:$4 sm:$0xff]  }
 0x37f   : > { %v14685_v7 = vpop.eup %14684  ;;  %v12648_v43 = vpack.c.bf16 %v8363_v12, %v8362_v51  ;;  %v7965_v48 = vmax.f32 %v18194_v4, %v18225_v52  ;;  %v8364_v10 = vsel %vm18228_vm10, %v7150_v47, 0.0  ;;  %v18239_v30 = vmax.f32 %v14673_v22, %v7157_v33 }
 0x380   : > { %v14687_v6 = vpop.eup %14686  ;;  %v7966_v9 = vmax.f32 %v18199_v29, %v18233_v3  ;;  %14692 = vrcp.f32 %v6138_v11  ;;  %v7158_v21 = vrot.slane %v18219_v14, 1  ;;  %v6139_v31 = vadd.f32 1.0, %v14681_v45 }
 0x381   : > { %v14689_v20 = vpop.eup %14688  ;;  %13343 = vst [vmem:[%s15729_s24 + $0x3a0] sm:$0xff] %v12648_v43   ;;  %vm8165_vm11 = vcmp.eq.f32.partialorder %v7965_v48, %v7153_v62  ;;  %v7967_v36 = vmax.f32 %v7740_v37, %v18239_v30  ;;  %v6140_v17 = vadd.f32 1.0, %v14683_v61  ;;  %v6141_v55 = vadd.f32 1.0, %v14685_v7  ;;  %v18260_v37 = vld [vmem:[%s15665_s29 + $0x4e8] sm:$0xff]  }
 0x382   : > { %v8365_v4 = vsel %vm8165_vm11, %v7153_v62, 0.0  ;;  %vm8166_vm12 = vcmp.eq.f32.partialorder %v7966_v9, %v7155_v46  ;;  %14694 = vrcp.f32 %v6139_v31  ;;  %v12324_v16 = vunpack.c.h.bf16 %v18197_v15 }
 0x383   : > { %v12653_v58 = vpack.c.bf16 %v8365_v4, %v8364_v10  ;;  %vm8167_vm13 = vcmp.eq.f32.partialorder %v7967_v36, %v7157_v33  ;;  %v8366_v29 = vsel %vm8166_vm12, %v7155_v46, 0.0  ;;  %v18248_v42 = vsel %vm2346_vm0, %v7156_v27, %v7158_v21 }
 0x384   : > { %v8367_v49 = vsel %vm8167_vm13, %v7157_v33, 0.0  ;;  %14696 = vrcp.f32 %v6140_v17  ;;  %v6142_v53 = vadd.f32 1.0, %v14687_v6  ;;  %v6143_v57 = vadd.f32 1.0, %v14689_v20 }
 0x385   : > { %v14691_v59 = vpop.eup %14690  ;;  %13344 = vst [vmem:[%s15729_s24 + $0x3a8] sm:$0xff] %v12653_v58   ;;  %v12658_v56 = vpack.c.bf16 %v8367_v49, %v8366_v29  ;;  %14698 = vrcp.f32 %v6141_v55  ;;  %v10419_v41 = vmul.f32 -1.442695, %v12320_v25  ;;  %v5165_v50 = vunpack.c.h.bf16 %v18179_v38 }
 0x386   : > { %v18257_v18 = vmax.f32 %v14675_v13, %v18248_v42  ;;  %14700 = vrcp.f32 %v6142_v53  ;;  %v6144_v0 = vadd.f32 1.0, %v14691_v59  ;;  %v5166_v40 = vunpack.c.l.bf16 %v10177_v8  ;;  %v10183_v59 = vld [vmem:[%s15665_s29 + $0x4f4] sm:$0x1] }
 0x387   : > { %13345 = vst [vmem:[%s15729_s24 + $0x3b0] sm:$0xff] %v12658_v56   ;;  %14702 = vrcp.f32 %v6143_v57  ;;  %v10420_v22 = vmul.f32 -1.442695, %v12323_v1  ;;  %v12327_v19 = vunpack.c.l.bf16 %v13267_v5  ;;  %v10421_v44 = vmul.f32 -1.442695, %v12324_v16 }
 0x388   : > { %14704 = vpow2.f32 %v18202_v28  ;;  %v12328_v25 = vunpack.c.h.bf16 %v13267_v5  ;;  %v10422_v38 = vmul.f32 -1.442695, %v5165_v50  ;;  %v12331_v47 = vunpack.c.l.bf16 %v18260_v37 }
 0x389   : > { %14706 = vpow2.f32 %v10419_v41  ;;  %v7968_v13 = vmax.f32 %v18211_v39, %v18257_v18  ;;  %v10423_v35 = vmul.f32 -1.442695, %v5166_v40  ;;  %v10424_v15 = vmul.f32 -1.442695, %v12327_v19 }
 0x38a   : > { %v14693_v24 = vpop.eup %14692  ;;  %14708 = vrcp.f32 %v6144_v0  ;;  %v10425_v54 = vmul.f32 -1.442695, %v12328_v25  ;;  %v10426_v63 = vmul.f32 -1.442695, %v12331_v47  ;;  %v12332_v45 = vunpack.c.h.bf16 %v18260_v37 }
 0x38b   : > { %v7160_v2 = vrot.slane %v14693_v24, 1  ;;  %14710 = vpow2.f32 %v10420_v22  ;;  %vm18277_vm14 = vcmp.eq.f32.partialorder %v7968_v13, %v18248_v42  ;;  %v5177_v37 = vunpack.c.h.bf16 %v18271_v32 }
 0x38c   : > { %v14695_v1 = vpop.eup %14694  ;;  %14712 = vpow2.f32 %v10421_v44  ;;  %v8368_v26 = vsel %vm18277_vm14, %v18248_v42, 0.0  ;;  %v10427_v39 = vmul.f32 -1.442695, %v12332_v45 }
 0x38d   : > { %v7161_v28 = vsel %vm2346_vm0, %v7158_v21, %v7160_v2  ;;  %v7162_v23 = vrot.slane %v14695_v1, 1  ;;  %14714 = vpow2.f32 %v10422_v38  ;;  %v5172_v38 = vunpack.c.l.bf16 %v10183_v59 }
 0x38e   : > { %v14697_v27 = vpop.eup %14696  ;;  %v18274_v62 = vmax.f32 %v18219_v14, %v7161_v28  ;;  %14716 = vpow2.f32 %v10423_v35  ;;  %v5171_v14 = vunpack.c.l.bf16 %v18271_v32 }
 0x38f   : > { %v14699_v60 = vpop.eup %14698  ;;  %v7163_v11 = vrot.slane %v14697_v27, 1  ;;  %14718 = vpow2.f32 %v10424_v15 }
 0x390   : > { %v14701_v51 = vpop.eup %14700  ;;  %v7969_v46 = vmax.f32 %v18215_v34, %v18274_v62  ;;  %v7165_v61 = vrot.slane %v14699_v60, 1  ;;  %14720 = vpow2.f32 %v10425_v54 }
 0x391   : > { %v14703_v12 = vpop.eup %14702  ;;  %v7164_v33 = vsel %vm2346_vm0, %v7162_v23, %v7163_v11  ;;  %v7167_v7 = vrot.slane %v14701_v51, 1  ;;  %14722 = vpow2.f32 %v10426_v63 }
 0x392   : > { %v14705_v43 = vpop.eup %14704  ;;  %vm8169_vm15 = vcmp.eq.f32.partialorder %v7969_v46, %v7161_v28  ;;  %v7166_v48 = vsel %vm2346_vm0, %v7163_v11, %v7165_v61  ;;  %v18290_v10 = vmax.f32 %v14695_v1, %v7164_v33  ;;  %v7169_v34 = vrot.slane %v14703_v12, 1 }
 0x393   : > { %v14707_v6 = vpop.eup %14706  ;;  %v8369_v9 = vsel %vm8169_vm15, %v7161_v28, 0.0  ;;  %v18292_v21 = vmax.f32 %v14697_v27, %v7166_v48  ;;  %v7168_v31 = vsel %vm2346_vm0, %v7165_v61, %v7167_v7  ;;  %v6145_v20 = vadd.f32 1.0, %v14705_v43  ;;  %v13270_v28 = vld [vmem:[%s15665_s29 + $0x500] sm:$0xff]  }
 0x394   : > { %v14709_v36 = vpop.eup %14708  ;;  %v12663_v17 = vpack.c.bf16 %v8369_v9, %v8368_v26  ;;  %v7970_v55 = vmax.f32 %v18225_v52, %v18290_v10  ;;  %v7170_v4 = vsel %vm2346_vm0, %v7167_v7, %v7169_v34  ;;  %v18298_v16 = vmax.f32 %v14699_v60, %v7168_v31 }
 0x395   : > { %v14711_v58 = vpop.eup %14710  ;;  %v7971_v29 = vmax.f32 %v18233_v3, %v18292_v21  ;;  %v18302_v42 = vmax.f32 %v14701_v51, %v7170_v4  ;;  %v6146_v8 = vadd.f32 1.0, %v14707_v6  ;;  %14724 = vrcp.f32 %v6145_v20  ;;  %v18343_v6 = vld [vmem:[%s15665_s29 + $0x510] sm:$0xff]  }
 0x396   : > { %v14713_v49 = vpop.eup %14712  ;;  %13346 = vst [vmem:[%s15729_s24 + $0x3b8] sm:$0xff] %v12663_v17   ;;  %vm18305_vm1 = vcmp.eq.f32.partialorder %v7970_v55, %v7164_v33  ;;  %v7972_v52 = vmax.f32 %v18239_v30, %v18298_v16  ;;  %v7171_v57 = vrot.slane %v14709_v36, 1  ;;  %v6147_v5 = vadd.f32 1.0, %v14711_v58 }
 0x397   : > { %v14715_v56 = vpop.eup %14714  ;;  %vm8171_vm2 = vcmp.eq.f32.partialorder %v7971_v29, %v7166_v48  ;;  %v8370_v3 = vsel %vm18305_vm1, %v7164_v33, 0.0  ;;  %v7973_v41 = vmax.f32 %v18257_v18, %v18302_v42  ;;  %14726 = vrcp.f32 %v6146_v8  ;;  %v13269_v18 = vld [vmem:[%s15665_s29 + $0x4f8] sm:$0xff]  }
 0x398   : > { %v14717_v50 = vpop.eup %14716  ;;  %v8371_v0 = vsel %vm8171_vm2, %v7166_v48, 0.0  ;;  %vm18316_vm3 = vcmp.eq.f32.partialorder %v7972_v52, %v7168_v31  ;;  %v18321_v30 = vsel %vm2346_vm0, %v7169_v34, %v7171_v57  ;;  %v6148_v22 = vadd.f32 1.0, %v14713_v49  ;;  %v18340_v48 = vld [vmem:[%s15665_s29 + $0x50c] sm:$0x1] }
 0x399   : > { %v14719_v19 = vpop.eup %14718  ;;  %v12668_v44 = vpack.c.bf16 %v8371_v0, %v8370_v3  ;;  %vm8173_vm4 = vcmp.eq.f32.partialorder %v7973_v41, %v7170_v4  ;;  %v8372_v25 = vsel %vm18316_vm3, %v7168_v31, 0.0  ;;  %14728 = vrcp.f32 %v6147_v5 }
 0x39a   : > { %v14721_v47 = vpop.eup %14720  ;;  %v8373_v24 = vsel %vm8173_vm4, %v7170_v4, 0.0  ;;  %v6149_v13 = vadd.f32 1.0, %v14715_v56  ;;  %v6150_v35 = vadd.f32 1.0, %v14717_v50  ;;  %v18328_v1 = vmax.f32 %v14703_v12, %v18321_v30 }
 0x39b   : > { %v14723_v2 = vpop.eup %14722  ;;  %13347 = vst [vmem:[%s15729_s24 + $0x3c0] sm:$0xff] %v12668_v44   ;;  %v12673_v15 = vpack.c.bf16 %v8373_v24, %v8372_v25  ;;  %14730 = vrcp.f32 %v6148_v22  ;;  %v6151_v54 = vadd.f32 1.0, %v14719_v19  ;;  %v6152_v23 = vadd.f32 1.0, %v14721_v47 }
 0x39c   : > { %14732 = vrcp.f32 %v6149_v13  ;;  %v6153_v63 = vadd.f32 1.0, %v14723_v2  ;;  %v12335_v27 = vunpack.c.l.bf16 %v13269_v18  ;;  %v12336_v60 = vunpack.c.h.bf16 %v13269_v18 }
 0x39d   : > { %13348 = vst [vmem:[%s15729_s24 + $0x3c8] sm:$0xff] %v12673_v15   ;;  %14734 = vrcp.f32 %v6150_v35  ;;  %v10428_v11 = vmul.f32 -1.442695, %v5171_v14  ;;  %v12339_v51 = vunpack.c.l.bf16 %v13270_v28  ;;  %v7974_v61 = vmax.f32 %v18274_v62, %v18328_v1  ;;  %v13272_v62 = vld [vmem:[%s15665_s29 + $0x518] sm:$0xff]  }
 0x39e   : > { %14736 = vrcp.f32 %v6151_v54  ;;  %v10429_v12 = vmul.f32 -1.442695, %v5172_v38  ;;  %v12340_v26 = vunpack.c.h.bf16 %v13270_v28  ;;  %v10430_v7 = vmul.f32 -1.442695, %v12335_v27 }
 0x39f   : > { %v14725_v46 = vpop.eup %14724  ;;  %14738 = vrcp.f32 %v6152_v23  ;;  %v10431_v43 = vmul.f32 -1.442695, %v12336_v60  ;;  %v10432_v34 = vmul.f32 -1.442695, %v12339_v51  ;;  %vm18346_vm5 = vcmp.eq.f32.partialorder %v7974_v61, %v18321_v30 }
 0x3a0   : > { %v7173_v33 = vrot.slane %v14725_v46, 1  ;;  %14740 = vrcp.f32 %v6153_v63  ;;  %v10433_v9 = vmul.f32 -1.442695, %v12340_v26  ;;  %v5178_v20 = vunpack.c.l.bf16 %v18340_v48 }
 0x3a1   : > { %v14727_v45 = vpop.eup %14726  ;;  %14742 = vpow2.f32 %v10427_v39  ;;  %v10434_v36 = vmul.f32 -1.442695, %v5177_v37  ;;  %v12343_v58 = vunpack.c.l.bf16 %v18343_v6  ;;  %v8374_v8 = vsel %vm18346_vm5, %v18321_v30, 0.0 }
 0x3a2   : > { %v7174_v14 = vrot.slane %v14727_v45, 1  ;;  %14744 = vpow2.f32 %v10428_v11  ;;  %v12344_v53 = vunpack.c.h.bf16 %v18343_v6 }
 0x3a3   : > { %14746 = vpow2.f32 %v10429_v12  ;;  %v14729_v31 = vpop.eup %14728 }
 0x3a4   : > { %v7175_v32 = vsel %vm2346_vm0, %v7173_v33, %v7174_v14  ;;  %14748 = vpow2.f32 %v10430_v7  ;;  %v7176_v4 = vrot.slane %v14729_v31, 1 }
 0x3a5   : > { %v14731_v17 = vpop.eup %14730  ;;  %v18352_v55 = vmax.f32 %v14725_v46, %v7175_v32  ;;  %14750 = vpow2.f32 %v10431_v43 }
 0x3a6   : > { %v14733_v29 = vpop.eup %14732  ;;  %v7178_v49 = vrot.slane %v14731_v17, 1  ;;  %14752 = vpow2.f32 %v10432_v34  ;;  %v7177_v5 = vsel %vm2346_vm0, %v7174_v14, %v7176_v4 }
 0x3a7   : > { %v14735_v52 = vpop.eup %14734  ;;  %v7975_v57 = vmax.f32 %v18290_v10, %v18352_v55  ;;  %v7180_v59 = vrot.slane %v14733_v29, 1  ;;  %14754 = vpow2.f32 %v10433_v9  ;;  %v7754_v41 = vmax.f32 %v14727_v45, %v7177_v5 }
 0x3a8   : > { %v14737_v56 = vpop.eup %14736  ;;  %v7179_v3 = vsel %vm2346_vm0, %v7176_v4, %v7178_v49  ;;  %v7182_v50 = vrot.slane %v14735_v52, 1  ;;  %14756 = vpow2.f32 %v10434_v36 }
 0x3a9   : > { %v14739_v0 = vpop.eup %14738  ;;  %vm8175_vm6 = vcmp.eq.f32.partialorder %v7975_v57, %v7175_v32  ;;  %v18363_v40 = vmax.f32 %v14729_v31, %v7179_v3  ;;  %v7181_v30 = vsel %vm2346_vm0, %v7178_v49, %v7180_v59  ;;  %v7184_v22 = vrot.slane %v14737_v56, 1  ;;  %v10195_v49 = vld [vmem:[%s15665_s29 + $0x524] sm:$0x1] }
 0x3aa   : > { %v18366_v19 = vpop.eup %14740  ;;  %v8375_v10 = vsel %vm8175_vm6, %v7175_v32, 0.0  ;;  %v7976_v44 = vmax.f32 %v18292_v21, %v7754_v41  ;;  %v7183_v25 = vsel %vm2346_vm0, %v7180_v59, %v7182_v50  ;;  %v18370_v18 = vmax.f32 %v14731_v17, %v7181_v30 }
 0x3ab   : > { %v14743_v38 = vpop.eup %14742  ;;  %v12678_v47 = vpack.c.bf16 %v8375_v10, %v8374_v8  ;;  %v7977_v24 = vmax.f32 %v18298_v16, %v18363_v40  ;;  %v18374_v13 = vmax.f32 %v14733_v29, %v7183_v25  ;;  %v7185_v35 = vrot.slane %v14739_v0, 1 }
 0x3ac   : > { %v14745_v2 = vpop.eup %14744  ;;  %vm18376_vm7 = vcmp.eq.f32.partialorder %v7976_v44, %v7177_v5  ;;  %v7978_v21 = vmax.f32 %v18302_v42, %v18370_v18  ;;  %v7187_v54 = vrot.slane %v18366_v19, 1  ;;  %v6154_v28 = vadd.f32 1.0, %v14743_v38 }
 0x3ad   : > { %v14747_v23 = vpop.eup %14746  ;;  %13349 = vst [vmem:[%s15729_s24 + $0x3d0] sm:$0xff] %v12678_v47   ;;  %vm8177_vm8 = vcmp.eq.f32.partialorder %v7977_v24, %v7179_v3  ;;  %v8376_v16 = vsel %vm18376_vm7, %v7177_v5, 0.0  ;;  %v7979_v63 = vmax.f32 %v18328_v1, %v18374_v13  ;;  %v7186_v27 = vsel %vm2346_vm0, %v7184_v22, %v7185_v35 }
 0x3ae   : > { %v14749_v39 = vpop.eup %14748  ;;  %v8377_v60 = vsel %vm8177_vm8, %v7179_v3, 0.0  ;;  %vm8178_vm9 = vcmp.eq.f32.partialorder %v7978_v21, %v7181_v30  ;;  %v7188_v42 = vsel %vm2346_vm0, %v7185_v35, %v7187_v54  ;;  %v18392_v11 = vmax.f32 %v14737_v56, %v7186_v27  ;;  %v13273_v3 = vld [vmem:[%s15665_s29 + $0x528] sm:$0xff]  }
 0x3af   : > { %v14751_v51 = vpop.eup %14750  ;;  %v12683_v46 = vpack.c.bf16 %v8377_v60, %v8376_v16  ;;  %vm8179_vm10 = vcmp.eq.f32.partialorder %v7979_v63, %v7183_v25  ;;  %v8378_v61 = vsel %vm8178_vm9, %v7181_v30, 0.0  ;;  %v18394_v12 = vmax.f32 %v14739_v0, %v7188_v42 }
 0x3b0   : > { %v14753_v1 = vpop.eup %14752  ;;  %v8379_v26 = vsel %vm8179_vm10, %v7183_v25, 0.0  ;;  %v7980_v33 = vmax.f32 %v18352_v55, %v18392_v11  ;;  %v6155_v7 = vadd.f32 1.0, %v14745_v2  ;;  %14758 = vrcp.f32 %v6154_v28  ;;  %v18403_v55 = vld [vmem:[%s15665_s29 + $0x520] ss:$24 sps:$4 sm:$0xff]  }
 0x3b1   : > { %v14755_v37 = vpop.eup %14754  ;;  %13350 = vst [vmem:[%s15729_s24 + $0x3d8] sm:$0xff] %v12683_v46   ;;  %v12688_v45 = vpack.c.bf16 %v8379_v26, %v8378_v61  ;;  %v7981_v43 = vmax.f32 %v7754_v41, %v18394_v12  ;;  %v6156_v14 = vadd.f32 1.0, %v14747_v23  ;;  %v6157_v34 = vadd.f32 1.0, %v14749_v39 }
 0x3b2   : > { %v14757_v9 = vpop.eup %14756  ;;  %vm8180_vm11 = vcmp.eq.f32.partialorder %v7980_v33, %v7186_v27  ;;  %14760 = vrcp.f32 %v6155_v7  ;;  %v6158_v31 = vadd.f32 1.0, %v14751_v51  ;;  %v6159_v32 = vadd.f32 1.0, %v14753_v1 }
 0x3b3   : > { %13351 = vst [vmem:[%s15729_s24 + $0x3e0] sm:$0xff] %v12688_v45   ;;  %vm8181_vm12 = vcmp.eq.f32.partialorder %v7981_v43, %v7188_v42  ;;  %v8380_v36 = vsel %vm8180_vm11, %v7186_v27, 0.0  ;;  %14762 = vrcp.f32 %v6156_v14  ;;  %v6160_v17 = vadd.f32 1.0, %v14755_v37 }
 0x3b4   : > { %v8381_v4 = vsel %vm8181_vm12, %v7188_v42, 0.0  ;;  %14764 = vrcp.f32 %v6157_v34  ;;  %v10435_v29 = vmul.f32 -1.442695, %v5178_v20  ;;  %v12347_v8 = vunpack.c.l.bf16 %v13272_v62 }
 0x3b5   : > { %v12693_v52 = vpack.c.bf16 %v8381_v4, %v8380_v36  ;;  %14766 = vrcp.f32 %v6158_v31  ;;  %v6161_v57 = vadd.f32 1.0, %v14757_v9  ;;  %v12348_v5 = vunpack.c.h.bf16 %v13272_v62 }
 0x3b6   : > { %14768 = vrcp.f32 %v6159_v32  ;;  %v10436_v59 = vmul.f32 -1.442695, %v12343_v58  ;;  %v5183_v56 = vunpack.c.l.bf16 %v18403_v55  ;;  %v10437_v41 = vmul.f32 -1.442695, %v12344_v53 }
 0x3b7   : > { %13352 = vst [vmem:[%s15729_s24 + $0x3e8] sm:$0xff] %v12693_v52   ;;  %14770 = vrcp.f32 %v6160_v17  ;;  %v5184_v48 = vunpack.c.l.bf16 %v10195_v49  ;;  %v10438_v20 = vmul.f32 -1.442695, %v12347_v8  ;;  %v10439_v50 = vmul.f32 -1.442695, %v12348_v5 }
 0x3b8   : > { %14772 = vpow2.f32 %v10435_v29  ;;  %v12351_v0 = vunpack.c.l.bf16 %v13273_v3  ;;  %v10440_v22 = vmul.f32 -1.442695, %v5183_v56  ;;  %v12352_v25 = vunpack.c.h.bf16 %v13273_v3 }
 0x3b9   : > { %14774 = vrcp.f32 %v6161_v57  ;;  %v10441_v58 = vmul.f32 -1.442695, %v5184_v48  ;;  %v13274_v57 = vld [vmem:[%s15665_s29 + $0x530] sm:$0xff]  }
 0x3ba   : > { %v14759_v30 = vpop.eup %14758  ;;  %14776 = vpow2.f32 %v10436_v59  ;;  %v10442_v47 = vmul.f32 -1.442695, %v12351_v0 }
 0x3bb   : > { %v7189_v10 = vrot.slane %v14759_v30, 1  ;;  %14778 = vpow2.f32 %v10437_v41 }
 0x3bc   : > { %v14761_v44 = vpop.eup %14760  ;;  %14780 = vpow2.f32 %v10438_v20 }
 0x3bd   : > { %v14763_v38 = vpop.eup %14762  ;;  %v7190_v6 = vsel %vm2346_vm0, %v7187_v54, %v7189_v10  ;;  %v7191_v53 = vrot.slane %v14761_v44, 1  ;;  %14782 = vpow2.f32 %v10439_v50 }
 0x3be   : > { %v14765_v24 = vpop.eup %14764  ;;  %v7760_v35 = vmax.f32 %v18366_v19, %v7190_v6  ;;  %v7193_v2 = vrot.slane %v14763_v38, 1  ;;  %14784 = vpow2.f32 %v10440_v22  ;;  %v18426_v19 = vmul.f32 -1.442695, %v12352_v25  ;;  %v10201_v22 = vld [vmem:[%s15665_s29 + $0x53c] sm:$0x1]  ;;  %v13275_v38 = vld [vmem:[%s15665_s29 + $0x540] sm:$0xff]  }
 0x3bf   : > { %v14767_v15 = vpop.eup %14766  ;;  %v7192_v21 = vsel %vm2346_vm0, %v7189_v10, %v7191_v53  ;;  %v7195_v28 = vrot.slane %v14765_v24, 1  ;;  %14786 = vpow2.f32 %v10441_v58  ;;  %v12356_v25 = vunpack.c.h.bf16 %v13274_v57 }
 0x3c0   : > { %v14769_v23 = vpop.eup %14768  ;;  %v18420_v16 = vmax.f32 %v14759_v30, %v7192_v21  ;;  %v7982_v63 = vmax.f32 %v18363_v40, %v7760_v35  ;;  %v7194_v54 = vsel %vm2346_vm0, %v7191_v53, %v7193_v2  ;;  %v7196_v27 = vrot.slane %v14767_v15, 1  ;;  %v18475_v2 = vld [vmem:[%s15665_s29 + $0x548] sm:$0xff]  }
 0x3c1   : > { %v14771_v39 = vpop.eup %14770  ;;  %v18424_v60 = vmax.f32 %v14761_v44, %v7194_v54  ;;  %v7198_v42 = vrot.slane %v14769_v23, 1  ;;  %14788 = vpow2.f32 %v10442_v47  ;;  %v12355_v30 = vunpack.c.l.bf16 %v13274_v57 }
 0x3c2   : > { %v14773_v51 = vpop.eup %14772  ;;  %v7983_v46 = vmax.f32 %v18370_v18, %v18420_v16  ;;  %vm18430_vm13 = vcmp.eq.f32.partialorder %v7982_v63, %v7190_v6  ;;  %v7197_v40 = vsel %vm2346_vm0, %v7195_v28, %v7196_v27  ;;  %v7200_v1 = vrot.slane %v14771_v39, 1 }
 0x3c3   : > { %v18435_v26 = vpop.eup %14774  ;;  %v8382_v33 = vsel %vm18430_vm13, %v7190_v6, 0.0  ;;  %v18439_v7 = vmax.f32 %v14765_v24, %v7197_v40  ;;  %v7984_v37 = vmax.f32 %v18374_v13, %v18424_v60  ;;  %v7199_v45 = vsel %vm2346_vm0, %v7196_v27, %v7198_v42 }
 0x3c4   : > { %v14777_v18 = vpop.eup %14776  ;;  %vm8183_vm14 = vcmp.eq.f32.partialorder %v7983_v46, %v7192_v21  ;;  %v7201_v43 = vsel %vm2346_vm0, %v7198_v42, %v7200_v1  ;;  %v18445_v14 = vmax.f32 %v14767_v15, %v7199_v45  ;;  %v6162_v34 = vadd.f32 1.0, %v14773_v51 }
 0x3c5   : > { %v14779_v62 = vpop.eup %14778  ;;  %v8383_v9 = vsel %vm8183_vm14, %v7192_v21, 0.0  ;;  %v7985_v31 = vmax.f32 %v18392_v11, %v18439_v7  ;;  %vm18449_vm15 = vcmp.eq.f32.partialorder %v7984_v37, %v7194_v54  ;;  %v18453_v13 = vmax.f32 %v14769_v23, %v7201_v43 }
 0x3c6   : > { %v14781_v36 = vpop.eup %14780  ;;  %v12698_v17 = vpack.c.bf16 %v8383_v9, %v8382_v33  ;;  %v8384_v4 = vsel %vm18449_vm15, %v7194_v54, 0.0  ;;  %v7986_v29 = vmax.f32 %v18394_v12, %v18445_v14  ;;  %14790 = vrcp.f32 %v6162_v34 }
 0x3c7   : > { %v14783_v8 = vpop.eup %14782  ;;  %vm8185_vm1 = vcmp.eq.f32.partialorder %v7985_v31, %v7197_v40  ;;  %v7987_v49 = vmax.f32 %v7760_v35, %v18453_v13  ;;  %v7202_v11 = vrot.slane %v18435_v26, 1  ;;  %v6163_v52 = vadd.f32 1.0, %v14777_v18 }
 0x3c8   : > { %v14785_v5 = vpop.eup %14784  ;;  %13353 = vst [vmem:[%s15729_s24 + $0x3f0] sm:$0xff] %v12698_v17   ;;  %v8385_v59 = vsel %vm8185_vm1, %v7197_v40, 0.0  ;;  %vm8186_vm2 = vcmp.eq.f32.partialorder %v7986_v29, %v7199_v45  ;;  %v6164_v56 = vadd.f32 1.0, %v14779_v62  ;;  %v6165_v3 = vadd.f32 1.0, %v14781_v36 }
 0x3c9   : > { %v14787_v41 = vpop.eup %14786  ;;  %v12703_v12 = vpack.c.bf16 %v8385_v59, %v8384_v4  ;;  %vm8187_vm3 = vcmp.eq.f32.partialorder %v7987_v49, %v7201_v43  ;;  %v8386_v48 = vsel %vm8186_vm2, %v7199_v45, 0.0  ;;  %v18464_v20 = vsel %vm2346_vm0, %v7200_v1, %v7202_v11  ;;  %v18501_v49 = vld [vmem:[%s15665_s29 + $0x550] ss:$24 sps:$4 sm:$0xff]  }
 0x3ca   : > { %v8387_v50 = vsel %vm8187_vm3, %v7201_v43, 0.0  ;;  %14792 = vrcp.f32 %v6163_v52  ;;  %v6166_v0 = vadd.f32 1.0, %v14783_v8  ;;  %v6167_v44 = vadd.f32 1.0, %v14785_v5 }
 0x3cb   : > { %v14789_v10 = vpop.eup %14788  ;;  %13354 = vst [vmem:[%s15729_s24 + $0x3f8] sm:$0xff] %v12703_v12   ;;  %v12708_v58 = vpack.c.bf16 %v8387_v50, %v8386_v48  ;;  %14794 = vrcp.f32 %v6164_v56  ;;  %v18470_v6 = vmax.f32 %v14771_v39, %v18464_v20  ;;  %v6168_v53 = vadd.f32 1.0, %v14787_v41  ;;  %v18507_v56 = vld [vmem:[%s15665_s29 + $0x558] sm:$0xff]  }
 0x3cc   : > { %14796 = vrcp.f32 %v6165_v3  ;;  %v5189_v47 = vunpack.c.h.bf16 %v18403_v55  ;;  %v6169_v24 = vadd.f32 1.0, %v14789_v10  ;;  %v5190_v35 = vunpack.c.l.bf16 %v10201_v22 }
 0x3cd   : > { %13355 = vst [vmem:[%s15729_s24 + $0x400] sm:$0xff] %v12708_v58   ;;  %14798 = vrcp.f32 %v6166_v0  ;;  %v10444_v15 = vmul.f32 -1.442695, %v12355_v30  ;;  %v12359_v21 = vunpack.c.l.bf16 %v13275_v38  ;;  %v10445_v28 = vmul.f32 -1.442695, %v12356_v25 }
 0x3ce   : > { %14800 = vrcp.f32 %v6167_v44  ;;  %v12360_v23 = vunpack.c.h.bf16 %v13275_v38  ;;  %v7988_v54 = vmax.f32 %v18420_v16, %v18470_v6  ;;  %v10446_v27 = vmul.f32 -1.442695, %v5189_v47  ;;  %v10207_v25 = vld [vmem:[%s15665_s29 + $0x554] sm:$0x1] }
 0x3cf   : > { %14802 = vpow2.f32 %v18426_v19  ;;  %v12363_v55 = vunpack.c.l.bf16 %v18475_v2  ;;  %v10447_v42 = vmul.f32 -1.442695, %v5190_v35  ;;  %v10448_v51 = vmul.f32 -1.442695, %v12359_v21 }
 0x3d0   : > { %v14791_v63 = vpop.eup %14790  ;;  %14804 = vrcp.f32 %v6168_v53  ;;  %v10449_v61 = vmul.f32 -1.442695, %v12360_v23  ;;  %vm18486_vm4 = vcmp.eq.f32.partialorder %v7988_v54, %v18464_v20  ;;  %v12364_v9 = vunpack.c.h.bf16 %v18475_v2 }
 0x3d1   : > { %v7204_v39 = vrot.slane %v14791_v63, 1  ;;  %14806 = vrcp.f32 %v6169_v24  ;;  %v10450_v1 = vmul.f32 -1.442695, %v12363_v55  ;;  %v5195_v22 = vunpack.c.l.bf16 %v18501_v49 }
 0x3d2   : > { %14808 = vpow2.f32 %v10444_v15  ;;  %v12367_v38 = vunpack.c.l.bf16 %v18507_v56 }
 0x3d3   : > { %v7205_v46 = vsel %vm2346_vm0, %v7202_v11, %v7204_v39  ;;  %14810 = vpow2.f32 %v10445_v28 }
 0x3d4   : > { %v14793_v19 = vpop.eup %14792  ;;  %v18483_v40 = vmax.f32 %v18435_v26, %v7205_v46  ;;  %14812 = vpow2.f32 %v10446_v27  ;;  %v8388_v26 = vsel %vm18486_vm4, %v18464_v20, 0.0 }
 0x3d5   : > { %v14795_v33 = vpop.eup %14794  ;;  %v7206_v37 = vrot.slane %v14793_v19, 1  ;;  %14814 = vpow2.f32 %v10447_v42  ;;  %v13278_v42 = vld [vmem:[%s15665_s29 + $0x560] sm:$0xff]  }
 0x3d6   : > { %v14797_v45 = vpop.eup %14796  ;;  %v7989_v18 = vmax.f32 %v18424_v60, %v18483_v40  ;;  %v7207_v43 = vrot.slane %v14795_v33, 1  ;;  %14816 = vpow2.f32 %v10448_v51 }
 0x3d7   : > { %v14799_v34 = vpop.eup %14798  ;;  %v7209_v62 = vrot.slane %v14797_v45, 1  ;;  %14818 = vpow2.f32 %v10449_v61 }
 0x3d8   : > { %v14801_v31 = vpop.eup %14800  ;;  %vm8189_vm5 = vcmp.eq.f32.partialorder %v7989_v18, %v7205_v46  ;;  %v7208_v32 = vsel %vm2346_vm0, %v7206_v37, %v7207_v43  ;;  %v7211_v36 = vrot.slane %v14799_v34, 1  ;;  %14820 = vpow2.f32 %v10450_v1 }
 0x3d9   : > { %v14803_v60 = vpop.eup %14802  ;;  %v8389_v17 = vsel %vm8189_vm5, %v7205_v46, 0.0  ;;  %v7210_v4 = vsel %vm2346_vm0, %v7207_v43, %v7209_v62  ;;  %v18498_v29 = vmax.f32 %v14793_v19, %v7208_v32  ;;  %v7213_v8 = vrot.slane %v14801_v31, 1  ;;  %v10213_v43 = vld [vmem:[%s15665_s29 + $0x56c] sm:$0x1] }
 0x3da   : > { %v14805_v11 = vpop.eup %14804  ;;  %v12713_v52 = vpack.c.bf16 %v8389_v17, %v8388_v26  ;;  %v18503_v57 = vmax.f32 %v14795_v33, %v7210_v4  ;;  %v7212_v5 = vsel %vm2346_vm0, %v7209_v62, %v7211_v36  ;;  %v6170_v59 = vadd.f32 1.0, %v14803_v60  ;;  %v18558_v17 = vld [vmem:[%s15665_s29 + $0x570] sm:$0xff]  }
 0x3db   : > { %v18509_v3 = vpop.eup %14806  ;;  %v7990_v41 = vmax.f32 %v18439_v7, %v18498_v29  ;;  %v7214_v12 = vsel %vm2346_vm0, %v7211_v36, %v7213_v8  ;;  %v18514_v48 = vmax.f32 %v14797_v45, %v7212_v5  ;;  %v7215_v20 = vrot.slane %v14805_v11, 1 }
 0x3dc   : > { %v14809_v50 = vpop.eup %14808  ;;  %13356 = vst [vmem:[%s15729_s24 + $0x408] sm:$0xff] %v12713_v52   ;;  %v7991_v0 = vmax.f32 %v18445_v14, %v18503_v57  ;;  %v18519_v30 = vmax.f32 %v14799_v34, %v7214_v12  ;;  %14822 = vrcp.f32 %v6170_v59  ;;  %v12368_v33 = vunpack.c.h.bf16 %v18507_v56  ;;  %v18561_v52 = vld [vmem:[%s15665_s29 + $0x578] sm:$0xff]  }
 0x3dd   : > { %v14811_v10 = vpop.eup %14810  ;;  %vm18522_vm6 = vcmp.eq.f32.partialorder %v7990_v41, %v7208_v32  ;;  %v7992_v7 = vmax.f32 %v18453_v13, %v18514_v48  ;;  %v6171_v44 = vadd.f32 1.0, %v14809_v50  ;;  %v18535_v24 = vsel %vm2346_vm0, %v7213_v8, %v7215_v20 }
 0x3de   : > { %v14813_v53 = vpop.eup %14812  ;;  %vm8191_vm7 = vcmp.eq.f32.partialorder %v7991_v0, %v7210_v4  ;;  %v8390_v14 = vsel %vm18522_vm6, %v7208_v32, 0.0  ;;  %v7993_v47 = vmax.f32 %v18470_v6, %v18519_v30  ;;  %v6172_v21 = vadd.f32 1.0, %v14811_v10 }
 0x3df   : > { %v14815_v35 = vpop.eup %14814  ;;  %v8391_v15 = vsel %vm8191_vm7, %v7210_v4, 0.0  ;;  %vm18537_vm8 = vcmp.eq.f32.partialorder %v7992_v7, %v7212_v5  ;;  %14824 = vrcp.f32 %v6171_v44  ;;  %v5196_v6 = vunpack.c.l.bf16 %v10207_v25 }
 0x3e0   : > { %v14817_v28 = vpop.eup %14816  ;;  %v12718_v23 = vpack.c.bf16 %v8391_v15, %v8390_v14  ;;  %vm8193_vm9 = vcmp.eq.f32.partialorder %v7993_v47, %v7214_v12  ;;  %v8392_v63 = vsel %vm18537_vm8, %v7212_v5, 0.0  ;;  %14826 = vrcp.f32 %v6172_v21 }
 0x3e1   : > { %v14819_v54 = vpop.eup %14818  ;;  %v8393_v27 = vsel %vm8193_vm9, %v7214_v12, 0.0  ;;  %v6173_v55 = vadd.f32 1.0, %v14813_v53  ;;  %v6174_v39 = vadd.f32 1.0, %v14815_v35  ;;  %v18546_v61 = vmax.f32 %v14801_v31, %v18535_v24 }
 0x3e2   : > { %v14821_v51 = vpop.eup %14820  ;;  %13357 = vst [vmem:[%s15729_s24 + $0x410] sm:$0xff] %v12718_v23   ;;  %v12723_v46 = vpack.c.bf16 %v8393_v27, %v8392_v63  ;;  %v6175_v19 = vadd.f32 1.0, %v14817_v28  ;;  %v6176_v16 = vadd.f32 1.0, %v14819_v54  ;;  %v10451_v37 = vmul.f32 -1.442695, %v12364_v9 }
 0x3e3   : > { %14828 = vrcp.f32 %v6173_v55  ;;  %v6177_v1 = vadd.f32 1.0, %v14821_v51  ;;  %v12371_v45 = vunpack.c.l.bf16 %v13278_v42  ;;  %v12372_v18 = vunpack.c.h.bf16 %v13278_v42 }
 0x3e4   : > { %13358 = vst [vmem:[%s15729_s24 + $0x418] sm:$0xff] %v12723_v46   ;;  %14830 = vrcp.f32 %v6174_v39  ;;  %v7217_v34 = vrot.slane %v18509_v3, 1  ;;  %v10452_v26 = vmul.f32 -1.442695, %v5195_v22  ;;  %v5201_v62 = vunpack.c.h.bf16 %v18501_v49 }
 0x3e5   : > { %14832 = vrcp.f32 %v6175_v19  ;;  %v7994_v32 = vmax.f32 %v18483_v40, %v18546_v61  ;;  %v10453_v36 = vmul.f32 -1.442695, %v5196_v6  ;;  %v10454_v60 = vmul.f32 -1.442695, %v12367_v38 }
 0x3e6   : > { %v14823_v31 = vpop.eup %14822  ;;  %14834 = vrcp.f32 %v6176_v16  ;;  %v10455_v9 = vmul.f32 -1.442695, %v12368_v33  ;;  %v5202_v4 = vunpack.c.l.bf16 %v10213_v43  ;;  %v10456_v8 = vmul.f32 -1.442695, %v12371_v45 }
 0x3e7   : > { %v7218_v2 = vrot.slane %v14823_v31, 1  ;;  %14836 = vrcp.f32 %v6177_v1  ;;  %v10457_v11 = vmul.f32 -1.442695, %v12372_v18  ;;  %v10458_v59 = vmul.f32 -1.442695, %v5201_v62 }
 0x3e8   : > { %14838 = vpow2.f32 %v10451_v37  ;;  %v12375_v40 = vunpack.c.l.bf16 %v18558_v17  ;;  %vm18569_vm10 = vcmp.eq.f32.partialorder %v7994_v32, %v18535_v24  ;;  %v10459_v50 = vmul.f32 -1.442695, %v5202_v4 }
 0x3e9   : > { %v14825_v5 = vpop.eup %14824  ;;  %v7219_v49 = vsel %vm2346_vm0, %v7217_v34, %v7218_v2  ;;  %14840 = vpow2.f32 %v10452_v26  ;;  %v12376_v0 = vunpack.c.h.bf16 %v18558_v17  ;;  %v12379_v22 = vunpack.c.l.bf16 %v18561_v52 }
 0x3ea   : > { %v18566_v56 = vmax.f32 %v18509_v3, %v7219_v49  ;;  %v7220_v12 = vrot.slane %v14825_v5, 1  ;;  %14842 = vpow2.f32 %v10453_v36  ;;  %v14827_v20 = vpop.eup %14826  ;;  %v8394_v44 = vsel %vm18569_vm10, %v18535_v24, 0.0 }
 0x3eb   : > { %14844 = vpow2.f32 %v10454_v60  ;;  %v7222_v58 = vrot.slane %v14827_v20, 1  ;;  %v18581_v38 = vmul.f32 -1.442695, %v12375_v40  ;;  %v18622_v40 = vld [vmem:[%s15665_s29 + $0x580] ss:$24 sps:$4 sm:$0xff]  }
 0x3ec   : > { %v7995_v10 = vmax.f32 %v18498_v29, %v18566_v56  ;;  %v7221_v3 = vsel %vm2346_vm0, %v7218_v2, %v7220_v12  ;;  %14846 = vpow2.f32 %v10455_v9 }
 0x3ed   : > { %v14829_v7 = vpop.eup %14828  ;;  %v7774_v25 = vmax.f32 %v14823_v31, %v7221_v3  ;;  %14848 = vpow2.f32 %v10456_v8  ;;  %v7223_v14 = vsel %vm2346_vm0, %v7220_v12, %v7222_v58 }
 0x3ee   : > { %v14831_v53 = vpop.eup %14830  ;;  %vm8195_vm11 = vcmp.eq.f32.partialorder %v7995_v10, %v7219_v49  ;;  %v7224_v47 = vrot.slane %v14829_v7, 1  ;;  %14850 = vpow2.f32 %v10457_v11  ;;  %v18584_v15 = vmax.f32 %v14825_v5, %v7223_v14 }
 0x3ef   : > { %v14833_v29 = vpop.eup %14832  ;;  %v8395_v35 = vsel %vm8195_vm11, %v7219_v49, 0.0  ;;  %v7996_v13 = vmax.f32 %v18503_v57, %v7774_v25  ;;  %v7226_v21 = vrot.slane %v14831_v53, 1  ;;  %14852 = vpow2.f32 %v10458_v59 }
 0x3f0   : > { %v14835_v28 = vpop.eup %14834  ;;  %v12728_v24 = vpack.c.bf16 %v8395_v35, %v8394_v44  ;;  %v7225_v23 = vsel %vm2346_vm0, %v7222_v58, %v7224_v47  ;;  %v7228_v63 = vrot.slane %v14833_v29, 1  ;;  %v7997_v54 = vmax.f32 %v18514_v48, %v18584_v15  ;;  %v13281_v44 = vld [vmem:[%s15665_s29 + $0x588] sm:$0xff]  }
 0x3f1   : > { %v18588_v6 = vpop.eup %14836  ;;  %vm18592_vm12 = vcmp.eq.f32.partialorder %v7996_v13, %v7221_v3  ;;  %v7227_v55 = vsel %vm2346_vm0, %v7224_v47, %v7226_v21  ;;  %v18597_v39 = vmax.f32 %v14827_v20, %v7225_v23  ;;  %v7229_v46 = vrot.slane %v14835_v28, 1 }
 0x3f2   : > { %v14839_v57 = vpop.eup %14838  ;;  %13359 = vst [vmem:[%s15729_s24 + $0x420] sm:$0xff] %v12728_v24   ;;  %v8396_v42 = vsel %vm18592_vm12, %v7221_v3, 0.0  ;;  %v18602_v51 = vmax.f32 %v14829_v7, %v7227_v55  ;;  %v7231_v19 = vrot.slane %v18588_v6, 1  ;;  %vm8197_vm13 = vcmp.eq.f32.partialorder %v7997_v54, %v7223_v14 }
 0x3f3   : > { %v14841_v16 = vpop.eup %14840  ;;  %v7998_v48 = vmax.f32 %v18519_v30, %v18597_v39  ;;  %v6178_v1 = vadd.f32 1.0, %v14839_v57  ;;  %14854 = vpow2.f32 %v10459_v50  ;;  %v8397_v37 = vsel %vm8197_vm13, %v7223_v14, 0.0  ;;  %v10219_v50 = vld [vmem:[%s15665_s29 + $0x584] sm:$0x1]  ;;  %v18640_v57 = vld [vmem:[%s15665_s29 + $0x590] sm:$0xff]  }
 0x3f4   : > { %v14843_v33 = vpop.eup %14842  ;;  %v7999_v45 = vmax.f32 %v18546_v61, %v18602_v51  ;;  %v7230_v18 = vsel %vm2346_vm0, %v7228_v63, %v7229_v46  ;;  %v7232_v43 = vsel %vm2346_vm0, %v7229_v46, %v7231_v19  ;;  %v12733_v26 = vpack.c.bf16 %v8397_v37, %v8396_v42 }
 0x3f5   : > { %v14845_v34 = vpop.eup %14844  ;;  %vm8198_vm14 = vcmp.eq.f32.partialorder %v7998_v48, %v7225_v23  ;;  %v18613_v62 = vmax.f32 %v14833_v29, %v7230_v18  ;;  %v18615_v30 = vmax.f32 %v14835_v28, %v7232_v43  ;;  %v6179_v36 = vadd.f32 1.0, %v14841_v16 }
 0x3f6   : > { %v14847_v31 = vpop.eup %14846  ;;  %vm8199_vm15 = vcmp.eq.f32.partialorder %v7999_v45, %v7227_v55  ;;  %v8398_v32 = vsel %vm8198_vm14, %v7225_v23, 0.0  ;;  %14856 = vrcp.f32 %v6178_v1  ;;  %13360 = vst [vmem:[%s15729_s24 + $0x428] sm:$0xff] %v12733_v26   ;;  %v6180_v4 = vadd.f32 1.0, %v14843_v33 }
 0x3f7   : > { %v14849_v61 = vpop.eup %14848  ;;  %v8399_v60 = vsel %vm8199_vm15, %v7227_v55, 0.0  ;;  %v8000_v2 = vmax.f32 %v18566_v56, %v18613_v62  ;;  %v8001_v9 = vmax.f32 %v7774_v25, %v18615_v30  ;;  %14858 = vrcp.f32 %v6179_v36 }
 0x3f8   : > { %v14851_v8 = vpop.eup %14850  ;;  %v12738_v11 = vpack.c.bf16 %v8399_v60, %v8398_v32  ;;  %v6181_v5 = vadd.f32 1.0, %v14845_v34  ;;  %v6182_v49 = vadd.f32 1.0, %v14847_v31  ;;  %14860 = vrcp.f32 %v6180_v4 }
 0x3f9   : > { %vm8200_vm1 = vcmp.eq.f32.partialorder %v8000_v2, %v7230_v18  ;;  %vm8201_vm2 = vcmp.eq.f32.partialorder %v8001_v9, %v7232_v43  ;;  %v6183_v59 = vadd.f32 1.0, %v14849_v61  ;;  %v14853_v41 = vpop.eup %14852  ;;  %v6184_v20 = vadd.f32 1.0, %v14851_v8 }
 0x3fa   : > { %13361 = vst [vmem:[%s15729_s24 + $0x430] sm:$0xff] %v12738_v11   ;;  %v8400_v56 = vsel %vm8200_vm1, %v7230_v18, 0.0  ;;  %v8401_v12 = vsel %vm8201_vm2, %v7232_v43, 0.0  ;;  %14862 = vrcp.f32 %v6181_v5  ;;  %v6185_v3 = vadd.f32 1.0, %v14853_v41 }
 0x3fb   : > { %v12743_v10 = vpack.c.bf16 %v8401_v12, %v8400_v56  ;;  %14864 = vrcp.f32 %v6182_v49  ;;  %v12380_v58 = vunpack.c.h.bf16 %v18561_v52  ;;  %v5207_v7 = vunpack.c.l.bf16 %v18622_v40 }
 0x3fc   : > { %14866 = vrcp.f32 %v6183_v59  ;;  %v10461_v53 = vmul.f32 -1.442695, %v12376_v0  ;;  %v5208_v14 = vunpack.c.l.bf16 %v10219_v50  ;;  %v10462_v29 = vmul.f32 -1.442695, %v12379_v22 }
 0x3fd   : > { %v14855_v25 = vpop.eup %14854  ;;  %13362 = vst [vmem:[%s15729_s24 + $0x438] sm:$0xff] %v12743_v10   ;;  %14868 = vrcp.f32 %v6184_v20  ;;  %v10463_v35 = vmul.f32 -1.442695, %v12380_v58  ;;  %v12383_v13 = vunpack.c.l.bf16 %v13281_v44  ;;  %v10464_v28 = vmul.f32 -1.442695, %v5207_v7 }
 0x3fe   : > { %v6186_v47 = vadd.f32 1.0, %v14855_v25  ;;  %14870 = vrcp.f32 %v6185_v3  ;;  %v12384_v23 = vunpack.c.h.bf16 %v13281_v44  ;;  %v10465_v63 = vmul.f32 -1.442695, %v5208_v14 }
 0x3ff   : > { %14872 = vpow2.f32 %v18581_v38  ;;  %v10466_v38 = vmul.f32 -1.442695, %v12383_v13  ;;  %v12387_v34 = vunpack.c.l.bf16 %v18640_v57 }
 0x400   : > { %v14857_v21 = vpop.eup %14856  ;;  %14874 = vrcp.f32 %v6186_v47  ;;  %v18643_v48 = vmul.f32 -1.442695, %v12384_v23 }
 0x401   : > { %v7233_v24 = vrot.slane %v14857_v21, 1  ;;  %14876 = vpow2.f32 %v10461_v53  ;;  %v14859_v17 = vpop.eup %14858 }
 0x402   : > { %14878 = vpow2.f32 %v10462_v29  ;;  %v14861_v0 = vpop.eup %14860  ;;  %v7235_v22 = vrot.slane %v14859_v17, 1 }
 0x403   : > { %v7234_v52 = vsel %vm2346_vm0, %v7231_v19, %v7233_v24  ;;  %14880 = vpow2.f32 %v10463_v35  ;;  %v7237_v55 = vrot.slane %v14861_v0, 1 }
 0x404   : > { %v14863_v54 = vpop.eup %14862  ;;  %v7780_v27 = vmax.f32 %v18588_v6, %v7234_v52  ;;  %14882 = vpow2.f32 %v10464_v28  ;;  %v7236_v46 = vsel %vm2346_vm0, %v7233_v24, %v7235_v22 }
 0x405   : > { %v14865_v42 = vpop.eup %14864  ;;  %v7239_v16 = vrot.slane %v14863_v54, 1  ;;  %14884 = vpow2.f32 %v10465_v63  ;;  %v18645_v33 = vmax.f32 %v14857_v21, %v7236_v46  ;;  %v7238_v37 = vsel %vm2346_vm0, %v7235_v22, %v7237_v55  ;;  %v10225_v22 = vld [vmem:[%s15665_s29 + $0x59c] sm:$0x1]  ;;  %v13283_v55 = vld [vmem:[%s15665_s29 + $0x5a0] sm:$0xff]  }
 0x406   : > { %v14867_v1 = vpop.eup %14866  ;;  %v8002_v19 = vmax.f32 %v18584_v15, %v7780_v27  ;;  %v7240_v45 = vrot.slane %v14865_v42, 1  ;;  %v18649_v18 = vmax.f32 %v14859_v17, %v7238_v37  ;;  %14886 = vpow2.f32 %v10466_v38 }
 0x407   : > { %v14869_v6 = vpop.eup %14868  ;;  %v7242_v43 = vrot.slane %v14867_v1, 1  ;;  %v8003_v31 = vmax.f32 %v18597_v39, %v18645_v33 }
 0x408   : > { %v14871_v26 = vpop.eup %14870  ;;  %vm18654_vm3 = vcmp.eq.f32.partialorder %v8002_v19, %v7234_v52  ;;  %v7241_v15 = vsel %vm2346_vm0, %v7239_v16, %v7240_v45  ;;  %v7244_v36 = vrot.slane %v14869_v6, 1  ;;  %v8004_v9 = vmax.f32 %v18602_v51, %v18649_v18  ;;  %v13284_v19 = vld [vmem:[%s15665_s29 + $0x5a8] sm:$0xff]  }
 0x409   : > { %v14873_v61 = vpop.eup %14872  ;;  %v8402_v60 = vsel %vm18654_vm3, %v7234_v52, 0.0  ;;  %v18661_v2 = vmax.f32 %v14863_v54, %v7241_v15  ;;  %v7243_v4 = vsel %vm2346_vm0, %v7240_v45, %v7242_v43  ;;  %vm8203_vm4 = vcmp.eq.f32.partialorder %v8003_v31, %v7236_v46  ;;  %v18710_v31 = vld [vmem:[%s15665_s29 + $0x5b0] ss:$24 sps:$4 sm:$0xff]  }
 0x40a   : > { %v14875_v8 = vpop.eup %14874  ;;  %v7245_v39 = vsel %vm2346_vm0, %v7242_v43, %v7244_v36  ;;  %v18667_v11 = vmax.f32 %v14865_v42, %v7243_v4  ;;  %v7246_v5 = vrot.slane %v14871_v26, 1  ;;  %v8403_v59 = vsel %vm8203_vm4, %v7236_v46, 0.0 }
 0x40b   : > { %v14877_v49 = vpop.eup %14876  ;;  %v8005_v41 = vmax.f32 %v18613_v62, %v18661_v2  ;;  %vm18671_vm5 = vcmp.eq.f32.partialorder %v8004_v9, %v7238_v37  ;;  %v18675_v51 = vmax.f32 %v14867_v1, %v7245_v39  ;;  %v12748_v20 = vpack.c.bf16 %v8403_v59, %v8402_v60 }
 0x40c   : > { %v14879_v12 = vpop.eup %14878  ;;  %v8404_v50 = vsel %vm18671_vm5, %v7238_v37, 0.0  ;;  %v8006_v10 = vmax.f32 %v18615_v30, %v18667_v11  ;;  %v7247_v3 = vsel %vm2346_vm0, %v7244_v36, %v7246_v5  ;;  %v7248_v7 = vrot.slane %v14875_v8, 1 }
 0x40d   : > { %v14881_v58 = vpop.eup %14880  ;;  %vm8205_vm6 = vcmp.eq.f32.partialorder %v8005_v41, %v7241_v15  ;;  %v8007_v62 = vmax.f32 %v7780_v27, %v18675_v51  ;;  %v18683_v44 = vmax.f32 %v14869_v6, %v7247_v3  ;;  %13363 = vst [vmem:[%s15729_s24 + $0x440] sm:$0xff] %v12748_v20   ;;  %v6187_v14 = vadd.f32 1.0, %v14873_v61 }
 0x40e   : > { %v14883_v25 = vpop.eup %14882  ;;  %v8405_v53 = vsel %vm8205_vm6, %v7241_v15, 0.0  ;;  %vm8206_vm7 = vcmp.eq.f32.partialorder %v8006_v10, %v7243_v4  ;;  %v6188_v47 = vadd.f32 1.0, %v14877_v49  ;;  %v7249_v13 = vsel %vm2346_vm0, %v7246_v5, %v7248_v7 }
 0x40f   : > { %v14885_v29 = vpop.eup %14884  ;;  %v12753_v35 = vpack.c.bf16 %v8405_v53, %v8404_v50  ;;  %vm8207_vm8 = vcmp.eq.f32.partialorder %v8007_v62, %v7245_v39  ;;  %v8406_v30 = vsel %vm8206_vm7, %v7243_v4, 0.0  ;;  %v18687_v28 = vmax.f32 %v14871_v26, %v7249_v13  ;;  %v18719_v62 = vld [vmem:[%s15665_s29 + $0x5b8] sm:$0xff]  }
 0x410   : > { %v8407_v21 = vsel %vm8207_vm8, %v7245_v39, 0.0  ;;  %v8008_v24 = vmax.f32 %v18645_v33, %v18683_v44  ;;  %v6189_v23 = vadd.f32 1.0, %v14879_v12  ;;  %v14887_v63 = vpop.eup %14886  ;;  %14888 = vrcp.f32 %v6187_v14 }
 0x411   : > { %13364 = vst [vmem:[%s15729_s24 + $0x448] sm:$0xff] %v12753_v35   ;;  %v12758_v17 = vpack.c.bf16 %v8407_v21, %v8406_v30  ;;  %v6190_v0 = vadd.f32 1.0, %v14881_v58  ;;  %v6191_v52 = vadd.f32 1.0, %v14883_v25  ;;  %v8009_v38 = vmax.f32 %v18649_v18, %v18687_v28 }
 0x412   : > { %vm18695_vm9 = vcmp.eq.f32.partialorder %v8008_v24, %v7247_v3  ;;  %14890 = vrcp.f32 %v6188_v47  ;;  %v12388_v27 = vunpack.c.h.bf16 %v18640_v57  ;;  %v6192_v46 = vadd.f32 1.0, %v14885_v29  ;;  %v10231_v47 = vld [vmem:[%s15665_s29 + $0x5b4] sm:$0x1] }
 0x413   : > { %13365 = vst [vmem:[%s15729_s24 + $0x450] sm:$0xff] %v12758_v17   ;;  %v8408_v42 = vsel %vm18695_vm9, %v7247_v3, 0.0  ;;  %14892 = vrcp.f32 %v6189_v23  ;;  %v5213_v16 = vunpack.c.h.bf16 %v18622_v40  ;;  %vm8209_vm10 = vcmp.eq.f32.partialorder %v8009_v38, %v7249_v13 }
 0x414   : > { %14894 = vrcp.f32 %v6190_v0  ;;  %v6193_v1 = vadd.f32 1.0, %v14887_v63  ;;  %v5214_v33 = vunpack.c.l.bf16 %v10225_v22  ;;  %v8409_v37 = vsel %vm8209_vm10, %v7249_v13, 0.0 }
 0x415   : > { %14896 = vrcp.f32 %v6191_v52  ;;  %v10468_v45 = vmul.f32 -1.442695, %v12387_v34  ;;  %v12391_v6 = vunpack.c.l.bf16 %v13283_v55  ;;  %v12763_v18 = vpack.c.bf16 %v8409_v37, %v8408_v42 }
 0x416   : > { %14898 = vpow2.f32 %v18643_v48  ;;  %v10469_v43 = vmul.f32 -1.442695, %v12388_v27  ;;  %v12392_v26 = vunpack.c.h.bf16 %v13283_v55  ;;  %v10470_v40 = vmul.f32 -1.442695, %v5213_v16 }
 0x417   : > { %14900 = vrcp.f32 %v6192_v46  ;;  %v12395_v32 = vunpack.c.l.bf16 %v13284_v19  ;;  %13366 = vst [vmem:[%s15729_s24 + $0x458] sm:$0xff] %v12763_v18   ;;  %v10471_v15 = vmul.f32 -1.442695, %v5214_v33  ;;  %v12396_v36 = vunpack.c.h.bf16 %v13284_v19  ;;  %v13286_v19 = vld [vmem:[%s15665_s29 + $0x5c0] sm:$0xff]  }
 0x418   : > { %14902 = vrcp.f32 %v6193_v1  ;;  %v10472_v61 = vmul.f32 -1.442695, %v12391_v6  ;;  %v5219_v57 = vunpack.c.l.bf16 %v18710_v31  ;;  %v10473_v34 = vmul.f32 -1.442695, %v12392_v26 }
 0x419   : > { %14904 = vpow2.f32 %v10468_v45  ;;  %v10474_v48 = vmul.f32 -1.442695, %v12395_v32  ;;  %v10475_v8 = vmul.f32 -1.442695, %v12396_v36  ;;  %v12399_v17 = vunpack.c.l.bf16 %v18719_v62  ;;  %v10237_v36 = vld [vmem:[%s15665_s29 + $0x5cc] sm:$0x1] }
 0x41a   : > { %14906 = vpow2.f32 %v10469_v43  ;;  %v14889_v60 = vpop.eup %14888  ;;  %v10476_v49 = vmul.f32 -1.442695, %v5219_v57  ;;  %v5220_v22 = vunpack.c.l.bf16 %v10231_v47 }
 0x41b   : > { %14908 = vpow2.f32 %v10470_v40  ;;  %v7250_v4 = vrot.slane %v14889_v60, 1 }
 0x41c   : > { %v14891_v9 = vpop.eup %14890  ;;  %14910 = vpow2.f32 %v10471_v15 }
 0x41d   : > { %v14893_v39 = vpop.eup %14892  ;;  %v7251_v5 = vrot.slane %v14891_v9, 1  ;;  %14912 = vpow2.f32 %v10472_v61 }
 0x41e   : > { %v14895_v59 = vpop.eup %14894  ;;  %v7253_v41 = vrot.slane %v14893_v39, 1  ;;  %14914 = vpow2.f32 %v10473_v34  ;;  %v10477_v34 = vmul.f32 -1.442695, %v5220_v22 }
 0x41f   : > { %v14897_v56 = vpop.eup %14896  ;;  %v7252_v12 = vsel %vm2346_vm0, %v7250_v4, %v7251_v5  ;;  %v7255_v20 = vrot.slane %v14895_v59, 1  ;;  %14916 = vpow2.f32 %v10474_v48  ;;  %v12404_v4 = vunpack.c.h.bf16 %v13286_v19 }
 0x420   : > { %v14899_v50 = vpop.eup %14898  ;;  %v7254_v10 = vsel %vm2346_vm0, %v7251_v5, %v7253_v41  ;;  %v18716_v3 = vmax.f32 %v14889_v60, %v7252_v12  ;;  %v7257_v58 = vrot.slane %v14897_v56, 1  ;;  %14918 = vpow2.f32 %v10475_v8 }
 0x421   : > { %v14901_v7 = vpop.eup %14900  ;;  %v18721_v25 = vmax.f32 %v14891_v9, %v7254_v10  ;;  %v7256_v53 = vsel %vm2346_vm0, %v7253_v41, %v7255_v20  ;;  %v6194_v14 = vadd.f32 1.0, %v14899_v50  ;;  %14920 = vpow2.f32 %v10476_v49 }
 0x422   : > { %v18725_v29 = vpop.eup %14902  ;;  %v8010_v35 = vmax.f32 %v18661_v2, %v18716_v3  ;;  %v7258_v30 = vsel %vm2346_vm0, %v7255_v20, %v7257_v58  ;;  %v18730_v13 = vmax.f32 %v14893_v39, %v7256_v53  ;;  %v7259_v21 = vrot.slane %v14901_v7, 1  ;;  %v13287_v39 = vld [vmem:[%s15665_s29 + $0x5d0] sm:$0xff]   ;;  %v18764_v7 = vld [vmem:[%s15665_s29 + $0x5d8] sm:$0xff]  }
 0x423   : > { %v14905_v24 = vpop.eup %14904  ;;  %v8011_v23 = vmax.f32 %v18667_v11, %v18721_v25  ;;  %v18734_v63 = vmax.f32 %v14895_v59, %v7258_v30  ;;  %14922 = vrcp.f32 %v6194_v14  ;;  %v12403_v60 = vunpack.c.l.bf16 %v13286_v19 }
 0x424   : > { %v14907_v0 = vpop.eup %14906  ;;  %vm8210_vm11 = vcmp.eq.f32.partialorder %v8010_v35, %v7252_v12  ;;  %v8012_v52 = vmax.f32 %v18675_v51, %v18730_v13  ;;  %v6195_v2 = vadd.f32 1.0, %v14905_v24  ;;  %v18742_v11 = vsel %vm2346_vm0, %v7257_v58, %v7259_v21 }
 0x425   : > { %v14909_v38 = vpop.eup %14908  ;;  %vm8211_vm12 = vcmp.eq.f32.partialorder %v8011_v23, %v7254_v10  ;;  %v8410_v54 = vsel %vm8210_vm11, %v7252_v12, 0.0  ;;  %v8013_v27 = vmax.f32 %v18683_v44, %v18734_v63  ;;  %v6196_v51 = vadd.f32 1.0, %v14907_v0 }
 0x426   : > { %v14911_v55 = vpop.eup %14910  ;;  %v8411_v42 = vsel %vm8211_vm12, %v7254_v10, 0.0  ;;  %vm18744_vm13 = vcmp.eq.f32.partialorder %v8012_v52, %v7256_v53  ;;  %14924 = vrcp.f32 %v6195_v2  ;;  %v12400_v44 = vunpack.c.h.bf16 %v18719_v62 }
 0x427   : > { %v14913_v16 = vpop.eup %14912  ;;  %v12768_v1 = vpack.c.bf16 %v8411_v42, %v8410_v54  ;;  %vm8213_vm14 = vcmp.eq.f32.partialorder %v8013_v27, %v7258_v30  ;;  %v8412_v33 = vsel %vm18744_vm13, %v7256_v53, 0.0  ;;  %14926 = vrcp.f32 %v6196_v51 }
 0x428   : > { %v14915_v37 = vpop.eup %14914  ;;  %v8413_v45 = vsel %vm8213_vm14, %v7258_v30, 0.0  ;;  %v6197_v6 = vadd.f32 1.0, %v14909_v38  ;;  %v6198_v18 = vadd.f32 1.0, %v14911_v55  ;;  %v18754_v40 = vmax.f32 %v14897_v56, %v18742_v11 }
 0x429   : > { %v14917_v43 = vpop.eup %14916  ;;  %13367 = vst [vmem:[%s15729_s24 + $0x460] sm:$0xff] %v12768_v1   ;;  %v12773_v26 = vpack.c.bf16 %v8413_v45, %v8412_v33  ;;  %v6199_v32 = vadd.f32 1.0, %v14913_v16  ;;  %v6200_v15 = vadd.f32 1.0, %v14915_v37  ;;  %v5225_v8 = vunpack.c.h.bf16 %v18710_v31 }
 0x42a   : > { %v14919_v61 = vpop.eup %14918  ;;  %14928 = vrcp.f32 %v6197_v6  ;;  %v6201_v57 = vadd.f32 1.0, %v14917_v43  ;;  %v7261_v5 = vrot.slane %v18725_v29, 1  ;;  %v5226_v59 = vunpack.c.l.bf16 %v10237_v36 }
 0x42b   : > { %v14921_v48 = vpop.eup %14920  ;;  %13368 = vst [vmem:[%s15729_s24 + $0x468] sm:$0xff] %v12773_v26   ;;  %14930 = vrcp.f32 %v6198_v18  ;;  %v6202_v9 = vadd.f32 1.0, %v14919_v61  ;;  %v8014_v56 = vmax.f32 %v18687_v28, %v18754_v40  ;;  %v10478_v12 = vmul.f32 -1.442695, %v12399_v17 }
 0x42c   : > { %14932 = vrcp.f32 %v6199_v32  ;;  %v6203_v49 = vadd.f32 1.0, %v14921_v48  ;;  %v10479_v20 = vmul.f32 -1.442695, %v12400_v44  ;;  %v12407_v10 = vunpack.c.l.bf16 %v13287_v39 }
 0x42d   : > { %v14923_v41 = vpop.eup %14922  ;;  %14934 = vrcp.f32 %v6200_v15  ;;  %v12408_v58 = vunpack.c.h.bf16 %v13287_v39  ;;  %v10480_v31 = vmul.f32 -1.442695, %v12403_v60  ;;  %v10481_v62 = vmul.f32 -1.442695, %v12404_v4 }
 0x42e   : > { %v7262_v50 = vrot.slane %v14923_v41, 1  ;;  %14936 = vrcp.f32 %v6201_v57  ;;  %v10482_v47 = vmul.f32 -1.442695, %v5225_v8  ;;  %v10483_v35 = vmul.f32 -1.442695, %v5226_v59 }
 0x42f   : > { %14938 = vrcp.f32 %v6202_v9  ;;  %vm18771_vm15 = vcmp.eq.f32.partialorder %v8014_v56, %v18742_v11  ;;  %v12411_v23 = vunpack.c.l.bf16 %v18764_v7  ;;  %v18776_v17 = vmul.f32 -1.442695, %v12407_v10 }
 0x430   : > { %v14925_v53 = vpop.eup %14924  ;;  %v7263_v14 = vsel %vm2346_vm0, %v7261_v5, %v7262_v50  ;;  %14940 = vrcp.f32 %v6203_v49  ;;  %v18778_v0 = vmul.f32 -1.442695, %v12408_v58  ;;  %v8414_v38 = vsel %vm18771_vm15, %v18742_v11, 0.0 }
 0x431   : > { %v18768_v28 = vmax.f32 %v18725_v29, %v7263_v14  ;;  %v7264_v21 = vrot.slane %v14925_v53, 1  ;;  %14942 = vpow2.f32 %v10477_v34  ;;  %v14927_v24 = vpop.eup %14926  ;;  %v12412_v27 = vunpack.c.h.bf16 %v18764_v7 }
 0x432   : > { %14944 = vpow2.f32 %v10478_v12  ;;  %v7266_v2 = vrot.slane %v14927_v24, 1 }
 0x433   : > { %v8015_v52 = vmax.f32 %v18716_v3, %v18768_v28  ;;  %v7265_v29 = vsel %vm2346_vm0, %v7262_v50, %v7264_v21  ;;  %14946 = vpow2.f32 %v10479_v20  ;;  %v10487_v18 = vmul.f32 -1.442695, %v12412_v27 }
 0x434   : > { %v14929_v22 = vpop.eup %14928  ;;  %v7794_v54 = vmax.f32 %v14923_v41, %v7265_v29  ;;  %14948 = vpow2.f32 %v10480_v31  ;;  %v7267_v42 = vsel %vm2346_vm0, %v7264_v21, %v7266_v2 }
 0x435   : > { %v14931_v55 = vpop.eup %14930  ;;  %vm8215_vm1 = vcmp.eq.f32.partialorder %v8015_v52, %v7263_v14  ;;  %v7268_v46 = vrot.slane %v14929_v22, 1  ;;  %14950 = vpow2.f32 %v10481_v62  ;;  %v18788_v16 = vmax.f32 %v14925_v53, %v7267_v42 }
 0x436   : > { %v14933_v3 = vpop.eup %14932  ;;  %v8415_v51 = vsel %vm8215_vm1, %v7263_v14, 0.0  ;;  %v8016_v1 = vmax.f32 %v18721_v25, %v7794_v54  ;;  %v7270_v33 = vrot.slane %v14931_v55, 1  ;;  %14952 = vpow2.f32 %v10482_v47 }
 0x437   : > { %v14935_v44 = vpop.eup %14934  ;;  %v12778_v11 = vpack.c.bf16 %v8415_v51, %v8414_v38  ;;  %v7269_v19 = vsel %vm2346_vm0, %v7266_v2, %v7268_v46  ;;  %v7272_v37 = vrot.slane %v14933_v3, 1  ;;  %v8017_v6 = vmax.f32 %v18730_v13, %v18788_v16 }
 0x438   : > { %v14937_v45 = vpop.eup %14936  ;;  %vm18794_vm2 = vcmp.eq.f32.partialorder %v8016_v1, %v7265_v29  ;;  %v7271_v43 = vsel %vm2346_vm0, %v7268_v46, %v7270_v33  ;;  %v7796_v26 = vmax.f32 %v14927_v24, %v7269_v19  ;;  %v7273_v36 = vrot.slane %v14935_v44, 1 }
 0x439   : > { %v14939_v32 = vpop.eup %14938  ;;  %13369 = vst [vmem:[%s15729_s24 + $0x470] sm:$0xff] %v12778_v11   ;;  %v8416_v25 = vsel %vm18794_vm2, %v7265_v29, 0.0  ;;  %v18802_v15 = vmax.f32 %v14929_v22, %v7271_v43  ;;  %v7275_v61 = vrot.slane %v14937_v45, 1  ;;  %vm8217_vm3 = vcmp.eq.f32.partialorder %v8017_v6, %v7267_v42  ;;  %v18832_v29 = vld [vmem:[%s15665_s29 + $0x5e0] ss:$24 sps:$4 sm:$0xff]  }
 0x43a   : > { %v18804_v57 = vpop.eup %14940  ;;  %v8018_v13 = vmax.f32 %v18734_v63, %v7796_v26  ;;  %v7277_v34 = vrot.slane %v14939_v32, 1  ;;  %14954 = vpow2.f32 %v10483_v35  ;;  %v8417_v48 = vsel %vm8217_vm3, %v7267_v42, 0.0 }
 0x43b   : > { %v14943_v60 = vpop.eup %14942  ;;  %v8019_v9 = vmax.f32 %v18754_v40, %v18802_v15  ;;  %v7274_v4 = vsel %vm2346_vm0, %v7272_v37, %v7273_v36  ;;  %v7276_v8 = vsel %vm2346_vm0, %v7273_v36, %v7275_v61  ;;  %v12783_v5 = vpack.c.bf16 %v8417_v48, %v8416_v25 }
 0x43c   : > { %v14945_v39 = vpop.eup %14944  ;;  %vm8218_vm4 = vcmp.eq.f32.partialorder %v8018_v13, %v7269_v19  ;;  %v18811_v49 = vmax.f32 %v14933_v3, %v7274_v4  ;;  %v18813_v59 = vmax.f32 %v14935_v44, %v7276_v8  ;;  %v7278_v56 = vsel %vm2346_vm0, %v7275_v61, %v7277_v34  ;;  %v13289_v3 = vld [vmem:[%s15665_s29 + $0x5e8] sm:$0xff]  }
 0x43d   : > { %v14947_v63 = vpop.eup %14946  ;;  %vm8219_vm5 = vcmp.eq.f32.partialorder %v8019_v9, %v7271_v43  ;;  %v8418_v41 = vsel %vm8218_vm4, %v7269_v19, 0.0  ;;  %v7279_v12 = vrot.slane %v18804_v57, 1  ;;  %13370 = vst [vmem:[%s15729_s24 + $0x478] sm:$0xff] %v12783_v5   ;;  %v18821_v58 = vmax.f32 %v14937_v45, %v7278_v56  ;;  %v13290_v19 = vld [vmem:[%s15665_s29 + $0x5f0] sm:$0xff]  }
 0x43e   : > { %v14949_v20 = vpop.eup %14948  ;;  %v8419_v40 = vsel %vm8219_vm5, %v7271_v43, 0.0  ;;  %v8020_v50 = vmax.f32 %v18768_v28, %v18811_v49  ;;  %v8021_v10 = vmax.f32 %v7794_v54, %v18813_v59  ;;  %v6204_v14 = vadd.f32 1.0, %v14943_v60  ;;  %v10243_v54 = vld [vmem:[%s15665_s29 + $0x5e4] sm:$0x1] }
 0x43f   : > { %v14951_v31 = vpop.eup %14950  ;;  %v12788_v62 = vpack.c.bf16 %v8419_v40, %v8418_v41  ;;  %v7280_v53 = vsel %vm2346_vm0, %v7277_v34, %v7279_v12  ;;  %v6205_v47 = vadd.f32 1.0, %v14945_v39  ;;  %v8022_v28 = vmax.f32 %v18788_v16, %v18821_v58 }
 0x440   : > { %vm8220_vm6 = vcmp.eq.f32.partialorder %v8020_v50, %v7274_v4  ;;  %vm8221_vm7 = vcmp.eq.f32.partialorder %v8021_v10, %v7276_v8  ;;  %v18826_v35 = vmax.f32 %v14939_v32, %v7280_v53  ;;  %v14953_v30 = vpop.eup %14952  ;;  %v6206_v52 = vadd.f32 1.0, %v14947_v63  ;;  %v18860_v63 = vld [vmem:[%s15665_s29 + $0x5fc] sm:$0x1] }
 0x441   : > { %13371 = vst [vmem:[%s15729_s24 + $0x480] sm:$0xff] %v12788_v62   ;;  %v8420_v21 = vsel %vm8220_vm6, %v7274_v4, 0.0  ;;  %v8421_v24 = vsel %vm8221_vm7, %v7276_v8, 0.0  ;;  %14956 = vrcp.f32 %v6204_v14  ;;  %vm18835_vm8 = vcmp.eq.f32.partialorder %v8022_v28, %v7278_v56 }
 0x442   : > { %v12793_v2 = vpack.c.bf16 %v8421_v24, %v8420_v21  ;;  %v8023_v22 = vmax.f32 %v7796_v26, %v18826_v35  ;;  %14958 = vrcp.f32 %v6205_v47  ;;  %v8422_v55 = vsel %vm18835_vm8, %v7278_v56, 0.0 }
 0x443   : > { %14960 = vrcp.f32 %v6206_v52  ;;  %v6207_v42 = vadd.f32 1.0, %v14949_v20  ;;  %v6208_v46 = vadd.f32 1.0, %v14951_v31  ;;  %v6209_v16 = vadd.f32 1.0, %v14953_v30 }
 0x444   : > { %v14955_v51 = vpop.eup %14954  ;;  %13372 = vst [vmem:[%s15729_s24 + $0x488] sm:$0xff] %v12793_v2   ;;  %vm8223_vm9 = vcmp.eq.f32.partialorder %v8023_v22, %v7280_v53  ;;  %14962 = vpow2.f32 %v18776_v17  ;;  %v5231_v1 = vunpack.c.l.bf16 %v18832_v29  ;;  %v5232_v11 = vunpack.c.l.bf16 %v10243_v54 }
 0x445   : > { %v8423_v33 = vsel %vm8223_vm9, %v7280_v53, 0.0  ;;  %14964 = vrcp.f32 %v6207_v42  ;;  %v6210_v44 = vadd.f32 1.0, %v14955_v51  ;;  %v10486_v45 = vmul.f32 -1.442695, %v12411_v23 }
 0x446   : > { %v12798_v37 = vpack.c.bf16 %v8423_v33, %v8422_v55  ;;  %14966 = vrcp.f32 %v6208_v46  ;;  %v12415_v6 = vunpack.c.l.bf16 %v13289_v3  ;;  %v12416_v43 = vunpack.c.h.bf16 %v13289_v3 }
 0x447   : > { %14968 = vrcp.f32 %v6209_v16  ;;  %v10488_v17 = vmul.f32 -1.442695, %v5231_v1  ;;  %v12419_v26 = vunpack.c.l.bf16 %v13290_v19  ;;  %v10489_v32 = vmul.f32 -1.442695, %v5232_v11 }
 0x448   : > { %13373 = vst [vmem:[%s15729_s24 + $0x490] sm:$0xff] %v12798_v37   ;;  %14970 = vrcp.f32 %v6210_v44  ;;  %v10490_v25 = vmul.f32 -1.442695, %v12415_v6  ;;  %v12420_v36 = vunpack.c.h.bf16 %v13290_v19  ;;  %v10491_v13 = vmul.f32 -1.442695, %v12416_v43 }
 0x449   : > { %14972 = vpow2.f32 %v18778_v0  ;;  %v10492_v7 = vmul.f32 -1.442695, %v12419_v26  ;;  %v5237_v40 = vunpack.c.h.bf16 %v18832_v29  ;;  %v5238_v14 = vunpack.c.l.bf16 %v18860_v63 }
 0x44a   : > { %14974 = vpow2.f32 %v10486_v45  ;;  %v10493_v4 = vmul.f32 -1.442695, %v12420_v36 }
 0x44b   : > { %v14957_v61 = vpop.eup %14956  ;;  %14976 = vpow2.f32 %v10487_v18 }
 0x44c   : > { %v14959_v23 = vpop.eup %14958  ;;  %v7281_v34 = vrot.slane %v14957_v61, 1  ;;  %14978 = vpow2.f32 %v10488_v17 }
 0x44d   : > { %v14961_v27 = vpop.eup %14960  ;;  %v7283_v60 = vrot.slane %v14959_v23, 1  ;;  %14980 = vpow2.f32 %v10489_v32 }
 0x44e   : > { %v14963_v48 = vpop.eup %14962  ;;  %v7282_v0 = vsel %vm2346_vm0, %v7279_v12, %v7281_v34  ;;  %v7284_v9 = vrot.slane %v14961_v27, 1  ;;  %14982 = vpow2.f32 %v10490_v25 }
 0x44f   : > { %v14965_v8 = vpop.eup %14964  ;;  %v18857_v39 = vmax.f32 %v18804_v57, %v7282_v0  ;;  %v6211_v5 = vadd.f32 1.0, %v14963_v48  ;;  %14984 = vpow2.f32 %v10491_v13 }
 0x450   : > { %v14967_v41 = vpop.eup %14966  ;;  %v7285_v56 = vsel %vm2346_vm0, %v7283_v60, %v7284_v9  ;;  %v7286_v20 = vrot.slane %v14965_v8, 1  ;;  %14986 = vpow2.f32 %v10492_v7  ;;  %v13292_v7 = vld [vmem:[%s15665_s29 + $0x608] sm:$0xff]  }
 0x451   : > { %v14969_v50 = vpop.eup %14968  ;;  %v18864_v12 = vmax.f32 %v14959_v23, %v7285_v56  ;;  %v8024_v10 = vmax.f32 %v18802_v15, %v18857_v39  ;;  %v7288_v31 = vrot.slane %v14967_v41, 1  ;;  %14988 = vrcp.f32 %v6211_v5  ;;  %v18917_v5 = vld [vmem:[%s15665_s29 + $0x618] sm:$0xff]  }
 0x452   : > { %v14971_v57 = vpop.eup %14970  ;;  %v7287_v62 = vsel %vm2346_vm0, %v7284_v9, %v7286_v20  ;;  %v7290_v53 = vrot.slane %v14969_v50, 1  ;;  %14990 = vpow2.f32 %v10493_v4  ;;  %v18914_v9 = vld [vmem:[%s15665_s29 + $0x610] ss:$24 sps:$4 sm:$0xff]  }
 0x453   : > { %v14973_v47 = vpop.eup %14972  ;;  %v8025_v28 = vmax.f32 %v18811_v49, %v18864_v12  ;;  %vm18872_vm10 = vcmp.eq.f32.partialorder %v8024_v10, %v7282_v0  ;;  %v7289_v21 = vsel %vm2346_vm0, %v7286_v20, %v7288_v31  ;;  %v18877_v15 = vmax.f32 %v14961_v27, %v7287_v62  ;;  %v10255_v20 = vld [vmem:[%s15665_s29 + $0x614] sm:$0x1] }
 0x454   : > { %v14975_v24 = vpop.eup %14974  ;;  %v8424_v52 = vsel %vm18872_vm10, %v7282_v0, 0.0  ;;  %v18881_v2 = vmax.f32 %v14965_v8, %v7289_v21  ;;  %v7291_v22 = vsel %vm2346_vm0, %v7288_v31, %v7290_v53  ;;  %v7292_v38 = vrot.slane %v14971_v57, 1 }
 0x455   : > { %v14977_v54 = vpop.eup %14976  ;;  %vm8225_vm11 = vcmp.eq.f32.partialorder %v8025_v28, %v7285_v56  ;;  %v8026_v49 = vmax.f32 %v18813_v59, %v18877_v15  ;;  %v18886_v55 = vmax.f32 %v14967_v41, %v7291_v22  ;;  %v6212_v42 = vadd.f32 1.0, %v14973_v47 }
 0x456   : > { %v14979_v46 = vpop.eup %14978  ;;  %v8425_v3 = vsel %vm8225_vm11, %v7285_v56, 0.0  ;;  %v8027_v51 = vmax.f32 %v18821_v58, %v18881_v2  ;;  %v7293_v16 = vsel %vm2346_vm0, %v7290_v53, %v7292_v38  ;;  %v6213_v1 = vadd.f32 1.0, %v14975_v24  ;;  %v18928_v24 = vld [vmem:[%s15665_s29 + $0x620] sm:$0xff]  }
 0x457   : > { %v14981_v33 = vpop.eup %14980  ;;  %v12803_v44 = vpack.c.bf16 %v8425_v3, %v8424_v52  ;;  %vm18891_vm12 = vcmp.eq.f32.partialorder %v8026_v49, %v7287_v62  ;;  %v18895_v59 = vmax.f32 %v14969_v50, %v7293_v16  ;;  %v8028_v19 = vmax.f32 %v18826_v35, %v18886_v55  ;;  %v13291_v35 = vld [vmem:[%s15665_s29 + $0x600] sm:$0xff]  }
 0x458   : > { %v14983_v37 = vpop.eup %14982  ;;  %vm8227_vm13 = vcmp.eq.f32.partialorder %v8027_v51, %v7289_v21  ;;  %v8426_v58 = vsel %vm18891_vm12, %v7287_v62, 0.0  ;;  %14992 = vrcp.f32 %v6212_v42  ;;  %v6214_v45 = vadd.f32 1.0, %v14977_v54 }
 0x459   : > { %v14985_v6 = vpop.eup %14984  ;;  %13374 = vst [vmem:[%s15729_s24 + $0x498] sm:$0xff] %v12803_v44   ;;  %v8427_v18 = vsel %vm8227_vm13, %v7289_v21, 0.0  ;;  %v8029_v43 = vmax.f32 %v18857_v39, %v18895_v59  ;;  %vm18904_vm14 = vcmp.eq.f32.partialorder %v8028_v19, %v7291_v22  ;;  %14994 = vrcp.f32 %v6213_v1 }
 0x45a   : > { %v14987_v26 = vpop.eup %14986  ;;  %v12808_v32 = vpack.c.bf16 %v8427_v18, %v8426_v58  ;;  %v8428_v25 = vsel %vm18904_vm14, %v7291_v22, 0.0  ;;  %v6215_v36 = vadd.f32 1.0, %v14979_v46  ;;  %14996 = vrcp.f32 %v6214_v45 }
 0x45b   : > { %v14989_v61 = vpop.eup %14988  ;;  %vm8229_vm15 = vcmp.eq.f32.partialorder %v8029_v43, %v7293_v16  ;;  %v6216_v13 = vadd.f32 1.0, %v14981_v33  ;;  %v6217_v23 = vadd.f32 1.0, %v14983_v37  ;;  %v6218_v34 = vadd.f32 1.0, %v14985_v6 }
 0x45c   : > { %v14991_v27 = vpop.eup %14990  ;;  %13375 = vst [vmem:[%s15729_s24 + $0x4a0] sm:$0xff] %v12808_v32   ;;  %v8429_v60 = vsel %vm8229_vm15, %v7293_v16, 0.0  ;;  %14998 = vrcp.f32 %v6215_v36  ;;  %v6219_v48 = vadd.f32 1.0, %v14987_v26  ;;  %v12423_v0 = vunpack.c.l.bf16 %v13291_v35 }
 0x45d   : > { %v12813_v4 = vpack.c.bf16 %v8429_v60, %v8428_v25  ;;  %15000 = vrcp.f32 %v6216_v13  ;;  %v6220_v8 = vadd.f32 1.0, %v14991_v27  ;;  %v12424_v39 = vunpack.c.h.bf16 %v13291_v35 }
 0x45e   : > { %15002 = vrcp.f32 %v6217_v23  ;;  %v10494_v41 = vmul.f32 -1.442695, %v5237_v40  ;;  %v12427_v56 = vunpack.c.l.bf16 %v13292_v7  ;;  %v10495_v50 = vmul.f32 -1.442695, %v5238_v14 }
 0x45f   : > { %13376 = vst [vmem:[%s15729_s24 + $0x4a8] sm:$0xff] %v12813_v4   ;;  %15004 = vrcp.f32 %v6218_v34  ;;  %v12428_v10 = vunpack.c.h.bf16 %v13292_v7  ;;  %v5243_v31 = vunpack.c.l.bf16 %v18914_v9  ;;  %v10496_v57 = vmul.f32 -1.442695, %v12423_v0 }
 0x460   : > { %15006 = vrcp.f32 %v6219_v48  ;;  %v12431_v62 = vunpack.c.l.bf16 %v18917_v5  ;;  %v7294_v53 = vrot.slane %v14989_v61, 1  ;;  %v10497_v47 = vmul.f32 -1.442695, %v12424_v39 }
 0x461   : > { %15008 = vrcp.f32 %v6220_v8  ;;  %v5244_v29 = vunpack.c.l.bf16 %v10255_v20  ;;  %v10498_v28 = vmul.f32 -1.442695, %v12427_v56  ;;  %v10499_v63 = vmul.f32 -1.442695, %v12428_v10 }
 0x462   : > { %v14993_v40 = vpop.eup %14992  ;;  %15010 = vpow2.f32 %v10494_v41  ;;  %v10500_v14 = vmul.f32 -1.442695, %v5243_v31  ;;  %v12432_v38 = vunpack.c.h.bf16 %v18917_v5  ;;  %v18931_v54 = vmul.f32 -1.442695, %v12431_v62 }
 0x463   : > { %v14995_v30 = vpop.eup %14994  ;;  %v7295_v21 = vrot.slane %v14993_v40, 1  ;;  %15012 = vpow2.f32 %v10495_v50  ;;  %v10501_v46 = vmul.f32 -1.442695, %v5244_v29  ;;  %v12435_v1 = vunpack.c.l.bf16 %v18928_v24 }
 0x464   : > { %v14997_v52 = vpop.eup %14996  ;;  %v7297_v22 = vrot.slane %v14995_v30, 1  ;;  %15014 = vpow2.f32 %v10496_v57 }
 0x465   : > { %v7296_v49 = vsel %vm2346_vm0, %v7294_v53, %v7295_v21  ;;  %v7299_v42 = vrot.slane %v14997_v52, 1  ;;  %15016 = vpow2.f32 %v10497_v47 }
 0x466   : > { %v14999_v3 = vpop.eup %14998  ;;  %v7298_v51 = vsel %vm2346_vm0, %v7295_v21, %v7297_v22  ;;  %v7808_v16 = vmax.f32 %v14989_v61, %v7296_v49  ;;  %15018 = vpow2.f32 %v10498_v28 }
 0x467   : > { %v15001_v33 = vpop.eup %15000  ;;  %v18936_v44 = vmax.f32 %v14993_v40, %v7298_v51  ;;  %v7300_v11 = vsel %vm2346_vm0, %v7297_v22, %v7299_v42  ;;  %v7301_v19 = vrot.slane %v14999_v3, 1  ;;  %15020 = vpow2.f32 %v10499_v63 }
 0x468   : > { %v15003_v37 = vpop.eup %15002  ;;  %v8030_v58 = vmax.f32 %v18864_v12, %v7808_v16  ;;  %v18940_v45 = vmax.f32 %v14995_v30, %v7300_v11  ;;  %v7303_v6 = vrot.slane %v15001_v33, 1  ;;  %15022 = vpow2.f32 %v10500_v14 }
 0x469   : > { %v15005_v18 = vpop.eup %15004  ;;  %v8031_v43 = vmax.f32 %v18877_v15, %v18936_v44  ;;  %v7302_v17 = vsel %vm2346_vm0, %v7299_v42, %v7301_v19  ;;  %v7305_v35 = vrot.slane %v15003_v37, 1  ;;  %15024 = vpow2.f32 %v10501_v46 }
 0x46a   : > { %v15007_v26 = vpop.eup %15006  ;;  %vm8230_vm1 = vcmp.eq.f32.partialorder %v8030_v58, %v7296_v49  ;;  %v18945_v32 = vmax.f32 %v14997_v52, %v7302_v17  ;;  %v8032_v25 = vmax.f32 %v18881_v2, %v18940_v45  ;;  %v7304_v12 = vsel %vm2346_vm0, %v7301_v19, %v7303_v6 }
 0x46b   : > { %v18950_v36 = vpop.eup %15008  ;;  %vm8231_vm2 = vcmp.eq.f32.partialorder %v8031_v43, %v7298_v51  ;;  %v8430_v61 = vsel %vm8230_vm1, %v7296_v49, 0.0  ;;  %v7306_v13 = vrot.slane %v15005_v18, 1  ;;  %v18952_v23 = vmax.f32 %v14999_v3, %v7304_v12 }
 0x46c   : > { %v15011_v15 = vpop.eup %15010  ;;  %v8431_v34 = vsel %vm8231_vm2, %v7298_v51, 0.0  ;;  %v8033_v7 = vmax.f32 %v18886_v55, %v18945_v32  ;;  %vm18956_vm3 = vcmp.eq.f32.partialorder %v8032_v25, %v7300_v11  ;;  %v7308_v2 = vrot.slane %v15007_v26, 1 }
 0x46d   : > { %v15013_v60 = vpop.eup %15012  ;;  %v12818_v48 = vpack.c.bf16 %v8431_v34, %v8430_v61  ;;  %v8432_v0 = vsel %vm18956_vm3, %v7300_v11, 0.0  ;;  %v7307_v4 = vsel %vm2346_vm0, %v7305_v35, %v7306_v13  ;;  %v8034_v8 = vmax.f32 %v18895_v59, %v18952_v23  ;;  %v19003_v35 = vld [vmem:[%s15665_s29 + $0x638] sm:$0xff]  }
 0x46e   : > { %v15015_v39 = vpop.eup %15014  ;;  %vm8233_vm4 = vcmp.eq.f32.partialorder %v8033_v7, %v7302_v17  ;;  %v18965_v41 = vmax.f32 %v15003_v37, %v7307_v4  ;;  %v7309_v55 = vsel %vm2346_vm0, %v7306_v13, %v7308_v2  ;;  %v7310_v56 = vrot.slane %v18950_v36, 1  ;;  %v13295_v37 = vld [vmem:[%s15665_s29 + $0x630] sm:$0xff]  }
 0x46f   : > { %v15017_v20 = vpop.eup %15016  ;;  %13377 = vst [vmem:[%s15729_s24 + $0x4b0] sm:$0xff] %v12818_v48   ;;  %v8433_v50 = vsel %vm8233_vm4, %v7302_v17, 0.0  ;;  %vm18970_vm5 = vcmp.eq.f32.partialorder %v8034_v8, %v7304_v12  ;;  %v18974_v31 = vmax.f32 %v15005_v18, %v7309_v55  ;;  %v6221_v57 = vadd.f32 1.0, %v15011_v15 }
 0x470   : > { %v15019_v59 = vpop.eup %15018  ;;  %v12823_v62 = vpack.c.bf16 %v8433_v50, %v8432_v0  ;;  %v8035_v53 = vmax.f32 %v7808_v16, %v18965_v41  ;;  %v8434_v47 = vsel %vm18970_vm5, %v7304_v12, 0.0  ;;  %v7311_v29 = vsel %vm2346_vm0, %v7308_v2, %v7310_v56 }
 0x471   : > { %v15021_v40 = vpop.eup %15020  ;;  %v18982_v28 = vmax.f32 %v15007_v26, %v7311_v29  ;;  %v8036_v30 = vmax.f32 %v18936_v44, %v18974_v31  ;;  %v6222_v21 = vadd.f32 1.0, %v15013_v60  ;;  %15026 = vrcp.f32 %v6221_v57  ;;  %v10261_v44 = vld [vmem:[%s15665_s29 + $0x62c] sm:$0x1] }
 0x472   : > { %v15023_v63 = vpop.eup %15022  ;;  %13378 = vst [vmem:[%s15729_s24 + $0x4b8] sm:$0xff] %v12823_v62   ;;  %vm8235_vm6 = vcmp.eq.f32.partialorder %v8035_v53, %v7307_v4  ;;  %v6223_v14 = vadd.f32 1.0, %v15015_v39  ;;  %v6224_v52 = vadd.f32 1.0, %v15017_v20  ;;  %v6225_v22 = vadd.f32 1.0, %v15019_v59 }
 0x473   : > { %v15025_v49 = vpop.eup %15024  ;;  %v8435_v42 = vsel %vm8235_vm6, %v7307_v4, 0.0  ;;  %v8037_v46 = vmax.f32 %v18940_v45, %v18982_v28  ;;  %vm18989_vm7 = vcmp.eq.f32.partialorder %v8036_v30, %v7309_v55  ;;  %15028 = vrcp.f32 %v6222_v21  ;;  %v19017_v4 = vld [vmem:[%s15665_s29 + $0x640] ss:$24 sps:$4 sm:$0xff]  }
 0x474   : > { %v12828_v51 = vpack.c.bf16 %v8435_v42, %v8434_v47  ;;  %v8436_v16 = vsel %vm18989_vm7, %v7309_v55, 0.0  ;;  %15030 = vrcp.f32 %v6223_v14  ;;  %v6226_v33 = vadd.f32 1.0, %v15021_v40 }
 0x475   : > { %vm8237_vm8 = vcmp.eq.f32.partialorder %v8037_v46, %v7311_v29  ;;  %15032 = vrcp.f32 %v6224_v52  ;;  %v6227_v11 = vadd.f32 1.0, %v15023_v63  ;;  %v12436_v19 = vunpack.c.h.bf16 %v18928_v24 }
 0x476   : > { %13379 = vst [vmem:[%s15729_s24 + $0x4c0] sm:$0xff] %v12828_v51   ;;  %v8437_v58 = vsel %vm8237_vm8, %v7311_v29, 0.0  ;;  %15034 = vrcp.f32 %v6225_v22  ;;  %v10503_v45 = vmul.f32 -1.442695, %v12432_v38  ;;  %v5249_v6 = vunpack.c.h.bf16 %v18914_v9 }
 0x477   : > { %v12833_v18 = vpack.c.bf16 %v8437_v58, %v8436_v16  ;;  %15036 = vrcp.f32 %v6226_v33  ;;  %v6228_v43 = vadd.f32 1.0, %v15025_v49  ;;  %v5250_v17 = vunpack.c.l.bf16 %v10261_v44 }
 0x478   : > { %15038 = vrcp.f32 %v6227_v11  ;;  %v10504_v26 = vmul.f32 -1.442695, %v12435_v1  ;;  %v12439_v25 = vunpack.c.l.bf16 %v13295_v37  ;;  %v10505_v12 = vmul.f32 -1.442695, %v12436_v19 }
 0x479   : > { %13380 = vst [vmem:[%s15729_s24 + $0x4c8] sm:$0xff] %v12833_v18   ;;  %15040 = vpow2.f32 %v18931_v54  ;;  %v12440_v61 = vunpack.c.h.bf16 %v13295_v37  ;;  %v10506_v5 = vmul.f32 -1.442695, %v5249_v6  ;;  %v12443_v9 = vunpack.c.l.bf16 %v19003_v35  ;;  %v10267_v18 = vld [vmem:[%s15665_s29 + $0x644] sm:$0x1] }
 0x47a   : > { %15042 = vpow2.f32 %v10503_v45  ;;  %v10507_v13 = vmul.f32 -1.442695, %v5250_v17  ;;  %v10508_v34 = vmul.f32 -1.442695, %v12439_v25  ;;  %v12444_v20 = vunpack.c.h.bf16 %v19003_v35 }
 0x47b   : > { %v15027_v38 = vpop.eup %15026  ;;  %15044 = vrcp.f32 %v6228_v43  ;;  %v10509_v24 = vmul.f32 -1.442695, %v12440_v61  ;;  %v10510_v2 = vmul.f32 -1.442695, %v12443_v9  ;;  %v5255_v53 = vunpack.c.l.bf16 %v19017_v4 }
 0x47c   : > { %v7312_v15 = vrot.slane %v15027_v38, 1  ;;  %15046 = vpow2.f32 %v10504_v26  ;;  %v5261_v35 = vunpack.c.h.bf16 %v19017_v4 }
 0x47d   : > { %v15029_v7 = vpop.eup %15028  ;;  %15048 = vpow2.f32 %v10505_v12 }
 0x47e   : > { %v15031_v1 = vpop.eup %15030  ;;  %v7313_v54 = vsel %vm2346_vm0, %v7310_v56, %v7312_v15  ;;  %v7314_v27 = vrot.slane %v15029_v7, 1  ;;  %15050 = vpow2.f32 %v10506_v5  ;;  %v5256_v7 = vunpack.c.l.bf16 %v10267_v18 }
 0x47f   : > { %v15033_v60 = vpop.eup %15032  ;;  %v19014_v48 = vmax.f32 %v18950_v36, %v7313_v54  ;;  %v7316_v0 = vrot.slane %v15031_v1, 1  ;;  %15052 = vpow2.f32 %v10507_v13 }
 0x480   : > { %v15035_v8 = vpop.eup %15034  ;;  %v7315_v39 = vsel %vm2346_vm0, %v7312_v15, %v7314_v27  ;;  %v7317_v55 = vrot.slane %v15033_v60, 1  ;;  %15054 = vpow2.f32 %v10508_v34  ;;  %v13297_v34 = vld [vmem:[%s15665_s29 + $0x648] sm:$0xff]  }
 0x481   : > { %v15037_v50 = vpop.eup %15036  ;;  %v19021_v56 = vmax.f32 %v15027_v38, %v7315_v39  ;;  %v8038_v10 = vmax.f32 %v18945_v32, %v19014_v48  ;;  %v7319_v57 = vrot.slane %v15035_v8, 1  ;;  %15056 = vpow2.f32 %v10509_v24 }
 0x482   : > { %v15039_v36 = vpop.eup %15038  ;;  %v7318_v59 = vsel %vm2346_vm0, %v7316_v0, %v7317_v55  ;;  %v7321_v62 = vrot.slane %v15037_v50, 1  ;;  %15058 = vpow2.f32 %v10510_v2  ;;  %v13298_v0 = vld [vmem:[%s15665_s29 + $0x650] sm:$0xff]  }
 0x483   : > { %v15041_v47 = vpop.eup %15040  ;;  %v8039_v29 = vmax.f32 %v18952_v23, %v19021_v56  ;;  %vm19029_vm9 = vcmp.eq.f32.partialorder %v8038_v10, %v7313_v54  ;;  %v7320_v30 = vsel %vm2346_vm0, %v7317_v55, %v7319_v57  ;;  %v19034_v32 = vmax.f32 %v15031_v1, %v7318_v59 }
 0x484   : > { %v15043_v21 = vpop.eup %15042  ;;  %v8438_v63 = vsel %vm19029_vm9, %v7313_v54, 0.0  ;;  %v19038_v14 = vmax.f32 %v15033_v60, %v7320_v30  ;;  %v7322_v52 = vsel %vm2346_vm0, %v7319_v57, %v7321_v62  ;;  %v7323_v22 = vrot.slane %v15039_v36, 1 }
 0x485   : > { %v15045_v49 = vpop.eup %15044  ;;  %vm8239_vm10 = vcmp.eq.f32.partialorder %v8039_v29, %v7315_v39  ;;  %v8040_v23 = vmax.f32 %v18965_v41, %v19034_v32  ;;  %v19043_v42 = vmax.f32 %v15035_v8, %v7322_v52  ;;  %v6229_v46 = vadd.f32 1.0, %v15041_v47 }
 0x486   : > { %v15047_v3 = vpop.eup %15046  ;;  %v8439_v51 = vsel %vm8239_vm10, %v7315_v39, 0.0  ;;  %v8041_v16 = vmax.f32 %v18974_v31, %v19038_v14  ;;  %v7324_v33 = vsel %vm2346_vm0, %v7321_v62, %v7323_v22  ;;  %v6230_v44 = vadd.f32 1.0, %v15043_v21  ;;  %v19086_v21 = vld [vmem:[%s15665_s29 + $0x65c] sm:$0x1] }
 0x487   : > { %v15049_v11 = vpop.eup %15048  ;;  %v12838_v19 = vpack.c.bf16 %v8439_v51, %v8438_v63  ;;  %vm19048_vm11 = vcmp.eq.f32.partialorder %v8040_v23, %v7318_v59  ;;  %v19052_v41 = vmax.f32 %v15037_v50, %v7324_v33  ;;  %v8042_v58 = vmax.f32 %v18982_v28, %v19043_v42 }
 0x488   : > { %v15051_v45 = vpop.eup %15050  ;;  %vm8241_vm12 = vcmp.eq.f32.partialorder %v8041_v16, %v7320_v30  ;;  %v8440_v6 = vsel %vm19048_vm11, %v7318_v59, 0.0  ;;  %15060 = vrcp.f32 %v6229_v46  ;;  %v7325_v31 = vrot.slane %v15045_v49, 1 }
 0x489   : > { %v15053_v43 = vpop.eup %15052  ;;  %13381 = vst [vmem:[%s15729_s24 + $0x4d0] sm:$0xff] %v12838_v19   ;;  %v8441_v17 = vsel %vm8241_vm12, %v7320_v30, 0.0  ;;  %v8043_v26 = vmax.f32 %v19014_v48, %v19052_v41  ;;  %vm19062_vm13 = vcmp.eq.f32.partialorder %v8042_v58, %v7322_v52  ;;  %15062 = vrcp.f32 %v6230_v44 }
 0x48a   : > { %v15055_v28 = vpop.eup %15054  ;;  %v12843_v12 = vpack.c.bf16 %v8441_v17, %v8440_v6  ;;  %v8442_v61 = vsel %vm19062_vm13, %v7322_v52, 0.0  ;;  %v19069_v5 = vsel %vm2346_vm0, %v7323_v22, %v7325_v31  ;;  %v6231_v9 = vadd.f32 1.0, %v15047_v3  ;;  %v19089_v52 = vld [vmem:[%s15665_s29 + $0x660] sm:$0xff]  }
 0x48b   : > { %v15057_v38 = vpop.eup %15056  ;;  %vm8243_vm14 = vcmp.eq.f32.partialorder %v8043_v26, %v7324_v33  ;;  %v6232_v13 = vadd.f32 1.0, %v15049_v11  ;;  %v6233_v15 = vadd.f32 1.0, %v15051_v45  ;;  %v6234_v54 = vadd.f32 1.0, %v15053_v43 }
 0x48c   : > { %v15059_v24 = vpop.eup %15058  ;;  %13382 = vst [vmem:[%s15729_s24 + $0x4d8] sm:$0xff] %v12843_v12   ;;  %v8443_v1 = vsel %vm8243_vm14, %v7324_v33, 0.0  ;;  %15064 = vrcp.f32 %v6231_v9  ;;  %v6235_v27 = vadd.f32 1.0, %v15055_v28  ;;  %v19074_v60 = vmax.f32 %v15039_v36, %v19069_v5 }
 0x48d   : > { %v12848_v2 = vpack.c.bf16 %v8443_v1, %v8442_v61  ;;  %15066 = vrcp.f32 %v6232_v13  ;;  %v6236_v48 = vadd.f32 1.0, %v15057_v38  ;;  %v6237_v8 = vadd.f32 1.0, %v15059_v24 }
 0x48e   : > { %15068 = vrcp.f32 %v6233_v15  ;;  %v12447_v39 = vunpack.c.l.bf16 %v13297_v34  ;;  %v10511_v55 = vmul.f32 -1.442695, %v12444_v20  ;;  %v12448_v50 = vunpack.c.h.bf16 %v13297_v34 }
 0x48f   : > { %13383 = vst [vmem:[%s15729_s24 + $0x4e0] sm:$0xff] %v12848_v2   ;;  %15070 = vrcp.f32 %v6234_v54  ;;  %v10512_v10 = vmul.f32 -1.442695, %v5255_v53  ;;  %v12451_v57 = vunpack.c.l.bf16 %v13298_v0  ;;  %v8044_v36 = vmax.f32 %v19021_v56, %v19074_v60  ;;  %v13300_v56 = vld [vmem:[%s15665_s29 + $0x668] sm:$0xff]  }
 0x490   : > { %15072 = vrcp.f32 %v6235_v27  ;;  %v10513_v59 = vmul.f32 -1.442695, %v5256_v7  ;;  %v12452_v62 = vunpack.c.h.bf16 %v13298_v0  ;;  %v10514_v29 = vmul.f32 -1.442695, %v12447_v39 }
 0x491   : > { %15074 = vrcp.f32 %v6236_v48  ;;  %v10515_v30 = vmul.f32 -1.442695, %v12448_v50  ;;  %v10516_v63 = vmul.f32 -1.442695, %v12451_v57  ;;  %vm19092_vm15 = vcmp.eq.f32.partialorder %v8044_v36, %v19069_v5 }
 0x492   : > { %v15061_v47 = vpop.eup %15060  ;;  %15076 = vrcp.f32 %v6237_v8  ;;  %v10517_v22 = vmul.f32 -1.442695, %v12452_v62  ;;  %v5262_v23 = vunpack.c.l.bf16 %v19086_v21  ;;  %v10518_v46 = vmul.f32 -1.442695, %v5261_v35 }
 0x493   : > { %v15063_v20 = vpop.eup %15062  ;;  %v7327_v40 = vrot.slane %v15061_v47, 1  ;;  %15078 = vpow2.f32 %v10511_v55  ;;  %v12455_v33 = vunpack.c.l.bf16 %v19089_v52  ;;  %v8444_v11 = vsel %vm19092_vm15, %v19069_v5, 0.0 }
 0x494   : > { %v7328_v53 = vrot.slane %v15063_v20, 1  ;;  %15080 = vpow2.f32 %v10512_v10  ;;  %v12456_v37 = vunpack.c.h.bf16 %v19089_v52 }
 0x495   : > { %15082 = vpow2.f32 %v10513_v59 }
 0x496   : > { %v15065_v49 = vpop.eup %15064  ;;  %v7329_v4 = vsel %vm2346_vm0, %v7327_v40, %v7328_v53  ;;  %15084 = vpow2.f32 %v10514_v29 }
 0x497   : > { %v15067_v3 = vpop.eup %15066  ;;  %v19098_v51 = vmax.f32 %v15061_v47, %v7329_v4  ;;  %v7330_v16 = vrot.slane %v15065_v49, 1  ;;  %15086 = vpow2.f32 %v10515_v30 }
 0x498   : > { %v15069_v44 = vpop.eup %15068  ;;  %v7332_v19 = vrot.slane %v15067_v3, 1  ;;  %15088 = vpow2.f32 %v10516_v63 }
 0x499   : > { %v15071_v58 = vpop.eup %15070  ;;  %v8045_v45 = vmax.f32 %v19034_v32, %v19098_v51  ;;  %v7331_v6 = vsel %vm2346_vm0, %v7328_v53, %v7330_v16  ;;  %v7334_v31 = vrot.slane %v15069_v44, 1  ;;  %15090 = vpow2.f32 %v10517_v22 }
 0x49a   : > { %v15073_v18 = vpop.eup %15072  ;;  %v7333_v43 = vsel %vm2346_vm0, %v7330_v16, %v7332_v19  ;;  %v7824_v17 = vmax.f32 %v15063_v20, %v7331_v6  ;;  %v7336_v26 = vrot.slane %v15071_v58, 1  ;;  %15092 = vpow2.f32 %v10518_v46 }
 0x49b   : > { %v15075_v25 = vpop.eup %15074  ;;  %vm8245_vm1 = vcmp.eq.f32.partialorder %v8045_v45, %v7329_v4  ;;  %v19109_v28 = vmax.f32 %v15065_v49, %v7333_v43  ;;  %v7335_v12 = vsel %vm2346_vm0, %v7332_v19, %v7334_v31  ;;  %v7338_v61 = vrot.slane %v15073_v18, 1  ;;  %v10279_v19 = vld [vmem:[%s15665_s29 + $0x674] sm:$0x1] }
 0x49c   : > { %v19112_v5 = vpop.eup %15076  ;;  %v8445_v32 = vsel %vm8245_vm1, %v7329_v4, 0.0  ;;  %v8046_v9 = vmax.f32 %v19038_v14, %v7824_v17  ;;  %v7337_v38 = vsel %vm2346_vm0, %v7334_v31, %v7336_v26  ;;  %v19116_v13 = vmax.f32 %v15067_v3, %v7335_v12 }
 0x49d   : > { %v15079_v15 = vpop.eup %15078  ;;  %v12853_v34 = vpack.c.bf16 %v8445_v32, %v8444_v11  ;;  %v8047_v7 = vmax.f32 %v19043_v42, %v19109_v28  ;;  %v19120_v24 = vmax.f32 %v15069_v44, %v7337_v38  ;;  %v7339_v1 = vrot.slane %v15075_v25, 1 }
 0x49e   : > { %v15081_v54 = vpop.eup %15080  ;;  %vm19122_vm2 = vcmp.eq.f32.partialorder %v8046_v9, %v7331_v6  ;;  %v8048_v14 = vmax.f32 %v19052_v41, %v19116_v13  ;;  %v7341_v2 = vrot.slane %v19112_v5, 1  ;;  %v6238_v48 = vadd.f32 1.0, %v15079_v15 }
 0x49f   : > { %v15083_v0 = vpop.eup %15082  ;;  %13384 = vst [vmem:[%s15729_s24 + $0x4e8] sm:$0xff] %v12853_v34   ;;  %vm8247_vm3 = vcmp.eq.f32.partialorder %v8047_v7, %v7333_v43  ;;  %v8446_v42 = vsel %vm19122_vm2, %v7331_v6, 0.0  ;;  %v8049_v8 = vmax.f32 %v19074_v60, %v19120_v24  ;;  %v7340_v39 = vsel %vm2346_vm0, %v7338_v61, %v7339_v1 }
 0x4a0   : > { %v15085_v55 = vpop.eup %15084  ;;  %v8447_v50 = vsel %vm8247_vm3, %v7333_v43, 0.0  ;;  %vm8248_vm4 = vcmp.eq.f32.partialorder %v8048_v14, %v7335_v12  ;;  %v7342_v41 = vsel %vm2346_vm0, %v7339_v1, %v7341_v2  ;;  %v19138_v10 = vmax.f32 %v15073_v18, %v7340_v39  ;;  %v13301_v43 = vld [vmem:[%s15665_s29 + $0x678] sm:$0xff]  }
 0x4a1   : > { %v15087_v57 = vpop.eup %15086  ;;  %v12858_v36 = vpack.c.bf16 %v8447_v50, %v8446_v42  ;;  %vm8249_vm5 = vcmp.eq.f32.partialorder %v8049_v8, %v7337_v38  ;;  %v8448_v59 = vsel %vm8248_vm4, %v7335_v12, 0.0  ;;  %v19140_v62 = vmax.f32 %v15075_v25, %v7342_v41 }
 0x4a2   : > { %v15089_v60 = vpop.eup %15088  ;;  %v8449_v47 = vsel %vm8249_vm5, %v7337_v38, 0.0  ;;  %v8050_v29 = vmax.f32 %v19098_v51, %v19138_v10  ;;  %v6239_v35 = vadd.f32 1.0, %v15081_v54  ;;  %15094 = vrcp.f32 %v6238_v48  ;;  %v19149_v51 = vld [vmem:[%s15665_s29 + $0x670] ss:$24 sps:$4 sm:$0xff]  }
 0x4a3   : > { %v15091_v20 = vpop.eup %15090  ;;  %13385 = vst [vmem:[%s15729_s24 + $0x4f0] sm:$0xff] %v12858_v36   ;;  %v12863_v40 = vpack.c.bf16 %v8449_v47, %v8448_v59  ;;  %v8051_v30 = vmax.f32 %v7824_v17, %v19140_v62  ;;  %v6240_v53 = vadd.f32 1.0, %v15083_v0  ;;  %v6241_v63 = vadd.f32 1.0, %v15085_v55 }
 0x4a4   : > { %v15093_v22 = vpop.eup %15092  ;;  %vm8250_vm6 = vcmp.eq.f32.partialorder %v8050_v29, %v7340_v39  ;;  %15096 = vrcp.f32 %v6239_v35  ;;  %v6242_v49 = vadd.f32 1.0, %v15087_v57  ;;  %v6243_v4 = vadd.f32 1.0, %v15089_v60 }
 0x4a5   : > { %13386 = vst [vmem:[%s15729_s24 + $0x4f8] sm:$0xff] %v12863_v40   ;;  %vm8251_vm7 = vcmp.eq.f32.partialorder %v8051_v30, %v7342_v41  ;;  %v8450_v46 = vsel %vm8250_vm6, %v7340_v39, 0.0  ;;  %15098 = vrcp.f32 %v6240_v53  ;;  %v6244_v3 = vadd.f32 1.0, %v15091_v20 }
 0x4a6   : > { %v8451_v16 = vsel %vm8251_vm7, %v7342_v41, 0.0  ;;  %15100 = vrcp.f32 %v6241_v63  ;;  %v10519_v44 = vmul.f32 -1.442695, %v5262_v23  ;;  %v12459_v11 = vunpack.c.l.bf16 %v13300_v56 }
 0x4a7   : > { %v12868_v58 = vpack.c.bf16 %v8451_v16, %v8450_v46  ;;  %15102 = vrcp.f32 %v6242_v49  ;;  %v6245_v45 = vadd.f32 1.0, %v15093_v22  ;;  %v12460_v6 = vunpack.c.h.bf16 %v13300_v56 }
 0x4a8   : > { %15104 = vrcp.f32 %v6243_v4  ;;  %v10520_v31 = vmul.f32 -1.442695, %v12455_v33  ;;  %v5267_v18 = vunpack.c.l.bf16 %v19149_v51  ;;  %v10521_v17 = vmul.f32 -1.442695, %v12456_v37 }
 0x4a9   : > { %13387 = vst [vmem:[%s15729_s24 + $0x500] sm:$0xff] %v12868_v58   ;;  %15106 = vrcp.f32 %v6244_v3  ;;  %v5268_v21 = vunpack.c.l.bf16 %v10279_v19  ;;  %v10522_v23 = vmul.f32 -1.442695, %v12459_v11  ;;  %v10523_v26 = vmul.f32 -1.442695, %v12460_v6 }
 0x4aa   : > { %15108 = vpow2.f32 %v10519_v44  ;;  %v12463_v25 = vunpack.c.l.bf16 %v13301_v43  ;;  %v10524_v61 = vmul.f32 -1.442695, %v5267_v18  ;;  %v12464_v38 = vunpack.c.h.bf16 %v13301_v43 }
 0x4ab   : > { %15110 = vrcp.f32 %v6245_v45  ;;  %v10525_v33 = vmul.f32 -1.442695, %v5268_v21  ;;  %v13302_v45 = vld [vmem:[%s15665_s29 + $0x680] sm:$0xff]  }
 0x4ac   : > { %v15095_v12 = vpop.eup %15094  ;;  %15112 = vpow2.f32 %v10520_v31  ;;  %v10526_v34 = vmul.f32 -1.442695, %v12463_v25 }
 0x4ad   : > { %v7343_v32 = vrot.slane %v15095_v12, 1  ;;  %15114 = vpow2.f32 %v10521_v17 }
 0x4ae   : > { %v15097_v9 = vpop.eup %15096  ;;  %15116 = vpow2.f32 %v10522_v23 }
 0x4af   : > { %v15099_v15 = vpop.eup %15098  ;;  %v7344_v52 = vsel %vm2346_vm0, %v7341_v2, %v7343_v32  ;;  %v7345_v37 = vrot.slane %v15097_v9, 1  ;;  %15118 = vpow2.f32 %v10523_v26 }
 0x4b0   : > { %v15101_v7 = vpop.eup %15100  ;;  %v7830_v1 = vmax.f32 %v19112_v5, %v7344_v52  ;;  %v7347_v54 = vrot.slane %v15099_v15, 1  ;;  %15120 = vpow2.f32 %v10524_v61  ;;  %v19172_v5 = vmul.f32 -1.442695, %v12464_v38  ;;  %v10285_v61 = vld [vmem:[%s15665_s29 + $0x68c] sm:$0x1]  ;;  %v13303_v15 = vld [vmem:[%s15665_s29 + $0x690] sm:$0xff]  }
 0x4b1   : > { %v15103_v27 = vpop.eup %15102  ;;  %v7346_v14 = vsel %vm2346_vm0, %v7343_v32, %v7345_v37  ;;  %v7349_v48 = vrot.slane %v15101_v7, 1  ;;  %15122 = vpow2.f32 %v10525_v33  ;;  %v12468_v38 = vunpack.c.h.bf16 %v13302_v45 }
 0x4b2   : > { %v15105_v0 = vpop.eup %15104  ;;  %v19166_v42 = vmax.f32 %v15095_v12, %v7346_v14  ;;  %v8052_v8 = vmax.f32 %v19109_v28, %v7830_v1  ;;  %v7348_v2 = vsel %vm2346_vm0, %v7345_v37, %v7347_v54  ;;  %v7350_v39 = vrot.slane %v15103_v27, 1  ;;  %v19221_v54 = vld [vmem:[%s15665_s29 + $0x698] sm:$0xff]  }
 0x4b3   : > { %v15107_v55 = vpop.eup %15106  ;;  %v19170_v50 = vmax.f32 %v15097_v9, %v7348_v2  ;;  %v7352_v41 = vrot.slane %v15105_v0, 1  ;;  %15124 = vpow2.f32 %v10526_v34  ;;  %v12467_v12 = vunpack.c.l.bf16 %v13302_v45 }
 0x4b4   : > { %v15109_v57 = vpop.eup %15108  ;;  %v8053_v36 = vmax.f32 %v19116_v13, %v19166_v42  ;;  %vm19176_vm8 = vcmp.eq.f32.partialorder %v8052_v8, %v7344_v52  ;;  %v7351_v28 = vsel %vm2346_vm0, %v7349_v48, %v7350_v39  ;;  %v7354_v60 = vrot.slane %v15107_v55, 1 }
 0x4b5   : > { %v19181_v47 = vpop.eup %15110  ;;  %v8452_v29 = vsel %vm19176_vm8, %v7344_v52, 0.0  ;;  %v19185_v35 = vmax.f32 %v15101_v7, %v7351_v28  ;;  %v8054_v20 = vmax.f32 %v19120_v24, %v19170_v50  ;;  %v7353_v40 = vsel %vm2346_vm0, %v7350_v39, %v7352_v41 }
 0x4b6   : > { %v15113_v13 = vpop.eup %15112  ;;  %vm8253_vm9 = vcmp.eq.f32.partialorder %v8053_v36, %v7346_v14  ;;  %v7355_v30 = vsel %vm2346_vm0, %v7352_v41, %v7354_v60  ;;  %v19191_v53 = vmax.f32 %v15103_v27, %v7353_v40  ;;  %v6246_v63 = vadd.f32 1.0, %v15109_v57 }
 0x4b7   : > { %v15115_v56 = vpop.eup %15114  ;;  %v8453_v22 = vsel %vm8253_vm9, %v7346_v14, 0.0  ;;  %v8055_v49 = vmax.f32 %v19138_v10, %v19185_v35  ;;  %vm19195_vm10 = vcmp.eq.f32.partialorder %v8054_v20, %v7348_v2  ;;  %v19199_v24 = vmax.f32 %v15105_v0, %v7355_v30 }
 0x4b8   : > { %v15117_v46 = vpop.eup %15116  ;;  %v12873_v3 = vpack.c.bf16 %v8453_v22, %v8452_v29  ;;  %v8454_v16 = vsel %vm19195_vm10, %v7348_v2, 0.0  ;;  %v8056_v44 = vmax.f32 %v19140_v62, %v19191_v53  ;;  %15126 = vrcp.f32 %v6246_v63 }
 0x4b9   : > { %v15119_v11 = vpop.eup %15118  ;;  %vm8255_vm11 = vcmp.eq.f32.partialorder %v8055_v49, %v7351_v28  ;;  %v8057_v19 = vmax.f32 %v7830_v1, %v19199_v24  ;;  %v7356_v10 = vrot.slane %v19181_v47, 1  ;;  %v6247_v58 = vadd.f32 1.0, %v15113_v13 }
 0x4ba   : > { %v15121_v6 = vpop.eup %15120  ;;  %13388 = vst [vmem:[%s15729_s24 + $0x508] sm:$0xff] %v12873_v3   ;;  %v8455_v31 = vsel %vm8255_vm11, %v7351_v28, 0.0  ;;  %vm8256_vm12 = vcmp.eq.f32.partialorder %v8056_v44, %v7353_v40  ;;  %v6248_v18 = vadd.f32 1.0, %v15115_v56  ;;  %v6249_v43 = vadd.f32 1.0, %v15117_v46 }
 0x4bb   : > { %v15123_v17 = vpop.eup %15122  ;;  %v12878_v62 = vpack.c.bf16 %v8455_v31, %v8454_v16  ;;  %vm8257_vm13 = vcmp.eq.f32.partialorder %v8057_v19, %v7355_v30  ;;  %v8456_v21 = vsel %vm8256_vm12, %v7353_v40, 0.0  ;;  %v19210_v23 = vsel %vm2346_vm0, %v7354_v60, %v7356_v10  ;;  %v19247_v19 = vld [vmem:[%s15665_s29 + $0x6a0] ss:$24 sps:$4 sm:$0xff]  }
 0x4bc   : > { %v8457_v26 = vsel %vm8257_vm13, %v7355_v30, 0.0  ;;  %15128 = vrcp.f32 %v6247_v58  ;;  %v6250_v25 = vadd.f32 1.0, %v15119_v11  ;;  %v6251_v9 = vadd.f32 1.0, %v15121_v6 }
 0x4bd   : > { %v15125_v32 = vpop.eup %15124  ;;  %13389 = vst [vmem:[%s15729_s24 + $0x510] sm:$0xff] %v12878_v62   ;;  %v12883_v33 = vpack.c.bf16 %v8457_v26, %v8456_v21  ;;  %15130 = vrcp.f32 %v6248_v18  ;;  %v19216_v52 = vmax.f32 %v15107_v55, %v19210_v23  ;;  %v6252_v37 = vadd.f32 1.0, %v15123_v17  ;;  %v19253_v18 = vld [vmem:[%s15665_s29 + $0x6a8] sm:$0xff]  }
 0x4be   : > { %15132 = vrcp.f32 %v6249_v43  ;;  %v5273_v34 = vunpack.c.h.bf16 %v19149_v51  ;;  %v6253_v7 = vadd.f32 1.0, %v15125_v32  ;;  %v5274_v1 = vunpack.c.l.bf16 %v10285_v61 }
 0x4bf   : > { %13390 = vst [vmem:[%s15729_s24 + $0x518] sm:$0xff] %v12883_v33   ;;  %15134 = vrcp.f32 %v6250_v25  ;;  %v10528_v27 = vmul.f32 -1.442695, %v12467_v12  ;;  %v12471_v14 = vunpack.c.l.bf16 %v13303_v15  ;;  %v10529_v48 = vmul.f32 -1.442695, %v12468_v38 }
 0x4c0   : > { %15136 = vrcp.f32 %v6251_v9  ;;  %v12472_v0 = vunpack.c.h.bf16 %v13303_v15  ;;  %v8058_v2 = vmax.f32 %v19166_v42, %v19216_v52  ;;  %v10530_v39 = vmul.f32 -1.442695, %v5273_v34  ;;  %v10291_v38 = vld [vmem:[%s15665_s29 + $0x6a4] sm:$0x1] }
 0x4c1   : > { %15138 = vpow2.f32 %v19172_v5  ;;  %v12475_v51 = vunpack.c.l.bf16 %v19221_v54  ;;  %v10531_v41 = vmul.f32 -1.442695, %v5274_v1  ;;  %v10532_v57 = vmul.f32 -1.442695, %v12471_v14 }
 0x4c2   : > { %v15127_v8 = vpop.eup %15126  ;;  %15140 = vrcp.f32 %v6252_v37  ;;  %v10533_v59 = vmul.f32 -1.442695, %v12472_v0  ;;  %vm19232_vm14 = vcmp.eq.f32.partialorder %v8058_v2, %v19210_v23  ;;  %v12476_v22 = vunpack.c.h.bf16 %v19221_v54 }
 0x4c3   : > { %v7358_v55 = vrot.slane %v15127_v8, 1  ;;  %15142 = vrcp.f32 %v6253_v7  ;;  %v10534_v60 = vmul.f32 -1.442695, %v12475_v51  ;;  %v5279_v61 = vunpack.c.l.bf16 %v19247_v19 }
 0x4c4   : > { %15144 = vpow2.f32 %v10528_v27  ;;  %v12479_v15 = vunpack.c.l.bf16 %v19253_v18 }
 0x4c5   : > { %v7359_v36 = vsel %vm2346_vm0, %v7356_v10, %v7358_v55  ;;  %15146 = vpow2.f32 %v10529_v48 }
 0x4c6   : > { %v15129_v5 = vpop.eup %15128  ;;  %v19229_v28 = vmax.f32 %v19181_v47, %v7359_v36  ;;  %15148 = vpow2.f32 %v10530_v39  ;;  %v8458_v47 = vsel %vm19232_vm14, %v19210_v23, 0.0 }
 0x4c7   : > { %v15131_v29 = vpop.eup %15130  ;;  %v7360_v20 = vrot.slane %v15129_v5, 1  ;;  %15150 = vpow2.f32 %v10531_v41  ;;  %v13306_v41 = vld [vmem:[%s15665_s29 + $0x6b0] sm:$0xff]  }
 0x4c8   : > { %v15133_v40 = vpop.eup %15132  ;;  %v8059_v13 = vmax.f32 %v19170_v50, %v19229_v28  ;;  %v7361_v30 = vrot.slane %v15131_v29, 1  ;;  %15152 = vpow2.f32 %v10532_v57 }
 0x4c9   : > { %v15135_v63 = vpop.eup %15134  ;;  %v7363_v56 = vrot.slane %v15133_v40, 1  ;;  %15154 = vpow2.f32 %v10533_v59 }
 0x4ca   : > { %v15137_v49 = vpop.eup %15136  ;;  %vm8259_vm15 = vcmp.eq.f32.partialorder %v8059_v13, %v7359_v36  ;;  %v7362_v4 = vsel %vm2346_vm0, %v7360_v20, %v7361_v30  ;;  %v7365_v46 = vrot.slane %v15135_v63, 1  ;;  %15156 = vpow2.f32 %v10534_v60 }
 0x4cb   : > { %v15139_v50 = vpop.eup %15138  ;;  %v8459_v3 = vsel %vm8259_vm15, %v7359_v36, 0.0  ;;  %v7364_v16 = vsel %vm2346_vm0, %v7361_v30, %v7363_v56  ;;  %v19244_v44 = vmax.f32 %v15129_v5, %v7362_v4  ;;  %v7367_v11 = vrot.slane %v15137_v49, 1  ;;  %v10297_v30 = vld [vmem:[%s15665_s29 + $0x6bc] sm:$0x1] }
 0x4cc   : > { %v15141_v10 = vpop.eup %15140  ;;  %v12888_v58 = vpack.c.bf16 %v8459_v3, %v8458_v47  ;;  %v19249_v45 = vmax.f32 %v15131_v29, %v7364_v16  ;;  %v7366_v6 = vsel %vm2346_vm0, %v7363_v56, %v7365_v46  ;;  %v6254_v31 = vadd.f32 1.0, %v15139_v50  ;;  %v19304_v3 = vld [vmem:[%s15665_s29 + $0x6c0] sm:$0xff]  }
 0x4cd   : > { %v19255_v43 = vpop.eup %15142  ;;  %v8060_v17 = vmax.f32 %v19185_v35, %v19244_v44  ;;  %v7368_v62 = vsel %vm2346_vm0, %v7365_v46, %v7367_v11  ;;  %v19260_v21 = vmax.f32 %v15133_v40, %v7366_v6  ;;  %v7369_v23 = vrot.slane %v15141_v10, 1 }
 0x4ce   : > { %v15145_v26 = vpop.eup %15144  ;;  %13391 = vst [vmem:[%s15729_s24 + $0x520] sm:$0xff] %v12888_v58   ;;  %v8061_v25 = vmax.f32 %v19191_v53, %v19249_v45  ;;  %v19265_v12 = vmax.f32 %v15135_v63, %v7368_v62  ;;  %15158 = vrcp.f32 %v6254_v31  ;;  %v12480_v29 = vunpack.c.h.bf16 %v19253_v18  ;;  %v19307_v58 = vld [vmem:[%s15665_s29 + $0x6c8] sm:$0xff]  }
 0x4cf   : > { %v15147_v32 = vpop.eup %15146  ;;  %vm19268_vm1 = vcmp.eq.f32.partialorder %v8060_v17, %v7362_v4  ;;  %v8062_v35 = vmax.f32 %v19199_v24, %v19260_v21  ;;  %v6255_v9 = vadd.f32 1.0, %v15145_v26  ;;  %v19281_v7 = vsel %vm2346_vm0, %v7367_v11, %v7369_v23 }
 0x4d0   : > { %v15149_v37 = vpop.eup %15148  ;;  %vm8261_vm2 = vcmp.eq.f32.partialorder %v8061_v25, %v7364_v16  ;;  %v8460_v53 = vsel %vm19268_vm1, %v7362_v4, 0.0  ;;  %v8063_v34 = vmax.f32 %v19216_v52, %v19265_v12  ;;  %v6256_v14 = vadd.f32 1.0, %v15147_v32 }
 0x4d1   : > { %v15151_v1 = vpop.eup %15150  ;;  %v8461_v27 = vsel %vm8261_vm2, %v7364_v16, 0.0  ;;  %vm19283_vm3 = vcmp.eq.f32.partialorder %v8062_v35, %v7366_v6  ;;  %15160 = vrcp.f32 %v6255_v9  ;;  %v5280_v52 = vunpack.c.l.bf16 %v10291_v38 }
 0x4d2   : > { %v15153_v48 = vpop.eup %15152  ;;  %v12893_v0 = vpack.c.bf16 %v8461_v27, %v8460_v53  ;;  %vm8263_vm4 = vcmp.eq.f32.partialorder %v8063_v34, %v7368_v62  ;;  %v8462_v8 = vsel %vm19283_vm3, %v7366_v6, 0.0  ;;  %15162 = vrcp.f32 %v6256_v14 }
 0x4d3   : > { %v15155_v2 = vpop.eup %15154  ;;  %v8463_v39 = vsel %vm8263_vm4, %v7368_v62, 0.0  ;;  %v6257_v51 = vadd.f32 1.0, %v15149_v37  ;;  %v6258_v55 = vadd.f32 1.0, %v15151_v1  ;;  %v19292_v59 = vmax.f32 %v15137_v49, %v19281_v7 }
 0x4d4   : > { %v15157_v57 = vpop.eup %15156  ;;  %13392 = vst [vmem:[%s15729_s24 + $0x528] sm:$0xff] %v12893_v0   ;;  %v12898_v36 = vpack.c.bf16 %v8463_v39, %v8462_v8  ;;  %v6259_v5 = vadd.f32 1.0, %v15153_v48  ;;  %v6260_v42 = vadd.f32 1.0, %v15155_v2  ;;  %v10535_v20 = vmul.f32 -1.442695, %v12476_v22 }
 0x4d5   : > { %15164 = vrcp.f32 %v6257_v51  ;;  %v6261_v60 = vadd.f32 1.0, %v15157_v57  ;;  %v12483_v40 = vunpack.c.l.bf16 %v13306_v41  ;;  %v12484_v13 = vunpack.c.h.bf16 %v13306_v41 }
 0x4d6   : > { %13393 = vst [vmem:[%s15729_s24 + $0x530] sm:$0xff] %v12898_v36   ;;  %15166 = vrcp.f32 %v6258_v55  ;;  %v7371_v63 = vrot.slane %v19255_v43, 1  ;;  %v10536_v47 = vmul.f32 -1.442695, %v5279_v61  ;;  %v5285_v56 = vunpack.c.h.bf16 %v19247_v19 }
 0x4d7   : > { %15168 = vrcp.f32 %v6259_v5  ;;  %v8064_v4 = vmax.f32 %v19229_v28, %v19292_v59  ;;  %v10537_v46 = vmul.f32 -1.442695, %v5280_v52  ;;  %v10538_v50 = vmul.f32 -1.442695, %v12479_v15 }
 0x4d8   : > { %v15159_v49 = vpop.eup %15158  ;;  %15170 = vrcp.f32 %v6260_v42  ;;  %v10539_v22 = vmul.f32 -1.442695, %v12480_v29  ;;  %v5286_v16 = vunpack.c.l.bf16 %v10297_v30  ;;  %v10540_v11 = vmul.f32 -1.442695, %v12483_v40 }
 0x4d9   : > { %v7372_v54 = vrot.slane %v15159_v49, 1  ;;  %15172 = vrcp.f32 %v6261_v60  ;;  %v10541_v10 = vmul.f32 -1.442695, %v12484_v13  ;;  %v10542_v31 = vmul.f32 -1.442695, %v5285_v56 }
 0x4da   : > { %15174 = vpow2.f32 %v10535_v20  ;;  %v12487_v28 = vunpack.c.l.bf16 %v19304_v3  ;;  %vm19315_vm5 = vcmp.eq.f32.partialorder %v8064_v4, %v19281_v7  ;;  %v10543_v26 = vmul.f32 -1.442695, %v5286_v16 }
 0x4db   : > { %v15161_v6 = vpop.eup %15160  ;;  %v7373_v19 = vsel %vm2346_vm0, %v7371_v63, %v7372_v54  ;;  %15176 = vpow2.f32 %v10536_v47  ;;  %v12488_v25 = vunpack.c.h.bf16 %v19304_v3  ;;  %v12491_v61 = vunpack.c.l.bf16 %v19307_v58 }
 0x4dc   : > { %v19312_v18 = vmax.f32 %v19255_v43, %v7373_v19  ;;  %v7374_v62 = vrot.slane %v15161_v6, 1  ;;  %15178 = vpow2.f32 %v10537_v46  ;;  %v15163_v23 = vpop.eup %15162  ;;  %v8464_v9 = vsel %vm19315_vm5, %v19281_v7, 0.0 }
 0x4dd   : > { %15180 = vpow2.f32 %v10538_v50  ;;  %v7376_v33 = vrot.slane %v15163_v23, 1  ;;  %v19327_v15 = vmul.f32 -1.442695, %v12487_v28  ;;  %v19368_v28 = vld [vmem:[%s15665_s29 + $0x6d0] ss:$24 sps:$4 sm:$0xff]  }
 0x4de   : > { %v8065_v32 = vmax.f32 %v19244_v44, %v19312_v18  ;;  %v7375_v43 = vsel %vm2346_vm0, %v7372_v54, %v7374_v62  ;;  %15182 = vpow2.f32 %v10539_v22 }
 0x4df   : > { %v15165_v35 = vpop.eup %15164  ;;  %v7844_v38 = vmax.f32 %v15159_v49, %v7375_v43  ;;  %15184 = vpow2.f32 %v10540_v11  ;;  %v7377_v53 = vsel %vm2346_vm0, %v7374_v62, %v7376_v33 }
 0x4e0   : > { %v15167_v37 = vpop.eup %15166  ;;  %vm8265_vm6 = vcmp.eq.f32.partialorder %v8065_v32, %v7373_v19  ;;  %v7378_v34 = vrot.slane %v15165_v35, 1  ;;  %15186 = vpow2.f32 %v10541_v10  ;;  %v19330_v27 = vmax.f32 %v15161_v6, %v7377_v53 }
 0x4e1   : > { %v15169_v44 = vpop.eup %15168  ;;  %v8465_v1 = vsel %vm8265_vm6, %v7373_v19, 0.0  ;;  %v8066_v24 = vmax.f32 %v19249_v45, %v7844_v38  ;;  %v7380_v14 = vrot.slane %v15167_v37, 1  ;;  %15188 = vpow2.f32 %v10542_v31 }
 0x4e2   : > { %v15171_v48 = vpop.eup %15170  ;;  %v12903_v7 = vpack.c.bf16 %v8465_v1, %v8464_v9  ;;  %v7379_v0 = vsel %vm2346_vm0, %v7376_v33, %v7378_v34  ;;  %v7382_v8 = vrot.slane %v15169_v44, 1  ;;  %v8067_v2 = vmax.f32 %v19260_v21, %v19330_v27  ;;  %v13309_v9 = vld [vmem:[%s15665_s29 + $0x6d8] sm:$0xff]  }
 0x4e3   : > { %v19334_v52 = vpop.eup %15172  ;;  %vm19338_vm7 = vcmp.eq.f32.partialorder %v8066_v24, %v7375_v43  ;;  %v7381_v51 = vsel %vm2346_vm0, %v7378_v34, %v7380_v14  ;;  %v19343_v55 = vmax.f32 %v15163_v23, %v7379_v0  ;;  %v7383_v36 = vrot.slane %v15171_v48, 1 }
 0x4e4   : > { %v15175_v45 = vpop.eup %15174  ;;  %13394 = vst [vmem:[%s15729_s24 + $0x538] sm:$0xff] %v12903_v7   ;;  %v8466_v41 = vsel %vm19338_vm7, %v7375_v43, 0.0  ;;  %v19348_v57 = vmax.f32 %v15165_v35, %v7381_v51  ;;  %v7385_v5 = vrot.slane %v19334_v52, 1  ;;  %vm8267_vm8 = vcmp.eq.f32.partialorder %v8067_v2, %v7377_v53 }
 0x4e5   : > { %v15177_v42 = vpop.eup %15176  ;;  %v8068_v21 = vmax.f32 %v19265_v12, %v19343_v55  ;;  %v6262_v60 = vadd.f32 1.0, %v15175_v45  ;;  %15190 = vpow2.f32 %v10543_v26  ;;  %v8467_v20 = vsel %vm8267_vm8, %v7377_v53, 0.0  ;;  %v10303_v26 = vld [vmem:[%s15665_s29 + $0x6d4] sm:$0x1]  ;;  %v19386_v45 = vld [vmem:[%s15665_s29 + $0x6e0] sm:$0xff]  }
 0x4e6   : > { %v15179_v29 = vpop.eup %15178  ;;  %v8069_v40 = vmax.f32 %v19292_v59, %v19348_v57  ;;  %v7384_v13 = vsel %vm2346_vm0, %v7382_v8, %v7383_v36  ;;  %v7386_v30 = vsel %vm2346_vm0, %v7383_v36, %v7385_v5  ;;  %v12908_v47 = vpack.c.bf16 %v8467_v20, %v8466_v41 }
 0x4e7   : > { %v15181_v63 = vpop.eup %15180  ;;  %vm8268_vm9 = vcmp.eq.f32.partialorder %v8068_v21, %v7379_v0  ;;  %v19359_v56 = vmax.f32 %v15169_v44, %v7384_v13  ;;  %v19361_v12 = vmax.f32 %v15171_v48, %v7386_v30  ;;  %v6263_v46 = vadd.f32 1.0, %v15177_v42 }
 0x4e8   : > { %v15183_v49 = vpop.eup %15182  ;;  %vm8269_vm10 = vcmp.eq.f32.partialorder %v8069_v40, %v7381_v51  ;;  %v8468_v4 = vsel %vm8268_vm9, %v7379_v0, 0.0  ;;  %15192 = vrcp.f32 %v6262_v60  ;;  %13395 = vst [vmem:[%s15729_s24 + $0x540] sm:$0xff] %v12908_v47   ;;  %v6264_v16 = vadd.f32 1.0, %v15179_v29 }
 0x4e9   : > { %v15185_v59 = vpop.eup %15184  ;;  %v8469_v50 = vsel %vm8269_vm10, %v7381_v51, 0.0  ;;  %v8070_v54 = vmax.f32 %v19312_v18, %v19359_v56  ;;  %v8071_v22 = vmax.f32 %v7844_v38, %v19361_v12  ;;  %15194 = vrcp.f32 %v6263_v46 }
 0x4ea   : > { %v15187_v11 = vpop.eup %15186  ;;  %v12913_v10 = vpack.c.bf16 %v8469_v50, %v8468_v4  ;;  %v6265_v6 = vadd.f32 1.0, %v15181_v63  ;;  %v6266_v19 = vadd.f32 1.0, %v15183_v49  ;;  %15196 = vrcp.f32 %v6264_v16 }
 0x4eb   : > { %vm8270_vm11 = vcmp.eq.f32.partialorder %v8070_v54, %v7384_v13  ;;  %vm8271_vm12 = vcmp.eq.f32.partialorder %v8071_v22, %v7386_v30  ;;  %v6267_v31 = vadd.f32 1.0, %v15185_v59  ;;  %v15189_v17 = vpop.eup %15188  ;;  %v6268_v23 = vadd.f32 1.0, %v15187_v11 }
 0x4ec   : > { %13396 = vst [vmem:[%s15729_s24 + $0x548] sm:$0xff] %v12913_v10   ;;  %v8470_v18 = vsel %vm8270_vm11, %v7384_v13, 0.0  ;;  %v8471_v62 = vsel %vm8271_vm12, %v7386_v30, 0.0  ;;  %15198 = vrcp.f32 %v6265_v6  ;;  %v6269_v43 = vadd.f32 1.0, %v15189_v17 }
 0x4ed   : > { %v12918_v32 = vpack.c.bf16 %v8471_v62, %v8470_v18  ;;  %15200 = vrcp.f32 %v6266_v19  ;;  %v12492_v33 = vunpack.c.h.bf16 %v19307_v58  ;;  %v5291_v35 = vunpack.c.l.bf16 %v19368_v28 }
 0x4ee   : > { %15202 = vrcp.f32 %v6267_v31  ;;  %v10545_v37 = vmul.f32 -1.442695, %v12488_v25  ;;  %v5292_v53 = vunpack.c.l.bf16 %v10303_v26  ;;  %v10546_v44 = vmul.f32 -1.442695, %v12491_v61 }
 0x4ef   : > { %v15191_v38 = vpop.eup %15190  ;;  %13397 = vst [vmem:[%s15729_s24 + $0x550] sm:$0xff] %v12918_v32   ;;  %15204 = vrcp.f32 %v6268_v23  ;;  %v10547_v1 = vmul.f32 -1.442695, %v12492_v33  ;;  %v12495_v24 = vunpack.c.l.bf16 %v13309_v9  ;;  %v10548_v48 = vmul.f32 -1.442695, %v5291_v35 }
 0x4f0   : > { %v6270_v34 = vadd.f32 1.0, %v15191_v38  ;;  %15206 = vrcp.f32 %v6269_v43  ;;  %v12496_v0 = vunpack.c.h.bf16 %v13309_v9  ;;  %v10549_v8 = vmul.f32 -1.442695, %v5292_v53 }
 0x4f1   : > { %15208 = vpow2.f32 %v19327_v15  ;;  %v10550_v15 = vmul.f32 -1.442695, %v12495_v24  ;;  %v12499_v63 = vunpack.c.l.bf16 %v19386_v45 }
 0x4f2   : > { %v15193_v14 = vpop.eup %15192  ;;  %15210 = vrcp.f32 %v6270_v34  ;;  %v19389_v21 = vmul.f32 -1.442695, %v12496_v0 }
 0x4f3   : > { %v7387_v7 = vrot.slane %v15193_v14, 1  ;;  %15212 = vpow2.f32 %v10545_v37  ;;  %v15195_v3 = vpop.eup %15194 }
 0x4f4   : > { %15214 = vpow2.f32 %v10546_v44  ;;  %v15197_v25 = vpop.eup %15196  ;;  %v7389_v61 = vrot.slane %v15195_v3, 1 }
 0x4f5   : > { %v7388_v58 = vsel %vm2346_vm0, %v7385_v5, %v7387_v7  ;;  %15216 = vpow2.f32 %v10547_v1  ;;  %v7391_v51 = vrot.slane %v15197_v25, 1 }
 0x4f6   : > { %v15199_v2 = vpop.eup %15198  ;;  %v7850_v39 = vmax.f32 %v19334_v52, %v7388_v58  ;;  %15218 = vpow2.f32 %v10548_v48  ;;  %v7390_v36 = vsel %vm2346_vm0, %v7387_v7, %v7389_v61 }
 0x4f7   : > { %v15201_v41 = vpop.eup %15200  ;;  %v7393_v42 = vrot.slane %v15199_v2, 1  ;;  %15220 = vpow2.f32 %v10549_v8  ;;  %v19391_v29 = vmax.f32 %v15193_v14, %v7390_v36  ;;  %v7392_v20 = vsel %vm2346_vm0, %v7389_v61, %v7391_v51  ;;  %v10309_v61 = vld [vmem:[%s15665_s29 + $0x6ec] sm:$0x1]  ;;  %v13311_v51 = vld [vmem:[%s15665_s29 + $0x6f0] sm:$0xff]  }
 0x4f8   : > { %v15203_v60 = vpop.eup %15202  ;;  %v8072_v5 = vmax.f32 %v19330_v27, %v7850_v39  ;;  %v7394_v40 = vrot.slane %v15201_v41, 1  ;;  %v19395_v13 = vmax.f32 %v15195_v3, %v7392_v20  ;;  %15222 = vpow2.f32 %v10550_v15 }
 0x4f9   : > { %v15205_v52 = vpop.eup %15204  ;;  %v7396_v30 = vrot.slane %v15203_v60, 1  ;;  %v8073_v49 = vmax.f32 %v19343_v55, %v19391_v29 }
 0x4fa   : > { %v15207_v47 = vpop.eup %15206  ;;  %vm19400_vm13 = vcmp.eq.f32.partialorder %v8072_v5, %v7388_v58  ;;  %v7395_v27 = vsel %vm2346_vm0, %v7393_v42, %v7394_v40  ;;  %v7398_v46 = vrot.slane %v15205_v52, 1  ;;  %v8074_v22 = vmax.f32 %v19348_v57, %v19395_v13  ;;  %v13312_v5 = vld [vmem:[%s15665_s29 + $0x6f8] sm:$0xff]  }
 0x4fb   : > { %v15209_v59 = vpop.eup %15208  ;;  %v8472_v50 = vsel %vm19400_vm13, %v7388_v58, 0.0  ;;  %v19407_v54 = vmax.f32 %v15199_v2, %v7395_v27  ;;  %v7397_v16 = vsel %vm2346_vm0, %v7394_v40, %v7396_v30  ;;  %vm8273_vm14 = vcmp.eq.f32.partialorder %v8073_v49, %v7390_v36  ;;  %v19456_v49 = vld [vmem:[%s15665_s29 + $0x700] ss:$24 sps:$4 sm:$0xff]  }
 0x4fc   : > { %v15211_v11 = vpop.eup %15210  ;;  %v7399_v55 = vsel %vm2346_vm0, %v7396_v30, %v7398_v46  ;;  %v19413_v10 = vmax.f32 %v15201_v41, %v7397_v16  ;;  %v7400_v6 = vrot.slane %v15207_v47, 1  ;;  %v8473_v31 = vsel %vm8273_vm14, %v7390_v36, 0.0 }
 0x4fd   : > { %v15213_v19 = vpop.eup %15212  ;;  %v8075_v17 = vmax.f32 %v19359_v56, %v19407_v54  ;;  %vm19417_vm15 = vcmp.eq.f32.partialorder %v8074_v22, %v7392_v20  ;;  %v19421_v57 = vmax.f32 %v15203_v60, %v7399_v55  ;;  %v12923_v23 = vpack.c.bf16 %v8473_v31, %v8472_v50 }
 0x4fe   : > { %v15215_v62 = vpop.eup %15214  ;;  %v8474_v26 = vsel %vm19417_vm15, %v7392_v20, 0.0  ;;  %v8076_v32 = vmax.f32 %v19361_v12, %v19413_v10  ;;  %v7401_v43 = vsel %vm2346_vm0, %v7398_v46, %v7400_v6  ;;  %v7402_v35 = vrot.slane %v15211_v11, 1 }
 0x4ff   : > { %v15217_v33 = vpop.eup %15216  ;;  %vm8275_vm1 = vcmp.eq.f32.partialorder %v8075_v17, %v7395_v27  ;;  %v8077_v56 = vmax.f32 %v7850_v39, %v19421_v57  ;;  %v19429_v9 = vmax.f32 %v15205_v52, %v7401_v43  ;;  %13398 = vst [vmem:[%s15729_s24 + $0x558] sm:$0xff] %v12923_v23   ;;  %v6271_v53 = vadd.f32 1.0, %v15209_v59 }
 0x500   : > { %v15219_v38 = vpop.eup %15218  ;;  %v8475_v37 = vsel %vm8275_vm1, %v7395_v27, 0.0  ;;  %vm8276_vm2 = vcmp.eq.f32.partialorder %v8076_v32, %v7397_v16  ;;  %v6272_v34 = vadd.f32 1.0, %v15213_v19  ;;  %v7403_v24 = vsel %vm2346_vm0, %v7400_v6, %v7402_v35 }
 0x501   : > { %v15221_v44 = vpop.eup %15220  ;;  %v12928_v1 = vpack.c.bf16 %v8475_v37, %v8474_v26  ;;  %vm8277_vm3 = vcmp.eq.f32.partialorder %v8077_v56, %v7399_v55  ;;  %v8476_v12 = vsel %vm8276_vm2, %v7397_v16, 0.0  ;;  %v19433_v48 = vmax.f32 %v15207_v47, %v7403_v24  ;;  %v19465_v56 = vld [vmem:[%s15665_s29 + $0x708] sm:$0xff]  }
 0x502   : > { %v8477_v14 = vsel %vm8277_vm3, %v7399_v55, 0.0  ;;  %v8078_v7 = vmax.f32 %v19391_v29, %v19429_v9  ;;  %v6273_v0 = vadd.f32 1.0, %v15215_v62  ;;  %v15223_v8 = vpop.eup %15222  ;;  %15224 = vrcp.f32 %v6271_v53 }
 0x503   : > { %13399 = vst [vmem:[%s15729_s24 + $0x560] sm:$0xff] %v12928_v1   ;;  %v12933_v3 = vpack.c.bf16 %v8477_v14, %v8476_v12  ;;  %v6274_v25 = vadd.f32 1.0, %v15217_v33  ;;  %v6275_v58 = vadd.f32 1.0, %v15219_v38  ;;  %v8079_v15 = vmax.f32 %v19395_v13, %v19433_v48 }
 0x504   : > { %vm19441_vm4 = vcmp.eq.f32.partialorder %v8078_v7, %v7401_v43  ;;  %15226 = vrcp.f32 %v6272_v34  ;;  %v12500_v39 = vunpack.c.h.bf16 %v19386_v45  ;;  %v6276_v36 = vadd.f32 1.0, %v15221_v44  ;;  %v10315_v34 = vld [vmem:[%s15665_s29 + $0x704] sm:$0x1] }
 0x505   : > { %13400 = vst [vmem:[%s15729_s24 + $0x568] sm:$0xff] %v12933_v3   ;;  %v8478_v41 = vsel %vm19441_vm4, %v7401_v43, 0.0  ;;  %15228 = vrcp.f32 %v6273_v0  ;;  %v5297_v42 = vunpack.c.h.bf16 %v19368_v28  ;;  %vm8279_vm5 = vcmp.eq.f32.partialorder %v8079_v15, %v7403_v24 }
 0x506   : > { %15230 = vrcp.f32 %v6274_v25  ;;  %v6277_v60 = vadd.f32 1.0, %v15223_v8  ;;  %v5298_v29 = vunpack.c.l.bf16 %v10309_v61  ;;  %v8479_v20 = vsel %vm8279_vm5, %v7403_v24, 0.0 }
 0x507   : > { %15232 = vrcp.f32 %v6275_v58  ;;  %v10552_v40 = vmul.f32 -1.442695, %v12499_v63  ;;  %v12503_v52 = vunpack.c.l.bf16 %v13311_v51  ;;  %v12938_v13 = vpack.c.bf16 %v8479_v20, %v8478_v41 }
 0x508   : > { %15234 = vpow2.f32 %v19389_v21  ;;  %v10553_v30 = vmul.f32 -1.442695, %v12500_v39  ;;  %v12504_v47 = vunpack.c.h.bf16 %v13311_v51  ;;  %v10554_v28 = vmul.f32 -1.442695, %v5297_v42 }
 0x509   : > { %15236 = vrcp.f32 %v6276_v36  ;;  %v12507_v4 = vunpack.c.l.bf16 %v13312_v5  ;;  %13401 = vst [vmem:[%s15729_s24 + $0x570] sm:$0xff] %v12938_v13   ;;  %v10555_v27 = vmul.f32 -1.442695, %v5298_v29  ;;  %v12508_v46 = vunpack.c.h.bf16 %v13312_v5  ;;  %v13314_v5 = vld [vmem:[%s15665_s29 + $0x710] sm:$0xff]  }
 0x50a   : > { %15238 = vrcp.f32 %v6277_v60  ;;  %v10556_v59 = vmul.f32 -1.442695, %v12503_v52  ;;  %v5303_v45 = vunpack.c.l.bf16 %v19456_v49  ;;  %v10557_v63 = vmul.f32 -1.442695, %v12504_v47 }
 0x50b   : > { %15240 = vpow2.f32 %v10552_v40  ;;  %v10558_v21 = vmul.f32 -1.442695, %v12507_v4  ;;  %v10559_v11 = vmul.f32 -1.442695, %v12508_v46  ;;  %v12511_v3 = vunpack.c.l.bf16 %v19465_v56  ;;  %v10321_v46 = vld [vmem:[%s15665_s29 + $0x71c] sm:$0x1] }
 0x50c   : > { %15242 = vpow2.f32 %v10553_v30  ;;  %v15225_v50 = vpop.eup %15224  ;;  %v10560_v19 = vmul.f32 -1.442695, %v5303_v45  ;;  %v5304_v61 = vunpack.c.l.bf16 %v10315_v34 }
 0x50d   : > { %15244 = vpow2.f32 %v10554_v28  ;;  %v7404_v16 = vrot.slane %v15225_v50, 1 }
 0x50e   : > { %v15227_v22 = vpop.eup %15226  ;;  %15246 = vpow2.f32 %v10555_v27 }
 0x50f   : > { %v15229_v55 = vpop.eup %15228  ;;  %v7405_v6 = vrot.slane %v15227_v22, 1  ;;  %15248 = vpow2.f32 %v10556_v59 }
 0x510   : > { %v15231_v31 = vpop.eup %15230  ;;  %v7407_v17 = vrot.slane %v15229_v55, 1  ;;  %15250 = vpow2.f32 %v10557_v63  ;;  %v10561_v63 = vmul.f32 -1.442695, %v5304_v61 }
 0x511   : > { %v15233_v18 = vpop.eup %15232  ;;  %v7406_v62 = vsel %vm2346_vm0, %v7404_v16, %v7405_v6  ;;  %v7409_v23 = vrot.slane %v15231_v31, 1  ;;  %15252 = vpow2.f32 %v10558_v21  ;;  %v12516_v16 = vunpack.c.h.bf16 %v13314_v5 }
 0x512   : > { %v15235_v26 = vpop.eup %15234  ;;  %v7408_v32 = vsel %vm2346_vm0, %v7405_v6, %v7407_v17  ;;  %v19462_v43 = vmax.f32 %v15225_v50, %v7406_v62  ;;  %v7411_v33 = vrot.slane %v15233_v18, 1  ;;  %15254 = vpow2.f32 %v10559_v11 }
 0x513   : > { %v15237_v35 = vpop.eup %15236  ;;  %v19467_v38 = vmax.f32 %v15227_v22, %v7408_v32  ;;  %v7410_v37 = vsel %vm2346_vm0, %v7407_v17, %v7409_v23  ;;  %v6278_v53 = vadd.f32 1.0, %v15235_v26  ;;  %15256 = vpow2.f32 %v10560_v19 }
 0x514   : > { %v19471_v44 = vpop.eup %15238  ;;  %v8080_v1 = vmax.f32 %v19407_v54, %v19462_v43  ;;  %v7412_v12 = vsel %vm2346_vm0, %v7409_v23, %v7411_v33  ;;  %v19476_v24 = vmax.f32 %v15229_v55, %v7410_v37  ;;  %v7413_v14 = vrot.slane %v15237_v35, 1  ;;  %v13315_v55 = vld [vmem:[%s15665_s29 + $0x720] sm:$0xff]   ;;  %v19510_v35 = vld [vmem:[%s15665_s29 + $0x728] sm:$0xff]  }
 0x515   : > { %v15241_v7 = vpop.eup %15240  ;;  %v8081_v0 = vmax.f32 %v19413_v10, %v19467_v38  ;;  %v19480_v8 = vmax.f32 %v15231_v31, %v7412_v12  ;;  %15258 = vrcp.f32 %v6278_v53  ;;  %v12515_v50 = vunpack.c.l.bf16 %v13314_v5 }
 0x516   : > { %v15243_v25 = vpop.eup %15242  ;;  %vm8280_vm6 = vcmp.eq.f32.partialorder %v8080_v1, %v7406_v62  ;;  %v8082_v58 = vmax.f32 %v19421_v57, %v19476_v24  ;;  %v6279_v54 = vadd.f32 1.0, %v15241_v7  ;;  %v19488_v10 = vsel %vm2346_vm0, %v7411_v33, %v7413_v14 }
 0x517   : > { %v15245_v15 = vpop.eup %15244  ;;  %vm8281_vm7 = vcmp.eq.f32.partialorder %v8081_v0, %v7408_v32  ;;  %v8480_v2 = vsel %vm8280_vm6, %v7406_v62, 0.0  ;;  %v8083_v39 = vmax.f32 %v19429_v9, %v19480_v8  ;;  %v6280_v57 = vadd.f32 1.0, %v15243_v25 }
 0x518   : > { %v15247_v51 = vpop.eup %15246  ;;  %v8481_v41 = vsel %vm8281_vm7, %v7408_v32, 0.0  ;;  %vm19490_vm8 = vcmp.eq.f32.partialorder %v8082_v58, %v7410_v37  ;;  %15260 = vrcp.f32 %v6279_v54  ;;  %v12512_v9 = vunpack.c.h.bf16 %v19465_v56 }
 0x519   : > { %v15249_v42 = vpop.eup %15248  ;;  %v12943_v60 = vpack.c.bf16 %v8481_v41, %v8480_v2  ;;  %vm8283_vm9 = vcmp.eq.f32.partialorder %v8083_v39, %v7412_v12  ;;  %v8482_v29 = vsel %vm19490_vm8, %v7410_v37, 0.0  ;;  %15262 = vrcp.f32 %v6280_v57 }
 0x51a   : > { %v15251_v20 = vpop.eup %15250  ;;  %v8483_v40 = vsel %vm8283_vm9, %v7412_v12, 0.0  ;;  %v6281_v52 = vadd.f32 1.0, %v15245_v15  ;;  %v6282_v13 = vadd.f32 1.0, %v15247_v51  ;;  %v19500_v28 = vmax.f32 %v15233_v18, %v19488_v10 }
 0x51b   : > { %v15253_v30 = vpop.eup %15252  ;;  %13402 = vst [vmem:[%s15729_s24 + $0x578] sm:$0xff] %v12943_v60   ;;  %v12948_v47 = vpack.c.bf16 %v8483_v40, %v8482_v29  ;;  %v6283_v4 = vadd.f32 1.0, %v15249_v42  ;;  %v6284_v27 = vadd.f32 1.0, %v15251_v20  ;;  %v5309_v11 = vunpack.c.h.bf16 %v19456_v49 }
 0x51c   : > { %v15255_v59 = vpop.eup %15254  ;;  %15264 = vrcp.f32 %v6281_v52  ;;  %v6285_v45 = vadd.f32 1.0, %v15253_v30  ;;  %v7415_v6 = vrot.slane %v19471_v44, 1  ;;  %v5310_v31 = vunpack.c.l.bf16 %v10321_v46 }
 0x51d   : > { %v15257_v21 = vpop.eup %15256  ;;  %13403 = vst [vmem:[%s15729_s24 + $0x580] sm:$0xff] %v12948_v47   ;;  %15266 = vrcp.f32 %v6282_v13  ;;  %v6286_v22 = vadd.f32 1.0, %v15255_v59  ;;  %v8084_v18 = vmax.f32 %v19433_v48, %v19500_v28  ;;  %v10562_v62 = vmul.f32 -1.442695, %v12511_v3 }
 0x51e   : > { %15268 = vrcp.f32 %v6283_v4  ;;  %v6287_v19 = vadd.f32 1.0, %v15257_v21  ;;  %v10563_v23 = vmul.f32 -1.442695, %v12512_v9  ;;  %v12519_v32 = vunpack.c.l.bf16 %v13315_v55 }
 0x51f   : > { %v15259_v17 = vpop.eup %15258  ;;  %15270 = vrcp.f32 %v6284_v27  ;;  %v12520_v33 = vunpack.c.h.bf16 %v13315_v55  ;;  %v10564_v49 = vmul.f32 -1.442695, %v12515_v50  ;;  %v10565_v56 = vmul.f32 -1.442695, %v12516_v16 }
 0x520   : > { %v7416_v26 = vrot.slane %v15259_v17, 1  ;;  %15272 = vrcp.f32 %v6285_v45  ;;  %v10566_v34 = vmul.f32 -1.442695, %v5309_v11  ;;  %v10567_v1 = vmul.f32 -1.442695, %v5310_v31 }
 0x521   : > { %15274 = vrcp.f32 %v6286_v22  ;;  %vm19517_vm10 = vcmp.eq.f32.partialorder %v8084_v18, %v19488_v10  ;;  %v12523_v0 = vunpack.c.l.bf16 %v19510_v35  ;;  %v19522_v3 = vmul.f32 -1.442695, %v12519_v32 }
 0x522   : > { %v15261_v37 = vpop.eup %15260  ;;  %v7417_v53 = vsel %vm2346_vm0, %v7415_v6, %v7416_v26  ;;  %15276 = vrcp.f32 %v6287_v19  ;;  %v19524_v25 = vmul.f32 -1.442695, %v12520_v33  ;;  %v8484_v15 = vsel %vm19517_vm10, %v19488_v10, 0.0 }
 0x523   : > { %v19514_v48 = vmax.f32 %v19471_v44, %v7417_v53  ;;  %v7418_v14 = vrot.slane %v15261_v37, 1  ;;  %15278 = vpow2.f32 %v10561_v63  ;;  %v15263_v7 = vpop.eup %15262  ;;  %v12524_v39 = vunpack.c.h.bf16 %v19510_v35 }
 0x524   : > { %15280 = vpow2.f32 %v10562_v62  ;;  %v7420_v54 = vrot.slane %v15263_v7, 1 }
 0x525   : > { %v8085_v58 = vmax.f32 %v19462_v43, %v19514_v48  ;;  %v7419_v44 = vsel %vm2346_vm0, %v7416_v26, %v7418_v14  ;;  %15282 = vpow2.f32 %v10563_v23  ;;  %v10571_v13 = vmul.f32 -1.442695, %v12524_v39 }
 0x526   : > { %v15265_v61 = vpop.eup %15264  ;;  %v7864_v2 = vmax.f32 %v15259_v17, %v7419_v44  ;;  %15284 = vpow2.f32 %v10564_v49  ;;  %v7421_v41 = vsel %vm2346_vm0, %v7418_v14, %v7420_v54 }
 0x527   : > { %v15267_v51 = vpop.eup %15266  ;;  %vm8285_vm11 = vcmp.eq.f32.partialorder %v8085_v58, %v7417_v53  ;;  %v7422_v36 = vrot.slane %v15265_v61, 1  ;;  %15286 = vpow2.f32 %v10565_v56  ;;  %v19534_v42 = vmax.f32 %v15261_v37, %v7421_v41 }
 0x528   : > { %v15269_v43 = vpop.eup %15268  ;;  %v8485_v57 = vsel %vm8285_vm11, %v7417_v53, 0.0  ;;  %v8086_v60 = vmax.f32 %v19467_v38, %v7864_v2  ;;  %v7424_v29 = vrot.slane %v15267_v51, 1  ;;  %15288 = vpow2.f32 %v10566_v34 }
 0x529   : > { %v15271_v9 = vpop.eup %15270  ;;  %v12953_v10 = vpack.c.bf16 %v8485_v57, %v8484_v15  ;;  %v7423_v5 = vsel %vm2346_vm0, %v7420_v54, %v7422_v36  ;;  %v7426_v20 = vrot.slane %v15269_v43, 1  ;;  %v8087_v52 = vmax.f32 %v19476_v24, %v19534_v42 }
 0x52a   : > { %v15273_v40 = vpop.eup %15272  ;;  %vm19540_vm12 = vcmp.eq.f32.partialorder %v8086_v60, %v7419_v44  ;;  %v7425_v30 = vsel %vm2346_vm0, %v7422_v36, %v7424_v29  ;;  %v7866_v47 = vmax.f32 %v15263_v7, %v7423_v5  ;;  %v7427_v46 = vrot.slane %v15271_v9, 1 }
 0x52b   : > { %v15275_v4 = vpop.eup %15274  ;;  %13404 = vst [vmem:[%s15729_s24 + $0x588] sm:$0xff] %v12953_v10   ;;  %v8486_v38 = vsel %vm19540_vm12, %v7419_v44, 0.0  ;;  %v19548_v27 = vmax.f32 %v15265_v61, %v7425_v30  ;;  %v7429_v59 = vrot.slane %v15273_v40, 1  ;;  %vm8287_vm13 = vcmp.eq.f32.partialorder %v8087_v52, %v7421_v41  ;;  %v19578_v44 = vld [vmem:[%s15665_s29 + $0x730] ss:$24 sps:$4 sm:$0xff]  }
 0x52c   : > { %v19550_v45 = vpop.eup %15276  ;;  %v8088_v24 = vmax.f32 %v19480_v8, %v7866_v47  ;;  %v7431_v63 = vrot.slane %v15275_v4, 1  ;;  %15290 = vpow2.f32 %v10567_v1  ;;  %v8487_v21 = vsel %vm8287_vm13, %v7421_v41, 0.0 }
 0x52d   : > { %v15279_v50 = vpop.eup %15278  ;;  %v8089_v22 = vmax.f32 %v19500_v28, %v19548_v27  ;;  %v7428_v16 = vsel %vm2346_vm0, %v7426_v20, %v7427_v46  ;;  %v7430_v11 = vsel %vm2346_vm0, %v7427_v46, %v7429_v59  ;;  %v12958_v6 = vpack.c.bf16 %v8487_v21, %v8486_v38 }
 0x52e   : > { %v15281_v55 = vpop.eup %15280  ;;  %vm8288_vm14 = vcmp.eq.f32.partialorder %v8088_v24, %v7423_v5  ;;  %v19557_v19 = vmax.f32 %v15269_v43, %v7428_v16  ;;  %v19559_v31 = vmax.f32 %v15271_v9, %v7430_v11  ;;  %v7432_v18 = vsel %vm2346_vm0, %v7429_v59, %v7431_v63  ;;  %v13317_v43 = vld [vmem:[%s15665_s29 + $0x738] sm:$0xff]  }
 0x52f   : > { %v15283_v8 = vpop.eup %15282  ;;  %vm8289_vm15 = vcmp.eq.f32.partialorder %v8089_v22, %v7425_v30  ;;  %v8488_v17 = vsel %vm8288_vm14, %v7423_v5, 0.0  ;;  %v7433_v62 = vrot.slane %v19550_v45, 1  ;;  %13405 = vst [vmem:[%s15729_s24 + $0x590] sm:$0xff] %v12958_v6   ;;  %v19567_v33 = vmax.f32 %v15273_v40, %v7432_v18  ;;  %v13318_v5 = vld [vmem:[%s15665_s29 + $0x740] sm:$0xff]  }
 0x530   : > { %v15285_v23 = vpop.eup %15284  ;;  %v8489_v28 = vsel %vm8289_vm15, %v7425_v30, 0.0  ;;  %v8090_v26 = vmax.f32 %v19514_v48, %v19557_v19  ;;  %v8091_v32 = vmax.f32 %v7864_v2, %v19559_v31  ;;  %v6288_v53 = vadd.f32 1.0, %v15279_v50  ;;  %v10327_v2 = vld [vmem:[%s15665_s29 + $0x734] sm:$0x1] }
 0x531   : > { %v15287_v49 = vpop.eup %15286  ;;  %v12963_v56 = vpack.c.bf16 %v8489_v28, %v8488_v17  ;;  %v7434_v37 = vsel %vm2346_vm0, %v7431_v63, %v7433_v62  ;;  %v6289_v34 = vadd.f32 1.0, %v15281_v55  ;;  %v8092_v48 = vmax.f32 %v19534_v42, %v19567_v33 }
 0x532   : > { %vm8290_vm1 = vcmp.eq.f32.partialorder %v8090_v26, %v7428_v16  ;;  %vm8291_vm2 = vcmp.eq.f32.partialorder %v8091_v32, %v7430_v11  ;;  %v19572_v1 = vmax.f32 %v15275_v4, %v7434_v37  ;;  %v15289_v12 = vpop.eup %15288  ;;  %v6290_v58 = vadd.f32 1.0, %v15283_v8  ;;  %v19606_v8 = vld [vmem:[%s15665_s29 + $0x74c] sm:$0x1] }
 0x533   : > { %13406 = vst [vmem:[%s15729_s24 + $0x598] sm:$0xff] %v12963_v56   ;;  %v8490_v14 = vsel %vm8290_vm1, %v7428_v16, 0.0  ;;  %v8491_v7 = vsel %vm8291_vm2, %v7430_v11, 0.0  ;;  %15292 = vrcp.f32 %v6288_v53  ;;  %vm19581_vm3 = vcmp.eq.f32.partialorder %v8092_v48, %v7432_v18 }
 0x534   : > { %v12968_v54 = vpack.c.bf16 %v8491_v7, %v8490_v14  ;;  %v8093_v61 = vmax.f32 %v7866_v47, %v19572_v1  ;;  %15294 = vrcp.f32 %v6289_v34  ;;  %v8492_v51 = vsel %vm19581_vm3, %v7432_v18, 0.0 }
 0x535   : > { %15296 = vrcp.f32 %v6290_v58  ;;  %v6291_v41 = vadd.f32 1.0, %v15285_v23  ;;  %v6292_v36 = vadd.f32 1.0, %v15287_v49  ;;  %v6293_v42 = vadd.f32 1.0, %v15289_v12 }
 0x536   : > { %v15291_v57 = vpop.eup %15290  ;;  %13407 = vst [vmem:[%s15729_s24 + $0x5a0] sm:$0xff] %v12968_v54   ;;  %vm8293_vm4 = vcmp.eq.f32.partialorder %v8093_v61, %v7434_v37  ;;  %15298 = vpow2.f32 %v19522_v3  ;;  %v5315_v60 = vunpack.c.l.bf16 %v19578_v44  ;;  %v5316_v10 = vunpack.c.l.bf16 %v10327_v2 }
 0x537   : > { %v8493_v29 = vsel %vm8293_vm4, %v7434_v37, 0.0  ;;  %15300 = vrcp.f32 %v6291_v41  ;;  %v6294_v9 = vadd.f32 1.0, %v15291_v57  ;;  %v10570_v40 = vmul.f32 -1.442695, %v12523_v0 }
 0x538   : > { %v12973_v20 = vpack.c.bf16 %v8493_v29, %v8492_v51  ;;  %15302 = vrcp.f32 %v6292_v36  ;;  %v12527_v52 = vunpack.c.l.bf16 %v13317_v43  ;;  %v12528_v30 = vunpack.c.h.bf16 %v13317_v43 }
 0x539   : > { %15304 = vrcp.f32 %v6293_v42  ;;  %v10572_v3 = vmul.f32 -1.442695, %v5315_v60  ;;  %v12531_v47 = vunpack.c.l.bf16 %v13318_v5  ;;  %v10573_v4 = vmul.f32 -1.442695, %v5316_v10 }
 0x53a   : > { %13408 = vst [vmem:[%s15729_s24 + $0x5a8] sm:$0xff] %v12973_v20   ;;  %15306 = vrcp.f32 %v6294_v9  ;;  %v10574_v38 = vmul.f32 -1.442695, %v12527_v52  ;;  %v12532_v46 = vunpack.c.h.bf16 %v13318_v5  ;;  %v10575_v24 = vmul.f32 -1.442695, %v12528_v30 }
 0x53b   : > { %15308 = vpow2.f32 %v19524_v25  ;;  %v10576_v35 = vmul.f32 -1.442695, %v12531_v47  ;;  %v5321_v28 = vunpack.c.h.bf16 %v19578_v44  ;;  %v5322_v53 = vunpack.c.l.bf16 %v19606_v8 }
 0x53c   : > { %15310 = vpow2.f32 %v10570_v40  ;;  %v10577_v16 = vmul.f32 -1.442695, %v12532_v46 }
 0x53d   : > { %v15293_v59 = vpop.eup %15292  ;;  %15312 = vpow2.f32 %v10571_v13 }
 0x53e   : > { %v15295_v0 = vpop.eup %15294  ;;  %v7435_v63 = vrot.slane %v15293_v59, 1  ;;  %15314 = vpow2.f32 %v10572_v3 }
 0x53f   : > { %v15297_v39 = vpop.eup %15296  ;;  %v7437_v50 = vrot.slane %v15295_v0, 1  ;;  %15316 = vpow2.f32 %v10573_v4 }
 0x540   : > { %v15299_v21 = vpop.eup %15298  ;;  %v7436_v25 = vsel %vm2346_vm0, %v7433_v62, %v7435_v63  ;;  %v7438_v22 = vrot.slane %v15297_v39, 1  ;;  %15318 = vpow2.f32 %v10574_v38 }
 0x541   : > { %v15301_v11 = vpop.eup %15300  ;;  %v19603_v55 = vmax.f32 %v19550_v45, %v7436_v25  ;;  %v6295_v6 = vadd.f32 1.0, %v15299_v21  ;;  %15320 = vpow2.f32 %v10575_v24 }
 0x542   : > { %v15303_v17 = vpop.eup %15302  ;;  %v7439_v18 = vsel %vm2346_vm0, %v7437_v50, %v7438_v22  ;;  %v7440_v23 = vrot.slane %v15301_v11, 1  ;;  %15322 = vpow2.f32 %v10576_v35  ;;  %v13320_v35 = vld [vmem:[%s15665_s29 + $0x758] sm:$0xff]  }
 0x543   : > { %v15305_v26 = vpop.eup %15304  ;;  %v19610_v62 = vmax.f32 %v15295_v0, %v7439_v18  ;;  %v8094_v32 = vmax.f32 %v19548_v27, %v19603_v55  ;;  %v7442_v49 = vrot.slane %v15303_v17, 1  ;;  %15324 = vrcp.f32 %v6295_v6  ;;  %v19663_v6 = vld [vmem:[%s15665_s29 + $0x768] sm:$0xff]  }
 0x544   : > { %v15307_v45 = vpop.eup %15306  ;;  %v7441_v56 = vsel %vm2346_vm0, %v7438_v22, %v7440_v23  ;;  %v7444_v37 = vrot.slane %v15305_v26, 1  ;;  %15326 = vpow2.f32 %v10577_v16  ;;  %v19660_v22 = vld [vmem:[%s15665_s29 + $0x760] ss:$24 sps:$4 sm:$0xff]  }
 0x545   : > { %v15309_v34 = vpop.eup %15308  ;;  %v8095_v48 = vmax.f32 %v19557_v19, %v19610_v62  ;;  %vm19618_vm5 = vcmp.eq.f32.partialorder %v8094_v32, %v7436_v25  ;;  %v7443_v14 = vsel %vm2346_vm0, %v7440_v23, %v7442_v49  ;;  %v19623_v27 = vmax.f32 %v15297_v39, %v7441_v56  ;;  %v10339_v23 = vld [vmem:[%s15665_s29 + $0x764] sm:$0x1] }
 0x546   : > { %v15311_v7 = vpop.eup %15310  ;;  %v8494_v58 = vsel %vm19618_vm5, %v7436_v25, 0.0  ;;  %v19627_v54 = vmax.f32 %v15301_v11, %v7443_v14  ;;  %v7445_v61 = vsel %vm2346_vm0, %v7442_v49, %v7444_v37  ;;  %v7446_v15 = vrot.slane %v15307_v45, 1 }
 0x547   : > { %v15313_v2 = vpop.eup %15312  ;;  %vm8295_vm6 = vcmp.eq.f32.partialorder %v8095_v48, %v7439_v18  ;;  %v8096_v19 = vmax.f32 %v19559_v31, %v19623_v27  ;;  %v19632_v51 = vmax.f32 %v15303_v17, %v7445_v61  ;;  %v6296_v41 = vadd.f32 1.0, %v15309_v34 }
 0x548   : > { %v15315_v36 = vpop.eup %15314  ;;  %v8495_v43 = vsel %vm8295_vm6, %v7439_v18, 0.0  ;;  %v8097_v57 = vmax.f32 %v19567_v33, %v19627_v54  ;;  %v7447_v42 = vsel %vm2346_vm0, %v7444_v37, %v7446_v15  ;;  %v6297_v60 = vadd.f32 1.0, %v15311_v7  ;;  %v19674_v7 = vld [vmem:[%s15665_s29 + $0x770] sm:$0xff]  }
 0x549   : > { %v15317_v29 = vpop.eup %15316  ;;  %v12978_v9 = vpack.c.bf16 %v8495_v43, %v8494_v58  ;;  %vm19637_vm7 = vcmp.eq.f32.partialorder %v8096_v19, %v7441_v56  ;;  %v19641_v31 = vmax.f32 %v15305_v26, %v7447_v42  ;;  %v8098_v5 = vmax.f32 %v19572_v1, %v19632_v51  ;;  %v13319_v1 = vld [vmem:[%s15665_s29 + $0x750] sm:$0xff]  }
 0x54a   : > { %v15319_v20 = vpop.eup %15318  ;;  %vm8297_vm8 = vcmp.eq.f32.partialorder %v8097_v57, %v7443_v14  ;;  %v8496_v33 = vsel %vm19637_vm7, %v7441_v56, 0.0  ;;  %15328 = vrcp.f32 %v6296_v41  ;;  %v6298_v40 = vadd.f32 1.0, %v15313_v2 }
 0x54b   : > { %v15321_v52 = vpop.eup %15320  ;;  %13409 = vst [vmem:[%s15729_s24 + $0x5b0] sm:$0xff] %v12978_v9   ;;  %v8497_v13 = vsel %vm8297_vm8, %v7443_v14, 0.0  ;;  %v8099_v30 = vmax.f32 %v19603_v55, %v19641_v31  ;;  %vm19650_vm9 = vcmp.eq.f32.partialorder %v8098_v5, %v7445_v61  ;;  %15330 = vrcp.f32 %v6297_v60 }
 0x54c   : > { %v15323_v47 = vpop.eup %15322  ;;  %v12983_v4 = vpack.c.bf16 %v8497_v13, %v8496_v33  ;;  %v8498_v38 = vsel %vm19650_vm9, %v7445_v61, 0.0  ;;  %v6299_v46 = vadd.f32 1.0, %v15315_v36  ;;  %15332 = vrcp.f32 %v6298_v40 }
 0x54d   : > { %v15325_v59 = vpop.eup %15324  ;;  %vm8299_vm10 = vcmp.eq.f32.partialorder %v8099_v30, %v7447_v42  ;;  %v6300_v24 = vadd.f32 1.0, %v15317_v29  ;;  %v6301_v0 = vadd.f32 1.0, %v15319_v20  ;;  %v6302_v63 = vadd.f32 1.0, %v15321_v52 }
 0x54e   : > { %v15327_v39 = vpop.eup %15326  ;;  %13410 = vst [vmem:[%s15729_s24 + $0x5b8] sm:$0xff] %v12983_v4   ;;  %v8499_v50 = vsel %vm8299_vm10, %v7447_v42, 0.0  ;;  %15334 = vrcp.f32 %v6299_v46  ;;  %v6303_v21 = vadd.f32 1.0, %v15323_v47  ;;  %v12535_v25 = vunpack.c.l.bf16 %v13319_v1 }
 0x54f   : > { %v12988_v16 = vpack.c.bf16 %v8499_v50, %v8498_v38  ;;  %15336 = vrcp.f32 %v6300_v24  ;;  %v6304_v11 = vadd.f32 1.0, %v15327_v39  ;;  %v12536_v55 = vunpack.c.h.bf16 %v13319_v1 }
 0x550   : > { %15338 = vrcp.f32 %v6301_v0  ;;  %v10578_v17 = vmul.f32 -1.442695, %v5321_v28  ;;  %v12539_v18 = vunpack.c.l.bf16 %v13320_v35  ;;  %v10579_v26 = vmul.f32 -1.442695, %v5322_v53 }
 0x551   : > { %13411 = vst [vmem:[%s15729_s24 + $0x5c0] sm:$0xff] %v12988_v16   ;;  %15340 = vrcp.f32 %v6302_v63  ;;  %v12540_v32 = vunpack.c.h.bf16 %v13320_v35  ;;  %v5327_v49 = vunpack.c.l.bf16 %v19660_v22  ;;  %v10580_v45 = vmul.f32 -1.442695, %v12535_v25 }
 0x552   : > { %15342 = vrcp.f32 %v6303_v21  ;;  %v12543_v56 = vunpack.c.l.bf16 %v19663_v6  ;;  %v7448_v37 = vrot.slane %v15325_v59, 1  ;;  %v10581_v34 = vmul.f32 -1.442695, %v12536_v55 }
 0x553   : > { %15344 = vrcp.f32 %v6304_v11  ;;  %v5328_v44 = vunpack.c.l.bf16 %v10339_v23  ;;  %v10582_v48 = vmul.f32 -1.442695, %v12539_v18  ;;  %v10583_v8 = vmul.f32 -1.442695, %v12540_v32 }
 0x554   : > { %v15329_v28 = vpop.eup %15328  ;;  %15346 = vpow2.f32 %v10578_v17  ;;  %v10584_v53 = vmul.f32 -1.442695, %v5327_v49  ;;  %v12544_v15 = vunpack.c.h.bf16 %v19663_v6  ;;  %v19677_v2 = vmul.f32 -1.442695, %v12543_v56 }
 0x555   : > { %v15331_v12 = vpop.eup %15330  ;;  %v7449_v14 = vrot.slane %v15329_v28, 1  ;;  %15348 = vpow2.f32 %v10579_v26  ;;  %v10585_v36 = vmul.f32 -1.442695, %v5328_v44  ;;  %v12547_v60 = vunpack.c.l.bf16 %v19674_v7 }
 0x556   : > { %v15333_v58 = vpop.eup %15332  ;;  %v7451_v61 = vrot.slane %v15331_v12, 1  ;;  %15350 = vpow2.f32 %v10580_v45 }
 0x557   : > { %v7450_v19 = vsel %vm2346_vm0, %v7448_v37, %v7449_v14  ;;  %v7453_v41 = vrot.slane %v15333_v58, 1  ;;  %15352 = vpow2.f32 %v10581_v34 }
 0x558   : > { %v15335_v43 = vpop.eup %15334  ;;  %v7452_v57 = vsel %vm2346_vm0, %v7449_v14, %v7451_v61  ;;  %v7878_v42 = vmax.f32 %v15325_v59, %v7450_v19  ;;  %15354 = vpow2.f32 %v10582_v48 }
 0x559   : > { %v15337_v29 = vpop.eup %15336  ;;  %v19682_v9 = vmax.f32 %v15329_v28, %v7452_v57  ;;  %v7454_v10 = vsel %vm2346_vm0, %v7451_v61, %v7453_v41  ;;  %v7455_v5 = vrot.slane %v15335_v43, 1  ;;  %15356 = vpow2.f32 %v10583_v8 }
 0x55a   : > { %v15339_v20 = vpop.eup %15338  ;;  %v8100_v33 = vmax.f32 %v19610_v62, %v7878_v42  ;;  %v19686_v40 = vmax.f32 %v15331_v12, %v7454_v10  ;;  %v7457_v52 = vrot.slane %v15337_v29, 1  ;;  %15358 = vpow2.f32 %v10584_v53 }
 0x55b   : > { %v15341_v13 = vpop.eup %15340  ;;  %v8101_v30 = vmax.f32 %v19623_v27, %v19682_v9  ;;  %v7456_v3 = vsel %vm2346_vm0, %v7453_v41, %v7455_v5  ;;  %v7459_v1 = vrot.slane %v15339_v20, 1  ;;  %15360 = vpow2.f32 %v10585_v36 }
 0x55c   : > { %v15343_v47 = vpop.eup %15342  ;;  %vm8300_vm11 = vcmp.eq.f32.partialorder %v8100_v33, %v7450_v19  ;;  %v19691_v4 = vmax.f32 %v15333_v58, %v7456_v3  ;;  %v8102_v38 = vmax.f32 %v19627_v54, %v19686_v40  ;;  %v7458_v62 = vsel %vm2346_vm0, %v7455_v5, %v7457_v52 }
 0x55d   : > { %v19696_v46 = vpop.eup %15344  ;;  %vm8301_vm12 = vcmp.eq.f32.partialorder %v8101_v30, %v7452_v57  ;;  %v8500_v59 = vsel %vm8300_vm11, %v7450_v19, 0.0  ;;  %v7460_v24 = vrot.slane %v15341_v13, 1  ;;  %v19698_v0 = vmax.f32 %v15335_v43, %v7458_v62 }
 0x55e   : > { %v15347_v27 = vpop.eup %15346  ;;  %v8501_v63 = vsel %vm8301_vm12, %v7452_v57, 0.0  ;;  %v8103_v35 = vmax.f32 %v19632_v51, %v19691_v4  ;;  %vm19702_vm13 = vcmp.eq.f32.partialorder %v8102_v38, %v7454_v10  ;;  %v7462_v54 = vrot.slane %v15343_v47, 1 }
 0x55f   : > { %v15349_v50 = vpop.eup %15348  ;;  %v12993_v21 = vpack.c.bf16 %v8501_v63, %v8500_v59  ;;  %v8502_v25 = vsel %vm19702_vm13, %v7454_v10, 0.0  ;;  %v7461_v16 = vsel %vm2346_vm0, %v7459_v1, %v7460_v24  ;;  %v8104_v11 = vmax.f32 %v19641_v31, %v19698_v0  ;;  %v19749_v1 = vld [vmem:[%s15665_s29 + $0x788] sm:$0xff]  }
 0x560   : > { %v15351_v55 = vpop.eup %15350  ;;  %vm8303_vm14 = vcmp.eq.f32.partialorder %v8103_v35, %v7456_v3  ;;  %v19711_v17 = vmax.f32 %v15339_v20, %v7461_v16  ;;  %v7463_v51 = vsel %vm2346_vm0, %v7460_v24, %v7462_v54  ;;  %v7464_v18 = vrot.slane %v19696_v46, 1  ;;  %v13323_v20 = vld [vmem:[%s15665_s29 + $0x780] sm:$0xff]  }
 0x561   : > { %v15353_v23 = vpop.eup %15352  ;;  %13412 = vst [vmem:[%s15729_s24 + $0x5c8] sm:$0xff] %v12993_v21   ;;  %v8503_v26 = vsel %vm8303_vm14, %v7456_v3, 0.0  ;;  %vm19716_vm15 = vcmp.eq.f32.partialorder %v8104_v11, %v7458_v62  ;;  %v19720_v49 = vmax.f32 %v15341_v13, %v7463_v51  ;;  %v6305_v45 = vadd.f32 1.0, %v15347_v27 }
 0x562   : > { %v15355_v31 = vpop.eup %15354  ;;  %v12998_v56 = vpack.c.bf16 %v8503_v26, %v8502_v25  ;;  %v8105_v37 = vmax.f32 %v7878_v42, %v19711_v17  ;;  %v8504_v34 = vsel %vm19716_vm15, %v7458_v62, 0.0  ;;  %v7465_v44 = vsel %vm2346_vm0, %v7462_v54, %v7464_v18 }
 0x563   : > { %v15357_v28 = vpop.eup %15356  ;;  %v19728_v48 = vmax.f32 %v15343_v47, %v7465_v44  ;;  %v8106_v12 = vmax.f32 %v19682_v9, %v19720_v49  ;;  %v6306_v14 = vadd.f32 1.0, %v15349_v50  ;;  %15362 = vrcp.f32 %v6305_v45  ;;  %v10345_v9 = vld [vmem:[%s15665_s29 + $0x77c] sm:$0x1] }
 0x564   : > { %v15359_v8 = vpop.eup %15358  ;;  %13413 = vst [vmem:[%s15729_s24 + $0x5d0] sm:$0xff] %v12998_v56   ;;  %vm8305_vm1 = vcmp.eq.f32.partialorder %v8105_v37, %v7461_v16  ;;  %v6307_v53 = vadd.f32 1.0, %v15351_v55  ;;  %v6308_v58 = vadd.f32 1.0, %v15353_v23  ;;  %v6309_v61 = vadd.f32 1.0, %v15355_v31 }
 0x565   : > { %v15361_v19 = vpop.eup %15360  ;;  %v8505_v41 = vsel %vm8305_vm1, %v7461_v16, 0.0  ;;  %v8107_v36 = vmax.f32 %v19686_v40, %v19728_v48  ;;  %vm19735_vm2 = vcmp.eq.f32.partialorder %v8106_v12, %v7463_v51  ;;  %15364 = vrcp.f32 %v6306_v14  ;;  %v19763_v16 = vld [vmem:[%s15665_s29 + $0x790] ss:$24 sps:$4 sm:$0xff]  }
 0x566   : > { %v13003_v57 = vpack.c.bf16 %v8505_v41, %v8504_v34  ;;  %v8506_v42 = vsel %vm19735_vm2, %v7463_v51, 0.0  ;;  %15366 = vrcp.f32 %v6307_v53  ;;  %v6310_v29 = vadd.f32 1.0, %v15357_v28 }
 0x567   : > { %vm8307_vm3 = vcmp.eq.f32.partialorder %v8107_v36, %v7465_v44  ;;  %15368 = vrcp.f32 %v6308_v58  ;;  %v6311_v10 = vadd.f32 1.0, %v15359_v8  ;;  %v12548_v5 = vunpack.c.h.bf16 %v19674_v7 }
 0x568   : > { %13414 = vst [vmem:[%s15729_s24 + $0x5d8] sm:$0xff] %v13003_v57   ;;  %v8507_v33 = vsel %vm8307_vm3, %v7465_v44, 0.0  ;;  %15370 = vrcp.f32 %v6309_v61  ;;  %v10587_v40 = vmul.f32 -1.442695, %v12544_v15  ;;  %v5333_v52 = vunpack.c.h.bf16 %v19660_v22 }
 0x569   : > { %v13008_v13 = vpack.c.bf16 %v8507_v33, %v8506_v42  ;;  %15372 = vrcp.f32 %v6310_v29  ;;  %v6312_v30 = vadd.f32 1.0, %v15361_v19  ;;  %v5334_v3 = vunpack.c.l.bf16 %v10345_v9 }
 0x56a   : > { %15374 = vrcp.f32 %v6311_v10  ;;  %v10588_v47 = vmul.f32 -1.442695, %v12547_v60  ;;  %v12551_v38 = vunpack.c.l.bf16 %v13323_v20  ;;  %v10589_v62 = vmul.f32 -1.442695, %v12548_v5 }
 0x56b   : > { %13415 = vst [vmem:[%s15729_s24 + $0x5e0] sm:$0xff] %v13008_v13   ;;  %15376 = vpow2.f32 %v19677_v2  ;;  %v12552_v59 = vunpack.c.h.bf16 %v13323_v20  ;;  %v10590_v6 = vmul.f32 -1.442695, %v5333_v52  ;;  %v12555_v22 = vunpack.c.l.bf16 %v19749_v1  ;;  %v10351_v13 = vld [vmem:[%s15665_s29 + $0x794] sm:$0x1] }
 0x56c   : > { %15378 = vpow2.f32 %v10587_v40  ;;  %v10591_v24 = vmul.f32 -1.442695, %v5334_v3  ;;  %v10592_v63 = vmul.f32 -1.442695, %v12551_v38  ;;  %v12556_v23 = vunpack.c.h.bf16 %v19749_v1 }
 0x56d   : > { %v15363_v15 = vpop.eup %15362  ;;  %15380 = vrcp.f32 %v6312_v30  ;;  %v10593_v7 = vmul.f32 -1.442695, %v12552_v59  ;;  %v10594_v54 = vmul.f32 -1.442695, %v12555_v22  ;;  %v5339_v37 = vunpack.c.l.bf16 %v19763_v16 }
 0x56e   : > { %v7466_v27 = vrot.slane %v15363_v15, 1  ;;  %15382 = vpow2.f32 %v10588_v47  ;;  %v5345_v28 = vunpack.c.h.bf16 %v19763_v16 }
 0x56f   : > { %v15365_v35 = vpop.eup %15364  ;;  %15384 = vpow2.f32 %v10589_v62 }
 0x570   : > { %v15367_v60 = vpop.eup %15366  ;;  %v7467_v2 = vsel %vm2346_vm0, %v7464_v18, %v7466_v27  ;;  %v7468_v39 = vrot.slane %v15365_v35, 1  ;;  %15386 = vpow2.f32 %v10590_v6  ;;  %v5340_v35 = vunpack.c.l.bf16 %v10351_v13 }
 0x571   : > { %v15369_v50 = vpop.eup %15368  ;;  %v19760_v21 = vmax.f32 %v19696_v46, %v7467_v2  ;;  %v7470_v25 = vrot.slane %v15367_v60, 1  ;;  %15388 = vpow2.f32 %v10591_v24  ;;  %v10602_v16 = vmul.f32 -1.442695, %v5345_v28 }
 0x572   : > { %v15371_v11 = vpop.eup %15370  ;;  %v7469_v55 = vsel %vm2346_vm0, %v7466_v27, %v7468_v39  ;;  %v7471_v51 = vrot.slane %v15369_v50, 1  ;;  %15390 = vpow2.f32 %v10592_v63  ;;  %v13325_v63 = vld [vmem:[%s15665_s29 + $0x798] sm:$0xff]  }
 0x573   : > { %v15373_v26 = vpop.eup %15372  ;;  %v19767_v18 = vmax.f32 %v15363_v15, %v7469_v55  ;;  %v8108_v32 = vmax.f32 %v19691_v4, %v19760_v21  ;;  %v7473_v45 = vrot.slane %v15371_v11, 1  ;;  %15392 = vpow2.f32 %v10593_v7 }
 0x574   : > { %v15375_v46 = vpop.eup %15374  ;;  %v7472_v31 = vsel %vm2346_vm0, %v7470_v25, %v7471_v51  ;;  %v7475_v56 = vrot.slane %v15373_v26, 1  ;;  %15394 = vpow2.f32 %v10594_v54  ;;  %v13326_v25 = vld [vmem:[%s15665_s29 + $0x7a0] sm:$0xff]  }
 0x575   : > { %v15377_v34 = vpop.eup %15376  ;;  %v8109_v44 = vmax.f32 %v19698_v0, %v19767_v18  ;;  %vm19775_vm4 = vcmp.eq.f32.partialorder %v8108_v32, %v7467_v2  ;;  %v7474_v12 = vsel %vm2346_vm0, %v7471_v51, %v7473_v45  ;;  %v19780_v4 = vmax.f32 %v15367_v60, %v7472_v31 }
 0x576   : > { %v15379_v14 = vpop.eup %15378  ;;  %v8508_v8 = vsel %vm19775_vm4, %v7467_v2, 0.0  ;;  %v19784_v53 = vmax.f32 %v15369_v50, %v7474_v12  ;;  %v7476_v58 = vsel %vm2346_vm0, %v7473_v45, %v7475_v56  ;;  %v7477_v61 = vrot.slane %v15375_v46, 1 }
 0x577   : > { %v15381_v19 = vpop.eup %15380  ;;  %vm8309_vm5 = vcmp.eq.f32.partialorder %v8109_v44, %v7469_v55  ;;  %v8110_v0 = vmax.f32 %v19711_v17, %v19780_v4  ;;  %v19789_v41 = vmax.f32 %v15371_v11, %v7476_v58  ;;  %v6313_v36 = vadd.f32 1.0, %v15377_v34 }
 0x578   : > { %v15383_v43 = vpop.eup %15382  ;;  %v8509_v57 = vsel %vm8309_vm5, %v7469_v55, 0.0  ;;  %v8111_v42 = vmax.f32 %v19720_v49, %v19784_v53  ;;  %v7478_v29 = vsel %vm2346_vm0, %v7475_v56, %v7477_v61  ;;  %v6314_v9 = vadd.f32 1.0, %v15379_v14 }
 0x579   : > { %v15385_v10 = vpop.eup %15384  ;;  %v13013_v5 = vpack.c.bf16 %v8509_v57, %v8508_v8  ;;  %vm19794_vm6 = vcmp.eq.f32.partialorder %v8110_v0, %v7472_v31  ;;  %v19798_v17 = vmax.f32 %v15373_v26, %v7478_v29  ;;  %v8112_v33 = vmax.f32 %v19728_v48, %v19789_v41 }
 0x57a   : > { %v15387_v40 = vpop.eup %15386  ;;  %vm8311_vm7 = vcmp.eq.f32.partialorder %v8111_v42, %v7474_v12  ;;  %v8510_v52 = vsel %vm19794_vm6, %v7472_v31, 0.0  ;;  %15396 = vrcp.f32 %v6313_v36  ;;  %v7479_v49 = vrot.slane %v15381_v19, 1 }
 0x57b   : > { %v15389_v30 = vpop.eup %15388  ;;  %13416 = vst [vmem:[%s15729_s24 + $0x5e8] sm:$0xff] %v13013_v5   ;;  %v8511_v3 = vsel %vm8311_vm7, %v7474_v12, 0.0  ;;  %v8113_v47 = vmax.f32 %v19760_v21, %v19798_v17  ;;  %vm19808_vm8 = vcmp.eq.f32.partialorder %v8112_v33, %v7476_v58  ;;  %15398 = vrcp.f32 %v6314_v9 }
 0x57c   : > { %v15391_v48 = vpop.eup %15390  ;;  %v13018_v62 = vpack.c.bf16 %v8511_v3, %v8510_v52  ;;  %v8512_v59 = vsel %vm19808_vm8, %v7476_v58, 0.0  ;;  %v19815_v6 = vsel %vm2346_vm0, %v7477_v61, %v7479_v49  ;;  %v6315_v22 = vadd.f32 1.0, %v15383_v43  ;;  %v19837_v58 = vld [vmem:[%s15665_s29 + $0x7ac] sm:$0x1] }
 0x57d   : > { %v15393_v15 = vpop.eup %15392  ;;  %vm8313_vm9 = vcmp.eq.f32.partialorder %v8113_v47, %v7478_v29  ;;  %v6316_v24 = vadd.f32 1.0, %v15385_v10  ;;  %v6317_v27 = vadd.f32 1.0, %v15387_v40  ;;  %v6318_v2 = vadd.f32 1.0, %v15389_v30 }
 0x57e   : > { %v15395_v7 = vpop.eup %15394  ;;  %13417 = vst [vmem:[%s15729_s24 + $0x5f0] sm:$0xff] %v13018_v62   ;;  %v8513_v60 = vsel %vm8313_vm9, %v7478_v29, 0.0  ;;  %15400 = vrcp.f32 %v6315_v22  ;;  %v6319_v39 = vadd.f32 1.0, %v15391_v48  ;;  %v19820_v50 = vmax.f32 %v15375_v46, %v19815_v6 }
 0x57f   : > { %v13023_v54 = vpack.c.bf16 %v8513_v60, %v8512_v59  ;;  %15402 = vrcp.f32 %v6316_v24  ;;  %v6320_v21 = vadd.f32 1.0, %v15393_v15  ;;  %v6321_v11 = vadd.f32 1.0, %v15395_v7 }
 0x580   : > { %15404 = vrcp.f32 %v6317_v27  ;;  %v12559_v55 = vunpack.c.l.bf16 %v13325_v63  ;;  %v10595_v51 = vmul.f32 -1.442695, %v12556_v23  ;;  %v12560_v26 = vunpack.c.h.bf16 %v13325_v63 }
 0x581   : > { %13418 = vst [vmem:[%s15729_s24 + $0x5f8] sm:$0xff] %v13023_v54   ;;  %15406 = vrcp.f32 %v6318_v2  ;;  %v10596_v32 = vmul.f32 -1.442695, %v5339_v37  ;;  %v12563_v45 = vunpack.c.l.bf16 %v13326_v25  ;;  %v8114_v46 = vmax.f32 %v19767_v18, %v19820_v50 }
 0x582   : > { %15408 = vrcp.f32 %v6319_v39  ;;  %v10597_v31 = vmul.f32 -1.442695, %v5340_v35  ;;  %v12564_v56 = vunpack.c.h.bf16 %v13326_v25  ;;  %v10598_v44 = vmul.f32 -1.442695, %v12559_v55 }
 0x583   : > { %15410 = vrcp.f32 %v6320_v21  ;;  %v10599_v12 = vmul.f32 -1.442695, %v12560_v26  ;;  %v10600_v37 = vmul.f32 -1.442695, %v12563_v45  ;;  %vm19832_vm10 = vcmp.eq.f32.partialorder %v8114_v46, %v19815_v6 }
 0x584   : > { %v15397_v34 = vpop.eup %15396  ;;  %15412 = vrcp.f32 %v6321_v11  ;;  %v10601_v18 = vmul.f32 -1.442695, %v12564_v56  ;;  %v8514_v42 = vsel %vm19832_vm10, %v19815_v6, 0.0  ;;  %v5346_v9 = vunpack.c.l.bf16 %v19837_v58 }
 0x585   : > { %v15399_v1 = vpop.eup %15398  ;;  %v7481_v23 = vrot.slane %v15397_v34, 1  ;;  %15414 = vpow2.f32 %v10595_v51 }
 0x586   : > { %v7482_v14 = vrot.slane %v15399_v1, 1  ;;  %15416 = vpow2.f32 %v10596_v32 }
 0x587   : > { %15418 = vpow2.f32 %v10597_v31 }
 0x588   : > { %v15401_v61 = vpop.eup %15400  ;;  %v7483_v19 = vsel %vm2346_vm0, %v7481_v23, %v7482_v14  ;;  %15420 = vpow2.f32 %v10598_v44 }
 0x589   : > { %v15403_v0 = vpop.eup %15402  ;;  %v19840_v36 = vmax.f32 %v15397_v34, %v7483_v19  ;;  %v7484_v43 = vrot.slane %v15401_v61, 1  ;;  %15422 = vpow2.f32 %v10599_v12 }
 0x58a   : > { %v15405_v57 = vpop.eup %15404  ;;  %v7486_v29 = vrot.slane %v15403_v0, 1  ;;  %15424 = vpow2.f32 %v10600_v37 }
 0x58b   : > { %v15407_v10 = vpop.eup %15406  ;;  %v8115_v5 = vmax.f32 %v19780_v4, %v19840_v36  ;;  %v7485_v20 = vsel %vm2346_vm0, %v7482_v14, %v7484_v43  ;;  %v7488_v33 = vrot.slane %v15405_v57, 1  ;;  %15426 = vpow2.f32 %v10601_v18 }
 0x58c   : > { %v15409_v40 = vpop.eup %15408  ;;  %v7487_v52 = vsel %vm2346_vm0, %v7484_v43, %v7486_v29  ;;  %v7894_v49 = vmax.f32 %v15399_v1, %v7485_v20  ;;  %v7490_v13 = vrot.slane %v15407_v10, 1  ;;  %15428 = vpow2.f32 %v10602_v16 }
 0x58d   : > { %v15411_v30 = vpop.eup %15410  ;;  %vm8315_vm11 = vcmp.eq.f32.partialorder %v8115_v5, %v7483_v19  ;;  %v19850_v3 = vmax.f32 %v15401_v61, %v7487_v52  ;;  %v7489_v47 = vsel %vm2346_vm0, %v7486_v29, %v7488_v33  ;;  %v7492_v38 = vrot.slane %v15409_v40, 1 }
 0x58e   : > { %v19853_v48 = vpop.eup %15412  ;;  %v8515_v4 = vsel %vm8315_vm11, %v7483_v19, 0.0  ;;  %v8116_v62 = vmax.f32 %v19784_v53, %v7894_v49  ;;  %v7491_v59 = vsel %vm2346_vm0, %v7488_v33, %v7490_v13  ;;  %v19857_v6 = vmax.f32 %v15403_v0, %v7489_v47 }
 0x58f   : > { %v15415_v22 = vpop.eup %15414  ;;  %v13028_v15 = vpack.c.bf16 %v8515_v4, %v8514_v42  ;;  %v8117_v24 = vmax.f32 %v19789_v41, %v19850_v3  ;;  %v19861_v27 = vmax.f32 %v15405_v57, %v7491_v59  ;;  %v7493_v63 = vrot.slane %v15411_v30, 1 }
 0x590   : > { %v15417_v35 = vpop.eup %15416  ;;  %vm19863_vm12 = vcmp.eq.f32.partialorder %v8116_v62, %v7485_v20  ;;  %v8118_v53 = vmax.f32 %v19798_v17, %v19857_v6  ;;  %v7495_v60 = vrot.slane %v19853_v48, 1  ;;  %v6322_v2 = vadd.f32 1.0, %v15415_v22 }
 0x591   : > { %v15419_v39 = vpop.eup %15418  ;;  %13419 = vst [vmem:[%s15729_s24 + $0x600] sm:$0xff] %v13028_v15   ;;  %vm8317_vm13 = vcmp.eq.f32.partialorder %v8117_v24, %v7487_v52  ;;  %v8516_v41 = vsel %vm19863_vm12, %v7485_v20, 0.0  ;;  %v8119_v54 = vmax.f32 %v19820_v50, %v19861_v27  ;;  %v7494_v21 = vsel %vm2346_vm0, %v7492_v38, %v7493_v63 }
 0x592   : > { %v15421_v25 = vpop.eup %15420  ;;  %v8517_v11 = vsel %vm8317_vm13, %v7487_v52, 0.0  ;;  %vm8318_vm14 = vcmp.eq.f32.partialorder %v8118_v53, %v7489_v47  ;;  %v7496_v17 = vsel %vm2346_vm0, %v7493_v63, %v7495_v60  ;;  %v19877_v55 = vmax.f32 %v15409_v40, %v7494_v21 }
 0x593   : > { %v15423_v51 = vpop.eup %15422  ;;  %v13033_v26 = vpack.c.bf16 %v8517_v11, %v8516_v41  ;;  %vm8319_vm15 = vcmp.eq.f32.partialorder %v8119_v54, %v7491_v59  ;;  %v8518_v32 = vsel %vm8318_vm14, %v7489_v47, 0.0  ;;  %v19879_v45 = vmax.f32 %v15411_v30, %v7496_v17 }
 0x594   : > { %v15425_v46 = vpop.eup %15424  ;;  %v8519_v31 = vsel %vm8319_vm15, %v7491_v59, 0.0  ;;  %v8120_v50 = vmax.f32 %v19840_v36, %v19877_v55  ;;  %v6323_v56 = vadd.f32 1.0, %v15417_v35  ;;  %15430 = vrcp.f32 %v6322_v2 }
 0x595   : > { %v15427_v34 = vpop.eup %15426  ;;  %13420 = vst [vmem:[%s15729_s24 + $0x608] sm:$0xff] %v13033_v26   ;;  %v13038_v44 = vpack.c.bf16 %v8519_v31, %v8518_v32  ;;  %v8121_v28 = vmax.f32 %v7894_v49, %v19879_v45  ;;  %v6324_v1 = vadd.f32 1.0, %v15419_v39  ;;  %v6325_v23 = vadd.f32 1.0, %v15421_v25 }
 0x596   : > { %v15429_v12 = vpop.eup %15428  ;;  %vm8320_vm1 = vcmp.eq.f32.partialorder %v8120_v50, %v7494_v21  ;;  %15432 = vrcp.f32 %v6323_v56  ;;  %v6326_v14 = vadd.f32 1.0, %v15423_v51  ;;  %v6327_v37 = vadd.f32 1.0, %v15425_v46 }
 0x597   : > { %13421 = vst [vmem:[%s15729_s24 + $0x610] sm:$0xff] %v13038_v44   ;;  %vm8321_vm2 = vcmp.eq.f32.partialorder %v8121_v28, %v7496_v17  ;;  %v8520_v8 = vsel %vm8320_vm1, %v7494_v21, 0.0  ;;  %15434 = vrcp.f32 %v6324_v1  ;;  %v6328_v18 = vadd.f32 1.0, %v15427_v34 }
 0x598   : > { %v8521_v61 = vsel %vm8321_vm2, %v7496_v17, 0.0  ;;  %15436 = vrcp.f32 %v6325_v23  ;;  %v10603_v19 = vmul.f32 -1.442695, %v5346_v9  ;;  %v6329_v0 = vadd.f32 1.0, %v15429_v12 }
 0x599   : > { %v13043_v16 = vpack.c.bf16 %v8521_v61, %v8520_v8  ;;  %15438 = vrcp.f32 %v6326_v14 }
 0x59a   : > { %15440 = vrcp.f32 %v6327_v37 }
 0x59b   : > { %13422 = vst [vmem:[%s15729_s24 + $0x618] sm:$0xff] %v13043_v16   ;;  %15442 = vrcp.f32 %v6328_v18 }
 0x59c   : > { %15444 = vpow2.f32 %v10603_v19 }
 0x59d   : > { %15446 = vrcp.f32 %v6329_v0 }
 0x59e   : > { %v15431_v36 = vpop.eup %15430 }
 0x59f   : > { %v7497_v43 = vrot.slane %v15431_v36, 1 }
 0x5a0   : > { %v15433_v57 = vpop.eup %15432 }
 0x5a1   : > { %v15435_v42 = vpop.eup %15434  ;;  %v7498_v29 = vsel %vm2346_vm0, %v7495_v60, %v7497_v43  ;;  %v7499_v10 = vrot.slane %v15433_v57, 1 }
 0x5a2   : > { %v15437_v5 = vpop.eup %15436  ;;  %v7900_v20 = vmax.f32 %v19853_v48, %v7498_v29  ;;  %v7501_v58 = vrot.slane %v15435_v42, 1 }
 0x5a3   : > { %v15439_v9 = vpop.eup %15438  ;;  %v7500_v33 = vsel %vm2346_vm0, %v7497_v43, %v7499_v10  ;;  %v7909_v40 = vrot.slane %v15437_v5, 1 }
 0x5a4   : > { %v15441_v52 = vpop.eup %15440  ;;  %v7901_v49 = vmax.f32 %v15431_v36, %v7500_v33  ;;  %v8122_v13 = vmax.f32 %v19850_v3, %v7900_v20  ;;  %v7502_v30 = vsel %vm2346_vm0, %v7499_v10, %v7501_v58  ;;  %v7910_v47 = vrot.slane %v15439_v9, 1 }
 0x5a5   : > { %v15443_v38 = vpop.eup %15442  ;;  %v7902_v4 = vmax.f32 %v15433_v57, %v7502_v30  ;;  %v7912_v62 = vrot.slane %v15441_v52, 1 }
 0x5a6   : > { %v15445_v59 = vpop.eup %15444  ;;  %v8123_v22 = vmax.f32 %v19857_v6, %v7901_v49  ;;  %vm19895_vm3 = vcmp.eq.f32.partialorder %v8122_v13, %v7498_v29  ;;  %v7911_v15 = vsel %vm2346_vm0, %v7909_v40, %v7910_v47  ;;  %v7914_v24 = vrot.slane %v15443_v38, 1 }
 0x5a7   : > { %v8522_v63 = vsel %vm19895_vm3, %v7498_v29, 0.0  ;;  %v7925_v3 = vmax.f32 %v15437_v5, %v7911_v15  ;;  %v8124_v35 = vmax.f32 %v19861_v27, %v7902_v4  ;;  %v7913_v7 = vsel %vm2346_vm0, %v7910_v47, %v7912_v62  ;;  %v15447_v53 = vpop.eup %15446 }
 0x5a8   : > { %vm8323_vm4 = vcmp.eq.f32.partialorder %v8123_v22, %v7500_v33  ;;  %v7915_v6 = vsel %vm2346_vm0, %v7912_v62, %v7914_v24  ;;  %v7926_v60 = vmax.f32 %v15439_v9, %v7913_v7  ;;  %v6330_v2 = vadd.f32 1.0, %v15445_v59 }
 0x5a9   : > { %v8523_v39 = vsel %vm8323_vm4, %v7500_v33, 0.0  ;;  %v8125_v41 = vmax.f32 %v19877_v55, %v7925_v3  ;;  %vm8324_vm5 = vcmp.eq.f32.partialorder %v8124_v35, %v7502_v30  ;;  %v7927_v54 = vmax.f32 %v15441_v52, %v7915_v6 }
 0x5aa   : > { %v13048_v21 = vpack.c.bf16 %v8523_v39, %v8522_v63  ;;  %v8524_v25 = vsel %vm8324_vm5, %v7502_v30, 0.0  ;;  %v8126_v11 = vmax.f32 %v19879_v45, %v7926_v60  ;;  %15448 = vrcp.f32 %v6330_v2 }
 0x5ab   : > { %vm8325_vm6 = vcmp.eq.f32.partialorder %v8125_v41, %v7911_v15  ;;  %v8127_v27 = vmax.f32 %v7900_v20, %v7927_v54  ;;  %v7916_v17 = vrot.slane %v15447_v53, 1 }
 0x5ac   : > { %13423 = vst [vmem:[%s15729_s24 + $0x620] sm:$0xff] %v13048_v21   ;;  %v8525_v51 = vsel %vm8325_vm6, %v7911_v15, 0.0  ;;  %vm8326_vm7 = vcmp.eq.f32.partialorder %v8126_v11, %v7913_v7 }
 0x5ad   : > { %v13053_v26 = vpack.c.bf16 %v8525_v51, %v8524_v25  ;;  %vm8327_vm8 = vcmp.eq.f32.partialorder %v8127_v27, %v7915_v6  ;;  %v8526_v55 = vsel %vm8326_vm7, %v7913_v7, 0.0  ;;  %v7917_v32 = vsel %vm2346_vm0, %v7914_v24, %v7916_v17 }
 0x5ae   : > { %v8527_v46 = vsel %vm8327_vm8, %v7915_v6, 0.0  ;;  %v7928_v50 = vmax.f32 %v15443_v38, %v7917_v32 }
 0x5af   : > { %13424 = vst [vmem:[%s15729_s24 + $0x628] sm:$0xff] %v13053_v26   ;;  %v13058_v31 = vpack.c.bf16 %v8527_v46, %v8526_v55 }
 0x5b0   : > { %v8128_v56 = vmax.f32 %v7901_v49, %v7928_v50 }
 0x5b1   : > { %13425 = vst [vmem:[%s15729_s24 + $0x630] sm:$0xff] %v13058_v31  }
 0x5b2   : > { %vm8328_vm9 = vcmp.eq.f32.partialorder %v8128_v56, %v7917_v32 }
 0x5b3   : > { %v8528_v23 = vsel %vm8328_vm9, %v7917_v32, 0.0 }
 0x5b4   : > { %v15449_v45 = vpop.eup %15448 }
 0x5b5   : > { %v7918_v34 = vrot.slane %v15449_v45, 1 }
 0x5b7   : > { %v7919_v44 = vsel %vm2346_vm0, %v7916_v17, %v7918_v34 }
 0x5b8   : > { %v7929_v28 = vmax.f32 %v15447_v53, %v7919_v44 }
 0x5ba   : > { %v8129_v1 = vmax.f32 %v7902_v4, %v7929_v28 }
 0x5bc   : > { %vm8329_vm10 = vcmp.eq.f32.partialorder %v8129_v1, %v7919_v44 }
 0x5bd   : > { %v8529_v12 = vsel %vm8329_vm10, %v7919_v44, 0.0 }
 0x5be   : > { %v13063_v14 = vpack.c.bf16 %v8529_v12, %v8528_v23 }
 0x5c0   : > { %13426 = vst [vmem:[%s15729_s24 + $0x638] sm:$0xff] %v13063_v14  }
 0x5c1   : > { %15493 = shalt.err (!%p15490_p1)
}
 0x5c2   : > { %s15494_s13 = scalar_lea.hbm %s19917_s2, 25600  ;;  %s15498_s20 = scalar_lea.hbm %s19964_s1, 128000 }
 0x5c3   : > { %p15495_p3 = scmp.ne.s32.totalorder %s19917_s2, %s15494_s13  ;;  %p15499_p0 = scmp.lt.u32.totalorder %s19917_s2, %s19964_s1 }
 0x5c4   : > { %p15500_p2 = scmp.lt.u32.totalorder %s15498_s20, %s15494_s13  ;;  %p15502_p6 = scmp.lt.u32.totalorder %s15494_s13, %s19917_s2 }
 0x5c5   : > { %p15496_p4 = pnand %p15495_p3, %p20214_p10 }
 0x5c6   : > { %p15501_p7 = por %p15500_p2, %p15499_p0 }
 0x5c7   : > { %p15497_p5 = pneg %p15496_p4 }
 0x5c8   : > { %p15503_p11 = por %p15502_p6, %p15501_p7 }
 0x5ca   : > { %p15504_p12 = pnand %p15503_p11, %p15497_p5 }
 0x5cc   : > { %15507 = shalt.err (!%p15504_p12)
}
 0x5cd   : > { %s15552_s26 = smov 64   ;;  %s15553_s29 = smov 4  }
 0x5ce   : > { %13434 = dma.vmem_to_hbm [thread:$0]  (%p20214_p10), %s19919_s27, 25600, %s19917_s2, %s9572_s3, %s15552_s26, %s15552_s26, %s15553_s29  }
 0x5cf PF: > { %p13445_p8 = scmp.ge.s32.totalorder %s15546_s9, 2  ;;  %s9601_s16 = sand.u32 1, %s15534_s6  }
 0x5d0   : > { %p20215_p9 = scmp.ne.s32.totalorder %s19968_s18, 0  ;;  %s9602_s24 = scalar_lea.sflag [#allocation4], %s9601_s16 }
 0x5d2   : > { %p13441_p13 = pnand %p13445_p8, %p20215_p9 }
 0x5d4   : > { %15529 = dma.done.wait (!%p13441_p13), %s9602_s24, 25600  }
 0x5d5   : > { %15531 = vsyncadd (!%p13441_p13), %s9602_s24, 4294941696  ;;  %p14_p1 = scmp.ge.s32.totalorder %s15589_s12, 7   ;;  %s20216_s6 = smov %s15538_s7 }
 0x5d6   : > { %s20217_s7 = smov %s15542_s8  ;;  %s20218_s8 = smov %s15601_s15 }
 0x5d7   : > { %s20219_s9 = smov %s15589_s12  ;;  %16 = sbr.rel (!%p14_p1) target bundleno = 5 (0x5), region = 71 }
 0x5de   :  { %9607 = vsyncpa [#allocation3], 1 }
 0x5df   :  { %9609 = vsyncpa [#allocation3 + $0x1], 1 }
 0x5e0   :  { %9610 = vsyncpa [#allocation4], 1 }
 0x5e1   :  { %9612 = vsyncpa [#allocation4 + $0x1], 1 }

</bundles_post_ra>
